<compile_context>
chip_gen: v5e
topology: v5e:2x2
jax: 0.10.0
libtpu: 0.0.40
codegen_flags: <defaults>
</compile_context>

<pallas_src>
import jax
import jax.numpy as jnp
from jax.experimental import pallas as pl
from jax.experimental.pallas import tpu as pltpu

K = 5    # kernel_size
PAD = 1  # padding


def _conv5x5_kernel(x_ref, w_ref, b_ref, o_ref, xpad_ref):
    """Direct 5x5 conv for tiny channel counts, entirely on the VPU.

    x_ref:    (B_TILE, C_in, H, W)            VMEM  batch tile (unpadded)
    w_ref:    (C_out*C_in*K*K,)               SMEM  flat conv weights (OIHW)
    b_ref:    (C_out,)                        SMEM  bias
    o_ref:    (B_TILE, C_out, Ho, Wo)         VMEM  Ho = H-2, Wo = W-2
    xpad_ref: (C_in, H+2, B_TILE*(W+2))       VMEM  lane-packed padded planes
    """
    b_tile, c_in, h, w = x_ref.shape
    _, c_out, ho, wo = o_ref.shape
    wp = xpad_ref.shape[-1]          # b_tile * (w + 2*PAD)
    wpi = w + 2 * PAD                # padded width of one image's packed slot
    wvalid = wp - (K - 1)            # valid window-start columns in packed plane

    # --- Fused zero-padding: zero ONLY the halo strips, not the whole plane.
    zrow = jnp.zeros((c_in, PAD, wp), dtype=jnp.float32)
    xpad_ref[:, pl.ds(0, PAD), :] = zrow
    xpad_ref[:, pl.ds(h + PAD, PAD), :] = zrow
    zcol = jnp.zeros((c_in, h + 2 * PAD, PAD), dtype=jnp.float32)
    for b in range(b_tile):
        base = b * wpi
        xpad_ref[:, :, pl.ds(base, PAD)] = zcol              # left halo col
        xpad_ref[:, :, pl.ds(base + PAD + w, PAD)] = zcol    # right halo col

    # --- Copy each image's interior into its packed slot.
    for b in range(b_tile):
        base = b * wpi
        xpad_ref[:, pl.ds(PAD, h), pl.ds(base + PAD, w)] = x_ref[b]

    # --- 3*5*5*3 = 225 scalar*slab FMAs on the VPU (weights from SMEM).
    # kw is OUTERMOST of kh/co: one lane shift per (ci, kw), reused 15x.
    accs = [jnp.zeros((ho, wvalid), dtype=jnp.float32) for _ in range(c_out)]
    for ci in range(c_in):
        x_ci = xpad_ref[ci]                          # (h+2, wp), loaded once
        for kw in range(K):
            xs = x_ci[:, kw:kw + wvalid]             # single lane shift
            for kh in range(K):
                slab = xs[kh:kh + ho, :]             # sublane window, reused over co
                for co in range(c_out):
                    w_s = w_ref[((co * c_in + ci) * K + kh) * K + kw]
                    accs[co] = accs[co] + w_s * slab

    # --- Bias add + per-image unpack of the lane-packed accumulator.
    for co in range(c_out):
        out_co = accs[co] + b_ref[co]
        for b in range(b_tile):
            base = b * wpi
            o_ref[b, co, :, :] = out_co[:, base:base + wo].astype(o_ref.dtype)


def _pick_batch_tile(n, w):
    """Images packed side-by-side along the lane axis per grid step.

    Largest divisor b of n with:
      * n // b >= 2 when n >= 2 (keep both v7x TensorCores busy), and
      * b * (w + 2*PAD) <= 256 lanes (bounded vreg pressure for the three
        f32 accumulators + the shifted slab).
    """
    padded_w = w + 2 * PAD
    max_b = n if n < 2 else n // 2
    best = 1
    for b in range(1, max_b + 1):
        if n % b == 0 and b * padded_w <= 256:
            best = b
    return best


def conv5x5_pad1(x_nchw, weight, bias):
    """Equivalent of nn.Conv2d(3, 3, kernel_size=5, padding=1).

    x_nchw: (N, C_in, H, W) float32
    weight: (C_out, C_in, 5, 5) float32
    bias:   (C_out,) float32
    returns (N, C_out, H-2, W-2) float32
    """
    n, c_in, h, w = x_nchw.shape
    c_out = weight.shape[0]
    ho = h + 2 * PAD - K + 1
    wo = w + 2 * PAD - K + 1

    b_tile = _pick_batch_tile(n, w)
    wp = b_tile * (w + 2 * PAD)

    w_flat = weight.astype(jnp.float32).reshape(-1)   # (C_out*C_in*K*K,) -> SMEM
    b_vec = bias.astype(jnp.float32)                  # (C_out,)          -> SMEM

    return pl.pallas_call(
        _conv5x5_kernel,
        out_shape=jax.ShapeDtypeStruct((n, c_out, ho, wo), jnp.float32),
        grid=(n // b_tile,),
        in_specs=[
            pl.BlockSpec((b_tile, c_in, h, w), lambda i: (i, 0, 0, 0)),
            pl.BlockSpec(memory_space=pltpu.MemorySpace.SMEM),
            pl.BlockSpec(memory_space=pltpu.MemorySpace.SMEM),
        ],
        out_specs=pl.BlockSpec((b_tile, c_out, ho, wo), lambda i: (i, 0, 0, 0)),
        scratch_shapes=[
            pltpu.VMEM((c_in, h + 2 * PAD, wp), jnp.float32),
        ],
        compiler_params=pltpu.CompilerParams(
            dimension_semantics=("parallel",),   # batch-tile programs split across TCs
        ),
    )(x_nchw, w_flat, b_vec)


if __name__ == "__main__":
    key = jax.random.PRNGKey(0)
    k_x, k_w, k_b = jax.random.split(key, 3)

    # Small shapes consistent with the module (Conv2d expects C_in = 3).
    # N=8 exercises the lane-packed batch tiling (B_TILE=4, grid=2).
    N, C_IN, H, W = 8, 3, 16, 16
    C_OUT = 3

    x = jax.random.normal(k_x, (N, C_IN, H, W), dtype=jnp.float32)

    # Deterministic PyTorch-style init: uniform(-1/sqrt(fan_in), 1/sqrt(fan_in)).
    fan_in = C_IN * K * K
    bound = 1.0 / (fan_in ** 0.5)
    weight = jax.random.uniform(k_w, (C_OUT, C_IN, K, K), jnp.float32, -bound, bound)
    bias = jax.random.uniform(k_b, (C_OUT,), jnp.float32, -bound, bound)

    out = conv5x5_pad1(x, weight, bias)
    out = jax.block_until_ready(out)

    # Reference: plain JAX conv (same semantics as the PyTorch module).
    ref = jax.lax.conv_general_dilated(
        x, weight, window_strides=(1, 1), padding=((PAD, PAD), (PAD, PAD)),
        dimension_numbers=("NCHW", "OIHW", "NCHW"),
        precision=jax.lax.Precision.HIGHEST,
    ) + bias.reshape(1, C_OUT, 1, 1)

    assert out.shape == (N, C_OUT, H - 2, W - 2), out.shape
    max_err = float(jnp.max(jnp.abs(out - ref)))
    assert max_err < 1e-3, max_err

    print("KERNEL_OK")
</pallas_src>

<mosaic_0001>
module attributes {stable_mosaic.version = 11 : i64} {
  func.func @_conv5x5_kernel(%arg0: i32, %arg1: memref<4x3x16x16xf32, #tpu.memory_space<vmem>>, %arg2: memref<225xf32, #tpu.memory_space<smem>>, %arg3: memref<3xf32, #tpu.memory_space<smem>>, %arg4: memref<4x3x14x14xf32, #tpu.memory_space<vmem>>, %arg5: memref<3x18x72xf32, #tpu.memory_space<vmem>>) attributes {dimension_semantics = [#tpu.dimension_semantics<parallel>], iteration_bounds = array<i64: 2>, scalar_prefetch = 0 : i64, scratch_operands = 1 : i64, tpu.core_type = #tpu.core_type<tc>, window_params = [{transform_indices = @transform_0, window_bounds = array<i64: 4, 3, 16, 16>}, {transform_indices = @transform_1, window_bounds = array<i64: 225>}, {transform_indices = @transform_2, window_bounds = array<i64: 3>}, {transform_indices = @transform_3, window_bounds = array<i64: 4, 3, 14, 14>}]} {
    %cst = arith.constant 0.000000e+00 : f32
    %0 = vector.broadcast %cst : f32 to vector<3x1x72xf32>
    %c0 = arith.constant 0 : index
    %c0_0 = arith.constant 0 : index
    %c0_1 = arith.constant 0 : index
    %1 = vector.load %arg5[%c0, %c0_0, %c0_1] : memref<3x18x72xf32, #tpu.memory_space<vmem>>, vector<3x1x72xf32>
    tpu.vector_store %arg5[%c0, %c0_0, %c0_1], %0 {strides = array<i32>} : memref<3x18x72xf32, #tpu.memory_space<vmem>>, vector<3x1x72xf32>,
    %c0_2 = arith.constant 0 : index
    %c17 = arith.constant 17 : index
    %c0_3 = arith.constant 0 : index
    %2 = vector.load %arg5[%c0_2, %c17, %c0_3] : memref<3x18x72xf32, #tpu.memory_space<vmem>>, vector<3x1x72xf32>
    tpu.vector_store %arg5[%c0_2, %c17, %c0_3], %0 {strides = array<i32>} : memref<3x18x72xf32, #tpu.memory_space<vmem>>, vector<3x1x72xf32>,
    %cst_4 = arith.constant 0.000000e+00 : f32
    %3 = vector.broadcast %cst_4 : f32 to vector<3x18x1xf32>
    %c0_5 = arith.constant 0 : index
    %c0_6 = arith.constant 0 : index
    %c0_7 = arith.constant 0 : index
    %4 = vector.load %arg5[%c0_5, %c0_6, %c0_7] : memref<3x18x72xf32, #tpu.memory_space<vmem>>, vector<3x18x1xf32>
    tpu.vector_store %arg5[%c0_5, %c0_6, %c0_7], %3 {strides = array<i32>} : memref<3x18x72xf32, #tpu.memory_space<vmem>>, vector<3x18x1xf32>,
    %c0_8 = arith.constant 0 : index
    %c0_9 = arith.constant 0 : index
    %c17_10 = arith.constant 17 : index
    %5 = vector.load %arg5[%c0_8, %c0_9, %c17_10] : memref<3x18x72xf32, #tpu.memory_space<vmem>>, vector<3x18x1xf32>
    tpu.vector_store %arg5[%c0_8, %c0_9, %c17_10], %3 {strides = array<i32>} : memref<3x18x72xf32, #tpu.memory_space<vmem>>, vector<3x18x1xf32>,
    %c0_11 = arith.constant 0 : index
    %c0_12 = arith.constant 0 : index
    %c18 = arith.constant 18 : index
    %6 = vector.load %arg5[%c0_11, %c0_12, %c18] : memref<3x18x72xf32, #tpu.memory_space<vmem>>, vector<3x18x1xf32>
    tpu.vector_store %arg5[%c0_11, %c0_12, %c18], %3 {strides = array<i32>} : memref<3x18x72xf32, #tpu.memory_space<vmem>>, vector<3x18x1xf32>,
    %c0_13 = arith.constant 0 : index
    %c0_14 = arith.constant 0 : index
    %c35 = arith.constant 35 : index
    %7 = vector.load %arg5[%c0_13, %c0_14, %c35] : memref<3x18x72xf32, #tpu.memory_space<vmem>>, vector<3x18x1xf32>
    tpu.vector_store %arg5[%c0_13, %c0_14, %c35], %3 {strides = array<i32>} : memref<3x18x72xf32, #tpu.memory_space<vmem>>, vector<3x18x1xf32>,
    %c0_15 = arith.constant 0 : index
    %c0_16 = arith.constant 0 : index
    %c36 = arith.constant 36 : index
    %8 = vector.load %arg5[%c0_15, %c0_16, %c36] : memref<3x18x72xf32, #tpu.memory_space<vmem>>, vector<3x18x1xf32>
    tpu.vector_store %arg5[%c0_15, %c0_16, %c36], %3 {strides = array<i32>} : memref<3x18x72xf32, #tpu.memory_space<vmem>>, vector<3x18x1xf32>,
    %c0_17 = arith.constant 0 : index
    %c0_18 = arith.constant 0 : index
    %c53 = arith.constant 53 : index
    %9 = vector.load %arg5[%c0_17, %c0_18, %c53] : memref<3x18x72xf32, #tpu.memory_space<vmem>>, vector<3x18x1xf32>
    tpu.vector_store %arg5[%c0_17, %c0_18, %c53], %3 {strides = array<i32>} : memref<3x18x72xf32, #tpu.memory_space<vmem>>, vector<3x18x1xf32>,
    %c0_19 = arith.constant 0 : index
    %c0_20 = arith.constant 0 : index
    %c54 = arith.constant 54 : index
    %10 = vector.load %arg5[%c0_19, %c0_20, %c54] : memref<3x18x72xf32, #tpu.memory_space<vmem>>, vector<3x18x1xf32>
    tpu.vector_store %arg5[%c0_19, %c0_20, %c54], %3 {strides = array<i32>} : memref<3x18x72xf32, #tpu.memory_space<vmem>>, vector<3x18x1xf32>,
    %c0_21 = arith.constant 0 : index
    %c0_22 = arith.constant 0 : index
    %c71 = arith.constant 71 : index
    %11 = vector.load %arg5[%c0_21, %c0_22, %c71] : memref<3x18x72xf32, #tpu.memory_space<vmem>>, vector<3x18x1xf32>
    tpu.vector_store %arg5[%c0_21, %c0_22, %c71], %3 {strides = array<i32>} : memref<3x18x72xf32, #tpu.memory_space<vmem>>, vector<3x18x1xf32>,
    %c0_23 = arith.constant 0 : index
    %c0_24 = arith.constant 0 : index
    %c0_25 = arith.constant 0 : index
    %c0_26 = arith.constant 0 : index
    %12 = vector.load %arg1[%c0_23, %c0_24, %c0_25, %c0_26] : memref<4x3x16x16xf32, #tpu.memory_space<vmem>>, vector<1x3x16x16xf32>
    %13 = vector.shape_cast %12 : vector<1x3x16x16xf32> to vector<3x16x16xf32>
    %c0_27 = arith.constant 0 : index
    %c1 = arith.constant 1 : index
    %c1_28 = arith.constant 1 : index
    %14 = vector.load %arg5[%c0_27, %c1, %c1_28] : memref<3x18x72xf32, #tpu.memory_space<vmem>>, vector<3x16x16xf32>
    tpu.vector_store %arg5[%c0_27, %c1, %c1_28], %13 {strides = array<i32>} : memref<3x18x72xf32, #tpu.memory_space<vmem>>, vector<3x16x16xf32>,
    %c1_29 = arith.constant 1 : index
    %c0_30 = arith.constant 0 : index
    %c0_31 = arith.constant 0 : index
    %c0_32 = arith.constant 0 : index
    %15 = vector.load %arg1[%c1_29, %c0_30, %c0_31, %c0_32] : memref<4x3x16x16xf32, #tpu.memory_space<vmem>>, vector<1x3x16x16xf32>
    %16 = vector.shape_cast %15 : vector<1x3x16x16xf32> to vector<3x16x16xf32>
    %c0_33 = arith.constant 0 : index
    %c1_34 = arith.constant 1 : index
    %c19 = arith.constant 19 : index
    %17 = vector.load %arg5[%c0_33, %c1_34, %c19] : memref<3x18x72xf32, #tpu.memory_space<vmem>>, vector<3x16x16xf32>
    tpu.vector_store %arg5[%c0_33, %c1_34, %c19], %16 {strides = array<i32>} : memref<3x18x72xf32, #tpu.memory_space<vmem>>, vector<3x16x16xf32>,
    %c2 = arith.constant 2 : index
    %c0_35 = arith.constant 0 : index
    %c0_36 = arith.constant 0 : index
    %c0_37 = arith.constant 0 : index
    %18 = vector.load %arg1[%c2, %c0_35, %c0_36, %c0_37] : memref<4x3x16x16xf32, #tpu.memory_space<vmem>>, vector<1x3x16x16xf32>
    %19 = vector.shape_cast %18 : vector<1x3x16x16xf32> to vector<3x16x16xf32>
    %c0_38 = arith.constant 0 : index
    %c1_39 = arith.constant 1 : index
    %c37 = arith.constant 37 : index
    %20 = vector.load %arg5[%c0_38, %c1_39, %c37] : memref<3x18x72xf32, #tpu.memory_space<vmem>>, vector<3x16x16xf32>
    tpu.vector_store %arg5[%c0_38, %c1_39, %c37], %19 {strides = array<i32>} : memref<3x18x72xf32, #tpu.memory_space<vmem>>, vector<3x16x16xf32>,
    %c3 = arith.constant 3 : index
    %c0_40 = arith.constant 0 : index
    %c0_41 = arith.constant 0 : index
    %c0_42 = arith.constant 0 : index
    %21 = vector.load %arg1[%c3, %c0_40, %c0_41, %c0_42] : memref<4x3x16x16xf32, #tpu.memory_space<vmem>>, vector<1x3x16x16xf32>
    %22 = vector.shape_cast %21 : vector<1x3x16x16xf32> to vector<3x16x16xf32>
    %c0_43 = arith.constant 0 : index
    %c1_44 = arith.constant 1 : index
    %c55 = arith.constant 55 : index
    %23 = vector.load %arg5[%c0_43, %c1_44, %c55] : memref<3x18x72xf32, #tpu.memory_space<vmem>>, vector<3x16x16xf32>
    tpu.vector_store %arg5[%c0_43, %c1_44, %c55], %22 {strides = array<i32>} : memref<3x18x72xf32, #tpu.memory_space<vmem>>, vector<3x16x16xf32>,
    %cst_45 = arith.constant 0.000000e+00 : f32
    %24 = vector.broadcast %cst_45 : f32 to vector<14x68xf32>
    %cst_46 = arith.constant 0.000000e+00 : f32
    %25 = vector.broadcast %cst_46 : f32 to vector<14x68xf32>
    %cst_47 = arith.constant 0.000000e+00 : f32
    %26 = vector.broadcast %cst_47 : f32 to vector<14x68xf32>
    %c0_48 = arith.constant 0 : index
    %c0_49 = arith.constant 0 : index
    %c0_50 = arith.constant 0 : index
    %27 = vector.load %arg5[%c0_48, %c0_49, %c0_50] : memref<3x18x72xf32, #tpu.memory_space<vmem>>, vector<1x18x72xf32>
    %28 = vector.shape_cast %27 : vector<1x18x72xf32> to vector<18x72xf32>
    %29 = vector.extract_strided_slice %28 {offsets = [0, 0], sizes = [18, 68], strides = [1, 1]} : vector<18x72xf32> to vector<18x68xf32>
    %30 = vector.extract_strided_slice %29 {offsets = [0, 0], sizes = [14, 68], strides = [1, 1]} : vector<18x68xf32> to vector<14x68xf32>
    %c0_51 = arith.constant 0 : index
    %31 = memref.load %arg2[%c0_51] : memref<225xf32, #tpu.memory_space<smem>>
    %32 = vector.broadcast %31 : f32 to vector<14x68xf32>
    %33 = arith.mulf %32, %30 : vector<14x68xf32>
    %34 = arith.addf %24, %33 : vector<14x68xf32>
    %c75 = arith.constant 75 : index
    %35 = memref.load %arg2[%c75] : memref<225xf32, #tpu.memory_space<smem>>
    %36 = vector.broadcast %35 : f32 to vector<14x68xf32>
    %37 = arith.mulf %36, %30 : vector<14x68xf32>
    %38 = arith.addf %25, %37 : vector<14x68xf32>
    %c150 = arith.constant 150 : index
    %39 = memref.load %arg2[%c150] : memref<225xf32, #tpu.memory_space<smem>>
    %40 = vector.broadcast %39 : f32 to vector<14x68xf32>
    %41 = arith.mulf %40, %30 : vector<14x68xf32>
    %42 = arith.addf %26, %41 : vector<14x68xf32>
    %43 = vector.extract_strided_slice %29 {offsets = [1, 0], sizes = [14, 68], strides = [1, 1]} : vector<18x68xf32> to vector<14x68xf32>
    %c5 = arith.constant 5 : index
    %44 = memref.load %arg2[%c5] : memref<225xf32, #tpu.memory_space<smem>>
    %45 = vector.broadcast %44 : f32 to vector<14x68xf32>
    %46 = arith.mulf %45, %43 : vector<14x68xf32>
    %47 = arith.addf %34, %46 : vector<14x68xf32>
    %c80 = arith.constant 80 : index
    %48 = memref.load %arg2[%c80] : memref<225xf32, #tpu.memory_space<smem>>
    %49 = vector.broadcast %48 : f32 to vector<14x68xf32>
    %50 = arith.mulf %49, %43 : vector<14x68xf32>
    %51 = arith.addf %38, %50 : vector<14x68xf32>
    %c155 = arith.constant 155 : index
    %52 = memref.load %arg2[%c155] : memref<225xf32, #tpu.memory_space<smem>>
    %53 = vector.broadcast %52 : f32 to vector<14x68xf32>
    %54 = arith.mulf %53, %43 : vector<14x68xf32>
    %55 = arith.addf %42, %54 : vector<14x68xf32>
    %56 = vector.extract_strided_slice %29 {offsets = [2, 0], sizes = [14, 68], strides = [1, 1]} : vector<18x68xf32> to vector<14x68xf32>
    %c10 = arith.constant 10 : index
    %57 = memref.load %arg2[%c10] : memref<225xf32, #tpu.memory_space<smem>>
    %58 = vector.broadcast %57 : f32 to vector<14x68xf32>
    %59 = arith.mulf %58, %56 : vector<14x68xf32>
    %60 = arith.addf %47, %59 : vector<14x68xf32>
    %c85 = arith.constant 85 : index
    %61 = memref.load %arg2[%c85] : memref<225xf32, #tpu.memory_space<smem>>
    %62 = vector.broadcast %61 : f32 to vector<14x68xf32>
    %63 = arith.mulf %62, %56 : vector<14x68xf32>
    %64 = arith.addf %51, %63 : vector<14x68xf32>
    %c160 = arith.constant 160 : index
    %65 = memref.load %arg2[%c160] : memref<225xf32, #tpu.memory_space<smem>>
    %66 = vector.broadcast %65 : f32 to vector<14x68xf32>
    %67 = arith.mulf %66, %56 : vector<14x68xf32>
    %68 = arith.addf %55, %67 : vector<14x68xf32>
    %69 = vector.extract_strided_slice %29 {offsets = [3, 0], sizes = [14, 68], strides = [1, 1]} : vector<18x68xf32> to vector<14x68xf32>
    %c15 = arith.constant 15 : index
    %70 = memref.load %arg2[%c15] : memref<225xf32, #tpu.memory_space<smem>>
    %71 = vector.broadcast %70 : f32 to vector<14x68xf32>
    %72 = arith.mulf %71, %69 : vector<14x68xf32>
    %73 = arith.addf %60, %72 : vector<14x68xf32>
    %c90 = arith.constant 90 : index
    %74 = memref.load %arg2[%c90] : memref<225xf32, #tpu.memory_space<smem>>
    %75 = vector.broadcast %74 : f32 to vector<14x68xf32>
    %76 = arith.mulf %75, %69 : vector<14x68xf32>
    %77 = arith.addf %64, %76 : vector<14x68xf32>
    %c165 = arith.constant 165 : index
    %78 = memref.load %arg2[%c165] : memref<225xf32, #tpu.memory_space<smem>>
    %79 = vector.broadcast %78 : f32 to vector<14x68xf32>
    %80 = arith.mulf %79, %69 : vector<14x68xf32>
    %81 = arith.addf %68, %80 : vector<14x68xf32>
    %82 = vector.extract_strided_slice %29 {offsets = [4, 0], sizes = [14, 68], strides = [1, 1]} : vector<18x68xf32> to vector<14x68xf32>
    %c20 = arith.constant 20 : index
    %83 = memref.load %arg2[%c20] : memref<225xf32, #tpu.memory_space<smem>>
    %84 = vector.broadcast %83 : f32 to vector<14x68xf32>
    %85 = arith.mulf %84, %82 : vector<14x68xf32>
    %86 = arith.addf %73, %85 : vector<14x68xf32>
    %c95 = arith.constant 95 : index
    %87 = memref.load %arg2[%c95] : memref<225xf32, #tpu.memory_space<smem>>
    %88 = vector.broadcast %87 : f32 to vector<14x68xf32>
    %89 = arith.mulf %88, %82 : vector<14x68xf32>
    %90 = arith.addf %77, %89 : vector<14x68xf32>
    %c170 = arith.constant 170 : index
    %91 = memref.load %arg2[%c170] : memref<225xf32, #tpu.memory_space<smem>>
    %92 = vector.broadcast %91 : f32 to vector<14x68xf32>
    %93 = arith.mulf %92, %82 : vector<14x68xf32>
    %94 = arith.addf %81, %93 : vector<14x68xf32>
    %95 = vector.extract_strided_slice %28 {offsets = [0, 1], sizes = [18, 68], strides = [1, 1]} : vector<18x72xf32> to vector<18x68xf32>
    %96 = vector.extract_strided_slice %95 {offsets = [0, 0], sizes = [14, 68], strides = [1, 1]} : vector<18x68xf32> to vector<14x68xf32>
    %c1_52 = arith.constant 1 : index
    %97 = memref.load %arg2[%c1_52] : memref<225xf32, #tpu.memory_space<smem>>
    %98 = vector.broadcast %97 : f32 to vector<14x68xf32>
    %99 = arith.mulf %98, %96 : vector<14x68xf32>
    %100 = arith.addf %86, %99 : vector<14x68xf32>
    %c76 = arith.constant 76 : index
    %101 = memref.load %arg2[%c76] : memref<225xf32, #tpu.memory_space<smem>>
    %102 = vector.broadcast %101 : f32 to vector<14x68xf32>
    %103 = arith.mulf %102, %96 : vector<14x68xf32>
    %104 = arith.addf %90, %103 : vector<14x68xf32>
    %c151 = arith.constant 151 : index
    %105 = memref.load %arg2[%c151] : memref<225xf32, #tpu.memory_space<smem>>
    %106 = vector.broadcast %105 : f32 to vector<14x68xf32>
    %107 = arith.mulf %106, %96 : vector<14x68xf32>
    %108 = arith.addf %94, %107 : vector<14x68xf32>
    %109 = vector.extract_strided_slice %95 {offsets = [1, 0], sizes = [14, 68], strides = [1, 1]} : vector<18x68xf32> to vector<14x68xf32>
    %c6 = arith.constant 6 : index
    %110 = memref.load %arg2[%c6] : memref<225xf32, #tpu.memory_space<smem>>
    %111 = vector.broadcast %110 : f32 to vector<14x68xf32>
    %112 = arith.mulf %111, %109 : vector<14x68xf32>
    %113 = arith.addf %100, %112 : vector<14x68xf32>
    %c81 = arith.constant 81 : index
    %114 = memref.load %arg2[%c81] : memref<225xf32, #tpu.memory_space<smem>>
    %115 = vector.broadcast %114 : f32 to vector<14x68xf32>
    %116 = arith.mulf %115, %109 : vector<14x68xf32>
    %117 = arith.addf %104, %116 : vector<14x68xf32>
    %c156 = arith.constant 156 : index
    %118 = memref.load %arg2[%c156] : memref<225xf32, #tpu.memory_space<smem>>
    %119 = vector.broadcast %118 : f32 to vector<14x68xf32>
    %120 = arith.mulf %119, %109 : vector<14x68xf32>
    %121 = arith.addf %108, %120 : vector<14x68xf32>
    %122 = vector.extract_strided_slice %95 {offsets = [2, 0], sizes = [14, 68], strides = [1, 1]} : vector<18x68xf32> to vector<14x68xf32>
    %c11 = arith.constant 11 : index
    %123 = memref.load %arg2[%c11] : memref<225xf32, #tpu.memory_space<smem>>
    %124 = vector.broadcast %123 : f32 to vector<14x68xf32>
    %125 = arith.mulf %124, %122 : vector<14x68xf32>
    %126 = arith.addf %113, %125 : vector<14x68xf32>
    %c86 = arith.constant 86 : index
    %127 = memref.load %arg2[%c86] : memref<225xf32, #tpu.memory_space<smem>>
    %128 = vector.broadcast %127 : f32 to vector<14x68xf32>
    %129 = arith.mulf %128, %122 : vector<14x68xf32>
    %130 = arith.addf %117, %129 : vector<14x68xf32>
    %c161 = arith.constant 161 : index
    %131 = memref.load %arg2[%c161] : memref<225xf32, #tpu.memory_space<smem>>
    %132 = vector.broadcast %131 : f32 to vector<14x68xf32>
    %133 = arith.mulf %132, %122 : vector<14x68xf32>
    %134 = arith.addf %121, %133 : vector<14x68xf32>
    %135 = vector.extract_strided_slice %95 {offsets = [3, 0], sizes = [14, 68], strides = [1, 1]} : vector<18x68xf32> to vector<14x68xf32>
    %c16 = arith.constant 16 : index
    %136 = memref.load %arg2[%c16] : memref<225xf32, #tpu.memory_space<smem>>
    %137 = vector.broadcast %136 : f32 to vector<14x68xf32>
    %138 = arith.mulf %137, %135 : vector<14x68xf32>
    %139 = arith.addf %126, %138 : vector<14x68xf32>
    %c91 = arith.constant 91 : index
    %140 = memref.load %arg2[%c91] : memref<225xf32, #tpu.memory_space<smem>>
    %141 = vector.broadcast %140 : f32 to vector<14x68xf32>
    %142 = arith.mulf %141, %135 : vector<14x68xf32>
    %143 = arith.addf %130, %142 : vector<14x68xf32>
    %c166 = arith.constant 166 : index
    %144 = memref.load %arg2[%c166] : memref<225xf32, #tpu.memory_space<smem>>
    %145 = vector.broadcast %144 : f32 to vector<14x68xf32>
    %146 = arith.mulf %145, %135 : vector<14x68xf32>
    %147 = arith.addf %134, %146 : vector<14x68xf32>
    %148 = vector.extract_strided_slice %95 {offsets = [4, 0], sizes = [14, 68], strides = [1, 1]} : vector<18x68xf32> to vector<14x68xf32>
    %c21 = arith.constant 21 : index
    %149 = memref.load %arg2[%c21] : memref<225xf32, #tpu.memory_space<smem>>
    %150 = vector.broadcast %149 : f32 to vector<14x68xf32>
    %151 = arith.mulf %150, %148 : vector<14x68xf32>
    %152 = arith.addf %139, %151 : vector<14x68xf32>
    %c96 = arith.constant 96 : index
    %153 = memref.load %arg2[%c96] : memref<225xf32, #tpu.memory_space<smem>>
    %154 = vector.broadcast %153 : f32 to vector<14x68xf32>
    %155 = arith.mulf %154, %148 : vector<14x68xf32>
    %156 = arith.addf %143, %155 : vector<14x68xf32>
    %c171 = arith.constant 171 : index
    %157 = memref.load %arg2[%c171] : memref<225xf32, #tpu.memory_space<smem>>
    %158 = vector.broadcast %157 : f32 to vector<14x68xf32>
    %159 = arith.mulf %158, %148 : vector<14x68xf32>
    %160 = arith.addf %147, %159 : vector<14x68xf32>
    %161 = vector.extract_strided_slice %28 {offsets = [0, 2], sizes = [18, 68], strides = [1, 1]} : vector<18x72xf32> to vector<18x68xf32>
    %162 = vector.extract_strided_slice %161 {offsets = [0, 0], sizes = [14, 68], strides = [1, 1]} : vector<18x68xf32> to vector<14x68xf32>
    %c2_53 = arith.constant 2 : index
    %163 = memref.load %arg2[%c2_53] : memref<225xf32, #tpu.memory_space<smem>>
    %164 = vector.broadcast %163 : f32 to vector<14x68xf32>
    %165 = arith.mulf %164, %162 : vector<14x68xf32>
    %166 = arith.addf %152, %165 : vector<14x68xf32>
    %c77 = arith.constant 77 : index
    %167 = memref.load %arg2[%c77] : memref<225xf32, #tpu.memory_space<smem>>
    %168 = vector.broadcast %167 : f32 to vector<14x68xf32>
    %169 = arith.mulf %168, %162 : vector<14x68xf32>
    %170 = arith.addf %156, %169 : vector<14x68xf32>
    %c152 = arith.constant 152 : index
    %171 = memref.load %arg2[%c152] : memref<225xf32, #tpu.memory_space<smem>>
    %172 = vector.broadcast %171 : f32 to vector<14x68xf32>
    %173 = arith.mulf %172, %162 : vector<14x68xf32>
    %174 = arith.addf %160, %173 : vector<14x68xf32>
    %175 = vector.extract_strided_slice %161 {offsets = [1, 0], sizes = [14, 68], strides = [1, 1]} : vector<18x68xf32> to vector<14x68xf32>
    %c7 = arith.constant 7 : index
    %176 = memref.load %arg2[%c7] : memref<225xf32, #tpu.memory_space<smem>>
    %177 = vector.broadcast %176 : f32 to vector<14x68xf32>
    %178 = arith.mulf %177, %175 : vector<14x68xf32>
    %179 = arith.addf %166, %178 : vector<14x68xf32>
    %c82 = arith.constant 82 : index
    %180 = memref.load %arg2[%c82] : memref<225xf32, #tpu.memory_space<smem>>
    %181 = vector.broadcast %180 : f32 to vector<14x68xf32>
    %182 = arith.mulf %181, %175 : vector<14x68xf32>
    %183 = arith.addf %170, %182 : vector<14x68xf32>
    %c157 = arith.constant 157 : index
    %184 = memref.load %arg2[%c157] : memref<225xf32, #tpu.memory_space<smem>>
    %185 = vector.broadcast %184 : f32 to vector<14x68xf32>
    %186 = arith.mulf %185, %175 : vector<14x68xf32>
    %187 = arith.addf %174, %186 : vector<14x68xf32>
    %188 = vector.extract_strided_slice %161 {offsets = [2, 0], sizes = [14, 68], strides = [1, 1]} : vector<18x68xf32> to vector<14x68xf32>
    %c12 = arith.constant 12 : index
    %189 = memref.load %arg2[%c12] : memref<225xf32, #tpu.memory_space<smem>>
    %190 = vector.broadcast %189 : f32 to vector<14x68xf32>
    %191 = arith.mulf %190, %188 : vector<14x68xf32>
    %192 = arith.addf %179, %191 : vector<14x68xf32>
    %c87 = arith.constant 87 : index
    %193 = memref.load %arg2[%c87] : memref<225xf32, #tpu.memory_space<smem>>
    %194 = vector.broadcast %193 : f32 to vector<14x68xf32>
    %195 = arith.mulf %194, %188 : vector<14x68xf32>
    %196 = arith.addf %183, %195 : vector<14x68xf32>
    %c162 = arith.constant 162 : index
    %197 = memref.load %arg2[%c162] : memref<225xf32, #tpu.memory_space<smem>>
    %198 = vector.broadcast %197 : f32 to vector<14x68xf32>
    %199 = arith.mulf %198, %188 : vector<14x68xf32>
    %200 = arith.addf %187, %199 : vector<14x68xf32>
    %201 = vector.extract_strided_slice %161 {offsets = [3, 0], sizes = [14, 68], strides = [1, 1]} : vector<18x68xf32> to vector<14x68xf32>
    %c17_54 = arith.constant 17 : index
    %202 = memref.load %arg2[%c17_54] : memref<225xf32, #tpu.memory_space<smem>>
    %203 = vector.broadcast %202 : f32 to vector<14x68xf32>
    %204 = arith.mulf %203, %201 : vector<14x68xf32>
    %205 = arith.addf %192, %204 : vector<14x68xf32>
    %c92 = arith.constant 92 : index
    %206 = memref.load %arg2[%c92] : memref<225xf32, #tpu.memory_space<smem>>
    %207 = vector.broadcast %206 : f32 to vector<14x68xf32>
    %208 = arith.mulf %207, %201 : vector<14x68xf32>
    %209 = arith.addf %196, %208 : vector<14x68xf32>
    %c167 = arith.constant 167 : index
    %210 = memref.load %arg2[%c167] : memref<225xf32, #tpu.memory_space<smem>>
    %211 = vector.broadcast %210 : f32 to vector<14x68xf32>
    %212 = arith.mulf %211, %201 : vector<14x68xf32>
    %213 = arith.addf %200, %212 : vector<14x68xf32>
    %214 = vector.extract_strided_slice %161 {offsets = [4, 0], sizes = [14, 68], strides = [1, 1]} : vector<18x68xf32> to vector<14x68xf32>
    %c22 = arith.constant 22 : index
    %215 = memref.load %arg2[%c22] : memref<225xf32, #tpu.memory_space<smem>>
    %216 = vector.broadcast %215 : f32 to vector<14x68xf32>
    %217 = arith.mulf %216, %214 : vector<14x68xf32>
    %218 = arith.addf %205, %217 : vector<14x68xf32>
    %c97 = arith.constant 97 : index
    %219 = memref.load %arg2[%c97] : memref<225xf32, #tpu.memory_space<smem>>
    %220 = vector.broadcast %219 : f32 to vector<14x68xf32>
    %221 = arith.mulf %220, %214 : vector<14x68xf32>
    %222 = arith.addf %209, %221 : vector<14x68xf32>
    %c172 = arith.constant 172 : index
    %223 = memref.load %arg2[%c172] : memref<225xf32, #tpu.memory_space<smem>>
    %224 = vector.broadcast %223 : f32 to vector<14x68xf32>
    %225 = arith.mulf %224, %214 : vector<14x68xf32>
    %226 = arith.addf %213, %225 : vector<14x68xf32>
    %227 = vector.extract_strided_slice %28 {offsets = [0, 3], sizes = [18, 68], strides = [1, 1]} : vector<18x72xf32> to vector<18x68xf32>
    %228 = vector.extract_strided_slice %227 {offsets = [0, 0], sizes = [14, 68], strides = [1, 1]} : vector<18x68xf32> to vector<14x68xf32>
    %c3_55 = arith.constant 3 : index
    %229 = memref.load %arg2[%c3_55] : memref<225xf32, #tpu.memory_space<smem>>
    %230 = vector.broadcast %229 : f32 to vector<14x68xf32>
    %231 = arith.mulf %230, %228 : vector<14x68xf32>
    %232 = arith.addf %218, %231 : vector<14x68xf32>
    %c78 = arith.constant 78 : index
    %233 = memref.load %arg2[%c78] : memref<225xf32, #tpu.memory_space<smem>>
    %234 = vector.broadcast %233 : f32 to vector<14x68xf32>
    %235 = arith.mulf %234, %228 : vector<14x68xf32>
    %236 = arith.addf %222, %235 : vector<14x68xf32>
    %c153 = arith.constant 153 : index
    %237 = memref.load %arg2[%c153] : memref<225xf32, #tpu.memory_space<smem>>
    %238 = vector.broadcast %237 : f32 to vector<14x68xf32>
    %239 = arith.mulf %238, %228 : vector<14x68xf32>
    %240 = arith.addf %226, %239 : vector<14x68xf32>
    %241 = vector.extract_strided_slice %227 {offsets = [1, 0], sizes = [14, 68], strides = [1, 1]} : vector<18x68xf32> to vector<14x68xf32>
    %c8 = arith.constant 8 : index
    %242 = memref.load %arg2[%c8] : memref<225xf32, #tpu.memory_space<smem>>
    %243 = vector.broadcast %242 : f32 to vector<14x68xf32>
    %244 = arith.mulf %243, %241 : vector<14x68xf32>
    %245 = arith.addf %232, %244 : vector<14x68xf32>
    %c83 = arith.constant 83 : index
    %246 = memref.load %arg2[%c83] : memref<225xf32, #tpu.memory_space<smem>>
    %247 = vector.broadcast %246 : f32 to vector<14x68xf32>
    %248 = arith.mulf %247, %241 : vector<14x68xf32>
    %249 = arith.addf %236, %248 : vector<14x68xf32>
    %c158 = arith.constant 158 : index
    %250 = memref.load %arg2[%c158] : memref<225xf32, #tpu.memory_space<smem>>
    %251 = vector.broadcast %250 : f32 to vector<14x68xf32>
    %252 = arith.mulf %251, %241 : vector<14x68xf32>
    %253 = arith.addf %240, %252 : vector<14x68xf32>
    %254 = vector.extract_strided_slice %227 {offsets = [2, 0], sizes = [14, 68], strides = [1, 1]} : vector<18x68xf32> to vector<14x68xf32>
    %c13 = arith.constant 13 : index
    %255 = memref.load %arg2[%c13] : memref<225xf32, #tpu.memory_space<smem>>
    %256 = vector.broadcast %255 : f32 to vector<14x68xf32>
    %257 = arith.mulf %256, %254 : vector<14x68xf32>
    %258 = arith.addf %245, %257 : vector<14x68xf32>
    %c88 = arith.constant 88 : index
    %259 = memref.load %arg2[%c88] : memref<225xf32, #tpu.memory_space<smem>>
    %260 = vector.broadcast %259 : f32 to vector<14x68xf32>
    %261 = arith.mulf %260, %254 : vector<14x68xf32>
    %262 = arith.addf %249, %261 : vector<14x68xf32>
    %c163 = arith.constant 163 : index
    %263 = memref.load %arg2[%c163] : memref<225xf32, #tpu.memory_space<smem>>
    %264 = vector.broadcast %263 : f32 to vector<14x68xf32>
    %265 = arith.mulf %264, %254 : vector<14x68xf32>
    %266 = arith.addf %253, %265 : vector<14x68xf32>
    %267 = vector.extract_strided_slice %227 {offsets = [3, 0], sizes = [14, 68], strides = [1, 1]} : vector<18x68xf32> to vector<14x68xf32>
    %c18_56 = arith.constant 18 : index
    %268 = memref.load %arg2[%c18_56] : memref<225xf32, #tpu.memory_space<smem>>
    %269 = vector.broadcast %268 : f32 to vector<14x68xf32>
    %270 = arith.mulf %269, %267 : vector<14x68xf32>
    %271 = arith.addf %258, %270 : vector<14x68xf32>
    %c93 = arith.constant 93 : index
    %272 = memref.load %arg2[%c93] : memref<225xf32, #tpu.memory_space<smem>>
    %273 = vector.broadcast %272 : f32 to vector<14x68xf32>
    %274 = arith.mulf %273, %267 : vector<14x68xf32>
    %275 = arith.addf %262, %274 : vector<14x68xf32>
    %c168 = arith.constant 168 : index
    %276 = memref.load %arg2[%c168] : memref<225xf32, #tpu.memory_space<smem>>
    %277 = vector.broadcast %276 : f32 to vector<14x68xf32>
    %278 = arith.mulf %277, %267 : vector<14x68xf32>
    %279 = arith.addf %266, %278 : vector<14x68xf32>
    %280 = vector.extract_strided_slice %227 {offsets = [4, 0], sizes = [14, 68], strides = [1, 1]} : vector<18x68xf32> to vector<14x68xf32>
    %c23 = arith.constant 23 : index
    %281 = memref.load %arg2[%c23] : memref<225xf32, #tpu.memory_space<smem>>
    %282 = vector.broadcast %281 : f32 to vector<14x68xf32>
    %283 = arith.mulf %282, %280 : vector<14x68xf32>
    %284 = arith.addf %271, %283 : vector<14x68xf32>
    %c98 = arith.constant 98 : index
    %285 = memref.load %arg2[%c98] : memref<225xf32, #tpu.memory_space<smem>>
    %286 = vector.broadcast %285 : f32 to vector<14x68xf32>
    %287 = arith.mulf %286, %280 : vector<14x68xf32>
    %288 = arith.addf %275, %287 : vector<14x68xf32>
    %c173 = arith.constant 173 : index
    %289 = memref.load %arg2[%c173] : memref<225xf32, #tpu.memory_space<smem>>
    %290 = vector.broadcast %289 : f32 to vector<14x68xf32>
    %291 = arith.mulf %290, %280 : vector<14x68xf32>
    %292 = arith.addf %279, %291 : vector<14x68xf32>
    %293 = vector.extract_strided_slice %28 {offsets = [0, 4], sizes = [18, 68], strides = [1, 1]} : vector<18x72xf32> to vector<18x68xf32>
    %294 = vector.extract_strided_slice %293 {offsets = [0, 0], sizes = [14, 68], strides = [1, 1]} : vector<18x68xf32> to vector<14x68xf32>
    %c4 = arith.constant 4 : index
    %295 = memref.load %arg2[%c4] : memref<225xf32, #tpu.memory_space<smem>>
    %296 = vector.broadcast %295 : f32 to vector<14x68xf32>
    %297 = arith.mulf %296, %294 : vector<14x68xf32>
    %298 = arith.addf %284, %297 : vector<14x68xf32>
    %c79 = arith.constant 79 : index
    %299 = memref.load %arg2[%c79] : memref<225xf32, #tpu.memory_space<smem>>
    %300 = vector.broadcast %299 : f32 to vector<14x68xf32>
    %301 = arith.mulf %300, %294 : vector<14x68xf32>
    %302 = arith.addf %288, %301 : vector<14x68xf32>
    %c154 = arith.constant 154 : index
    %303 = memref.load %arg2[%c154] : memref<225xf32, #tpu.memory_space<smem>>
    %304 = vector.broadcast %303 : f32 to vector<14x68xf32>
    %305 = arith.mulf %304, %294 : vector<14x68xf32>
    %306 = arith.addf %292, %305 : vector<14x68xf32>
    %307 = vector.extract_strided_slice %293 {offsets = [1, 0], sizes = [14, 68], strides = [1, 1]} : vector<18x68xf32> to vector<14x68xf32>
    %c9 = arith.constant 9 : index
    %308 = memref.load %arg2[%c9] : memref<225xf32, #tpu.memory_space<smem>>
    %309 = vector.broadcast %308 : f32 to vector<14x68xf32>
    %310 = arith.mulf %309, %307 : vector<14x68xf32>
    %311 = arith.addf %298, %310 : vector<14x68xf32>
    %c84 = arith.constant 84 : index
    %312 = memref.load %arg2[%c84] : memref<225xf32, #tpu.memory_space<smem>>
    %313 = vector.broadcast %312 : f32 to vector<14x68xf32>
    %314 = arith.mulf %313, %307 : vector<14x68xf32>
    %315 = arith.addf %302, %314 : vector<14x68xf32>
    %c159 = arith.constant 159 : index
    %316 = memref.load %arg2[%c159] : memref<225xf32, #tpu.memory_space<smem>>
    %317 = vector.broadcast %316 : f32 to vector<14x68xf32>
    %318 = arith.mulf %317, %307 : vector<14x68xf32>
    %319 = arith.addf %306, %318 : vector<14x68xf32>
    %320 = vector.extract_strided_slice %293 {offsets = [2, 0], sizes = [14, 68], strides = [1, 1]} : vector<18x68xf32> to vector<14x68xf32>
    %c14 = arith.constant 14 : index
    %321 = memref.load %arg2[%c14] : memref<225xf32, #tpu.memory_space<smem>>
    %322 = vector.broadcast %321 : f32 to vector<14x68xf32>
    %323 = arith.mulf %322, %320 : vector<14x68xf32>
    %324 = arith.addf %311, %323 : vector<14x68xf32>
    %c89 = arith.constant 89 : index
    %325 = memref.load %arg2[%c89] : memref<225xf32, #tpu.memory_space<smem>>
    %326 = vector.broadcast %325 : f32 to vector<14x68xf32>
    %327 = arith.mulf %326, %320 : vector<14x68xf32>
    %328 = arith.addf %315, %327 : vector<14x68xf32>
    %c164 = arith.constant 164 : index
    %329 = memref.load %arg2[%c164] : memref<225xf32, #tpu.memory_space<smem>>
    %330 = vector.broadcast %329 : f32 to vector<14x68xf32>
    %331 = arith.mulf %330, %320 : vector<14x68xf32>
    %332 = arith.addf %319, %331 : vector<14x68xf32>
    %333 = vector.extract_strided_slice %293 {offsets = [3, 0], sizes = [14, 68], strides = [1, 1]} : vector<18x68xf32> to vector<14x68xf32>
    %c19_57 = arith.constant 19 : index
    %334 = memref.load %arg2[%c19_57] : memref<225xf32, #tpu.memory_space<smem>>
    %335 = vector.broadcast %334 : f32 to vector<14x68xf32>
    %336 = arith.mulf %335, %333 : vector<14x68xf32>
    %337 = arith.addf %324, %336 : vector<14x68xf32>
    %c94 = arith.constant 94 : index
    %338 = memref.load %arg2[%c94] : memref<225xf32, #tpu.memory_space<smem>>
    %339 = vector.broadcast %338 : f32 to vector<14x68xf32>
    %340 = arith.mulf %339, %333 : vector<14x68xf32>
    %341 = arith.addf %328, %340 : vector<14x68xf32>
    %c169 = arith.constant 169 : index
    %342 = memref.load %arg2[%c169] : memref<225xf32, #tpu.memory_space<smem>>
    %343 = vector.broadcast %342 : f32 to vector<14x68xf32>
    %344 = arith.mulf %343, %333 : vector<14x68xf32>
    %345 = arith.addf %332, %344 : vector<14x68xf32>
    %346 = vector.extract_strided_slice %293 {offsets = [4, 0], sizes = [14, 68], strides = [1, 1]} : vector<18x68xf32> to vector<14x68xf32>
    %c24 = arith.constant 24 : index
    %347 = memref.load %arg2[%c24] : memref<225xf32, #tpu.memory_space<smem>>
    %348 = vector.broadcast %347 : f32 to vector<14x68xf32>
    %349 = arith.mulf %348, %346 : vector<14x68xf32>
    %350 = arith.addf %337, %349 : vector<14x68xf32>
    %c99 = arith.constant 99 : index
    %351 = memref.load %arg2[%c99] : memref<225xf32, #tpu.memory_space<smem>>
    %352 = vector.broadcast %351 : f32 to vector<14x68xf32>
    %353 = arith.mulf %352, %346 : vector<14x68xf32>
    %354 = arith.addf %341, %353 : vector<14x68xf32>
    %c174 = arith.constant 174 : index
    %355 = memref.load %arg2[%c174] : memref<225xf32, #tpu.memory_space<smem>>
    %356 = vector.broadcast %355 : f32 to vector<14x68xf32>
    %357 = arith.mulf %356, %346 : vector<14x68xf32>
    %358 = arith.addf %345, %357 : vector<14x68xf32>
    %c1_58 = arith.constant 1 : index
    %c0_59 = arith.constant 0 : index
    %c0_60 = arith.constant 0 : index
    %359 = vector.load %arg5[%c1_58, %c0_59, %c0_60] : memref<3x18x72xf32, #tpu.memory_space<vmem>>, vector<1x18x72xf32>
    %360 = vector.shape_cast %359 : vector<1x18x72xf32> to vector<18x72xf32>
    %361 = vector.extract_strided_slice %360 {offsets = [0, 0], sizes = [18, 68], strides = [1, 1]} : vector<18x72xf32> to vector<18x68xf32>
    %362 = vector.extract_strided_slice %361 {offsets = [0, 0], sizes = [14, 68], strides = [1, 1]} : vector<18x68xf32> to vector<14x68xf32>
    %c25 = arith.constant 25 : index
    %363 = memref.load %arg2[%c25] : memref<225xf32, #tpu.memory_space<smem>>
    %364 = vector.broadcast %363 : f32 to vector<14x68xf32>
    %365 = arith.mulf %364, %362 : vector<14x68xf32>
    %366 = arith.addf %350, %365 : vector<14x68xf32>
    %c100 = arith.constant 100 : index
    %367 = memref.load %arg2[%c100] : memref<225xf32, #tpu.memory_space<smem>>
    %368 = vector.broadcast %367 : f32 to vector<14x68xf32>
    %369 = arith.mulf %368, %362 : vector<14x68xf32>
    %370 = arith.addf %354, %369 : vector<14x68xf32>
    %c175 = arith.constant 175 : index
    %371 = memref.load %arg2[%c175] : memref<225xf32, #tpu.memory_space<smem>>
    %372 = vector.broadcast %371 : f32 to vector<14x68xf32>
    %373 = arith.mulf %372, %362 : vector<14x68xf32>
    %374 = arith.addf %358, %373 : vector<14x68xf32>
    %375 = vector.extract_strided_slice %361 {offsets = [1, 0], sizes = [14, 68], strides = [1, 1]} : vector<18x68xf32> to vector<14x68xf32>
    %c30 = arith.constant 30 : index
    %376 = memref.load %arg2[%c30] : memref<225xf32, #tpu.memory_space<smem>>
    %377 = vector.broadcast %376 : f32 to vector<14x68xf32>
    %378 = arith.mulf %377, %375 : vector<14x68xf32>
    %379 = arith.addf %366, %378 : vector<14x68xf32>
    %c105 = arith.constant 105 : index
    %380 = memref.load %arg2[%c105] : memref<225xf32, #tpu.memory_space<smem>>
    %381 = vector.broadcast %380 : f32 to vector<14x68xf32>
    %382 = arith.mulf %381, %375 : vector<14x68xf32>
    %383 = arith.addf %370, %382 : vector<14x68xf32>
    %c180 = arith.constant 180 : index
    %384 = memref.load %arg2[%c180] : memref<225xf32, #tpu.memory_space<smem>>
    %385 = vector.broadcast %384 : f32 to vector<14x68xf32>
    %386 = arith.mulf %385, %375 : vector<14x68xf32>
    %387 = arith.addf %374, %386 : vector<14x68xf32>
    %388 = vector.extract_strided_slice %361 {offsets = [2, 0], sizes = [14, 68], strides = [1, 1]} : vector<18x68xf32> to vector<14x68xf32>
    %c35_61 = arith.constant 35 : index
    %389 = memref.load %arg2[%c35_61] : memref<225xf32, #tpu.memory_space<smem>>
    %390 = vector.broadcast %389 : f32 to vector<14x68xf32>
    %391 = arith.mulf %390, %388 : vector<14x68xf32>
    %392 = arith.addf %379, %391 : vector<14x68xf32>
    %c110 = arith.constant 110 : index
    %393 = memref.load %arg2[%c110] : memref<225xf32, #tpu.memory_space<smem>>
    %394 = vector.broadcast %393 : f32 to vector<14x68xf32>
    %395 = arith.mulf %394, %388 : vector<14x68xf32>
    %396 = arith.addf %383, %395 : vector<14x68xf32>
    %c185 = arith.constant 185 : index
    %397 = memref.load %arg2[%c185] : memref<225xf32, #tpu.memory_space<smem>>
    %398 = vector.broadcast %397 : f32 to vector<14x68xf32>
    %399 = arith.mulf %398, %388 : vector<14x68xf32>
    %400 = arith.addf %387, %399 : vector<14x68xf32>
    %401 = vector.extract_strided_slice %361 {offsets = [3, 0], sizes = [14, 68], strides = [1, 1]} : vector<18x68xf32> to vector<14x68xf32>
    %c40 = arith.constant 40 : index
    %402 = memref.load %arg2[%c40] : memref<225xf32, #tpu.memory_space<smem>>
    %403 = vector.broadcast %402 : f32 to vector<14x68xf32>
    %404 = arith.mulf %403, %401 : vector<14x68xf32>
    %405 = arith.addf %392, %404 : vector<14x68xf32>
    %c115 = arith.constant 115 : index
    %406 = memref.load %arg2[%c115] : memref<225xf32, #tpu.memory_space<smem>>
    %407 = vector.broadcast %406 : f32 to vector<14x68xf32>
    %408 = arith.mulf %407, %401 : vector<14x68xf32>
    %409 = arith.addf %396, %408 : vector<14x68xf32>
    %c190 = arith.constant 190 : index
    %410 = memref.load %arg2[%c190] : memref<225xf32, #tpu.memory_space<smem>>
    %411 = vector.broadcast %410 : f32 to vector<14x68xf32>
    %412 = arith.mulf %411, %401 : vector<14x68xf32>
    %413 = arith.addf %400, %412 : vector<14x68xf32>
    %414 = vector.extract_strided_slice %361 {offsets = [4, 0], sizes = [14, 68], strides = [1, 1]} : vector<18x68xf32> to vector<14x68xf32>
    %c45 = arith.constant 45 : index
    %415 = memref.load %arg2[%c45] : memref<225xf32, #tpu.memory_space<smem>>
    %416 = vector.broadcast %415 : f32 to vector<14x68xf32>
    %417 = arith.mulf %416, %414 : vector<14x68xf32>
    %418 = arith.addf %405, %417 : vector<14x68xf32>
    %c120 = arith.constant 120 : index
    %419 = memref.load %arg2[%c120] : memref<225xf32, #tpu.memory_space<smem>>
    %420 = vector.broadcast %419 : f32 to vector<14x68xf32>
    %421 = arith.mulf %420, %414 : vector<14x68xf32>
    %422 = arith.addf %409, %421 : vector<14x68xf32>
    %c195 = arith.constant 195 : index
    %423 = memref.load %arg2[%c195] : memref<225xf32, #tpu.memory_space<smem>>
    %424 = vector.broadcast %423 : f32 to vector<14x68xf32>
    %425 = arith.mulf %424, %414 : vector<14x68xf32>
    %426 = arith.addf %413, %425 : vector<14x68xf32>
    %427 = vector.extract_strided_slice %360 {offsets = [0, 1], sizes = [18, 68], strides = [1, 1]} : vector<18x72xf32> to vector<18x68xf32>
    %428 = vector.extract_strided_slice %427 {offsets = [0, 0], sizes = [14, 68], strides = [1, 1]} : vector<18x68xf32> to vector<14x68xf32>
    %c26 = arith.constant 26 : index
    %429 = memref.load %arg2[%c26] : memref<225xf32, #tpu.memory_space<smem>>
    %430 = vector.broadcast %429 : f32 to vector<14x68xf32>
    %431 = arith.mulf %430, %428 : vector<14x68xf32>
    %432 = arith.addf %418, %431 : vector<14x68xf32>
    %c101 = arith.constant 101 : index
    %433 = memref.load %arg2[%c101] : memref<225xf32, #tpu.memory_space<smem>>
    %434 = vector.broadcast %433 : f32 to vector<14x68xf32>
    %435 = arith.mulf %434, %428 : vector<14x68xf32>
    %436 = arith.addf %422, %435 : vector<14x68xf32>
    %c176 = arith.constant 176 : index
    %437 = memref.load %arg2[%c176] : memref<225xf32, #tpu.memory_space<smem>>
    %438 = vector.broadcast %437 : f32 to vector<14x68xf32>
    %439 = arith.mulf %438, %428 : vector<14x68xf32>
    %440 = arith.addf %426, %439 : vector<14x68xf32>
    %441 = vector.extract_strided_slice %427 {offsets = [1, 0], sizes = [14, 68], strides = [1, 1]} : vector<18x68xf32> to vector<14x68xf32>
    %c31 = arith.constant 31 : index
    %442 = memref.load %arg2[%c31] : memref<225xf32, #tpu.memory_space<smem>>
    %443 = vector.broadcast %442 : f32 to vector<14x68xf32>
    %444 = arith.mulf %443, %441 : vector<14x68xf32>
    %445 = arith.addf %432, %444 : vector<14x68xf32>
    %c106 = arith.constant 106 : index
    %446 = memref.load %arg2[%c106] : memref<225xf32, #tpu.memory_space<smem>>
    %447 = vector.broadcast %446 : f32 to vector<14x68xf32>
    %448 = arith.mulf %447, %441 : vector<14x68xf32>
    %449 = arith.addf %436, %448 : vector<14x68xf32>
    %c181 = arith.constant 181 : index
    %450 = memref.load %arg2[%c181] : memref<225xf32, #tpu.memory_space<smem>>
    %451 = vector.broadcast %450 : f32 to vector<14x68xf32>
    %452 = arith.mulf %451, %441 : vector<14x68xf32>
    %453 = arith.addf %440, %452 : vector<14x68xf32>
    %454 = vector.extract_strided_slice %427 {offsets = [2, 0], sizes = [14, 68], strides = [1, 1]} : vector<18x68xf32> to vector<14x68xf32>
    %c36_62 = arith.constant 36 : index
    %455 = memref.load %arg2[%c36_62] : memref<225xf32, #tpu.memory_space<smem>>
    %456 = vector.broadcast %455 : f32 to vector<14x68xf32>
    %457 = arith.mulf %456, %454 : vector<14x68xf32>
    %458 = arith.addf %445, %457 : vector<14x68xf32>
    %c111 = arith.constant 111 : index
    %459 = memref.load %arg2[%c111] : memref<225xf32, #tpu.memory_space<smem>>
    %460 = vector.broadcast %459 : f32 to vector<14x68xf32>
    %461 = arith.mulf %460, %454 : vector<14x68xf32>
    %462 = arith.addf %449, %461 : vector<14x68xf32>
    %c186 = arith.constant 186 : index
    %463 = memref.load %arg2[%c186] : memref<225xf32, #tpu.memory_space<smem>>
    %464 = vector.broadcast %463 : f32 to vector<14x68xf32>
    %465 = arith.mulf %464, %454 : vector<14x68xf32>
    %466 = arith.addf %453, %465 : vector<14x68xf32>
    %467 = vector.extract_strided_slice %427 {offsets = [3, 0], sizes = [14, 68], strides = [1, 1]} : vector<18x68xf32> to vector<14x68xf32>
    %c41 = arith.constant 41 : index
    %468 = memref.load %arg2[%c41] : memref<225xf32, #tpu.memory_space<smem>>
    %469 = vector.broadcast %468 : f32 to vector<14x68xf32>
    %470 = arith.mulf %469, %467 : vector<14x68xf32>
    %471 = arith.addf %458, %470 : vector<14x68xf32>
    %c116 = arith.constant 116 : index
    %472 = memref.load %arg2[%c116] : memref<225xf32, #tpu.memory_space<smem>>
    %473 = vector.broadcast %472 : f32 to vector<14x68xf32>
    %474 = arith.mulf %473, %467 : vector<14x68xf32>
    %475 = arith.addf %462, %474 : vector<14x68xf32>
    %c191 = arith.constant 191 : index
    %476 = memref.load %arg2[%c191] : memref<225xf32, #tpu.memory_space<smem>>
    %477 = vector.broadcast %476 : f32 to vector<14x68xf32>
    %478 = arith.mulf %477, %467 : vector<14x68xf32>
    %479 = arith.addf %466, %478 : vector<14x68xf32>
    %480 = vector.extract_strided_slice %427 {offsets = [4, 0], sizes = [14, 68], strides = [1, 1]} : vector<18x68xf32> to vector<14x68xf32>
    %c46 = arith.constant 46 : index
    %481 = memref.load %arg2[%c46] : memref<225xf32, #tpu.memory_space<smem>>
    %482 = vector.broadcast %481 : f32 to vector<14x68xf32>
    %483 = arith.mulf %482, %480 : vector<14x68xf32>
    %484 = arith.addf %471, %483 : vector<14x68xf32>
    %c121 = arith.constant 121 : index
    %485 = memref.load %arg2[%c121] : memref<225xf32, #tpu.memory_space<smem>>
    %486 = vector.broadcast %485 : f32 to vector<14x68xf32>
    %487 = arith.mulf %486, %480 : vector<14x68xf32>
    %488 = arith.addf %475, %487 : vector<14x68xf32>
    %c196 = arith.constant 196 : index
    %489 = memref.load %arg2[%c196] : memref<225xf32, #tpu.memory_space<smem>>
    %490 = vector.broadcast %489 : f32 to vector<14x68xf32>
    %491 = arith.mulf %490, %480 : vector<14x68xf32>
    %492 = arith.addf %479, %491 : vector<14x68xf32>
    %493 = vector.extract_strided_slice %360 {offsets = [0, 2], sizes = [18, 68], strides = [1, 1]} : vector<18x72xf32> to vector<18x68xf32>
    %494 = vector.extract_strided_slice %493 {offsets = [0, 0], sizes = [14, 68], strides = [1, 1]} : vector<18x68xf32> to vector<14x68xf32>
    %c27 = arith.constant 27 : index
    %495 = memref.load %arg2[%c27] : memref<225xf32, #tpu.memory_space<smem>>
    %496 = vector.broadcast %495 : f32 to vector<14x68xf32>
    %497 = arith.mulf %496, %494 : vector<14x68xf32>
    %498 = arith.addf %484, %497 : vector<14x68xf32>
    %c102 = arith.constant 102 : index
    %499 = memref.load %arg2[%c102] : memref<225xf32, #tpu.memory_space<smem>>
    %500 = vector.broadcast %499 : f32 to vector<14x68xf32>
    %501 = arith.mulf %500, %494 : vector<14x68xf32>
    %502 = arith.addf %488, %501 : vector<14x68xf32>
    %c177 = arith.constant 177 : index
    %503 = memref.load %arg2[%c177] : memref<225xf32, #tpu.memory_space<smem>>
    %504 = vector.broadcast %503 : f32 to vector<14x68xf32>
    %505 = arith.mulf %504, %494 : vector<14x68xf32>
    %506 = arith.addf %492, %505 : vector<14x68xf32>
    %507 = vector.extract_strided_slice %493 {offsets = [1, 0], sizes = [14, 68], strides = [1, 1]} : vector<18x68xf32> to vector<14x68xf32>
    %c32 = arith.constant 32 : index
    %508 = memref.load %arg2[%c32] : memref<225xf32, #tpu.memory_space<smem>>
    %509 = vector.broadcast %508 : f32 to vector<14x68xf32>
    %510 = arith.mulf %509, %507 : vector<14x68xf32>
    %511 = arith.addf %498, %510 : vector<14x68xf32>
    %c107 = arith.constant 107 : index
    %512 = memref.load %arg2[%c107] : memref<225xf32, #tpu.memory_space<smem>>
    %513 = vector.broadcast %512 : f32 to vector<14x68xf32>
    %514 = arith.mulf %513, %507 : vector<14x68xf32>
    %515 = arith.addf %502, %514 : vector<14x68xf32>
    %c182 = arith.constant 182 : index
    %516 = memref.load %arg2[%c182] : memref<225xf32, #tpu.memory_space<smem>>
    %517 = vector.broadcast %516 : f32 to vector<14x68xf32>
    %518 = arith.mulf %517, %507 : vector<14x68xf32>
    %519 = arith.addf %506, %518 : vector<14x68xf32>
    %520 = vector.extract_strided_slice %493 {offsets = [2, 0], sizes = [14, 68], strides = [1, 1]} : vector<18x68xf32> to vector<14x68xf32>
    %c37_63 = arith.constant 37 : index
    %521 = memref.load %arg2[%c37_63] : memref<225xf32, #tpu.memory_space<smem>>
    %522 = vector.broadcast %521 : f32 to vector<14x68xf32>
    %523 = arith.mulf %522, %520 : vector<14x68xf32>
    %524 = arith.addf %511, %523 : vector<14x68xf32>
    %c112 = arith.constant 112 : index
    %525 = memref.load %arg2[%c112] : memref<225xf32, #tpu.memory_space<smem>>
    %526 = vector.broadcast %525 : f32 to vector<14x68xf32>
    %527 = arith.mulf %526, %520 : vector<14x68xf32>
    %528 = arith.addf %515, %527 : vector<14x68xf32>
    %c187 = arith.constant 187 : index
    %529 = memref.load %arg2[%c187] : memref<225xf32, #tpu.memory_space<smem>>
    %530 = vector.broadcast %529 : f32 to vector<14x68xf32>
    %531 = arith.mulf %530, %520 : vector<14x68xf32>
    %532 = arith.addf %519, %531 : vector<14x68xf32>
    %533 = vector.extract_strided_slice %493 {offsets = [3, 0], sizes = [14, 68], strides = [1, 1]} : vector<18x68xf32> to vector<14x68xf32>
    %c42 = arith.constant 42 : index
    %534 = memref.load %arg2[%c42] : memref<225xf32, #tpu.memory_space<smem>>
    %535 = vector.broadcast %534 : f32 to vector<14x68xf32>
    %536 = arith.mulf %535, %533 : vector<14x68xf32>
    %537 = arith.addf %524, %536 : vector<14x68xf32>
    %c117 = arith.constant 117 : index
    %538 = memref.load %arg2[%c117] : memref<225xf32, #tpu.memory_space<smem>>
    %539 = vector.broadcast %538 : f32 to vector<14x68xf32>
    %540 = arith.mulf %539, %533 : vector<14x68xf32>
    %541 = arith.addf %528, %540 : vector<14x68xf32>
    %c192 = arith.constant 192 : index
    %542 = memref.load %arg2[%c192] : memref<225xf32, #tpu.memory_space<smem>>
    %543 = vector.broadcast %542 : f32 to vector<14x68xf32>
    %544 = arith.mulf %543, %533 : vector<14x68xf32>
    %545 = arith.addf %532, %544 : vector<14x68xf32>
    %546 = vector.extract_strided_slice %493 {offsets = [4, 0], sizes = [14, 68], strides = [1, 1]} : vector<18x68xf32> to vector<14x68xf32>
    %c47 = arith.constant 47 : index
    %547 = memref.load %arg2[%c47] : memref<225xf32, #tpu.memory_space<smem>>
    %548 = vector.broadcast %547 : f32 to vector<14x68xf32>
    %549 = arith.mulf %548, %546 : vector<14x68xf32>
    %550 = arith.addf %537, %549 : vector<14x68xf32>
    %c122 = arith.constant 122 : index
    %551 = memref.load %arg2[%c122] : memref<225xf32, #tpu.memory_space<smem>>
    %552 = vector.broadcast %551 : f32 to vector<14x68xf32>
    %553 = arith.mulf %552, %546 : vector<14x68xf32>
    %554 = arith.addf %541, %553 : vector<14x68xf32>
    %c197 = arith.constant 197 : index
    %555 = memref.load %arg2[%c197] : memref<225xf32, #tpu.memory_space<smem>>
    %556 = vector.broadcast %555 : f32 to vector<14x68xf32>
    %557 = arith.mulf %556, %546 : vector<14x68xf32>
    %558 = arith.addf %545, %557 : vector<14x68xf32>
    %559 = vector.extract_strided_slice %360 {offsets = [0, 3], sizes = [18, 68], strides = [1, 1]} : vector<18x72xf32> to vector<18x68xf32>
    %560 = vector.extract_strided_slice %559 {offsets = [0, 0], sizes = [14, 68], strides = [1, 1]} : vector<18x68xf32> to vector<14x68xf32>
    %c28 = arith.constant 28 : index
    %561 = memref.load %arg2[%c28] : memref<225xf32, #tpu.memory_space<smem>>
    %562 = vector.broadcast %561 : f32 to vector<14x68xf32>
    %563 = arith.mulf %562, %560 : vector<14x68xf32>
    %564 = arith.addf %550, %563 : vector<14x68xf32>
    %c103 = arith.constant 103 : index
    %565 = memref.load %arg2[%c103] : memref<225xf32, #tpu.memory_space<smem>>
    %566 = vector.broadcast %565 : f32 to vector<14x68xf32>
    %567 = arith.mulf %566, %560 : vector<14x68xf32>
    %568 = arith.addf %554, %567 : vector<14x68xf32>
    %c178 = arith.constant 178 : index
    %569 = memref.load %arg2[%c178] : memref<225xf32, #tpu.memory_space<smem>>
    %570 = vector.broadcast %569 : f32 to vector<14x68xf32>
    %571 = arith.mulf %570, %560 : vector<14x68xf32>
    %572 = arith.addf %558, %571 : vector<14x68xf32>
    %573 = vector.extract_strided_slice %559 {offsets = [1, 0], sizes = [14, 68], strides = [1, 1]} : vector<18x68xf32> to vector<14x68xf32>
    %c33 = arith.constant 33 : index
    %574 = memref.load %arg2[%c33] : memref<225xf32, #tpu.memory_space<smem>>
    %575 = vector.broadcast %574 : f32 to vector<14x68xf32>
    %576 = arith.mulf %575, %573 : vector<14x68xf32>
    %577 = arith.addf %564, %576 : vector<14x68xf32>
    %c108 = arith.constant 108 : index
    %578 = memref.load %arg2[%c108] : memref<225xf32, #tpu.memory_space<smem>>
    %579 = vector.broadcast %578 : f32 to vector<14x68xf32>
    %580 = arith.mulf %579, %573 : vector<14x68xf32>
    %581 = arith.addf %568, %580 : vector<14x68xf32>
    %c183 = arith.constant 183 : index
    %582 = memref.load %arg2[%c183] : memref<225xf32, #tpu.memory_space<smem>>
    %583 = vector.broadcast %582 : f32 to vector<14x68xf32>
    %584 = arith.mulf %583, %573 : vector<14x68xf32>
    %585 = arith.addf %572, %584 : vector<14x68xf32>
    %586 = vector.extract_strided_slice %559 {offsets = [2, 0], sizes = [14, 68], strides = [1, 1]} : vector<18x68xf32> to vector<14x68xf32>
    %c38 = arith.constant 38 : index
    %587 = memref.load %arg2[%c38] : memref<225xf32, #tpu.memory_space<smem>>
    %588 = vector.broadcast %587 : f32 to vector<14x68xf32>
    %589 = arith.mulf %588, %586 : vector<14x68xf32>
    %590 = arith.addf %577, %589 : vector<14x68xf32>
    %c113 = arith.constant 113 : index
    %591 = memref.load %arg2[%c113] : memref<225xf32, #tpu.memory_space<smem>>
    %592 = vector.broadcast %591 : f32 to vector<14x68xf32>
    %593 = arith.mulf %592, %586 : vector<14x68xf32>
    %594 = arith.addf %581, %593 : vector<14x68xf32>
    %c188 = arith.constant 188 : index
    %595 = memref.load %arg2[%c188] : memref<225xf32, #tpu.memory_space<smem>>
    %596 = vector.broadcast %595 : f32 to vector<14x68xf32>
    %597 = arith.mulf %596, %586 : vector<14x68xf32>
    %598 = arith.addf %585, %597 : vector<14x68xf32>
    %599 = vector.extract_strided_slice %559 {offsets = [3, 0], sizes = [14, 68], strides = [1, 1]} : vector<18x68xf32> to vector<14x68xf32>
    %c43 = arith.constant 43 : index
    %600 = memref.load %arg2[%c43] : memref<225xf32, #tpu.memory_space<smem>>
    %601 = vector.broadcast %600 : f32 to vector<14x68xf32>
    %602 = arith.mulf %601, %599 : vector<14x68xf32>
    %603 = arith.addf %590, %602 : vector<14x68xf32>
    %c118 = arith.constant 118 : index
    %604 = memref.load %arg2[%c118] : memref<225xf32, #tpu.memory_space<smem>>
    %605 = vector.broadcast %604 : f32 to vector<14x68xf32>
    %606 = arith.mulf %605, %599 : vector<14x68xf32>
    %607 = arith.addf %594, %606 : vector<14x68xf32>
    %c193 = arith.constant 193 : index
    %608 = memref.load %arg2[%c193] : memref<225xf32, #tpu.memory_space<smem>>
    %609 = vector.broadcast %608 : f32 to vector<14x68xf32>
    %610 = arith.mulf %609, %599 : vector<14x68xf32>
    %611 = arith.addf %598, %610 : vector<14x68xf32>
    %612 = vector.extract_strided_slice %559 {offsets = [4, 0], sizes = [14, 68], strides = [1, 1]} : vector<18x68xf32> to vector<14x68xf32>
    %c48 = arith.constant 48 : index
    %613 = memref.load %arg2[%c48] : memref<225xf32, #tpu.memory_space<smem>>
    %614 = vector.broadcast %613 : f32 to vector<14x68xf32>
    %615 = arith.mulf %614, %612 : vector<14x68xf32>
    %616 = arith.addf %603, %615 : vector<14x68xf32>
    %c123 = arith.constant 123 : index
    %617 = memref.load %arg2[%c123] : memref<225xf32, #tpu.memory_space<smem>>
    %618 = vector.broadcast %617 : f32 to vector<14x68xf32>
    %619 = arith.mulf %618, %612 : vector<14x68xf32>
    %620 = arith.addf %607, %619 : vector<14x68xf32>
    %c198 = arith.constant 198 : index
    %621 = memref.load %arg2[%c198] : memref<225xf32, #tpu.memory_space<smem>>
    %622 = vector.broadcast %621 : f32 to vector<14x68xf32>
    %623 = arith.mulf %622, %612 : vector<14x68xf32>
    %624 = arith.addf %611, %623 : vector<14x68xf32>
    %625 = vector.extract_strided_slice %360 {offsets = [0, 4], sizes = [18, 68], strides = [1, 1]} : vector<18x72xf32> to vector<18x68xf32>
    %626 = vector.extract_strided_slice %625 {offsets = [0, 0], sizes = [14, 68], strides = [1, 1]} : vector<18x68xf32> to vector<14x68xf32>
    %c29 = arith.constant 29 : index
    %627 = memref.load %arg2[%c29] : memref<225xf32, #tpu.memory_space<smem>>
    %628 = vector.broadcast %627 : f32 to vector<14x68xf32>
    %629 = arith.mulf %628, %626 : vector<14x68xf32>
    %630 = arith.addf %616, %629 : vector<14x68xf32>
    %c104 = arith.constant 104 : index
    %631 = memref.load %arg2[%c104] : memref<225xf32, #tpu.memory_space<smem>>
    %632 = vector.broadcast %631 : f32 to vector<14x68xf32>
    %633 = arith.mulf %632, %626 : vector<14x68xf32>
    %634 = arith.addf %620, %633 : vector<14x68xf32>
    %c179 = arith.constant 179 : index
    %635 = memref.load %arg2[%c179] : memref<225xf32, #tpu.memory_space<smem>>
    %636 = vector.broadcast %635 : f32 to vector<14x68xf32>
    %637 = arith.mulf %636, %626 : vector<14x68xf32>
    %638 = arith.addf %624, %637 : vector<14x68xf32>
    %639 = vector.extract_strided_slice %625 {offsets = [1, 0], sizes = [14, 68], strides = [1, 1]} : vector<18x68xf32> to vector<14x68xf32>
    %c34 = arith.constant 34 : index
    %640 = memref.load %arg2[%c34] : memref<225xf32, #tpu.memory_space<smem>>
    %641 = vector.broadcast %640 : f32 to vector<14x68xf32>
    %642 = arith.mulf %641, %639 : vector<14x68xf32>
    %643 = arith.addf %630, %642 : vector<14x68xf32>
    %c109 = arith.constant 109 : index
    %644 = memref.load %arg2[%c109] : memref<225xf32, #tpu.memory_space<smem>>
    %645 = vector.broadcast %644 : f32 to vector<14x68xf32>
    %646 = arith.mulf %645, %639 : vector<14x68xf32>
    %647 = arith.addf %634, %646 : vector<14x68xf32>
    %c184 = arith.constant 184 : index
    %648 = memref.load %arg2[%c184] : memref<225xf32, #tpu.memory_space<smem>>
    %649 = vector.broadcast %648 : f32 to vector<14x68xf32>
    %650 = arith.mulf %649, %639 : vector<14x68xf32>
    %651 = arith.addf %638, %650 : vector<14x68xf32>
    %652 = vector.extract_strided_slice %625 {offsets = [2, 0], sizes = [14, 68], strides = [1, 1]} : vector<18x68xf32> to vector<14x68xf32>
    %c39 = arith.constant 39 : index
    %653 = memref.load %arg2[%c39] : memref<225xf32, #tpu.memory_space<smem>>
    %654 = vector.broadcast %653 : f32 to vector<14x68xf32>
    %655 = arith.mulf %654, %652 : vector<14x68xf32>
    %656 = arith.addf %643, %655 : vector<14x68xf32>
    %c114 = arith.constant 114 : index
    %657 = memref.load %arg2[%c114] : memref<225xf32, #tpu.memory_space<smem>>
    %658 = vector.broadcast %657 : f32 to vector<14x68xf32>
    %659 = arith.mulf %658, %652 : vector<14x68xf32>
    %660 = arith.addf %647, %659 : vector<14x68xf32>
    %c189 = arith.constant 189 : index
    %661 = memref.load %arg2[%c189] : memref<225xf32, #tpu.memory_space<smem>>
    %662 = vector.broadcast %661 : f32 to vector<14x68xf32>
    %663 = arith.mulf %662, %652 : vector<14x68xf32>
    %664 = arith.addf %651, %663 : vector<14x68xf32>
    %665 = vector.extract_strided_slice %625 {offsets = [3, 0], sizes = [14, 68], strides = [1, 1]} : vector<18x68xf32> to vector<14x68xf32>
    %c44 = arith.constant 44 : index
    %666 = memref.load %arg2[%c44] : memref<225xf32, #tpu.memory_space<smem>>
    %667 = vector.broadcast %666 : f32 to vector<14x68xf32>
    %668 = arith.mulf %667, %665 : vector<14x68xf32>
    %669 = arith.addf %656, %668 : vector<14x68xf32>
    %c119 = arith.constant 119 : index
    %670 = memref.load %arg2[%c119] : memref<225xf32, #tpu.memory_space<smem>>
    %671 = vector.broadcast %670 : f32 to vector<14x68xf32>
    %672 = arith.mulf %671, %665 : vector<14x68xf32>
    %673 = arith.addf %660, %672 : vector<14x68xf32>
    %c194 = arith.constant 194 : index
    %674 = memref.load %arg2[%c194] : memref<225xf32, #tpu.memory_space<smem>>
    %675 = vector.broadcast %674 : f32 to vector<14x68xf32>
    %676 = arith.mulf %675, %665 : vector<14x68xf32>
    %677 = arith.addf %664, %676 : vector<14x68xf32>
    %678 = vector.extract_strided_slice %625 {offsets = [4, 0], sizes = [14, 68], strides = [1, 1]} : vector<18x68xf32> to vector<14x68xf32>
    %c49 = arith.constant 49 : index
    %679 = memref.load %arg2[%c49] : memref<225xf32, #tpu.memory_space<smem>>
    %680 = vector.broadcast %679 : f32 to vector<14x68xf32>
    %681 = arith.mulf %680, %678 : vector<14x68xf32>
    %682 = arith.addf %669, %681 : vector<14x68xf32>
    %c124 = arith.constant 124 : index
    %683 = memref.load %arg2[%c124] : memref<225xf32, #tpu.memory_space<smem>>
    %684 = vector.broadcast %683 : f32 to vector<14x68xf32>
    %685 = arith.mulf %684, %678 : vector<14x68xf32>
    %686 = arith.addf %673, %685 : vector<14x68xf32>
    %c199 = arith.constant 199 : index
    %687 = memref.load %arg2[%c199] : memref<225xf32, #tpu.memory_space<smem>>
    %688 = vector.broadcast %687 : f32 to vector<14x68xf32>
    %689 = arith.mulf %688, %678 : vector<14x68xf32>
    %690 = arith.addf %677, %689 : vector<14x68xf32>
    %c2_64 = arith.constant 2 : index
    %c0_65 = arith.constant 0 : index
    %c0_66 = arith.constant 0 : index
    %691 = vector.load %arg5[%c2_64, %c0_65, %c0_66] : memref<3x18x72xf32, #tpu.memory_space<vmem>>, vector<1x18x72xf32>
    %692 = vector.shape_cast %691 : vector<1x18x72xf32> to vector<18x72xf32>
    %693 = vector.extract_strided_slice %692 {offsets = [0, 0], sizes = [18, 68], strides = [1, 1]} : vector<18x72xf32> to vector<18x68xf32>
    %694 = vector.extract_strided_slice %693 {offsets = [0, 0], sizes = [14, 68], strides = [1, 1]} : vector<18x68xf32> to vector<14x68xf32>
    %c50 = arith.constant 50 : index
    %695 = memref.load %arg2[%c50] : memref<225xf32, #tpu.memory_space<smem>>
    %696 = vector.broadcast %695 : f32 to vector<14x68xf32>
    %697 = arith.mulf %696, %694 : vector<14x68xf32>
    %698 = arith.addf %682, %697 : vector<14x68xf32>
    %c125 = arith.constant 125 : index
    %699 = memref.load %arg2[%c125] : memref<225xf32, #tpu.memory_space<smem>>
    %700 = vector.broadcast %699 : f32 to vector<14x68xf32>
    %701 = arith.mulf %700, %694 : vector<14x68xf32>
    %702 = arith.addf %686, %701 : vector<14x68xf32>
    %c200 = arith.constant 200 : index
    %703 = memref.load %arg2[%c200] : memref<225xf32, #tpu.memory_space<smem>>
    %704 = vector.broadcast %703 : f32 to vector<14x68xf32>
    %705 = arith.mulf %704, %694 : vector<14x68xf32>
    %706 = arith.addf %690, %705 : vector<14x68xf32>
    %707 = vector.extract_strided_slice %693 {offsets = [1, 0], sizes = [14, 68], strides = [1, 1]} : vector<18x68xf32> to vector<14x68xf32>
    %c55_67 = arith.constant 55 : index
    %708 = memref.load %arg2[%c55_67] : memref<225xf32, #tpu.memory_space<smem>>
    %709 = vector.broadcast %708 : f32 to vector<14x68xf32>
    %710 = arith.mulf %709, %707 : vector<14x68xf32>
    %711 = arith.addf %698, %710 : vector<14x68xf32>
    %c130 = arith.constant 130 : index
    %712 = memref.load %arg2[%c130] : memref<225xf32, #tpu.memory_space<smem>>
    %713 = vector.broadcast %712 : f32 to vector<14x68xf32>
    %714 = arith.mulf %713, %707 : vector<14x68xf32>
    %715 = arith.addf %702, %714 : vector<14x68xf32>
    %c205 = arith.constant 205 : index
    %716 = memref.load %arg2[%c205] : memref<225xf32, #tpu.memory_space<smem>>
    %717 = vector.broadcast %716 : f32 to vector<14x68xf32>
    %718 = arith.mulf %717, %707 : vector<14x68xf32>
    %719 = arith.addf %706, %718 : vector<14x68xf32>
    %720 = vector.extract_strided_slice %693 {offsets = [2, 0], sizes = [14, 68], strides = [1, 1]} : vector<18x68xf32> to vector<14x68xf32>
    %c60 = arith.constant 60 : index
    %721 = memref.load %arg2[%c60] : memref<225xf32, #tpu.memory_space<smem>>
    %722 = vector.broadcast %721 : f32 to vector<14x68xf32>
    %723 = arith.mulf %722, %720 : vector<14x68xf32>
    %724 = arith.addf %711, %723 : vector<14x68xf32>
    %c135 = arith.constant 135 : index
    %725 = memref.load %arg2[%c135] : memref<225xf32, #tpu.memory_space<smem>>
    %726 = vector.broadcast %725 : f32 to vector<14x68xf32>
    %727 = arith.mulf %726, %720 : vector<14x68xf32>
    %728 = arith.addf %715, %727 : vector<14x68xf32>
    %c210 = arith.constant 210 : index
    %729 = memref.load %arg2[%c210] : memref<225xf32, #tpu.memory_space<smem>>
    %730 = vector.broadcast %729 : f32 to vector<14x68xf32>
    %731 = arith.mulf %730, %720 : vector<14x68xf32>
    %732 = arith.addf %719, %731 : vector<14x68xf32>
    %733 = vector.extract_strided_slice %693 {offsets = [3, 0], sizes = [14, 68], strides = [1, 1]} : vector<18x68xf32> to vector<14x68xf32>
    %c65 = arith.constant 65 : index
    %734 = memref.load %arg2[%c65] : memref<225xf32, #tpu.memory_space<smem>>
    %735 = vector.broadcast %734 : f32 to vector<14x68xf32>
    %736 = arith.mulf %735, %733 : vector<14x68xf32>
    %737 = arith.addf %724, %736 : vector<14x68xf32>
    %c140 = arith.constant 140 : index
    %738 = memref.load %arg2[%c140] : memref<225xf32, #tpu.memory_space<smem>>
    %739 = vector.broadcast %738 : f32 to vector<14x68xf32>
    %740 = arith.mulf %739, %733 : vector<14x68xf32>
    %741 = arith.addf %728, %740 : vector<14x68xf32>
    %c215 = arith.constant 215 : index
    %742 = memref.load %arg2[%c215] : memref<225xf32, #tpu.memory_space<smem>>
    %743 = vector.broadcast %742 : f32 to vector<14x68xf32>
    %744 = arith.mulf %743, %733 : vector<14x68xf32>
    %745 = arith.addf %732, %744 : vector<14x68xf32>
    %746 = vector.extract_strided_slice %693 {offsets = [4, 0], sizes = [14, 68], strides = [1, 1]} : vector<18x68xf32> to vector<14x68xf32>
    %c70 = arith.constant 70 : index
    %747 = memref.load %arg2[%c70] : memref<225xf32, #tpu.memory_space<smem>>
    %748 = vector.broadcast %747 : f32 to vector<14x68xf32>
    %749 = arith.mulf %748, %746 : vector<14x68xf32>
    %750 = arith.addf %737, %749 : vector<14x68xf32>
    %c145 = arith.constant 145 : index
    %751 = memref.load %arg2[%c145] : memref<225xf32, #tpu.memory_space<smem>>
    %752 = vector.broadcast %751 : f32 to vector<14x68xf32>
    %753 = arith.mulf %752, %746 : vector<14x68xf32>
    %754 = arith.addf %741, %753 : vector<14x68xf32>
    %c220 = arith.constant 220 : index
    %755 = memref.load %arg2[%c220] : memref<225xf32, #tpu.memory_space<smem>>
    %756 = vector.broadcast %755 : f32 to vector<14x68xf32>
    %757 = arith.mulf %756, %746 : vector<14x68xf32>
    %758 = arith.addf %745, %757 : vector<14x68xf32>
    %759 = vector.extract_strided_slice %692 {offsets = [0, 1], sizes = [18, 68], strides = [1, 1]} : vector<18x72xf32> to vector<18x68xf32>
    %760 = vector.extract_strided_slice %759 {offsets = [0, 0], sizes = [14, 68], strides = [1, 1]} : vector<18x68xf32> to vector<14x68xf32>
    %c51 = arith.constant 51 : index
    %761 = memref.load %arg2[%c51] : memref<225xf32, #tpu.memory_space<smem>>
    %762 = vector.broadcast %761 : f32 to vector<14x68xf32>
    %763 = arith.mulf %762, %760 : vector<14x68xf32>
    %764 = arith.addf %750, %763 : vector<14x68xf32>
    %c126 = arith.constant 126 : index
    %765 = memref.load %arg2[%c126] : memref<225xf32, #tpu.memory_space<smem>>
    %766 = vector.broadcast %765 : f32 to vector<14x68xf32>
    %767 = arith.mulf %766, %760 : vector<14x68xf32>
    %768 = arith.addf %754, %767 : vector<14x68xf32>
    %c201 = arith.constant 201 : index
    %769 = memref.load %arg2[%c201] : memref<225xf32, #tpu.memory_space<smem>>
    %770 = vector.broadcast %769 : f32 to vector<14x68xf32>
    %771 = arith.mulf %770, %760 : vector<14x68xf32>
    %772 = arith.addf %758, %771 : vector<14x68xf32>
    %773 = vector.extract_strided_slice %759 {offsets = [1, 0], sizes = [14, 68], strides = [1, 1]} : vector<18x68xf32> to vector<14x68xf32>
    %c56 = arith.constant 56 : index
    %774 = memref.load %arg2[%c56] : memref<225xf32, #tpu.memory_space<smem>>
    %775 = vector.broadcast %774 : f32 to vector<14x68xf32>
    %776 = arith.mulf %775, %773 : vector<14x68xf32>
    %777 = arith.addf %764, %776 : vector<14x68xf32>
    %c131 = arith.constant 131 : index
    %778 = memref.load %arg2[%c131] : memref<225xf32, #tpu.memory_space<smem>>
    %779 = vector.broadcast %778 : f32 to vector<14x68xf32>
    %780 = arith.mulf %779, %773 : vector<14x68xf32>
    %781 = arith.addf %768, %780 : vector<14x68xf32>
    %c206 = arith.constant 206 : index
    %782 = memref.load %arg2[%c206] : memref<225xf32, #tpu.memory_space<smem>>
    %783 = vector.broadcast %782 : f32 to vector<14x68xf32>
    %784 = arith.mulf %783, %773 : vector<14x68xf32>
    %785 = arith.addf %772, %784 : vector<14x68xf32>
    %786 = vector.extract_strided_slice %759 {offsets = [2, 0], sizes = [14, 68], strides = [1, 1]} : vector<18x68xf32> to vector<14x68xf32>
    %c61 = arith.constant 61 : index
    %787 = memref.load %arg2[%c61] : memref<225xf32, #tpu.memory_space<smem>>
    %788 = vector.broadcast %787 : f32 to vector<14x68xf32>
    %789 = arith.mulf %788, %786 : vector<14x68xf32>
    %790 = arith.addf %777, %789 : vector<14x68xf32>
    %c136 = arith.constant 136 : index
    %791 = memref.load %arg2[%c136] : memref<225xf32, #tpu.memory_space<smem>>
    %792 = vector.broadcast %791 : f32 to vector<14x68xf32>
    %793 = arith.mulf %792, %786 : vector<14x68xf32>
    %794 = arith.addf %781, %793 : vector<14x68xf32>
    %c211 = arith.constant 211 : index
    %795 = memref.load %arg2[%c211] : memref<225xf32, #tpu.memory_space<smem>>
    %796 = vector.broadcast %795 : f32 to vector<14x68xf32>
    %797 = arith.mulf %796, %786 : vector<14x68xf32>
    %798 = arith.addf %785, %797 : vector<14x68xf32>
    %799 = vector.extract_strided_slice %759 {offsets = [3, 0], sizes = [14, 68], strides = [1, 1]} : vector<18x68xf32> to vector<14x68xf32>
    %c66 = arith.constant 66 : index
    %800 = memref.load %arg2[%c66] : memref<225xf32, #tpu.memory_space<smem>>
    %801 = vector.broadcast %800 : f32 to vector<14x68xf32>
    %802 = arith.mulf %801, %799 : vector<14x68xf32>
    %803 = arith.addf %790, %802 : vector<14x68xf32>
    %c141 = arith.constant 141 : index
    %804 = memref.load %arg2[%c141] : memref<225xf32, #tpu.memory_space<smem>>
    %805 = vector.broadcast %804 : f32 to vector<14x68xf32>
    %806 = arith.mulf %805, %799 : vector<14x68xf32>
    %807 = arith.addf %794, %806 : vector<14x68xf32>
    %c216 = arith.constant 216 : index
    %808 = memref.load %arg2[%c216] : memref<225xf32, #tpu.memory_space<smem>>
    %809 = vector.broadcast %808 : f32 to vector<14x68xf32>
    %810 = arith.mulf %809, %799 : vector<14x68xf32>
    %811 = arith.addf %798, %810 : vector<14x68xf32>
    %812 = vector.extract_strided_slice %759 {offsets = [4, 0], sizes = [14, 68], strides = [1, 1]} : vector<18x68xf32> to vector<14x68xf32>
    %c71_68 = arith.constant 71 : index
    %813 = memref.load %arg2[%c71_68] : memref<225xf32, #tpu.memory_space<smem>>
    %814 = vector.broadcast %813 : f32 to vector<14x68xf32>
    %815 = arith.mulf %814, %812 : vector<14x68xf32>
    %816 = arith.addf %803, %815 : vector<14x68xf32>
    %c146 = arith.constant 146 : index
    %817 = memref.load %arg2[%c146] : memref<225xf32, #tpu.memory_space<smem>>
    %818 = vector.broadcast %817 : f32 to vector<14x68xf32>
    %819 = arith.mulf %818, %812 : vector<14x68xf32>
    %820 = arith.addf %807, %819 : vector<14x68xf32>
    %c221 = arith.constant 221 : index
    %821 = memref.load %arg2[%c221] : memref<225xf32, #tpu.memory_space<smem>>
    %822 = vector.broadcast %821 : f32 to vector<14x68xf32>
    %823 = arith.mulf %822, %812 : vector<14x68xf32>
    %824 = arith.addf %811, %823 : vector<14x68xf32>
    %825 = vector.extract_strided_slice %692 {offsets = [0, 2], sizes = [18, 68], strides = [1, 1]} : vector<18x72xf32> to vector<18x68xf32>
    %826 = vector.extract_strided_slice %825 {offsets = [0, 0], sizes = [14, 68], strides = [1, 1]} : vector<18x68xf32> to vector<14x68xf32>
    %c52 = arith.constant 52 : index
    %827 = memref.load %arg2[%c52] : memref<225xf32, #tpu.memory_space<smem>>
    %828 = vector.broadcast %827 : f32 to vector<14x68xf32>
    %829 = arith.mulf %828, %826 : vector<14x68xf32>
    %830 = arith.addf %816, %829 : vector<14x68xf32>
    %c127 = arith.constant 127 : index
    %831 = memref.load %arg2[%c127] : memref<225xf32, #tpu.memory_space<smem>>
    %832 = vector.broadcast %831 : f32 to vector<14x68xf32>
    %833 = arith.mulf %832, %826 : vector<14x68xf32>
    %834 = arith.addf %820, %833 : vector<14x68xf32>
    %c202 = arith.constant 202 : index
    %835 = memref.load %arg2[%c202] : memref<225xf32, #tpu.memory_space<smem>>
    %836 = vector.broadcast %835 : f32 to vector<14x68xf32>
    %837 = arith.mulf %836, %826 : vector<14x68xf32>
    %838 = arith.addf %824, %837 : vector<14x68xf32>
    %839 = vector.extract_strided_slice %825 {offsets = [1, 0], sizes = [14, 68], strides = [1, 1]} : vector<18x68xf32> to vector<14x68xf32>
    %c57 = arith.constant 57 : index
    %840 = memref.load %arg2[%c57] : memref<225xf32, #tpu.memory_space<smem>>
    %841 = vector.broadcast %840 : f32 to vector<14x68xf32>
    %842 = arith.mulf %841, %839 : vector<14x68xf32>
    %843 = arith.addf %830, %842 : vector<14x68xf32>
    %c132 = arith.constant 132 : index
    %844 = memref.load %arg2[%c132] : memref<225xf32, #tpu.memory_space<smem>>
    %845 = vector.broadcast %844 : f32 to vector<14x68xf32>
    %846 = arith.mulf %845, %839 : vector<14x68xf32>
    %847 = arith.addf %834, %846 : vector<14x68xf32>
    %c207 = arith.constant 207 : index
    %848 = memref.load %arg2[%c207] : memref<225xf32, #tpu.memory_space<smem>>
    %849 = vector.broadcast %848 : f32 to vector<14x68xf32>
    %850 = arith.mulf %849, %839 : vector<14x68xf32>
    %851 = arith.addf %838, %850 : vector<14x68xf32>
    %852 = vector.extract_strided_slice %825 {offsets = [2, 0], sizes = [14, 68], strides = [1, 1]} : vector<18x68xf32> to vector<14x68xf32>
    %c62 = arith.constant 62 : index
    %853 = memref.load %arg2[%c62] : memref<225xf32, #tpu.memory_space<smem>>
    %854 = vector.broadcast %853 : f32 to vector<14x68xf32>
    %855 = arith.mulf %854, %852 : vector<14x68xf32>
    %856 = arith.addf %843, %855 : vector<14x68xf32>
    %c137 = arith.constant 137 : index
    %857 = memref.load %arg2[%c137] : memref<225xf32, #tpu.memory_space<smem>>
    %858 = vector.broadcast %857 : f32 to vector<14x68xf32>
    %859 = arith.mulf %858, %852 : vector<14x68xf32>
    %860 = arith.addf %847, %859 : vector<14x68xf32>
    %c212 = arith.constant 212 : index
    %861 = memref.load %arg2[%c212] : memref<225xf32, #tpu.memory_space<smem>>
    %862 = vector.broadcast %861 : f32 to vector<14x68xf32>
    %863 = arith.mulf %862, %852 : vector<14x68xf32>
    %864 = arith.addf %851, %863 : vector<14x68xf32>
    %865 = vector.extract_strided_slice %825 {offsets = [3, 0], sizes = [14, 68], strides = [1, 1]} : vector<18x68xf32> to vector<14x68xf32>
    %c67 = arith.constant 67 : index
    %866 = memref.load %arg2[%c67] : memref<225xf32, #tpu.memory_space<smem>>
    %867 = vector.broadcast %866 : f32 to vector<14x68xf32>
    %868 = arith.mulf %867, %865 : vector<14x68xf32>
    %869 = arith.addf %856, %868 : vector<14x68xf32>
    %c142 = arith.constant 142 : index
    %870 = memref.load %arg2[%c142] : memref<225xf32, #tpu.memory_space<smem>>
    %871 = vector.broadcast %870 : f32 to vector<14x68xf32>
    %872 = arith.mulf %871, %865 : vector<14x68xf32>
    %873 = arith.addf %860, %872 : vector<14x68xf32>
    %c217 = arith.constant 217 : index
    %874 = memref.load %arg2[%c217] : memref<225xf32, #tpu.memory_space<smem>>
    %875 = vector.broadcast %874 : f32 to vector<14x68xf32>
    %876 = arith.mulf %875, %865 : vector<14x68xf32>
    %877 = arith.addf %864, %876 : vector<14x68xf32>
    %878 = vector.extract_strided_slice %825 {offsets = [4, 0], sizes = [14, 68], strides = [1, 1]} : vector<18x68xf32> to vector<14x68xf32>
    %c72 = arith.constant 72 : index
    %879 = memref.load %arg2[%c72] : memref<225xf32, #tpu.memory_space<smem>>
    %880 = vector.broadcast %879 : f32 to vector<14x68xf32>
    %881 = arith.mulf %880, %878 : vector<14x68xf32>
    %882 = arith.addf %869, %881 : vector<14x68xf32>
    %c147 = arith.constant 147 : index
    %883 = memref.load %arg2[%c147] : memref<225xf32, #tpu.memory_space<smem>>
    %884 = vector.broadcast %883 : f32 to vector<14x68xf32>
    %885 = arith.mulf %884, %878 : vector<14x68xf32>
    %886 = arith.addf %873, %885 : vector<14x68xf32>
    %c222 = arith.constant 222 : index
    %887 = memref.load %arg2[%c222] : memref<225xf32, #tpu.memory_space<smem>>
    %888 = vector.broadcast %887 : f32 to vector<14x68xf32>
    %889 = arith.mulf %888, %878 : vector<14x68xf32>
    %890 = arith.addf %877, %889 : vector<14x68xf32>
    %891 = vector.extract_strided_slice %692 {offsets = [0, 3], sizes = [18, 68], strides = [1, 1]} : vector<18x72xf32> to vector<18x68xf32>
    %892 = vector.extract_strided_slice %891 {offsets = [0, 0], sizes = [14, 68], strides = [1, 1]} : vector<18x68xf32> to vector<14x68xf32>
    %c53_69 = arith.constant 53 : index
    %893 = memref.load %arg2[%c53_69] : memref<225xf32, #tpu.memory_space<smem>>
    %894 = vector.broadcast %893 : f32 to vector<14x68xf32>
    %895 = arith.mulf %894, %892 : vector<14x68xf32>
    %896 = arith.addf %882, %895 : vector<14x68xf32>
    %c128 = arith.constant 128 : index
    %897 = memref.load %arg2[%c128] : memref<225xf32, #tpu.memory_space<smem>>
    %898 = vector.broadcast %897 : f32 to vector<14x68xf32>
    %899 = arith.mulf %898, %892 : vector<14x68xf32>
    %900 = arith.addf %886, %899 : vector<14x68xf32>
    %c203 = arith.constant 203 : index
    %901 = memref.load %arg2[%c203] : memref<225xf32, #tpu.memory_space<smem>>
    %902 = vector.broadcast %901 : f32 to vector<14x68xf32>
    %903 = arith.mulf %902, %892 : vector<14x68xf32>
    %904 = arith.addf %890, %903 : vector<14x68xf32>
    %905 = vector.extract_strided_slice %891 {offsets = [1, 0], sizes = [14, 68], strides = [1, 1]} : vector<18x68xf32> to vector<14x68xf32>
    %c58 = arith.constant 58 : index
    %906 = memref.load %arg2[%c58] : memref<225xf32, #tpu.memory_space<smem>>
    %907 = vector.broadcast %906 : f32 to vector<14x68xf32>
    %908 = arith.mulf %907, %905 : vector<14x68xf32>
    %909 = arith.addf %896, %908 : vector<14x68xf32>
    %c133 = arith.constant 133 : index
    %910 = memref.load %arg2[%c133] : memref<225xf32, #tpu.memory_space<smem>>
    %911 = vector.broadcast %910 : f32 to vector<14x68xf32>
    %912 = arith.mulf %911, %905 : vector<14x68xf32>
    %913 = arith.addf %900, %912 : vector<14x68xf32>
    %c208 = arith.constant 208 : index
    %914 = memref.load %arg2[%c208] : memref<225xf32, #tpu.memory_space<smem>>
    %915 = vector.broadcast %914 : f32 to vector<14x68xf32>
    %916 = arith.mulf %915, %905 : vector<14x68xf32>
    %917 = arith.addf %904, %916 : vector<14x68xf32>
    %918 = vector.extract_strided_slice %891 {offsets = [2, 0], sizes = [14, 68], strides = [1, 1]} : vector<18x68xf32> to vector<14x68xf32>
    %c63 = arith.constant 63 : index
    %919 = memref.load %arg2[%c63] : memref<225xf32, #tpu.memory_space<smem>>
    %920 = vector.broadcast %919 : f32 to vector<14x68xf32>
    %921 = arith.mulf %920, %918 : vector<14x68xf32>
    %922 = arith.addf %909, %921 : vector<14x68xf32>
    %c138 = arith.constant 138 : index
    %923 = memref.load %arg2[%c138] : memref<225xf32, #tpu.memory_space<smem>>
    %924 = vector.broadcast %923 : f32 to vector<14x68xf32>
    %925 = arith.mulf %924, %918 : vector<14x68xf32>
    %926 = arith.addf %913, %925 : vector<14x68xf32>
    %c213 = arith.constant 213 : index
    %927 = memref.load %arg2[%c213] : memref<225xf32, #tpu.memory_space<smem>>
    %928 = vector.broadcast %927 : f32 to vector<14x68xf32>
    %929 = arith.mulf %928, %918 : vector<14x68xf32>
    %930 = arith.addf %917, %929 : vector<14x68xf32>
    %931 = vector.extract_strided_slice %891 {offsets = [3, 0], sizes = [14, 68], strides = [1, 1]} : vector<18x68xf32> to vector<14x68xf32>
    %c68 = arith.constant 68 : index
    %932 = memref.load %arg2[%c68] : memref<225xf32, #tpu.memory_space<smem>>
    %933 = vector.broadcast %932 : f32 to vector<14x68xf32>
    %934 = arith.mulf %933, %931 : vector<14x68xf32>
    %935 = arith.addf %922, %934 : vector<14x68xf32>
    %c143 = arith.constant 143 : index
    %936 = memref.load %arg2[%c143] : memref<225xf32, #tpu.memory_space<smem>>
    %937 = vector.broadcast %936 : f32 to vector<14x68xf32>
    %938 = arith.mulf %937, %931 : vector<14x68xf32>
    %939 = arith.addf %926, %938 : vector<14x68xf32>
    %c218 = arith.constant 218 : index
    %940 = memref.load %arg2[%c218] : memref<225xf32, #tpu.memory_space<smem>>
    %941 = vector.broadcast %940 : f32 to vector<14x68xf32>
    %942 = arith.mulf %941, %931 : vector<14x68xf32>
    %943 = arith.addf %930, %942 : vector<14x68xf32>
    %944 = vector.extract_strided_slice %891 {offsets = [4, 0], sizes = [14, 68], strides = [1, 1]} : vector<18x68xf32> to vector<14x68xf32>
    %c73 = arith.constant 73 : index
    %945 = memref.load %arg2[%c73] : memref<225xf32, #tpu.memory_space<smem>>
    %946 = vector.broadcast %945 : f32 to vector<14x68xf32>
    %947 = arith.mulf %946, %944 : vector<14x68xf32>
    %948 = arith.addf %935, %947 : vector<14x68xf32>
    %c148 = arith.constant 148 : index
    %949 = memref.load %arg2[%c148] : memref<225xf32, #tpu.memory_space<smem>>
    %950 = vector.broadcast %949 : f32 to vector<14x68xf32>
    %951 = arith.mulf %950, %944 : vector<14x68xf32>
    %952 = arith.addf %939, %951 : vector<14x68xf32>
    %c223 = arith.constant 223 : index
    %953 = memref.load %arg2[%c223] : memref<225xf32, #tpu.memory_space<smem>>
    %954 = vector.broadcast %953 : f32 to vector<14x68xf32>
    %955 = arith.mulf %954, %944 : vector<14x68xf32>
    %956 = arith.addf %943, %955 : vector<14x68xf32>
    %957 = vector.extract_strided_slice %692 {offsets = [0, 4], sizes = [18, 68], strides = [1, 1]} : vector<18x72xf32> to vector<18x68xf32>
    %958 = vector.extract_strided_slice %957 {offsets = [0, 0], sizes = [14, 68], strides = [1, 1]} : vector<18x68xf32> to vector<14x68xf32>
    %c54_70 = arith.constant 54 : index
    %959 = memref.load %arg2[%c54_70] : memref<225xf32, #tpu.memory_space<smem>>
    %960 = vector.broadcast %959 : f32 to vector<14x68xf32>
    %961 = arith.mulf %960, %958 : vector<14x68xf32>
    %962 = arith.addf %948, %961 : vector<14x68xf32>
    %c129 = arith.constant 129 : index
    %963 = memref.load %arg2[%c129] : memref<225xf32, #tpu.memory_space<smem>>
    %964 = vector.broadcast %963 : f32 to vector<14x68xf32>
    %965 = arith.mulf %964, %958 : vector<14x68xf32>
    %966 = arith.addf %952, %965 : vector<14x68xf32>
    %c204 = arith.constant 204 : index
    %967 = memref.load %arg2[%c204] : memref<225xf32, #tpu.memory_space<smem>>
    %968 = vector.broadcast %967 : f32 to vector<14x68xf32>
    %969 = arith.mulf %968, %958 : vector<14x68xf32>
    %970 = arith.addf %956, %969 : vector<14x68xf32>
    %971 = vector.extract_strided_slice %957 {offsets = [1, 0], sizes = [14, 68], strides = [1, 1]} : vector<18x68xf32> to vector<14x68xf32>
    %c59 = arith.constant 59 : index
    %972 = memref.load %arg2[%c59] : memref<225xf32, #tpu.memory_space<smem>>
    %973 = vector.broadcast %972 : f32 to vector<14x68xf32>
    %974 = arith.mulf %973, %971 : vector<14x68xf32>
    %975 = arith.addf %962, %974 : vector<14x68xf32>
    %c134 = arith.constant 134 : index
    %976 = memref.load %arg2[%c134] : memref<225xf32, #tpu.memory_space<smem>>
    %977 = vector.broadcast %976 : f32 to vector<14x68xf32>
    %978 = arith.mulf %977, %971 : vector<14x68xf32>
    %979 = arith.addf %966, %978 : vector<14x68xf32>
    %c209 = arith.constant 209 : index
    %980 = memref.load %arg2[%c209] : memref<225xf32, #tpu.memory_space<smem>>
    %981 = vector.broadcast %980 : f32 to vector<14x68xf32>
    %982 = arith.mulf %981, %971 : vector<14x68xf32>
    %983 = arith.addf %970, %982 : vector<14x68xf32>
    %984 = vector.extract_strided_slice %957 {offsets = [2, 0], sizes = [14, 68], strides = [1, 1]} : vector<18x68xf32> to vector<14x68xf32>
    %c64 = arith.constant 64 : index
    %985 = memref.load %arg2[%c64] : memref<225xf32, #tpu.memory_space<smem>>
    %986 = vector.broadcast %985 : f32 to vector<14x68xf32>
    %987 = arith.mulf %986, %984 : vector<14x68xf32>
    %988 = arith.addf %975, %987 : vector<14x68xf32>
    %c139 = arith.constant 139 : index
    %989 = memref.load %arg2[%c139] : memref<225xf32, #tpu.memory_space<smem>>
    %990 = vector.broadcast %989 : f32 to vector<14x68xf32>
    %991 = arith.mulf %990, %984 : vector<14x68xf32>
    %992 = arith.addf %979, %991 : vector<14x68xf32>
    %c214 = arith.constant 214 : index
    %993 = memref.load %arg2[%c214] : memref<225xf32, #tpu.memory_space<smem>>
    %994 = vector.broadcast %993 : f32 to vector<14x68xf32>
    %995 = arith.mulf %994, %984 : vector<14x68xf32>
    %996 = arith.addf %983, %995 : vector<14x68xf32>
    %997 = vector.extract_strided_slice %957 {offsets = [3, 0], sizes = [14, 68], strides = [1, 1]} : vector<18x68xf32> to vector<14x68xf32>
    %c69 = arith.constant 69 : index
    %998 = memref.load %arg2[%c69] : memref<225xf32, #tpu.memory_space<smem>>
    %999 = vector.broadcast %998 : f32 to vector<14x68xf32>
    %1000 = arith.mulf %999, %997 : vector<14x68xf32>
    %1001 = arith.addf %988, %1000 : vector<14x68xf32>
    %c144 = arith.constant 144 : index
    %1002 = memref.load %arg2[%c144] : memref<225xf32, #tpu.memory_space<smem>>
    %1003 = vector.broadcast %1002 : f32 to vector<14x68xf32>
    %1004 = arith.mulf %1003, %997 : vector<14x68xf32>
    %1005 = arith.addf %992, %1004 : vector<14x68xf32>
    %c219 = arith.constant 219 : index
    %1006 = memref.load %arg2[%c219] : memref<225xf32, #tpu.memory_space<smem>>
    %1007 = vector.broadcast %1006 : f32 to vector<14x68xf32>
    %1008 = arith.mulf %1007, %997 : vector<14x68xf32>
    %1009 = arith.addf %996, %1008 : vector<14x68xf32>
    %1010 = vector.extract_strided_slice %957 {offsets = [4, 0], sizes = [14, 68], strides = [1, 1]} : vector<18x68xf32> to vector<14x68xf32>
    %c74 = arith.constant 74 : index
    %1011 = memref.load %arg2[%c74] : memref<225xf32, #tpu.memory_space<smem>>
    %1012 = vector.broadcast %1011 : f32 to vector<14x68xf32>
    %1013 = arith.mulf %1012, %1010 : vector<14x68xf32>
    %1014 = arith.addf %1001, %1013 : vector<14x68xf32>
    %c149 = arith.constant 149 : index
    %1015 = memref.load %arg2[%c149] : memref<225xf32, #tpu.memory_space<smem>>
    %1016 = vector.broadcast %1015 : f32 to vector<14x68xf32>
    %1017 = arith.mulf %1016, %1010 : vector<14x68xf32>
    %1018 = arith.addf %1005, %1017 : vector<14x68xf32>
    %c224 = arith.constant 224 : index
    %1019 = memref.load %arg2[%c224] : memref<225xf32, #tpu.memory_space<smem>>
    %1020 = vector.broadcast %1019 : f32 to vector<14x68xf32>
    %1021 = arith.mulf %1020, %1010 : vector<14x68xf32>
    %1022 = arith.addf %1009, %1021 : vector<14x68xf32>
    %c0_71 = arith.constant 0 : index
    %1023 = memref.load %arg3[%c0_71] : memref<3xf32, #tpu.memory_space<smem>>
    %1024 = vector.broadcast %1023 : f32 to vector<14x68xf32>
    %1025 = arith.addf %1014, %1024 : vector<14x68xf32>
    %1026 = vector.extract_strided_slice %1025 {offsets = [0, 0], sizes = [14, 14], strides = [1, 1]} : vector<14x68xf32> to vector<14x14xf32>
    %c0_72 = arith.constant 0 : index
    %c0_73 = arith.constant 0 : index
    %c0_74 = arith.constant 0 : index
    %c0_75 = arith.constant 0 : index
    %1027 = vector.load %arg4[%c0_72, %c0_73, %c0_74, %c0_75] : memref<4x3x14x14xf32, #tpu.memory_space<vmem>>, vector<1x1x14x14xf32>
    %1028 = vector.shape_cast %1027 : vector<1x1x14x14xf32> to vector<14x14xf32>
    %1029 = vector.shape_cast %1026 : vector<14x14xf32> to vector<1x1x14x14xf32>
    tpu.vector_store %arg4[%c0_72, %c0_73, %c0_74, %c0_75], %1029 {strides = array<i32>} : memref<4x3x14x14xf32, #tpu.memory_space<vmem>>, vector<1x1x14x14xf32>,
    %1030 = vector.extract_strided_slice %1025 {offsets = [0, 18], sizes = [14, 14], strides = [1, 1]} : vector<14x68xf32> to vector<14x14xf32>
    %c1_76 = arith.constant 1 : index
    %c0_77 = arith.constant 0 : index
    %c0_78 = arith.constant 0 : index
    %c0_79 = arith.constant 0 : index
    %1031 = vector.load %arg4[%c1_76, %c0_77, %c0_78, %c0_79] : memref<4x3x14x14xf32, #tpu.memory_space<vmem>>, vector<1x1x14x14xf32>
    %1032 = vector.shape_cast %1031 : vector<1x1x14x14xf32> to vector<14x14xf32>
    %1033 = vector.shape_cast %1030 : vector<14x14xf32> to vector<1x1x14x14xf32>
    tpu.vector_store %arg4[%c1_76, %c0_77, %c0_78, %c0_79], %1033 {strides = array<i32>} : memref<4x3x14x14xf32, #tpu.memory_space<vmem>>, vector<1x1x14x14xf32>,
    %1034 = vector.extract_strided_slice %1025 {offsets = [0, 36], sizes = [14, 14], strides = [1, 1]} : vector<14x68xf32> to vector<14x14xf32>
    %c2_80 = arith.constant 2 : index
    %c0_81 = arith.constant 0 : index
    %c0_82 = arith.constant 0 : index
    %c0_83 = arith.constant 0 : index
    %1035 = vector.load %arg4[%c2_80, %c0_81, %c0_82, %c0_83] : memref<4x3x14x14xf32, #tpu.memory_space<vmem>>, vector<1x1x14x14xf32>
    %1036 = vector.shape_cast %1035 : vector<1x1x14x14xf32> to vector<14x14xf32>
    %1037 = vector.shape_cast %1034 : vector<14x14xf32> to vector<1x1x14x14xf32>
    tpu.vector_store %arg4[%c2_80, %c0_81, %c0_82, %c0_83], %1037 {strides = array<i32>} : memref<4x3x14x14xf32, #tpu.memory_space<vmem>>, vector<1x1x14x14xf32>,
    %1038 = vector.extract_strided_slice %1025 {offsets = [0, 54], sizes = [14, 14], strides = [1, 1]} : vector<14x68xf32> to vector<14x14xf32>
    %c3_84 = arith.constant 3 : index
    %c0_85 = arith.constant 0 : index
    %c0_86 = arith.constant 0 : index
    %c0_87 = arith.constant 0 : index
    %1039 = vector.load %arg4[%c3_84, %c0_85, %c0_86, %c0_87] : memref<4x3x14x14xf32, #tpu.memory_space<vmem>>, vector<1x1x14x14xf32>
    %1040 = vector.shape_cast %1039 : vector<1x1x14x14xf32> to vector<14x14xf32>
    %1041 = vector.shape_cast %1038 : vector<14x14xf32> to vector<1x1x14x14xf32>
    tpu.vector_store %arg4[%c3_84, %c0_85, %c0_86, %c0_87], %1041 {strides = array<i32>} : memref<4x3x14x14xf32, #tpu.memory_space<vmem>>, vector<1x1x14x14xf32>,
    %c1_88 = arith.constant 1 : index
    %1042 = memref.load %arg3[%c1_88] : memref<3xf32, #tpu.memory_space<smem>>
    %1043 = vector.broadcast %1042 : f32 to vector<14x68xf32>
    %1044 = arith.addf %1018, %1043 : vector<14x68xf32>
    %1045 = vector.extract_strided_slice %1044 {offsets = [0, 0], sizes = [14, 14], strides = [1, 1]} : vector<14x68xf32> to vector<14x14xf32>
    %c0_89 = arith.constant 0 : index
    %c1_90 = arith.constant 1 : index
    %c0_91 = arith.constant 0 : index
    %c0_92 = arith.constant 0 : index
    %1046 = vector.load %arg4[%c0_89, %c1_90, %c0_91, %c0_92] : memref<4x3x14x14xf32, #tpu.memory_space<vmem>>, vector<1x1x14x14xf32>
    %1047 = vector.shape_cast %1046 : vector<1x1x14x14xf32> to vector<14x14xf32>
    %1048 = vector.shape_cast %1045 : vector<14x14xf32> to vector<1x1x14x14xf32>
    tpu.vector_store %arg4[%c0_89, %c1_90, %c0_91, %c0_92], %1048 {strides = array<i32>} : memref<4x3x14x14xf32, #tpu.memory_space<vmem>>, vector<1x1x14x14xf32>,
    %1049 = vector.extract_strided_slice %1044 {offsets = [0, 18], sizes = [14, 14], strides = [1, 1]} : vector<14x68xf32> to vector<14x14xf32>
    %c1_93 = arith.constant 1 : index
    %c1_94 = arith.constant 1 : index
    %c0_95 = arith.constant 0 : index
    %c0_96 = arith.constant 0 : index
    %1050 = vector.load %arg4[%c1_93, %c1_94, %c0_95, %c0_96] : memref<4x3x14x14xf32, #tpu.memory_space<vmem>>, vector<1x1x14x14xf32>
    %1051 = vector.shape_cast %1050 : vector<1x1x14x14xf32> to vector<14x14xf32>
    %1052 = vector.shape_cast %1049 : vector<14x14xf32> to vector<1x1x14x14xf32>
    tpu.vector_store %arg4[%c1_93, %c1_94, %c0_95, %c0_96], %1052 {strides = array<i32>} : memref<4x3x14x14xf32, #tpu.memory_space<vmem>>, vector<1x1x14x14xf32>,
    %1053 = vector.extract_strided_slice %1044 {offsets = [0, 36], sizes = [14, 14], strides = [1, 1]} : vector<14x68xf32> to vector<14x14xf32>
    %c2_97 = arith.constant 2 : index
    %c1_98 = arith.constant 1 : index
    %c0_99 = arith.constant 0 : index
    %c0_100 = arith.constant 0 : index
    %1054 = vector.load %arg4[%c2_97, %c1_98, %c0_99, %c0_100] : memref<4x3x14x14xf32, #tpu.memory_space<vmem>>, vector<1x1x14x14xf32>
    %1055 = vector.shape_cast %1054 : vector<1x1x14x14xf32> to vector<14x14xf32>
    %1056 = vector.shape_cast %1053 : vector<14x14xf32> to vector<1x1x14x14xf32>
    tpu.vector_store %arg4[%c2_97, %c1_98, %c0_99, %c0_100], %1056 {strides = array<i32>} : memref<4x3x14x14xf32, #tpu.memory_space<vmem>>, vector<1x1x14x14xf32>,
    %1057 = vector.extract_strided_slice %1044 {offsets = [0, 54], sizes = [14, 14], strides = [1, 1]} : vector<14x68xf32> to vector<14x14xf32>
    %c3_101 = arith.constant 3 : index
    %c1_102 = arith.constant 1 : index
    %c0_103 = arith.constant 0 : index
    %c0_104 = arith.constant 0 : index
    %1058 = vector.load %arg4[%c3_101, %c1_102, %c0_103, %c0_104] : memref<4x3x14x14xf32, #tpu.memory_space<vmem>>, vector<1x1x14x14xf32>
    %1059 = vector.shape_cast %1058 : vector<1x1x14x14xf32> to vector<14x14xf32>
    %1060 = vector.shape_cast %1057 : vector<14x14xf32> to vector<1x1x14x14xf32>
    tpu.vector_store %arg4[%c3_101, %c1_102, %c0_103, %c0_104], %1060 {strides = array<i32>} : memref<4x3x14x14xf32, #tpu.memory_space<vmem>>, vector<1x1x14x14xf32>,
    %c2_105 = arith.constant 2 : index
    %1061 = memref.load %arg3[%c2_105] : memref<3xf32, #tpu.memory_space<smem>>
    %1062 = vector.broadcast %1061 : f32 to vector<14x68xf32>
    %1063 = arith.addf %1022, %1062 : vector<14x68xf32>
    %1064 = vector.extract_strided_slice %1063 {offsets = [0, 0], sizes = [14, 14], strides = [1, 1]} : vector<14x68xf32> to vector<14x14xf32>
    %c0_106 = arith.constant 0 : index
    %c2_107 = arith.constant 2 : index
    %c0_108 = arith.constant 0 : index
    %c0_109 = arith.constant 0 : index
    %1065 = vector.load %arg4[%c0_106, %c2_107, %c0_108, %c0_109] : memref<4x3x14x14xf32, #tpu.memory_space<vmem>>, vector<1x1x14x14xf32>
    %1066 = vector.shape_cast %1065 : vector<1x1x14x14xf32> to vector<14x14xf32>
    %1067 = vector.shape_cast %1064 : vector<14x14xf32> to vector<1x1x14x14xf32>
    tpu.vector_store %arg4[%c0_106, %c2_107, %c0_108, %c0_109], %1067 {strides = array<i32>} : memref<4x3x14x14xf32, #tpu.memory_space<vmem>>, vector<1x1x14x14xf32>,
    %1068 = vector.extract_strided_slice %1063 {offsets = [0, 18], sizes = [14, 14], strides = [1, 1]} : vector<14x68xf32> to vector<14x14xf32>
    %c1_110 = arith.constant 1 : index
    %c2_111 = arith.constant 2 : index
    %c0_112 = arith.constant 0 : index
    %c0_113 = arith.constant 0 : index
    %1069 = vector.load %arg4[%c1_110, %c2_111, %c0_112, %c0_113] : memref<4x3x14x14xf32, #tpu.memory_space<vmem>>, vector<1x1x14x14xf32>
    %1070 = vector.shape_cast %1069 : vector<1x1x14x14xf32> to vector<14x14xf32>
    %1071 = vector.shape_cast %1068 : vector<14x14xf32> to vector<1x1x14x14xf32>
    tpu.vector_store %arg4[%c1_110, %c2_111, %c0_112, %c0_113], %1071 {strides = array<i32>} : memref<4x3x14x14xf32, #tpu.memory_space<vmem>>, vector<1x1x14x14xf32>,
    %1072 = vector.extract_strided_slice %1063 {offsets = [0, 36], sizes = [14, 14], strides = [1, 1]} : vector<14x68xf32> to vector<14x14xf32>
    %c2_114 = arith.constant 2 : index
    %c2_115 = arith.constant 2 : index
    %c0_116 = arith.constant 0 : index
    %c0_117 = arith.constant 0 : index
    %1073 = vector.load %arg4[%c2_114, %c2_115, %c0_116, %c0_117] : memref<4x3x14x14xf32, #tpu.memory_space<vmem>>, vector<1x1x14x14xf32>
    %1074 = vector.shape_cast %1073 : vector<1x1x14x14xf32> to vector<14x14xf32>
    %1075 = vector.shape_cast %1072 : vector<14x14xf32> to vector<1x1x14x14xf32>
    tpu.vector_store %arg4[%c2_114, %c2_115, %c0_116, %c0_117], %1075 {strides = array<i32>} : memref<4x3x14x14xf32, #tpu.memory_space<vmem>>, vector<1x1x14x14xf32>,
    %1076 = vector.extract_strided_slice %1063 {offsets = [0, 54], sizes = [14, 14], strides = [1, 1]} : vector<14x68xf32> to vector<14x14xf32>
    %c3_118 = arith.constant 3 : index
    %c2_119 = arith.constant 2 : index
    %c0_120 = arith.constant 0 : index
    %c0_121 = arith.constant 0 : index
    %1077 = vector.load %arg4[%c3_118, %c2_119, %c0_120, %c0_121] : memref<4x3x14x14xf32, #tpu.memory_space<vmem>>, vector<1x1x14x14xf32>
    %1078 = vector.shape_cast %1077 : vector<1x1x14x14xf32> to vector<14x14xf32>
    %1079 = vector.shape_cast %1076 : vector<14x14xf32> to vector<1x1x14x14xf32>
    tpu.vector_store %arg4[%c3_118, %c2_119, %c0_120, %c0_121], %1079 {strides = array<i32>} : memref<4x3x14x14xf32, #tpu.memory_space<vmem>>, vector<1x1x14x14xf32>,
    return
  }
  func.func @transform_0(%arg0: i32) -> (i32, i32, i32, i32) {
    %c0_i32 = arith.constant 0 : i32
    %c0_i32_0 = arith.constant 0 : i32
    %c0_i32_1 = arith.constant 0 : i32
    %c0_i32_2 = arith.constant 0 : i32
    return %arg0, %c0_i32, %c0_i32_0, %c0_i32_1 : i32, i32, i32, i32
  }
  func.func @transform_1(%arg0: i32) -> i32 {
    %c0_i32 = arith.constant 0 : i32
    %c0_i32_0 = arith.constant 0 : i32
    return %c0_i32 : i32
  }
  func.func @transform_2(%arg0: i32) -> i32 {
    %c0_i32 = arith.constant 0 : i32
    %c0_i32_0 = arith.constant 0 : i32
    return %c0_i32 : i32
  }
  func.func @transform_3(%arg0: i32) -> (i32, i32, i32, i32) {
    %c0_i32 = arith.constant 0 : i32
    %c0_i32_0 = arith.constant 0 : i32
    %c0_i32_1 = arith.constant 0 : i32
    %c0_i32_2 = arith.constant 0 : i32
    return %arg0, %c0_i32, %c0_i32_0, %c0_i32_1 : i32, i32, i32, i32
  }
}

</mosaic_0001>

<bundles_post_ra>
// kernel: tpu_custom_call.1
= control target key start
LH: loop header
LB: loop body
LE: loop exit
PB: predicated region body
PF: predicated region fallthrough
CT: control target
= control target key end

     0   :  { %8 = vsyncpa [#allocation4], 0  ;;  %s8365_s0 = inlined_call_operand.hbm [shape: f32[8,3,16,16], index: 0, kind: input, shape index: {}]   ;;  %s8366_s1 = inlined_call_operand.hbm [shape: f32[225], index: 1, kind: input, shape index: {}]   ;;  %s8367_s2 = inlined_call_operand.vmem [shape: f32[3], index: 2, kind: input, shape index: {}]   ;;  %s8368_s3 = inlined_call_operand.vmem [shape: f32[8,3,14,14], index: 3, kind: output, shape index: {}]  }
   0x1   :  { %10 = vsyncpa [#allocation4 + $0x1], 0 }
   0x2   :  { %11 = vsyncpa [#allocation5], 0 }
   0x3   :  { %12 = vsyncpa [#allocation6], 0  ;;  %s5036_s12 = smov 0   ;;  %s5038_s13 = smov 0  }
   0x4   :  { %s5040_s14 = smov 0   ;;  %s5042_s15 = smov 0  }
   0x5 LB: > { %s4522_s16 = sadd.s32 4294967295, %s4998_s15   ;;  %s5056_s17 = sadd.s32 1, %s4998_s15   ;;  %s4998_s15 = sphi %s5042_s15, %s8914_s15   ;;  %s4994_s14 = sphi %s5040_s14, %s8913_s14   ;;  %s4990_s13 = sphi %s5038_s13, %s8912_s13   ;;  %s4986_s12 = sphi %s5036_s12, %s8911_s12  }
   0x6   : > { %s22_s18 = ssub.s32 %s4998_s15, %s5056_s17  ;;  %s25_s19 = sadd.s32 1, %s4994_s14 }
   0x7   : > { %p23_p0 = scmp.eq.s32.totalorder %s22_s18, 0  ;;  %p32_p1 = scmp.ne.s32.totalorder %s4994_s14, %s4990_s13 }
   0x8   : > { %p33_p2 = scmp.eq.s32.totalorder %s4998_s15, 0  ;;  %p38_p3 = scmp.ne.s32.totalorder %s4990_s13, %s4986_s12 }
   0x9   : > { %s5066_s20 = scalar_select %p23_p0, %s4994_s14, %s25_s19  }
   0xa   : > { %p5068_p4 = por %p33_p2, %p32_p1  ;;  %p5074_p5 = scmp.eq.s32.totalorder %s4522_s16, 0 }
   0xb   : > { %p4524_p6 = scmp.ge.s32.totalorder %s4998_s15, 1  ;;  %p117_p7 = scmp.lt.s32.totalorder %s4998_s15, 3 }
   0xc   : > { %p5082_p8 = por %p5074_p5, %p38_p3  ;;  %s129_s27 = sshll.u32 %s8366_s1, 4  ;;  %s130_s27 = int_to_ptr.hbm [resolvable:$true] %s129_s27 }
   0xd   : > { %p5086_p9 = pnand %p4524_p6, %p117_p7  ;;  %p4831_p11 = scmp.lt.s32.totalorder %s4998_s15, 2 }
   0xe   : > { %s139_s30 = sshll.u32 %s8367_s2, 4  ;;  %s150_s5 = sand.u32 1, %s4994_s14   ;;  %s140_s30 = int_to_ptr.vmem [resolvable:$true] %s139_s30 }
   0xf   : > { %p4818_p10 = pneg %p5086_p9  ;;  %p5103_p13 = pnand %p4831_p11, %p5068_p4 }
  0x10   : > { %s5000_s6 = smov [#allocation7]   ;;  %s5001_s7 = smov [#allocation8]  }
  0x11   : > { %p4819_p12 = pnand %p4818_p10, %p5074_p5  ;;  %s4804_s8 = smul.u32 192, %s150_s5 }
  0x12   : > { %s4805_s9 = smul.u32 192, %s4998_s15  ;;  %s151_s21 = scalar_lea.sflag [#allocation4], %s150_s5 }
  0x13   : > { %4821 = dma.hbm_to_smem (!%p4819_p12), %s130_s27, 32, %s5000_s6, [#allocation5]  }
  0x14   : > { %4824 = dma.vmem_to_smem (!%p4819_p12), %s140_s30, 16, %s5001_s7, [#allocation6]  }
  0x15   : > { %s160_s12 = scalar_lea.hbm %s8365_s0, %s4805_s9  ;;  %s154_s18 = scalar_lea.vmem [#allocation3], %s4804_s8 }
  0x16   : > { %s163_s19 = sshll.u32 %s154_s18, 4  ;;  %s161_s25 = sshll.u32 %s160_s12, 4  ;;  %s164_s19 = int_to_ptr.vmem [resolvable:$true] %s163_s19  ;;  %s162_s25 = int_to_ptr.hbm [resolvable:$true] %s161_s25 }
  0x17   : > { %s4926_s26 = sshra.s32 %s162_s25, 4  ;;  %p4930_p1 = pneg %p5103_p13  ;;  %s4927_s26 = int_to_ptr.hbm [resolvable:$true] %s4926_s26 }
  0x18   : > { %s4928_s28 = scalar_lea.hbm %s4927_s26, 192  ;;  %s4933_s30 = scalar_lea.hbm %s8365_s0, 384 }
  0x19   : > { %p4929_p0 = scmp.ne.s32.totalorder %s4927_s26, %s4928_s28  ;;  %p4934_p4 = scmp.lt.s32.totalorder %s4927_s26, %s8365_s0 }
  0x1a   : > { %p4935_p6 = scmp.lt.s32.totalorder %s4933_s30, %s4928_s28 }
  0x1b   : > { %p4931_p2 = pnand %p4930_p1, %p4929_p0 }
  0x1c   : > { %p4936_p7 = por %p4935_p6, %p4934_p4 }
  0x1d   : > { %p4932_p3 = pneg %p4931_p2 }
  0x1f   : > { %p4937_p10 = pnand %p4936_p7, %p4932_p3 }
  0x21   : > { %4940 = shalt.err (!%p4937_p10)
}
  0x22   : > { %s5002_s5 = smov 128   ;;  %s5003_s8 = smov 8  }
  0x23   : > { %4828 = dma.hbm_to_vmem [thread:$0]  (!%p5103_p13), %s162_s25, 3072, %s164_s19, %s151_s21, %s5002_s5, %s5002_s5, %s5003_s8  }
  0x24   : > { %175 = sbr.rel (%p5086_p9) target bundleno = 1452 (0x5ac), region = 32 }
  0x29   : > { %s177_s9 = sand.u32 1, %s4990_s13  }
  0x2a   : > { %s4806_s10 = smul.u32 192, %s177_s9  ;;  %s178_s11 = scalar_lea.sflag [#allocation4], %s177_s9 }
  0x2c   : > { %s5125_s12 = scalar_lea.vmem [#allocation3], %s4806_s10 }
  0x2d   : > { %4973 = dma.done.wait (%p5082_p8), %s178_s11, 3072  }
  0x2e   : > { %4975 = vsyncadd (%p5082_p8), %s178_s11, 4294964224 }
  0x2f   : > { %4977 = dma.done.wait (%p5074_p5), [#allocation5], 32  }
  0x30   : > { %4979 = vsyncadd (%p5074_p5), [#allocation5], 4294967264 }
  0x31   : > { %4981 = dma.done.wait (%p5074_p5), [#allocation6], 16  }
  0x32   : > { %4983 = vsyncadd (%p5074_p5), [#allocation6], 4294967280 }
  0x33   : > { %197 = sfence }
  0x34   : > { %v322_v0 = vld [vmem:[%s5125_s12 + $0x10] sm:$0xff]  ;;  %v320_v1 = vld [vmem:[%s5125_s12] sm:$0xff]  ;;  %s5004_s23 = smov 1   ;;  %v323_v2 = vld [vmem:[%s5125_s12 + $0x18] sm:$0xff]  ;;  %s5005_s22 = smov 19   ;;  %vm225_vm0 = vcmask 581632  }
  0x35   : > { %336 = vrot.lane.b32.xlu1 %v322_v0, %s5004_s23  ;;  %332 = vrot.lane.b32.xlu0 %v320_v1, %s5004_s23  ;;  %v321_v3 = vld [vmem:[%s5125_s12 + $0x8] sm:$0xff]  ;;  %v324_v4 = vld [vmem:[%s5125_s12 + $0x20] sm:$0xff]  ;;  %s5006_s24 = smov 37   ;;  %s5007_s4 = smov 55   ;;  %v5008_v15 = vmov 0.0   ;;  %vm232_vm1 = vcmask 7168  }
  0x36   : > { %340 = vrot.lane.b32.xlu2 %v324_v4, %s5004_s23  ;;  %v4537_v5 = vld [vmem:[%s5125_s12 + $0x38] sm:$0xff]  ;;  %v4536_v6 = vld [vmem:[%s5125_s12 + $0x30] sm:$0xff]  ;;  %v4539_v8 = vld [vmem:[%s5125_s12 + $0x48] sm:$0xff]  ;;  %227 = vst.msk [vmem:[#allocation2 + $0x18] sm:$0x1] %vm225_vm0, %v5008_v15  ;;  %vm243_vm2 = vcmask 146568  }
  0x37   : > { %v4540_v7 = vld [vmem:[%s5125_s12 + $0x50] sm:$0xff]  ;;  %v4543_v9 = vld [vmem:[%s5125_s12 + $0x68] sm:$0xff]  ;;  %v4542_v10 = vld [vmem:[%s5125_s12 + $0x60] sm:$0xff]  ;;  %237 = vst.msk [vmem:[#allocation2 + $0x18] sm:$0xff] %vm232_vm1, %v5008_v15  ;;  %vm254_vm3 = vcmask 154768   ;;  %vm265_vm4 = vcmask 294168  }
  0x38   : > { %v4546_v11 = vld [vmem:[%s5125_s12 + $0x80] sm:$0xff]  ;;  %v4545_v12 = vld [vmem:[%s5125_s12 + $0x78] sm:$0xff]  ;;  %v4548_v14 = vld [vmem:[%s5125_s12 + $0x90] sm:$0xff]  ;;  %238 = vst.msk [vmem:[#allocation2 + $0x20] sm:$0xff] %vm232_vm1, %v5008_v15  ;;  %vm276_vm5 = vcmask 302368   ;;  %vm287_vm6 = vcmask 441768  }
  0x39   : > { %v4549_v13 = vld [vmem:[%s5125_s12 + $0x98] sm:$0xff]  ;;  %248 = vst.msk [vmem:[#allocation2 + $0x18] sm:$0xff] %vm243_vm2, %v5008_v15  ;;  %vm298_vm7 = vcmask 449968   ;;  %v325_v16 = vld [vmem:[%s5125_s12 + $0x28] sm:$0xff]  ;;  %vm309_vm8 = vcmask 589368   ;;  %v4538_v17 = vld [vmem:[%s5125_s12 + $0x40] sm:$0xff] }
  0x3a   : > { %249 = vst.msk [vmem:[#allocation2 + $0x20] sm:$0xff] %vm243_vm2, %v5008_v15  ;;  %vm350_vm9 = vcmask 138248   ;;  %vm235_vm10 = vcmask 1024   ;;  %vm246_vm11 = vcmask 140424   ;;  %vm257_vm12 = vcmask 148624   ;;  %v4541_v20 = vld [vmem:[%s5125_s12 + $0x58] sm:$0xff] }
  0x3b   : > { %259 = vst.msk [vmem:[#allocation2 + $0x18] sm:$0xff] %vm254_vm3, %v5008_v15  ;;  %vm268_vm13 = vcmask 288024   ;;  %vm279_vm14 = vcmask 296224   ;;  %vm290_vm15 = vcmask 435624   ;;  %v4544_v23 = vld [vmem:[%s5125_s12 + $0x70] sm:$0xff]  ;;  %v4547_v26 = vld [vmem:[%s5125_s12 + $0x88] sm:$0xff] }
  0x3c   : > { %260 = vst.msk [vmem:[#allocation2 + $0x20] sm:$0xff] %vm254_vm3, %v5008_v15  ;;  %v4552_v29 = vld [vmem:[%s5125_s12 + $0xb0] sm:$0xff]  ;;  %v4551_v30 = vld [vmem:[%s5125_s12 + $0xa8] sm:$0xff]  ;;  %v4550_v31 = vld [vmem:[%s5125_s12 + $0xa0] sm:$0xff]  ;;  %s4568_s18 = sld [smem:[#allocation7 + $0x1]]  ;;  %s5009_s28 = smov 127  }
  0x3d   : > { %338 = vrot.lane.b32.xlu1 %v323_v2, %s5004_s23  ;;  %334 = vrot.lane.b32.xlu0 %v321_v3, %s5004_s23  ;;  %270 = vst.msk [vmem:[#allocation2 + $0x18] sm:$0xff] %vm265_vm4, %v5008_v15  ;;  %v4553_v34 = vld [vmem:[%s5125_s12 + $0xb8] sm:$0xff]  ;;  %s4569_s19 = sld [smem:[#allocation7 + $0x4c]] }
  0x3e   : > { %271 = vst.msk [vmem:[#allocation2 + $0x20] sm:$0xff] %vm265_vm4, %v5008_v15  ;;  %342 = vrot.lane.b32.xlu2 %v325_v16, %s5004_s23  ;;  %s4570_s25 = sld [smem:[#allocation7 + $0x97]] }
  0x3f   : > { %281 = vst.msk [vmem:[#allocation2 + $0x18] sm:$0xff] %vm276_vm5, %v5008_v15  ;;  %s5365_s21 = sld [smem:[#allocation7 + $0x6]] }
  0x40   : > { %282 = vst.msk [vmem:[#allocation2 + $0x20] sm:$0xff] %vm276_vm5, %v5008_v15  ;;  %s5367_s26 = sld [smem:[#allocation7 + $0x9c]] }
  0x41   : > { %292 = vst.msk [vmem:[#allocation2 + $0x18] sm:$0xff] %vm287_vm6, %v5008_v15  ;;  %s5371_s27 = sld [smem:[#allocation7 + $0x51]] }
  0x42   : > { %293 = vst.msk [vmem:[#allocation2 + $0x20] sm:$0xff] %vm287_vm6, %v5008_v15  ;;  %v677_v40 = vstv %s4568_s18  ;;  %s5377_s29 = sld [smem:[#allocation7 + $0xb]]  ;;  %s5010_s18 = smov 126  }
  0x43   : > { %303 = vst.msk [vmem:[#allocation2 + $0x18] sm:$0xff] %vm298_vm7, %v5008_v15  ;;  %v691_v41 = vstv %s4569_s19  ;;  %s5382_s30 = sld [smem:[#allocation7 + $0xa1]] }
  0x44   : > { %304 = vst.msk [vmem:[#allocation2 + $0x20] sm:$0xff] %vm298_vm7, %v5008_v15  ;;  %v705_v48 = vstv %s4570_s25  ;;  %s5387_s6 = sld [smem:[#allocation7 + $0x56]] }
  0x45   : > { %372 = vrot.lane.b32.xlu1 %v4537_v5, %s5005_s22  ;;  %370 = vrot.lane.b32.xlu0 %v4536_v6, %s5005_s22  ;;  %314 = vst.msk [vmem:[#allocation2 + $0x18] sm:$0xff] %vm309_vm8, %v5008_v15  ;;  %v719_v52 = vstv %s5365_s21  ;;  %s4577_s7 = sld [smem:[#allocation7 + $0x10]] }
  0x46   : > { %315 = vst.msk [vmem:[#allocation2 + $0x20] sm:$0xff] %vm309_vm8, %v5008_v15  ;;  %374 = vrot.lane.b32.xlu2 %v4538_v17, %s5005_s22  ;;  %v753_v53 = vstv %s5367_s26  ;;  %s4578_s5 = sld [smem:[#allocation7 + $0x5b]] }
  0x47   : > { %226 = vst.msk [vmem:[#allocation2] sm:$0x1] %vm225_vm0, %v5008_v15  ;;  %v736_v54 = vstv %s5371_s27  ;;  %s4579_s8 = sld [smem:[#allocation7 + $0xa6]] }
  0x48   : > { %228 = vst.msk [vmem:[#allocation2 + $0x30] sm:$0x1] %vm225_vm0, %v5008_v15  ;;  %v770_v61 = vstv %s5377_s29  ;;  %s4580_s9 = sld [smem:[#allocation7 + $0x15]] }
  0x49   : > { %229 = vst.msk [vmem:[#allocation2 + $0x11] sm:$0x1] %vm225_vm0, %v5008_v15  ;;  %v804_v62 = vstv %s5382_s30  ;;  %s4581_s10 = sld [smem:[#allocation7 + $0x60]] }
  0x4a   : > { %230 = vst.msk [vmem:[#allocation2 + $0x29] sm:$0x1] %vm225_vm0, %v5008_v15  ;;  %v787_v63 = vstv %s5387_s6  ;;  %s4582_s11 = sld [smem:[#allocation7 + $0xab]] }
  0x4b   : > { %231 = vst.msk [vmem:[#allocation2 + $0x41] sm:$0x1] %vm225_vm0, %v5008_v15  ;;  %vm301_vm0 = vcmask 443824   ;;  %s4583_s12 = sld [smem:[#allocation7 + $0x2]] }
  0x4c   : > { %234 = vst.msk [vmem:[#allocation2 + $0x8] sm:$0xff] %vm232_vm1, %v5008_v15  ;;  %s5466_s23 = sld [smem:[#allocation7 + $0x4d]] }
  0x4d   : > { %378 = vrot.lane.b32.xlu1 %v4540_v7, %s5005_s22  ;;  %376 = vrot.lane.b32.xlu0 %v4539_v8, %s5005_s22  ;;  %241 = vst.msk [vmem:[#allocation2 + $0x38] sm:$0xff] %vm232_vm1, %v5008_v15  ;;  %s4588_s19 = sld [smem:[#allocation7 + $0x9d]] }
  0x4e   : > { %233 = vst.msk [vmem:[#allocation2] sm:$0xff] %vm232_vm1, %v5008_v15  ;;  %380 = vrot.lane.b32.xlu2 %v4541_v20, %s5005_s22  ;;  %s4585_s22 = sld [smem:[#allocation7 + $0x98]] }
  0x4f   : > { %244 = vst.msk [vmem:[#allocation2] sm:$0xff] %vm243_vm2, %v5008_v15  ;;  %s4590_s25 = sld [smem:[#allocation7 + $0x57]] }
  0x50   : > { %245 = vst.msk [vmem:[#allocation2 + $0x8] sm:$0xff] %vm243_vm2, %v5008_v15  ;;  %s4589_s21 = sld [smem:[#allocation7 + $0xc]] }
  0x51   : > { %255 = vst.msk [vmem:[#allocation2] sm:$0xff] %vm254_vm3, %v5008_v15  ;;  %s4591_s26 = sld [smem:[#allocation7 + $0xa2]] }
  0x52   : > { %256 = vst.msk [vmem:[#allocation2 + $0x8] sm:$0xff] %vm254_vm3, %v5008_v15  ;;  %s4592_s27 = sld [smem:[#allocation7 + $0x11]] }
  0x53   : > { %266 = vst.msk [vmem:[#allocation2] sm:$0xff] %vm265_vm4, %v5008_v15  ;;  %s4593_s29 = sld [smem:[#allocation7 + $0x5c]] }
  0x54   : > { %267 = vst.msk [vmem:[#allocation2 + $0x8] sm:$0xff] %vm265_vm4, %v5008_v15  ;;  %s4594_s30 = sld [smem:[#allocation7 + $0xa7]] }
  0x55   : > { %410 = vrot.lane.b32.xlu1 %v4543_v9, %s5006_s24  ;;  %408 = vrot.lane.b32.xlu0 %v4542_v10, %s5006_s24  ;;  %277 = vst.msk [vmem:[#allocation2] sm:$0xff] %vm276_vm5, %v5008_v15  ;;  %s4595_s6 = sld [smem:[#allocation7 + $0x16]] }
  0x56   : > { %278 = vst.msk [vmem:[#allocation2 + $0x8] sm:$0xff] %vm276_vm5, %v5008_v15  ;;  %412 = vrot.lane.b32.xlu2 %v4544_v23, %s5006_s24  ;;  %v821_v23 = vstv %s4577_s7  ;;  %s4596_s7 = sld [smem:[#allocation7 + $0x61]] }
  0x57   : > { %288 = vst.msk [vmem:[#allocation2] sm:$0xff] %vm287_vm6, %v5008_v15 }
  0x58   : > { %289 = vst.msk [vmem:[#allocation2 + $0x8] sm:$0xff] %vm287_vm6, %v5008_v15 }
  0x59   : > { %299 = vst.msk [vmem:[#allocation2] sm:$0xff] %vm298_vm7, %v5008_v15 }
  0x5a   : > { %300 = vst.msk [vmem:[#allocation2 + $0x8] sm:$0xff] %vm298_vm7, %v5008_v15 }
  0x5b   : > { %310 = vst.msk [vmem:[#allocation2] sm:$0xff] %vm309_vm8, %v5008_v15 }
  0x5c   : > { %311 = vst.msk [vmem:[#allocation2 + $0x8] sm:$0xff] %vm309_vm8, %v5008_v15 }
  0x5d   : > { %416 = vrot.lane.b32.xlu1 %v4546_v11, %s5006_s24  ;;  %414 = vrot.lane.b32.xlu0 %v4545_v12, %s5006_s24  ;;  %240 = vst.msk [vmem:[#allocation2 + $0x30] sm:$0xff] %vm232_vm1, %v5008_v15  ;;  %vm312_vm1 = vcmask 583224  }
  0x5e   : > { %252 = vst.msk [vmem:[#allocation2 + $0x38] sm:$0xff] %vm243_vm2, %v5008_v15  ;;  %418 = vrot.lane.b32.xlu2 %v4547_v26, %s5006_s24  ;;  %s4587_s24 = sld [smem:[#allocation7 + $0x52]] }
  0x5f   : > { %251 = vst.msk [vmem:[#allocation2 + $0x30] sm:$0xff] %vm243_vm2, %v5008_v15  ;;  %vm388_vm2 = vcmask 285848  }
  0x60   : > { %263 = vst.msk [vmem:[#allocation2 + $0x38] sm:$0xff] %vm254_vm3, %v5008_v15 }
  0x61   : > { %239 = vst.msk [vmem:[#allocation2 + $0x28] sm:$0x3] %vm235_vm10, %v5008_v15 }
  0x62   : > { %250 = vst.msk [vmem:[#allocation2 + $0x28] sm:$0x3] %vm246_vm11, %v5008_v15 }
  0x63   : > { %261 = vst.msk [vmem:[#allocation2 + $0x28] sm:$0x3] %vm257_vm12, %v5008_v15 }
  0x64   : > { %272 = vst.msk [vmem:[#allocation2 + $0x28] sm:$0x3] %vm268_vm13, %v5008_v15 }
  0x65   : > { %448 = vrot.lane.b32.xlu1 %v4549_v13, %s5007_s4  ;;  %446 = vrot.lane.b32.xlu0 %v4548_v14, %s5007_s4  ;;  %283 = vst.msk [vmem:[#allocation2 + $0x28] sm:$0x3] %vm279_vm14, %v5008_v15 }
  0x66   : > { %294 = vst.msk [vmem:[#allocation2 + $0x28] sm:$0x3] %vm290_vm15, %v5008_v15  ;;  %450 = vrot.lane.b32.xlu2 %v4550_v31, %s5007_s4 }
  0x67   : > { %305 = vst.msk [vmem:[#allocation2 + $0x28] sm:$0x3] %vm301_vm0, %v5008_v15 }
  0x68   : > { %316 = vst.msk [vmem:[#allocation2 + $0x28] sm:$0x3] %vm312_vm1, %v5008_v15 }
  0x69   : > { %236 = vst.msk [vmem:[#allocation2 + $0x10] sm:$0x3] %vm235_vm10, %v5008_v15 }
  0x6a   : > { %242 = vst.msk [vmem:[#allocation2 + $0x40] sm:$0x3] %vm235_vm10, %v5008_v15  ;;  %vm4326_vm10 = vcmask 111616  }
  0x6b   : > { %262 = vst.msk [vmem:[#allocation2 + $0x30] sm:$0xff] %vm254_vm3, %v5008_v15  ;;  %vm426_vm3 = vcmask 433448  }
  0x6c   : > { %274 = vst.msk [vmem:[#allocation2 + $0x38] sm:$0xff] %vm265_vm4, %v5008_v15 }
  0x6d   : > { %247 = vst.msk [vmem:[#allocation2 + $0x10] sm:$0x3] %vm246_vm11, %v5008_v15  ;;  %454 = vrot.lane.b32.xlu1 %v4552_v29, %s5007_s4  ;;  %452 = vrot.lane.b32.xlu0 %v4551_v30, %s5007_s4 }
  0x6e   : > { %258 = vst.msk [vmem:[#allocation2 + $0x10] sm:$0x3] %vm257_vm12, %v5008_v15  ;;  %456 = vrot.lane.b32.xlu2 %v4553_v34, %s5007_s4  ;;  %v863_v34 = vstv %s4579_s8  ;;  %s4586_s4 = sld [smem:[#allocation7 + $0x7]] }
  0x6f   : > { %269 = vst.msk [vmem:[#allocation2 + $0x10] sm:$0x3] %vm268_vm13, %v5008_v15  ;;  %s4598_s8 = sld [smem:[#allocation7 + $0x3]] }
  0x70   : > { %280 = vst.msk [vmem:[#allocation2 + $0x10] sm:$0x3] %vm279_vm14, %v5008_v15 }
  0x71   : > { %291 = vst.msk [vmem:[#allocation2 + $0x10] sm:$0x3] %vm290_vm15, %v5008_v15 }
  0x72   : > { %302 = vst.msk [vmem:[#allocation2 + $0x10] sm:$0x3] %vm301_vm0, %v5008_v15 }
  0x73   : > { %313 = vst.msk [vmem:[#allocation2 + $0x10] sm:$0x3] %vm312_vm1, %v5008_v15 }
  0x74   : > { %253 = vst.msk [vmem:[#allocation2 + $0x40] sm:$0x3] %vm246_vm11, %v5008_v15 }
  0x75   : > { %273 = vst.msk [vmem:[#allocation2 + $0x30] sm:$0xff] %vm265_vm4, %v5008_v15  ;;  %vm464_vm4 = vcmask 581048  }
  0x76   : > { %285 = vst.msk [vmem:[#allocation2 + $0x38] sm:$0xff] %vm276_vm5, %v5008_v15 }
  0x77   : > { %264 = vst.msk [vmem:[#allocation2 + $0x40] sm:$0x3] %vm257_vm12, %v5008_v15 }
  0x78   : > { %284 = vst.msk [vmem:[#allocation2 + $0x30] sm:$0xff] %vm276_vm5, %v5008_v15  ;;  %vm498_vm5 = vcmask 1046528  }
  0x79   : > { %296 = vst.msk [vmem:[#allocation2 + $0x38] sm:$0xff] %vm287_vm6, %v5008_v15 }
  0x7a   : > { %275 = vst.msk [vmem:[#allocation2 + $0x40] sm:$0x3] %vm268_vm13, %v5008_v15 }
  0x7b   : > { %295 = vst.msk [vmem:[#allocation2 + $0x30] sm:$0xff] %vm287_vm6, %v5008_v15  ;;  %vm538_vm6 = vcmask 1045504  }
  0x7c   : > { %307 = vst.msk [vmem:[#allocation2 + $0x38] sm:$0xff] %vm298_vm7, %v5008_v15 }
  0x7d   : > { %286 = vst.msk [vmem:[#allocation2 + $0x40] sm:$0x3] %vm279_vm14, %v5008_v15 }
  0x7e   : > { %306 = vst.msk [vmem:[#allocation2 + $0x30] sm:$0xff] %vm298_vm7, %v5008_v15  ;;  %vm580_vm7 = vcmask 1044480  }
  0x7f   : > { %318 = vst.msk [vmem:[#allocation2 + $0x38] sm:$0xff] %vm309_vm8, %v5008_v15 }
  0x80   : > { %297 = vst.msk [vmem:[#allocation2 + $0x40] sm:$0x3] %vm290_vm15, %v5008_v15 }
  0x81   : > { %317 = vst.msk [vmem:[#allocation2 + $0x30] sm:$0xff] %vm309_vm8, %v5008_v15  ;;  %vm632_vm8 = vcmask 1043456  }
  0x82   : > { %308 = vst.msk [vmem:[#allocation2 + $0x40] sm:$0x3] %vm301_vm0, %v5008_v15 }
  0x83   : > { %319 = vst.msk [vmem:[#allocation2 + $0x40] sm:$0x3] %vm312_vm1, %v5008_v15 }
  0x90   : > { %v341_v35 = vpop.permute.xlu2 %340 }
  0x91   : > { %355 = vst.msk [vmem:[#allocation2 + $0x31] sm:$0xff] %vm350_vm9, %v341_v35 }
  0x98   : > { %v343_v47 = vpop.permute.xlu2 %342 }
  0x99   : > { %356 = vst.msk [vmem:[#allocation2 + $0x39] sm:$0xff] %vm350_vm9, %v343_v47 }
  0xa0   : > { %v375_v8 = vpop.permute.xlu2 %374 }
  0xa7   : > { %v337_v18 = vpop.permute.xlu1 %336  ;;  %v333_v19 = vpop.permute.xlu0 %332 }
  0xa8   : > { %353 = vst.msk [vmem:[#allocation2 + $0x19] sm:$0xff] %vm350_vm9, %v337_v18  ;;  %v381_v20 = vpop.permute.xlu2 %380 }
  0xa9   : > { %351 = vst.msk [vmem:[#allocation2 + $0x1] sm:$0xff] %vm350_vm9, %v333_v19 }
  0xaa   : > { %391 = vst.msk [vmem:[#allocation2 + $0x19] sm:$0xff] %vm388_vm2, %v375_v8 }
  0xab   : > { %394 = vst.msk [vmem:[#allocation2 + $0x39] sm:$0xff] %vm388_vm2, %v381_v20 }
  0xaf   : > { %v339_v21 = vpop.permute.xlu1 %338  ;;  %v335_v22 = vpop.permute.xlu0 %334 }
  0xb0   : > { %354 = vst.msk [vmem:[#allocation2 + $0x21] sm:$0xff] %vm350_vm9, %v339_v21 }
  0xb1   : > { %352 = vst.msk [vmem:[#allocation2 + $0x9] sm:$0xff] %vm350_vm9, %v335_v22  ;;  %vm4324_vm9 = vcmask 113664  }
  0xb7   : > { %v373_v24 = vpop.permute.xlu1 %372  ;;  %v371_v25 = vpop.permute.xlu0 %370 }
  0xb8   : > { %390 = vst.msk [vmem:[#allocation2 + $0x9] sm:$0xff] %vm388_vm2, %v373_v24 }
  0xb9   : > { %389 = vst.msk [vmem:[#allocation2 + $0x1] sm:$0xff] %vm388_vm2, %v371_v25  ;;  %v842_v25 = vstv %s4578_s5  ;;  %s4597_s5 = sld [smem:[#allocation7 + $0xac]] }
  0xbf   : > { %v379_v27 = vpop.permute.xlu1 %378  ;;  %v377_v28 = vpop.permute.xlu0 %376 }
  0xc0   : > { %393 = vst.msk [vmem:[#allocation2 + $0x31] sm:$0xff] %vm388_vm2, %v379_v27 }
  0xc1   : > { %392 = vst.msk [vmem:[#allocation2 + $0x21] sm:$0xff] %vm388_vm2, %v377_v28 }
  0xc7   : > { %v411_v32 = vpop.permute.xlu1 %410  ;;  %v409_v33 = vpop.permute.xlu0 %408 }
  0xc8   : > { %428 = vst.msk [vmem:[#allocation2 + $0x9] sm:$0xff] %vm426_vm3, %v411_v32 }
  0xc9   : > { %427 = vst.msk [vmem:[#allocation2 + $0x1] sm:$0xff] %vm426_vm3, %v409_v33 }
  0xcf   : > { %v417_v36 = vpop.permute.xlu1 %416  ;;  %v415_v37 = vpop.permute.xlu0 %414 }
  0xd0   : > { %431 = vst.msk [vmem:[#allocation2 + $0x31] sm:$0xff] %vm426_vm3, %v417_v36 }
  0xd1   : > { %430 = vst.msk [vmem:[#allocation2 + $0x21] sm:$0xff] %vm426_vm3, %v415_v37 }
  0xd7   : > { %v449_v38 = vpop.permute.xlu1 %448  ;;  %v447_v39 = vpop.permute.xlu0 %446 }
  0xd8   : > { %466 = vst.msk [vmem:[#allocation2 + $0x9] sm:$0xff] %vm464_vm4, %v449_v38 }
  0xd9   : > { %465 = vst.msk [vmem:[#allocation2 + $0x1] sm:$0xff] %vm464_vm4, %v447_v39  ;;  %v413_v39 = vpop.permute.xlu2 %412 }
  0xda   : > { %429 = vst.msk [vmem:[#allocation2 + $0x19] sm:$0xff] %vm426_vm3, %v413_v39 }
  0xdf   : > { %v5418_v21 = vld [vmem:[#allocation2 + $0x10] sm:$0x3] }
  0xe0   : > { %v5358_v42 = vld [vmem:[#allocation2] sm:$0xff]  ;;  %v5360_v43 = vld [vmem:[#allocation2 + $0x8] sm:$0xff]  ;;  %v824_v27 = vmul.f32 %v821_v23, %v5418_v21 }
  0xe1   : > { %v679_v44 = vmul.f32 %v677_v40, %v5360_v43  ;;  %v692_v45 = vmul.f32 %v691_v41, %v5358_v42  ;;  %v678_v46 = vmul.f32 %v677_v40, %v5358_v42  ;;  %v706_v49 = vmul.f32 %v705_v48, %v5358_v42 }
  0xe2   : > { %v707_v50 = vmul.f32 %v705_v48, %v5360_v43  ;;  %v693_v51 = vmul.f32 %v691_v41, %v5360_v43  ;;  %v721_v55 = vmul.f32 %v719_v52, %v5360_v43  ;;  %v755_v56 = vmul.f32 %v753_v53, %v5360_v43 }
  0xe3   : > { %684 = vrot.lane.b32.xlu1 %v679_v44, %s5009_s28  ;;  %696 = vrot.lane.b32.xlu2 %v692_v45, %s5009_s28  ;;  %v738_v57 = vmul.f32 %v736_v54, %v5360_v43  ;;  %v772_v0 = vmul.f32 %v770_v61, %v5360_v43  ;;  %v806_v1 = vmul.f32 %v804_v62, %v5360_v43  ;;  %v831_v36 = vrot.slane %v824_v27, 3 }
  0xe4   : > { %682 = vrot.lane.b32.xlu0 %v678_v46, %s5009_s28  ;;  %v725_v58 = vrot.slane %v721_v55, 1  ;;  %v759_v59 = vrot.slane %v755_v56, 1  ;;  %v789_v2 = vmul.f32 %v787_v63, %v5360_v43  ;;  %v754_v5 = vmul.f32 %v753_v53, %v5358_v42 }
  0xe5   : > { %v742_v60 = vrot.slane %v738_v57, 1  ;;  %v776_v3 = vrot.slane %v772_v0, 2  ;;  %v810_v4 = vrot.slane %v806_v1, 2  ;;  %v737_v6 = vmul.f32 %v736_v54, %v5358_v42  ;;  %v419_v54 = vpop.permute.xlu2 %418 }
  0xe6   : > { %v793_v7 = vrot.slane %v789_v2, 2  ;;  %v720_v9 = vmul.f32 %v719_v52, %v5358_v42  ;;  %v758_v10 = vrot.slane %v754_v5, 1  ;;  %v805_v13 = vmul.f32 %v804_v62, %v5358_v42  ;;  %432 = vst.msk [vmem:[#allocation2 + $0x39] sm:$0xff] %vm426_vm3, %v419_v54 }
  0xe7   : > { %v741_v11 = vrot.slane %v737_v6, 1  ;;  %v788_v14 = vmul.f32 %v787_v63, %v5358_v42  ;;  %v771_v17 = vmul.f32 %v770_v61, %v5358_v42  ;;  %v823_v29 = vmul.f32 %v821_v23, %v5360_v43 }
  0xe8   : > { %v724_v12 = vrot.slane %v720_v9, 1  ;;  %v760_v15 = vsel %vm498_vm5, %v758_v10, %v759_v59  ;;  %v809_v19 = vrot.slane %v805_v13, 2  ;;  %v843_v30 = vmul.f32 %v842_v25, %v5358_v42 }
  0xe9   : > { %v743_v16 = vsel %vm498_vm5, %v741_v11, %v742_v60  ;;  %v792_v22 = vrot.slane %v788_v14, 2  ;;  %v775_v24 = vrot.slane %v771_v17, 2  ;;  %v844_v31 = vmul.f32 %v842_v25, %v5360_v43 }
  0xea   : > { %v726_v18 = vsel %vm498_vm5, %v724_v12, %v725_v58  ;;  %v811_v26 = vsel %vm538_vm6, %v809_v19, %v810_v4  ;;  %v822_v33 = vmul.f32 %v821_v23, %v5358_v42  ;;  %v829_v35 = vrot.slane %v823_v29, 3  ;;  %v455_v29 = vpop.permute.xlu1 %454 }
  0xeb   : > { %710 = vrot.lane.b32.xlu1 %v706_v49, %s5009_s28  ;;  %712 = vrot.lane.b32.xlu2 %v707_v50, %s5009_s28  ;;  %v794_v28 = vsel %vm538_vm6, %v792_v22, %v793_v7  ;;  %v777_v32 = vsel %vm538_vm6, %v775_v24, %v776_v3  ;;  %v849_v37 = vrot.slane %v843_v30, 3  ;;  %v850_v38 = vrot.slane %v844_v31, 3  ;;  %v453_v30 = vpop.permute.xlu0 %452  ;;  %469 = vst.msk [vmem:[#allocation2 + $0x31] sm:$0xff] %vm464_vm4, %v455_v29 }
  0xec   : > { %698 = vrot.lane.b32.xlu0 %v693_v51, %s5009_s28  ;;  %v828_v40 = vrot.slane %v822_v33, 3  ;;  %v866_v41 = vmul.f32 %v863_v34, %v5418_v21  ;;  %v832_v44 = vsel %vm580_vm7, %v829_v35, %v831_v36  ;;  %v864_v46 = vmul.f32 %v863_v34, %v5358_v42  ;;  %468 = vst.msk [vmem:[#allocation2 + $0x21] sm:$0xff] %vm464_vm4, %v453_v30 }
  0xed   : > { %v851_v45 = vsel %vm580_vm7, %v849_v37, %v850_v38  ;;  %v865_v47 = vmul.f32 %v863_v34, %v5360_v43  ;;  %v845_v49 = vmul.f32 %v842_v25, %v5418_v21  ;;  %v884_v53 = vstv %s4580_s9  ;;  %v451_v6 = vpop.permute.xlu2 %450  ;;  %s5592_s9 = sld [smem:[#allocation7 + $0x4e]] }
  0xee   : > { %v830_v48 = vsel %vm580_vm7, %v828_v40, %v829_v35  ;;  %v870_v50 = vrot.slane %v864_v46, 3  ;;  %v873_v52 = vrot.slane %v866_v41, 3  ;;  %v905_v56 = vstv %s4581_s10  ;;  %467 = vst.msk [vmem:[#allocation2 + $0x19] sm:$0xff] %vm464_vm4, %v451_v6  ;;  %s4600_s10 = sld [smem:[#allocation7 + $0x99]] }
  0xef   : > { %v871_v51 = vrot.slane %v865_v47, 3  ;;  %v852_v55 = vrot.slane %v845_v49, 3  ;;  %v886_v57 = vmul.f32 %v884_v53, %v5360_v43  ;;  %v906_v61 = vmul.f32 %v905_v56, %v5358_v42 }
  0xf0   : > { %v907_v62 = vmul.f32 %v905_v56, %v5360_v43  ;;  %v885_v0 = vmul.f32 %v884_v53, %v5358_v42  ;;  %v926_v1 = vstv %s4582_s11  ;;  %v908_v14 = vmul.f32 %v905_v56, %v5418_v21  ;;  %s4602_s11 = sld [smem:[#allocation7 + $0x53]] }
  0xf1   : > { %v853_v63 = vsel %vm580_vm7, %v850_v38, %v852_v55  ;;  %v892_v2 = vrot.slane %v886_v57, 4  ;;  %v927_v8 = vmul.f32 %v926_v1, %v5358_v42  ;;  %v928_v11 = vmul.f32 %v926_v1, %v5360_v43 }
  0xf2   : > { %v913_v5 = vrot.slane %v907_v62, 4  ;;  %v929_v12 = vmul.f32 %v926_v1, %v5418_v21  ;;  %v915_v19 = vrot.slane %v908_v14, 4  ;;  %v947_v24 = vstv %s4583_s12  ;;  %s4601_s12 = sld [smem:[#allocation7 + $0x8]] }
  0xf3   : > { %729 = vrot.lane.b32.xlu1 %v725_v58, %s5009_s28  ;;  %763 = vrot.lane.b32.xlu2 %v759_v59, %s5009_s28  ;;  %v887_v58 = vmul.f32 %v884_v53, %v5418_v21  ;;  %v872_v59 = vsel %vm580_vm7, %v870_v50, %v871_v51  ;;  %v961_v25 = vstv %s5466_s23  ;;  %v975_v31 = vstv %s4585_s22  ;;  %s5011_s23 = smov 125   ;;  %s4603_s22 = sld [smem:[#allocation7 + $0x9e]] }
  0xf4   : > { %746 = vrot.lane.b32.xlu0 %v742_v60, %s5009_s28  ;;  %v874_v60 = vsel %vm580_vm7, %v871_v51, %v873_v52  ;;  %v936_v17 = vrot.slane %v929_v12, 4  ;;  %v916_v23 = vsel %vm632_vm8, %v913_v5, %v915_v19  ;;  %v962_v27 = vmul.f32 %v961_v25, %v5358_v42 }
  0xf5   : > { %v989_v33 = vstv %s4586_s4  ;;  %v976_v34 = vmul.f32 %v975_v31, %v5358_v42  ;;  %v977_v35 = vmul.f32 %v975_v31, %v5360_v43  ;;  %v963_v36 = vmul.f32 %v961_v25, %v5360_v43  ;;  %s4604_s4 = sld [smem:[#allocation7 + $0xd]] }
  0xf6   : > { %v990_v39 = vmul.f32 %v989_v33, %v5358_v42  ;;  %v991_v40 = vmul.f32 %v989_v33, %v5360_v43  ;;  %v1057_v56 = vstv %s4590_s25  ;;  %v1040_v57 = vstv %s4589_s21  ;;  %s4607_s25 = sld [smem:[#allocation7 + $0x12]] }
  0xf7   : > { %v1042_v62 = vmul.f32 %v1040_v57, %v5360_v43  ;;  %v1091_v14 = vstv %s4592_s27  ;;  %v1133_v25 = vstv %s4594_s30  ;;  %s4608_s21 = sld [smem:[#allocation7 + $0x5d]] }
  0xf8   : > { %v995_v46 = vrot.slane %v991_v40, 1  ;;  %v994_v47 = vrot.slane %v990_v39, 1  ;;  %s4610_s27 = sld [smem:[#allocation7 + $0x17]] }
  0xf9   : > { %s4612_s30 = sld [smem:[#allocation7 + $0xad]] }
  0xfa   : > { %v996_v52 = vsel %vm498_vm5, %v994_v47, %v995_v46 }
  0xfb   : > { %780 = vrot.lane.b32.xlu1 %v776_v3, %s5009_s28  ;;  %814 = vrot.lane.b32.xlu2 %v810_v4, %s5009_s28  ;;  %v894_v3 = vrot.slane %v887_v58, 4  ;;  %v912_v4 = vrot.slane %v906_v61, 4  ;;  %v1041_v61 = vmul.f32 %v1040_v57, %v5358_v42 }
  0xfc   : > { %797 = vrot.lane.b32.xlu0 %v793_v7, %s5009_s28  ;;  %v891_v7 = vrot.slane %v885_v0, 4 }
  0xfd   : > { %v895_v9 = vsel %vm632_vm8, %v892_v2, %v894_v3  ;;  %v914_v10 = vsel %vm632_vm8, %v912_v4, %v913_v5  ;;  %v1046_v3 = vrot.slane %v1042_v62, 2  ;;  %v1045_v4 = vrot.slane %v1041_v61, 2 }
  0xfe   : > { %v893_v13 = vsel %vm632_vm8, %v891_v7, %v892_v2  ;;  %v1074_v2 = vstv %s4591_s26  ;;  %s4609_s26 = sld [smem:[#allocation7 + $0xa8]] }
  0xff   : > { %v1075_v5 = vmul.f32 %v1074_v2, %v5358_v42  ;;  %v1076_v6 = vmul.f32 %v1074_v2, %v5360_v43 }
 0x101   : > { %v1080_v12 = vrot.slane %v1076_v6, 2 }
 0x103   : > { %761 = vrot.lane.b32.xlu1 %v760_v15, %s5009_s28  ;;  %744 = vrot.lane.b32.xlu2 %v743_v16, %s5009_s28  ;;  %v933_v15 = vrot.slane %v927_v8, 4  ;;  %v934_v16 = vrot.slane %v928_v11, 4  ;;  %v1047_v8 = vsel %vm538_vm6, %v1045_v4, %v1046_v3  ;;  %v1079_v11 = vrot.slane %v1075_v5, 2 }
 0x104   : > { %727 = vrot.lane.b32.xlu0 %v726_v18, %s5009_s28  ;;  %v457_v18 = vpop.permute.xlu2 %456  ;;  %v1196_v5 = vstv %s4597_s5  ;;  %s4615_s5 = sld [smem:[#allocation7 + $0x9a]] }
 0x105   : > { %470 = vst.msk [vmem:[#allocation2 + $0x39] sm:$0xff] %vm464_vm4, %v457_v18  ;;  %v935_v20 = vsel %vm632_vm8, %v933_v15, %v934_v16  ;;  %v937_v22 = vsel %vm632_vm8, %v934_v16, %v936_v17  ;;  %v1112_v15 = vstv %s4593_s29  ;;  %v1081_v16 = vsel %vm538_vm6, %v1079_v11, %v1080_v12  ;;  %s4611_s29 = sld [smem:[#allocation7 + $0x62]] }
 0x106   : > { %v1093_v17 = vmul.f32 %v1091_v14, %v5360_v43  ;;  %v1094_v18 = vmul.f32 %v1091_v14, %v5418_v21  ;;  %v1113_v19 = vmul.f32 %v1112_v15, %v5358_v42  ;;  %v1198_v11 = vmul.f32 %v1196_v5, %v5360_v43 }
 0x108   : > { %v1119_v29 = vrot.slane %v1113_v19, 3 }
 0x10b   : > { %812 = vrot.lane.b32.xlu1 %v811_v26, %s5009_s28  ;;  %795 = vrot.lane.b32.xlu2 %v794_v28, %s5009_s28  ;;  %v949_v26 = vmul.f32 %v947_v24, %v5360_v43  ;;  %v948_v28 = vmul.f32 %v947_v24, %v5358_v42 }
 0x10c   : > { %778 = vrot.lane.b32.xlu0 %v777_v32, %s5009_s28  ;;  %v1006_v32 = vstv %s4587_s24  ;;  %s4605_s24 = sld [smem:[#allocation7 + $0x58]] }
 0x10d   : > { %v1007_v37 = vmul.f32 %v1006_v32, %v5358_v42  ;;  %v1008_v38 = vmul.f32 %v1006_v32, %v5360_v43  ;;  %v1134_v32 = vmul.f32 %v1133_v25, %v5358_v42 }
 0x113   : > { %835 = vrot.lane.b32.xlu1 %v832_v44, %s5009_s28  ;;  %854 = vrot.lane.b32.xlu2 %v851_v45, %s5009_s28  ;;  %v1011_v44 = vrot.slane %v1007_v37, 1  ;;  %v1012_v45 = vrot.slane %v1008_v38, 1  ;;  %v1115_v38 = vmul.f32 %v1112_v15, %v5418_v21 }
 0x114   : > { %833 = vrot.lane.b32.xlu0 %v830_v48, %s5009_s28  ;;  %v1023_v48 = vstv %s4588_s19  ;;  %s4606_s19 = sld [smem:[#allocation7 + $0xa3]] }
 0x115   : > { %v1013_v49 = vsel %vm498_vm5, %v1011_v44, %v1012_v45  ;;  %v1024_v50 = vmul.f32 %v1023_v48, %v5358_v42  ;;  %v1025_v51 = vmul.f32 %v1023_v48, %v5360_v43  ;;  %v1154_v48 = vstv %s4595_s6  ;;  %s4613_s6 = sld [smem:[#allocation7 + $0x4]] }
 0x117   : > { %v1028_v54 = vrot.slane %v1024_v50, 1  ;;  %v1029_v55 = vrot.slane %v1025_v51, 1  ;;  %v1175_v50 = vstv %s4596_s7  ;;  %v1156_v51 = vmul.f32 %v1154_v48, %v5360_v43  ;;  %s5739_s7 = sld [smem:[#allocation7 + $0x4f]] }
 0x118   : > { %v1177_v57 = vmul.f32 %v1175_v50, %v5360_v43 }
 0x119   : > { %v1030_v58 = vsel %vm498_vm5, %v1028_v54, %v1029_v55  ;;  %v1162_v62 = vrot.slane %v1156_v51, 4 }
 0x11b   : > { %875 = vrot.lane.b32.xlu1 %v872_v59, %s5009_s28  ;;  %877 = vrot.lane.b32.xlu2 %v874_v60, %s5009_s28  ;;  %v1058_v59 = vmul.f32 %v1057_v56, %v5358_v42  ;;  %v1059_v60 = vmul.f32 %v1057_v56, %v5360_v43  ;;  %v1176_v56 = vmul.f32 %v1175_v50, %v5358_v42 }
 0x11c   : > { %856 = vrot.lane.b32.xlu0 %v853_v63, %s5009_s28 }
 0x11d   : > { %v1062_v0 = vrot.slane %v1058_v59, 2  ;;  %v1063_v1 = vrot.slane %v1059_v60, 2  ;;  %v1155_v59 = vmul.f32 %v1154_v48, %v5358_v42  ;;  %v1182_v2 = vrot.slane %v1176_v56, 4 }
 0x11f   : > { %v1064_v7 = vsel %vm538_vm6, %v1062_v0, %v1063_v1  ;;  %v1161_v4 = vrot.slane %v1155_v59, 4 }
 0x123   : > { %898 = vrot.lane.b32.xlu1 %v895_v9, %s5009_s28  ;;  %917 = vrot.lane.b32.xlu2 %v914_v10, %s5009_s28 }
 0x124   : > { %896 = vrot.lane.b32.xlu0 %v893_v13, %s5009_s28 }
 0x12b   : > { %938 = vrot.lane.b32.xlu1 %v935_v20, %s5009_s28  ;;  %940 = vrot.lane.b32.xlu2 %v937_v22, %s5009_s28  ;;  %v1114_v20 = vmul.f32 %v1112_v15, %v5360_v43  ;;  %v1092_v22 = vmul.f32 %v1091_v14, %v5358_v42  ;;  %v1163_v14 = vsel %vm632_vm8, %v1161_v4, %v1162_v62 }
 0x12c   : > { %919 = vrot.lane.b32.xlu0 %v916_v23, %s5009_s28  ;;  %v1178_v15 = vmul.f32 %v1175_v50, %v5418_v21 }
 0x12d   : > { %v1120_v30 = vrot.slane %v1114_v20, 3  ;;  %v1098_v31 = vrot.slane %v1092_v22, 3  ;;  %v1204_v20 = vrot.slane %v1198_v11, 4 }
 0x133   : > { %954 = vrot.lane.b32.xlu1 %v949_v26, %s5010_s18  ;;  %966 = vrot.lane.b32.xlu2 %v962_v27, %s5010_s18  ;;  %v1099_v27 = vrot.slane %v1093_v17, 3 }
 0x134   : > { %952 = vrot.lane.b32.xlu0 %v948_v28, %s5010_s18  ;;  %v1101_v28 = vrot.slane %v1094_v18, 3 }
 0x135   : > { %v1100_v37 = vsel %vm580_vm7, %v1098_v31, %v1099_v27 }
 0x136   : > { %v1102_v33 = vsel %vm580_vm7, %v1099_v27, %v1101_v28 }
 0x13b   : > { %980 = vrot.lane.b32.xlu1 %v976_v34, %s5010_s18  ;;  %982 = vrot.lane.b32.xlu2 %v977_v35, %s5010_s18  ;;  %v1121_v34 = vsel %vm580_vm7, %v1119_v29, %v1120_v30  ;;  %v1135_v35 = vmul.f32 %v1133_v25, %v5360_v43 }
 0x13c   : > { %968 = vrot.lane.b32.xlu0 %v963_v36, %s5010_s18  ;;  %v1136_v36 = vmul.f32 %v1133_v25, %v5418_v21  ;;  %v1185_v25 = vrot.slane %v1178_v15, 4 }
 0x13d   : > { %v5494_v41 = vpop.permute.xlu2 %696 }
 0x13e   : > { %v1143_v47 = vrot.slane %v1136_v36, 3 }
 0x143   : > { %999 = vrot.lane.b32.xlu1 %v995_v46, %s5010_s18  ;;  %1014 = vrot.lane.b32.xlu2 %v1013_v49, %s5010_s18  ;;  %v1141_v46 = vrot.slane %v1135_v35, 3  ;;  %v1122_v49 = vrot.slane %v1115_v38, 3 }
 0x144   : > { %997 = vrot.lane.b32.xlu0 %v996_v52, %s5010_s18  ;;  %v1157_v52 = vmul.f32 %v1154_v48, %v5418_v21  ;;  %v1276_v48 = vstv %s4602_s11  ;;  %s4618_s11 = sld [smem:[#allocation7 + $0x9f]] }
 0x145   : > { %v5503_v53 = vpop.permute.xlu2 %712 }
 0x146   : > { %v1164_v0 = vrot.slane %v1157_v52, 4 }
 0x148   : > { %v1165_v6 = vsel %vm632_vm8, %v1162_v62, %v1164_v0 }
 0x14b   : > { %1031 = vrot.lane.b32.xlu1 %v1030_v58, %s5010_s18  ;;  %1033 = vrot.lane.b32.xlu2 %v1029_v55, %s5010_s18  ;;  %v1144_v55 = vsel %vm580_vm7, %v1141_v46, %v1143_v47  ;;  %v1123_v58 = vsel %vm580_vm7, %v1120_v30, %v1122_v49  ;;  %v1245_v47 = vstv %s4600_s10  ;;  %v1259_v49 = vstv %s4601_s12  ;;  %s5012_s10 = smov 124   ;;  %s4620_s12 = sld [smem:[#allocation7 + $0x59]] }
 0x14c   : > { %1016 = vrot.lane.b32.xlu0 %v1012_v45, %s5010_s18  ;;  %v1140_v45 = vrot.slane %v1134_v32, 3  ;;  %v1246_v50 = vmul.f32 %v1245_v47, %v5358_v42  ;;  %v1247_v51 = vmul.f32 %v1245_v47, %v5360_v43  ;;  %v1260_v56 = vmul.f32 %v1259_v49, %v5358_v42 }
 0x14d   : > { %v5513_v63 = vpop.permute.xlu2 %763 }
 0x14e   : > { %v1142_v54 = vsel %vm580_vm7, %v1140_v45, %v1141_v46  ;;  %v1264_v4 = vrot.slane %v1260_v56, 1 }
 0x153   : > { %1050 = vrot.lane.b32.xlu1 %v1046_v3, %s5010_s18  ;;  %1065 = vrot.lane.b32.xlu2 %v1064_v7, %s5010_s18  ;;  %v1183_v3 = vrot.slane %v1177_v57, 4  ;;  %v1261_v57 = vmul.f32 %v1259_v49, %v5360_v43 }
 0x154   : > { %1048 = vrot.lane.b32.xlu0 %v1047_v8, %s5010_s18  ;;  %v1197_v8 = vmul.f32 %v1196_v5, %v5358_v42 }
 0x155   : > { %v5522_v9 = vpop.permute.xlu1 %684  ;;  %v5524_v10 = vpop.permute.xlu2 %814  ;;  %v1184_v7 = vsel %vm632_vm8, %v1182_v2, %v1183_v3  ;;  %v1186_v29 = vsel %vm632_vm8, %v1183_v3, %v1185_v25  ;;  %v1265_v3 = vrot.slane %v1261_v57, 1  ;;  %v1310_v25 = vstv %s4604_s4  ;;  %s4622_s4 = sld [smem:[#allocation7 + $0x13]] }
 0x156   : > { %v5526_v13 = vpop.permute.xlu0 %682  ;;  %v1203_v19 = vrot.slane %v1197_v8, 4 }
 0x157   : > { %v1266_v11 = vsel %vm498_vm5, %v1264_v4, %v1265_v3 }
 0x158   : > { %v1205_v27 = vsel %vm632_vm8, %v1203_v19, %v1204_v20 }
 0x15b   : > { %1082 = vrot.lane.b32.xlu1 %v1081_v16, %s5010_s18  ;;  %1084 = vrot.lane.b32.xlu2 %v1080_v12, %s5010_s18  ;;  %v1199_v12 = vmul.f32 %v1196_v5, %v5418_v21  ;;  %v1293_v5 = vstv %s4603_s22  ;;  %s4619_s22 = sld [smem:[#allocation7 + $0xe]] }
 0x15c   : > { %1067 = vrot.lane.b32.xlu0 %v1063_v1, %s5010_s18  ;;  %v1295_v8 = vmul.f32 %v1293_v5, %v5360_v43 }
 0x15d   : > { %v5537_v23 = vpop.permute.xlu1 %710  ;;  %v5539_v24 = vpop.permute.xlu2 %744  ;;  %v1206_v22 = vrot.slane %v1199_v12, 4 }
 0x15e   : > { %v5541_v26 = vpop.permute.xlu0 %698 }
 0x15f   : > { %v1207_v28 = vsel %vm632_vm8, %v1204_v20, %v1206_v22  ;;  %v1299_v20 = vrot.slane %v1295_v8, 1  ;;  %v1327_v22 = vstv %s4605_s24  ;;  %s4621_s24 = sld [smem:[#allocation7 + $0xa4]] }
 0x163   : > { %1105 = vrot.lane.b32.xlu1 %v1102_v33, %s5010_s18  ;;  %1124 = vrot.lane.b32.xlu2 %v1121_v34, %s5010_s18  ;;  %v1217_v33 = vstv %s4598_s8  ;;  %v1231_v34 = vstv %s5592_s9  ;;  %s4617_s8 = sld [smem:[#allocation7 + $0x54]] }
 0x164   : > { %1103 = vrot.lane.b32.xlu0 %v1100_v37, %s5010_s18  ;;  %v1219_v35 = vmul.f32 %v1217_v33, %v5360_v43  ;;  %v1232_v36 = vmul.f32 %v1231_v34, %v5358_v42  ;;  %v1218_v37 = vmul.f32 %v1217_v33, %v5358_v42  ;;  %v1233_v52 = vmul.f32 %v1231_v34, %v5360_v43  ;;  %s4616_s9 = sld [smem:[#allocation7 + $0x9]] }
 0x165   : > { %v5553_v39 = vpop.permute.xlu1 %729  ;;  %v5555_v40 = vpop.permute.xlu2 %795  ;;  %v1311_v33 = vmul.f32 %v1310_v25, %v5358_v42  ;;  %v1312_v34 = vmul.f32 %v1310_v25, %v5360_v43 }
 0x166   : > { %v5557_v44 = vpop.permute.xlu0 %746 }
 0x167   : > { %v1316_v49 = vrot.slane %v1312_v34, 2 }
 0x16b   : > { %1145 = vrot.lane.b32.xlu1 %v1142_v54, %s5010_s18  ;;  %1147 = vrot.lane.b32.xlu2 %v1144_v55, %s5010_s18  ;;  %v1277_v54 = vmul.f32 %v1276_v48, %v5358_v42  ;;  %v1278_v55 = vmul.f32 %v1276_v48, %v5360_v43 }
 0x16c   : > { %1126 = vrot.lane.b32.xlu0 %v1123_v58, %s5010_s18 }
 0x16d   : > { %v5570_v60 = vpop.permute.xlu1 %780  ;;  %v5572_v61 = vpop.permute.xlu2 %854  ;;  %v1281_v0 = vrot.slane %v1277_v54, 1  ;;  %v1282_v2 = vrot.slane %v1278_v55, 1 }
 0x16e   : > { %v5574_v1 = vpop.permute.xlu0 %797 }
 0x16f   : > { %8400 = vst [vmem:[#allocation12_spill] sm:$0xff] %v5574_v1 }
 0x173   : > { %1168 = vrot.lane.b32.xlu1 %v1165_v6, %s5010_s18  ;;  %1187 = vrot.lane.b32.xlu2 %v1184_v7, %s5010_s18  ;;  %v1283_v6 = vsel %vm498_vm5, %v1281_v0, %v1282_v2  ;;  %v1294_v7 = vmul.f32 %v1293_v5, %v5358_v42  ;;  %v1361_v5 = vstv %s4607_s25  ;;  %s4624_s25 = sld [smem:[#allocation7 + $0xa9]] }
 0x174   : > { %1166 = vrot.lane.b32.xlu0 %v1163_v14, %s5010_s18 }
 0x175   : > { %v5586_v16 = vpop.permute.xlu1 %761  ;;  %v5588_v17 = vpop.permute.xlu2 %877  ;;  %v1298_v19 = vrot.slane %v1294_v7, 1  ;;  %v1363_v7 = vmul.f32 %v1361_v5, %v5360_v43 }
 0x176   : > { %8401 = vst [vmem:[#allocation13_spill] sm:$0xff] %v5588_v17  ;;  %v5590_v18 = vpop.permute.xlu0 %727 }
 0x17b   : > { %1208 = vrot.lane.b32.xlu1 %v1205_v27, %s5010_s18  ;;  %1210 = vrot.lane.b32.xlu2 %v1207_v28, %s5010_s18  ;;  %v1300_v27 = vsel %vm498_vm5, %v1298_v19, %v1299_v20  ;;  %v1328_v28 = vmul.f32 %v1327_v22, %v5358_v42 }
 0x17c   : > { %1189 = vrot.lane.b32.xlu0 %v1186_v29, %s5010_s18  ;;  %v1329_v29 = vmul.f32 %v1327_v22, %v5360_v43  ;;  %v1362_v22 = vmul.f32 %v1361_v5, %v5358_v42 }
 0x17d   : > { %v5600_v30 = vpop.permute.xlu1 %812  ;;  %v5602_v31 = vpop.permute.xlu2 %917  ;;  %v1332_v47 = vrot.slane %v1328_v28, 2  ;;  %v1369_v28 = vrot.slane %v1363_v7, 3 }
 0x17e   : > { %8402 = vst [vmem:[#allocation14_spill] sm:$0xff] %v5600_v30  ;;  %v5604_v32 = vpop.permute.xlu0 %778  ;;  %v1333_v48 = vrot.slane %v1329_v29, 2 }
 0x17f   : > { %8403 = vst [vmem:[#allocation15_spill] sm:$0xff] %v5602_v31 }
 0x180   : > { %8404 = vst [vmem:[#allocation16_spill] sm:$0xff] %v5604_v32 }
 0x183   : > { %1224 = vrot.lane.b32.xlu1 %v1219_v35, %s5011_s23  ;;  %1236 = vrot.lane.b32.xlu2 %v1232_v36, %s5011_s23 }
 0x184   : > { %1222 = vrot.lane.b32.xlu0 %v1218_v37, %s5011_s23 }
 0x185   : > { %v5613_v38 = vpop.permute.xlu1 %835  ;;  %v5615_v45 = vpop.permute.xlu2 %940 }
 0x186   : > { %8405 = vst [vmem:[#allocation17_spill] sm:$0xff] %v5613_v38  ;;  %v5617_v46 = vpop.permute.xlu0 %833 }
 0x187   : > { %8406 = vst [vmem:[#allocation18_spill] sm:$0xff] %v5615_v45 }
 0x188   : > { %8407 = vst [vmem:[#allocation19_spill] sm:$0xff] %v5617_v46 }
 0x18b   : > { %1250 = vrot.lane.b32.xlu1 %v1246_v50, %s5011_s23  ;;  %1252 = vrot.lane.b32.xlu2 %v1247_v51, %s5011_s23  ;;  %v1315_v50 = vrot.slane %v1311_v33, 2  ;;  %v1344_v51 = vstv %s4606_s19  ;;  %s4623_s19 = sld [smem:[#allocation7 + $0x5e]] }
 0x18c   : > { %1238 = vrot.lane.b32.xlu0 %v1233_v52, %s5011_s23  ;;  %v1334_v52 = vsel %vm538_vm6, %v1332_v47, %v1333_v48  ;;  %v1345_v54 = vmul.f32 %v1344_v51, %v5358_v42  ;;  %v1346_v55 = vmul.f32 %v1344_v51, %v5360_v43 }
 0x18d   : > { %v5629_v58 = vpop.permute.xlu1 %875  ;;  %v5631_v59 = vpop.permute.xlu2 %966  ;;  %v1317_v56 = vsel %vm538_vm6, %v1315_v50, %v1316_v49  ;;  %v1368_v50 = vrot.slane %v1362_v22, 3 }
 0x18e   : > { %8408 = vst [vmem:[#allocation20_spill] sm:$0xff] %v5629_v58  ;;  %v5633_v62 = vpop.permute.xlu0 %856  ;;  %v1350_v4 = vrot.slane %v1346_v55, 2 }
 0x18f   : > { %8409 = vst [vmem:[#allocation21_spill] sm:$0xff] %v5631_v59 }
 0x190   : > { %8410 = vst [vmem:[#allocation22_spill] sm:$0xff] %v5633_v62 }
 0x193   : > { %1269 = vrot.lane.b32.xlu1 %v1265_v3, %s5011_s23  ;;  %1284 = vrot.lane.b32.xlu2 %v1283_v6, %s5011_s23  ;;  %v1349_v3 = vrot.slane %v1345_v54, 2  ;;  %v1382_v6 = vstv %s4608_s21  ;;  %s4625_s21 = sld [smem:[#allocation7 + $0x18]] }
 0x194   : > { %1267 = vrot.lane.b32.xlu0 %v1266_v11, %s5011_s23  ;;  %v1364_v11 = vmul.f32 %v1361_v5, %v5418_v21  ;;  %v1383_v19 = vmul.f32 %v1382_v6, %v5358_v42 }
 0x195   : > { %v5642_v12 = vpop.permute.xlu1 %898  ;;  %v5644_v14 = vpop.permute.xlu2 %982  ;;  %v1351_v8 = vsel %vm538_vm6, %v1349_v3, %v1350_v4  ;;  %v1385_v3 = vmul.f32 %v1382_v6, %v5418_v21 }
 0x196   : > { %8411 = vst [vmem:[#allocation23_spill] sm:$0xff] %v5642_v12  ;;  %v5646_v15 = vpop.permute.xlu0 %896  ;;  %v1371_v33 = vrot.slane %v1364_v11, 3  ;;  %v1389_v34 = vrot.slane %v1383_v19, 3 }
 0x197   : > { %8412 = vst [vmem:[#allocation24_spill] sm:$0xff] %v5644_v14  ;;  %v1392_v22 = vrot.slane %v1385_v3, 3 }
 0x198   : > { %8413 = vst [vmem:[#allocation25_spill] sm:$0xff] %v5646_v15 }
 0x19b   : > { %1301 = vrot.lane.b32.xlu1 %v1300_v27, %s5011_s23  ;;  %1303 = vrot.lane.b32.xlu2 %v1299_v20, %s5011_s23  ;;  %v1384_v20 = vmul.f32 %v1382_v6, %v5360_v43 }
 0x19c   : > { %1286 = vrot.lane.b32.xlu0 %v1282_v2, %s5011_s23 }
 0x19d   : > { %v5656_v35 = vpop.permute.xlu1 %938  ;;  %v5658_v36 = vpop.permute.xlu2 %1014  ;;  %v1390_v47 = vrot.slane %v1384_v20, 3  ;;  %v1424_v20 = vstv %s4610_s27  ;;  %s4627_s27 = sld [smem:[#allocation7 + $0xae]] }
 0x19e   : > { %8414 = vst [vmem:[#allocation26_spill] sm:$0xff] %v5656_v35  ;;  %v5660_v37 = vpop.permute.xlu0 %919 }
 0x19f   : > { %8415 = vst [vmem:[#allocation27_spill] sm:$0xff] %v5658_v36 }
 0x1a0   : > { %8416 = vst [vmem:[#allocation28_spill] sm:$0xff] %v5660_v37 }
 0x1a3   : > { %1320 = vrot.lane.b32.xlu1 %v1316_v49, %s5011_s23  ;;  %1335 = vrot.lane.b32.xlu2 %v1334_v52, %s5011_s23  ;;  %v1403_v49 = vstv %s4609_s26  ;;  %v1372_v52 = vsel %vm580_vm7, %v1369_v28, %v1371_v33  ;;  %v1445_v33 = vstv %s4611_s29  ;;  %s4626_s26 = sld [smem:[#allocation7 + $0x63]] }
 0x1a4   : > { %1318 = vrot.lane.b32.xlu0 %v1317_v56, %s5011_s23  ;;  %v1404_v51 = vmul.f32 %v1403_v49, %v5358_v42  ;;  %v1405_v54 = vmul.f32 %v1403_v49, %v5360_v43  ;;  %v1406_v55 = vmul.f32 %v1403_v49, %v5418_v21  ;;  %v1370_v56 = vsel %vm580_vm7, %v1368_v50, %v1369_v28  ;;  %s4643_s29 = sld [smem:[#allocation7 + $0x1a]] }
 0x1a5   : > { %v5669_v57 = vpop.permute.xlu1 %954  ;;  %v5671_v0 = vpop.permute.xlu2 %1033  ;;  %v1427_v28 = vmul.f32 %v1424_v20, %v5418_v21  ;;  %v1446_v50 = vmul.f32 %v1445_v33, %v5358_v42 }
 0x1a6   : > { %8417 = vst [vmem:[#allocation29_spill] sm:$0xff] %v5669_v57  ;;  %v5673_v2 = vpop.permute.xlu0 %952  ;;  %v1411_v11 = vrot.slane %v1405_v54, 3  ;;  %v1413_v19 = vrot.slane %v1406_v55, 3 }
 0x1a7   : > { %8418 = vst [vmem:[#allocation30_spill] sm:$0xff] %v5671_v0 }
 0x1a8   : > { %8419 = vst [vmem:[#allocation31_spill] sm:$0xff] %v5673_v2  ;;  %v1414_v49 = vsel %vm580_vm7, %v1411_v11, %v1413_v19 }
 0x1ab   : > { %1352 = vrot.lane.b32.xlu1 %v1351_v8, %s5011_s23  ;;  %1354 = vrot.lane.b32.xlu2 %v1350_v4, %s5011_s23  ;;  %v1410_v8 = vrot.slane %v1404_v51, 3  ;;  %v1393_v51 = vsel %vm580_vm7, %v1390_v47, %v1392_v22 }
 0x1ac   : > { %1337 = vrot.lane.b32.xlu0 %v1333_v48, %s5011_s23  ;;  %v1391_v48 = vsel %vm580_vm7, %v1389_v34, %v1390_v47  ;;  %v1426_v34 = vmul.f32 %v1424_v20, %v5360_v43 }
 0x1ad   : > { %v5684_v25 = vpop.permute.xlu1 %980  ;;  %v5686_v27 = vpop.permute.xlu2 %1065  ;;  %v1412_v6 = vsel %vm580_vm7, %v1410_v8, %v1411_v11  ;;  %v1434_v8 = vrot.slane %v1427_v28, 4  ;;  %v1452_v11 = vrot.slane %v1446_v50, 4  ;;  %v1448_v28 = vmul.f32 %v1445_v33, %v5418_v21 }
 0x1ae   : > { %8420 = vst [vmem:[#allocation32_spill] sm:$0xff] %v5684_v25  ;;  %v5688_v29 = vpop.permute.xlu0 %968 }
 0x1af   : > { %8421 = vst [vmem:[#allocation33_spill] sm:$0xff] %v5686_v27 }
 0x1b0   : > { %8422 = vst [vmem:[#allocation34_spill] sm:$0xff] %v5688_v29 }
 0x1b3   : > { %1375 = vrot.lane.b32.xlu1 %v1372_v52, %s5011_s23  ;;  %1394 = vrot.lane.b32.xlu2 %v1391_v48, %s5011_s23  ;;  %v1447_v52 = vmul.f32 %v1445_v33, %v5360_v43  ;;  %v1425_v48 = vmul.f32 %v1424_v20, %v5358_v42 }
 0x1b4   : > { %1373 = vrot.lane.b32.xlu0 %v1370_v56, %s5011_s23  ;;  %v1432_v56 = vrot.slane %v1426_v34, 4 }
 0x1b5   : > { %v5700_v4 = vpop.permute.xlu1 %999  ;;  %v5702_v5 = vpop.permute.xlu2 %1084  ;;  %v1453_v19 = vrot.slane %v1447_v52, 4 }
 0x1b6   : > { %8423 = vst [vmem:[#allocation35_spill] sm:$0xff] %v5700_v4  ;;  %v5704_v7 = vpop.permute.xlu0 %997  ;;  %v1435_v47 = vsel %vm632_vm8, %v1432_v56, %v1434_v8  ;;  %v1455_v8 = vrot.slane %v1448_v28, 4 }
 0x1b7   : > { %8424 = vst [vmem:[#allocation36_spill] sm:$0xff] %v5702_v5  ;;  %v1454_v20 = vsel %vm632_vm8, %v1452_v11, %v1453_v19 }
 0x1b8   : > { %8425 = vst [vmem:[#allocation37_spill] sm:$0xff] %v5704_v7  ;;  %v1466_v7 = vstv %s4612_s30  ;;  %v1456_v33 = vsel %vm632_vm8, %v1453_v19, %v1455_v8  ;;  %v1515_v8 = vstv %s4615_s5  ;;  %s5892_s30 = sld [smem:[#allocation7 + $0x65]] }
 0x1b9   : > { %v1468_v22 = vmul.f32 %v1466_v7, %v5360_v43  ;;  %s4646_s5 = sld [smem:[#allocation7 + $0x1f]] }
 0x1bb   : > { %1415 = vrot.lane.b32.xlu1 %v1412_v6, %s5011_s23  ;;  %1417 = vrot.lane.b32.xlu2 %v1414_v49, %s5011_s23  ;;  %v1431_v6 = vrot.slane %v1425_v48, 4  ;;  %v1467_v49 = vmul.f32 %v1466_v7, %v5358_v42  ;;  %v1474_v48 = vrot.slane %v1468_v22, 4  ;;  %v5754_v22 = vld [vmem:[#allocation2 + $0x8] sm:$0xff] }
 0x1bc   : > { %1396 = vrot.lane.b32.xlu0 %v1393_v51, %s5011_s23  ;;  %v1469_v51 = vmul.f32 %v1466_v7, %v5418_v21 }
 0x1bd   : > { %v5717_v54 = vpop.permute.xlu1 %1031  ;;  %v5719_v55 = vpop.permute.xlu2 %1124  ;;  %v1433_v34 = vsel %vm632_vm8, %v1431_v6, %v1432_v56  ;;  %v1473_v43 = vrot.slane %v1467_v49, 4 }
 0x1be   : > { %8426 = vst [vmem:[#allocation38_spill] sm:$0xff] %v5717_v54  ;;  %v5721_v3 = vpop.permute.xlu0 %1016  ;;  %v1476_v7 = vrot.slane %v1469_v51, 4 }
 0x1bf   : > { %8427 = vst [vmem:[#allocation39_spill] sm:$0xff] %v5719_v55  ;;  %v1475_v56 = vsel %vm632_vm8, %v1473_v43, %v1474_v48  ;;  %v1673_v55 = vstv %s4624_s25  ;;  %s4656_s25 = sld [smem:[#allocation7 + $0x79]] }
 0x1c0   : > { %8428 = vst [vmem:[#allocation40_spill] sm:$0xff] %v5721_v3  ;;  %v1477_v21 = vsel %vm632_vm8, %v1474_v48, %v1476_v7 }
 0x1c3   : > { %1438 = vrot.lane.b32.xlu1 %v1435_v47, %s5011_s23  ;;  %1457 = vrot.lane.b32.xlu2 %v1454_v20, %s5011_s23  ;;  %v1487_v47 = vstv %s4613_s6  ;;  %v1501_v20 = vstv %s5739_s7  ;;  %s4645_s6 = sld [smem:[#allocation7 + $0xb0]] }
 0x1c4   : > { %1436 = vrot.lane.b32.xlu0 %v1433_v34, %s5011_s23  ;;  %v1489_v51 = vmul.f32 %v5754_v22, %v1487_v47  ;;  %v5757_v34 = vld [vmem:[#allocation2] sm:$0xff]  ;;  %s4647_s7 = sld [smem:[#allocation7 + $0x6a]] }
 0x1c5   : > { %v5733_v50 = vpop.permute.xlu1 %1050  ;;  %v5735_v42 = vpop.permute.xlu2 %1147  ;;  %v1502_v19 = vmul.f32 %v5757_v34, %v1501_v20  ;;  %v1488_v28 = vmul.f32 %v5757_v34, %v1487_v47  ;;  %v1517_v47 = vmul.f32 %v5754_v22, %v1515_v8 }
 0x1c6   : > { %8429 = vst [vmem:[#allocation41_spill] sm:$0xff] %v5733_v50  ;;  %v5737_v52 = vpop.permute.xlu0 %1048 }
 0x1c7   : > { %8430 = vst [vmem:[#allocation42_spill] sm:$0xff] %v5735_v42 }
 0x1c8   : > { %8431 = vst [vmem:[#allocation43_spill] sm:$0xff] %v5737_v52  ;;  %v1563_v52 = vstv %s4618_s11  ;;  %s4649_s11 = sld [smem:[#allocation7 + $0x24]] }
 0x1cb   : > { %1478 = vrot.lane.b32.xlu1 %v1475_v56, %s5011_s23  ;;  %1480 = vrot.lane.b32.xlu2 %v1477_v21, %s5011_s23  ;;  %v1546_v56 = vstv %s4617_s8  ;;  %v1529_v21 = vstv %s4616_s9  ;;  %s4648_s8 = sld [smem:[#allocation7 + $0xb5]] }
 0x1cc   : > { %1459 = vrot.lane.b32.xlu0 %v1456_v33, %s5011_s23  ;;  %v1516_v33 = vmul.f32 %v5757_v34, %v1515_v8  ;;  %s4650_s9 = sld [smem:[#allocation7 + $0x6f]] }
 0x1cd   : > { %v5747_v11 = vpop.permute.xlu1 %1082  ;;  %v5749_v6 = vpop.permute.xlu2 %1187 }
 0x1ce   : > { %8432 = vst [vmem:[#allocation44_spill] sm:$0xff] %v5747_v11  ;;  %v5751_v49 = vpop.permute.xlu0 %1067 }
 0x1cf   : > { %8433 = vst [vmem:[#allocation45_spill] sm:$0xff] %v5749_v6 }
 0x1d0   : > { %8434 = vst [vmem:[#allocation46_spill] sm:$0xff] %v5751_v49 }
 0x1d3   : > { %1494 = vrot.lane.b32.xlu1 %v1489_v51, %s5012_s10  ;;  %1506 = vrot.lane.b32.xlu2 %v1502_v19, %s5012_s10  ;;  %v1503_v51 = vmul.f32 %v5754_v22, %v1501_v20  ;;  %v1547_v19 = vmul.f32 %v5757_v34, %v1546_v56 }
 0x1d4   : > { %1492 = vrot.lane.b32.xlu0 %v1488_v28, %s5012_s10  ;;  %v1548_v28 = vmul.f32 %v5754_v22, %v1546_v56 }
 0x1d5   : > { %v5764_v43 = vpop.permute.xlu1 %1105  ;;  %v5766_v48 = vpop.permute.xlu2 %1210  ;;  %v1551_v20 = vrot.slane %v1547_v19, 1 }
 0x1d6   : > { %8435 = vst [vmem:[#allocation47_spill] sm:$0xff] %v5764_v43  ;;  %v5768_v7 = vpop.permute.xlu0 %1103  ;;  %v1552_v6 = vrot.slane %v1548_v28, 1 }
 0x1d7   : > { %8436 = vst [vmem:[#allocation48_spill] sm:$0xff] %v5766_v48  ;;  %v1531_v48 = vmul.f32 %v5754_v22, %v1529_v21 }
 0x1d8   : > { %8437 = vst [vmem:[#allocation49_spill] sm:$0xff] %v5768_v7  ;;  %v1530_v7 = vmul.f32 %v5757_v34, %v1529_v21  ;;  %v1565_v21 = vmul.f32 %v5754_v22, %v1563_v52 }
 0x1d9   : > { %v1535_v11 = vrot.slane %v1531_v48, 1 }
 0x1da   : > { %v1534_v56 = vrot.slane %v1530_v7, 1 }
 0x1db   : > { %1520 = vrot.lane.b32.xlu1 %v1516_v33, %s5012_s10  ;;  %1522 = vrot.lane.b32.xlu2 %v1517_v47, %s5012_s10  ;;  %v1553_v33 = vsel %vm498_vm5, %v1551_v20, %v1552_v6  ;;  %v1564_v47 = vmul.f32 %v5757_v34, %v1563_v52  ;;  %v1569_v20 = vrot.slane %v1565_v21, 1 }
 0x1dc   : > { %1508 = vrot.lane.b32.xlu0 %v1503_v51, %s5012_s10  ;;  %v1536_v51 = vsel %vm498_vm5, %v1534_v56, %v1535_v11 }
 0x1dd   : > { %v5780_v43 = vpop.permute.xlu1 %1145  ;;  %v5782_v49 = vpop.permute.xlu2 %1236  ;;  %v1568_v28 = vrot.slane %v1564_v47, 1 }
 0x1de   : > { %8438 = vst [vmem:[#allocation50_spill] sm:$0xff] %v5780_v43  ;;  %v5784_v8 = vpop.permute.xlu0 %1126 }
 0x1df   : > { %8439 = vst [vmem:[#allocation51_spill] sm:$0xff] %v5782_v49  ;;  %v1580_v49 = vstv %s4619_s22  ;;  %v1570_v52 = vsel %vm498_vm5, %v1568_v28, %v1569_v20  ;;  %s4652_s22 = sld [smem:[#allocation7 + $0x29]] }
 0x1e0   : > { %8440 = vst [vmem:[#allocation52_spill] sm:$0xff] %v5784_v8  ;;  %v1597_v8 = vstv %s4620_s12  ;;  %v1582_v56 = vmul.f32 %v5754_v22, %v1580_v49  ;;  %s4651_s12 = sld [smem:[#allocation7 + $0xba]] }
 0x1e1   : > { %v1598_v43 = vmul.f32 %v5757_v34, %v1597_v8 }
 0x1e3   : > { %1539 = vrot.lane.b32.xlu1 %v1535_v11, %s5012_s10  ;;  %1554 = vrot.lane.b32.xlu2 %v1553_v33, %s5012_s10  ;;  %v1599_v33 = vmul.f32 %v5754_v22, %v1597_v8  ;;  %v1581_v11 = vmul.f32 %v5757_v34, %v1580_v49  ;;  %v1602_v28 = vrot.slane %v1598_v43, 2  ;;  %v1586_v8 = vrot.slane %v1582_v56, 2 }
 0x1e4   : > { %1537 = vrot.lane.b32.xlu0 %v1536_v51, %s5012_s10 }
 0x1e5   : > { %v5793_v19 = vpop.permute.xlu1 %1168  ;;  %v5795_v48 = vpop.permute.xlu2 %1252 }
 0x1e6   : > { %8441 = vst [vmem:[#allocation53_spill] sm:$0xff] %v5793_v19  ;;  %v5797_v7 = vpop.permute.xlu0 %1166 }
 0x1e7   : > { %8442 = vst [vmem:[#allocation54_spill] sm:$0xff] %v5795_v48  ;;  %v1585_v48 = vrot.slane %v1581_v11, 2 }
 0x1e8   : > { %8443 = vst [vmem:[#allocation55_spill] sm:$0xff] %v5797_v7  ;;  %v1603_v7 = vrot.slane %v1599_v33, 2 }
 0x1eb   : > { %1571 = vrot.lane.b32.xlu1 %v1570_v52, %s5012_s10  ;;  %1573 = vrot.lane.b32.xlu2 %v1569_v20, %s5012_s10  ;;  %v1614_v52 = vstv %s4621_s24  ;;  %v1604_v20 = vsel %vm538_vm6, %v1602_v28, %v1603_v7  ;;  %s4653_s24 = sld [smem:[#allocation7 + $0x74]] }
 0x1ec   : > { %1556 = vrot.lane.b32.xlu0 %v1552_v6, %s5012_s10  ;;  %v1615_v19 = vmul.f32 %v5757_v34, %v1614_v52  ;;  %v1616_v49 = vmul.f32 %v5754_v22, %v1614_v52  ;;  %v1587_v6 = vsel %vm538_vm6, %v1585_v48, %v1586_v8 }
 0x1ed   : > { %v5807_v47 = vpop.permute.xlu1 %1208  ;;  %v5809_v21 = vpop.permute.xlu2 %1284 }
 0x1ee   : > { %8444 = vst [vmem:[#allocation56_spill] sm:$0xff] %v5807_v47  ;;  %v5811_v51 = vpop.permute.xlu0 %1189  ;;  %v1619_v56 = vrot.slane %v1615_v19, 2  ;;  %v1620_v28 = vrot.slane %v1616_v49, 2  ;;  %v5827_v47 = vld [vmem:[#allocation2 + $0x10] sm:$0x3] }
 0x1ef   : > { %8445 = vst [vmem:[#allocation57_spill] sm:$0xff] %v5809_v21  ;;  %v1652_v21 = vstv %s4623_s19  ;;  %s4655_s19 = sld [smem:[#allocation7 + $0x2e]] }
 0x1f0   : > { %8446 = vst [vmem:[#allocation58_spill] sm:$0xff] %v5811_v51  ;;  %v1631_v51 = vstv %s4622_s4  ;;  %v1621_v48 = vsel %vm538_vm6, %v1619_v56, %v1620_v28  ;;  %s4654_s4 = sld [smem:[#allocation7 + $0xbf]] }
 0x1f1   : > { %v1633_v52 = vmul.f32 %v5754_v22, %v1631_v51  ;;  %v1632_v19 = vmul.f32 %v5757_v34, %v1631_v51 }
 0x1f3   : > { %1590 = vrot.lane.b32.xlu1 %v1586_v8, %s5012_s10  ;;  %1605 = vrot.lane.b32.xlu2 %v1604_v20, %s5012_s10  ;;  %v1634_v20 = vmul.f32 %v5827_v47, %v1631_v51  ;;  %v1653_v8 = vmul.f32 %v5757_v34, %v1652_v21  ;;  %v1638_v3 = vrot.slane %v1632_v19, 3 }
 0x1f4   : > { %1588 = vrot.lane.b32.xlu0 %v1587_v6, %s5012_s10  ;;  %v1654_v6 = vmul.f32 %v5754_v22, %v1652_v21 }
 0x1f5   : > { %v5820_v43 = vpop.permute.xlu1 %1224  ;;  %v5822_v33 = vpop.permute.xlu2 %1303  ;;  %v1659_v56 = vrot.slane %v1653_v8, 3 }
 0x1f6   : > { %8447 = vst [vmem:[#allocation59_spill] sm:$0xff] %v5820_v43  ;;  %v5824_v11 = vpop.permute.xlu0 %1222  ;;  %v1641_v43 = vrot.slane %v1634_v20, 3  ;;  %v1660_v50 = vrot.slane %v1654_v6, 3  ;;  %v1655_v20 = vmul.f32 %v5827_v47, %v1652_v21 }
 0x1f7   : > { %8448 = vst [vmem:[#allocation60_spill] sm:$0xff] %v5822_v33  ;;  %v1639_v33 = vrot.slane %v1633_v52, 3 }
 0x1f8   : > { %8449 = vst [vmem:[#allocation61_spill] sm:$0xff] %v5824_v11  ;;  %v1661_v51 = vsel %vm580_vm7, %v1659_v56, %v1660_v50 }
 0x1f9   : > { %v1640_v52 = vsel %vm580_vm7, %v1638_v3, %v1639_v33 }
 0x1fb   : > { %1622 = vrot.lane.b32.xlu1 %v1621_v48, %s5012_s10  ;;  %1624 = vrot.lane.b32.xlu2 %v1620_v28, %s5012_s10  ;;  %v1642_v28 = vsel %vm580_vm7, %v1639_v33, %v1641_v43  ;;  %v1675_v48 = vmul.f32 %v5754_v22, %v1673_v55 }
 0x1fc   : > { %1607 = vrot.lane.b32.xlu0 %v1603_v7, %s5012_s10  ;;  %v1674_v7 = vmul.f32 %v5757_v34, %v1673_v55 }
 0x1fd   : > { %v5837_v49 = vpop.permute.xlu1 %1250  ;;  %v5839_v11 = vpop.permute.xlu2 %1335  ;;  %v1681_v56 = vrot.slane %v1675_v48, 3 }
 0x1fe   : > { %8450 = vst [vmem:[#allocation62_spill] sm:$0xff] %v5837_v49  ;;  %v5841_v42 = vpop.permute.xlu0 %1238  ;;  %v1680_v19 = vrot.slane %v1674_v7, 3  ;;  %v1662_v49 = vrot.slane %v1655_v20, 3 }
 0x1ff   : > { %8451 = vst [vmem:[#allocation63_spill] sm:$0xff] %v5839_v11  ;;  %v1676_v11 = vmul.f32 %v5827_v47, %v1673_v55  ;;  %v1694_v55 = vstv %s4625_s21  ;;  %s4657_s21 = sld [smem:[#allocation7 + $0xc4]] }
 0x200   : > { %8452 = vst [vmem:[#allocation64_spill] sm:$0xff] %v5841_v42  ;;  %v1697_v3 = vmul.f32 %v5827_v47, %v1694_v55  ;;  %v1682_v21 = vsel %vm580_vm7, %v1680_v19, %v1681_v56  ;;  %v1695_v7 = vmul.f32 %v5757_v34, %v1694_v55 }
 0x201   : > { %v1683_v42 = vrot.slane %v1676_v11, 3  ;;  %v1663_v11 = vsel %vm580_vm7, %v1660_v50, %v1662_v49 }
 0x202   : > { %v1701_v54 = vrot.slane %v1695_v7, 4 }
 0x203   : > { %1645 = vrot.lane.b32.xlu1 %v1642_v28, %s5012_s10  ;;  %1664 = vrot.lane.b32.xlu2 %v1661_v51, %s5012_s10  ;;  %v1715_v28 = vstv %s4626_s26  ;;  %v1696_v51 = vmul.f32 %v5754_v22, %v1694_v55  ;;  %v1684_v33 = vsel %vm580_vm7, %v1681_v56, %v1683_v42  ;;  %v1704_v42 = vrot.slane %v1697_v3, 4  ;;  %s4658_s26 = sld [smem:[#allocation7 + $0x1b]] }
 0x204   : > { %1643 = vrot.lane.b32.xlu0 %v1640_v52, %s5012_s10  ;;  %v1716_v52 = vmul.f32 %v5757_v34, %v1715_v28 }
 0x205   : > { %v5853_v8 = vpop.permute.xlu1 %1269  ;;  %v5855_v43 = vpop.permute.xlu2 %1354  ;;  %v1702_v19 = vrot.slane %v1696_v51, 4 }
 0x206   : > { %8453 = vst [vmem:[#allocation65_spill] sm:$0xff] %v5853_v8  ;;  %v5857_v6 = vpop.permute.xlu0 %1267 }
 0x207   : > { %8454 = vst [vmem:[#allocation66_spill] sm:$0xff] %v5855_v43  ;;  %v1717_v43 = vmul.f32 %v5754_v22, %v1715_v28  ;;  %v1703_v51 = vsel %vm632_vm8, %v1701_v54, %v1702_v19 }
 0x208   : > { %8455 = vst [vmem:[#allocation67_spill] sm:$0xff] %v5857_v6  ;;  %v1722_v6 = vrot.slane %v1716_v52, 4 }
 0x209   : > { %v1723_v8 = vrot.slane %v1717_v43, 4  ;;  %v1718_v43 = vmul.f32 %v5827_v47, %v1715_v28 }
 0x20b   : > { %1685 = vrot.lane.b32.xlu1 %v1682_v21, %s5012_s10  ;;  %1687 = vrot.lane.b32.xlu2 %v1684_v33, %s5012_s10  ;;  %v1736_v21 = vstv %s4627_s27  ;;  %v1705_v33 = vsel %vm632_vm8, %v1702_v19, %v1704_v42  ;;  %v1724_v50 = vsel %vm632_vm8, %v1722_v6, %v1723_v8  ;;  %v1725_v42 = vrot.slane %v1718_v43, 4  ;;  %s4659_s27 = sld [smem:[#allocation7 + $0x66]] }
 0x20c   : > { %1666 = vrot.lane.b32.xlu0 %v1663_v11, %s5012_s10  ;;  %v1737_v49 = vmul.f32 %v5757_v34, %v1736_v21  ;;  %v1738_v55 = vmul.f32 %v5754_v22, %v1736_v21  ;;  %v1739_v11 = vmul.f32 %v5827_v47, %v1736_v21 }
 0x20d   : > { %v5870_v48 = vpop.permute.xlu1 %1301  ;;  %v5872_v20 = vpop.permute.xlu2 %1394  ;;  %v1726_v28 = vsel %vm632_vm8, %v1723_v8, %v1725_v42  ;;  %v1987_v42 = vstv %s4645_s6  ;;  %s4661_s6 = sld [smem:[#allocation7 + $0x20]] }
 0x20e   : > { %8456 = vst [vmem:[#allocation68_spill] sm:$0xff] %v5870_v48  ;;  %v5874_v56 = vpop.permute.xlu0 %1286  ;;  %v1743_v34 = vrot.slane %v1737_v49, 4  ;;  %v1744_v22 = vrot.slane %v1738_v55, 4  ;;  %v1746_v7 = vrot.slane %v1739_v11, 4  ;;  %v1959_v49 = vstv %s4643_s29  ;;  %v5908_v55 = vld [vmem:[#allocation2 + $0x18] sm:$0xff]  ;;  %s4660_s29 = sld [smem:[#allocation7 + $0xb1]] }
 0x20f   : > { %8457 = vst [vmem:[#allocation69_spill] sm:$0xff] %v5872_v20  ;;  %v1973_v11 = vstv %s5892_s30  ;;  %v1960_v43 = vmul.f32 %v1959_v49, %v5908_v55  ;;  %v2208_v48 = vstv %s4657_s21  ;;  %s4662_s30 = sld [smem:[#allocation7 + $0x6b]] }
 0x210   : > { %8458 = vst [vmem:[#allocation70_spill] sm:$0xff] %v5874_v56  ;;  %v1745_v54 = vsel %vm632_vm8, %v1743_v34, %v1744_v22  ;;  %v1747_v47 = vsel %vm632_vm8, %v1744_v22, %v1746_v7  ;;  %v1974_v8 = vmul.f32 %v1973_v11, %v5908_v55  ;;  %s4674_s21 = sld [smem:[#allocation7 + $0x67]] }
 0x213   : > { %1708 = vrot.lane.b32.xlu1 %v1705_v33, %s5012_s10  ;;  %1727 = vrot.lane.b32.xlu2 %v1724_v50, %s5012_s10  ;;  %v5904_v33 = vld [vmem:[#allocation2 + $0x20] sm:$0xff] }
 0x214   : > { %1706 = vrot.lane.b32.xlu0 %v1703_v51, %s5012_s10  ;;  %v1961_v51 = vmul.f32 %v1959_v49, %v5904_v33  ;;  %v1989_v49 = vmul.f32 %v1987_v42, %v5904_v33 }
 0x215   : > { %v5886_v3 = vpop.permute.xlu1 %1320  ;;  %v5888_v52 = vpop.permute.xlu2 %1417 }
 0x216   : > { %8459 = vst [vmem:[#allocation71_spill] sm:$0xff] %v5886_v3  ;;  %v5890_v6 = vpop.permute.xlu0 %1318 }
 0x217   : > { %8460 = vst [vmem:[#allocation72_spill] sm:$0xff] %v5888_v52 }
 0x218   : > { %8461 = vst [vmem:[#allocation73_spill] sm:$0xff] %v5890_v6  ;;  %v2035_v6 = vstv %s4648_s8  ;;  %s4664_s8 = sld [smem:[#allocation7 + $0x25]] }
 0x21b   : > { %1748 = vrot.lane.b32.xlu1 %v1745_v54, %s5012_s10  ;;  %1750 = vrot.lane.b32.xlu2 %v1747_v47, %s5012_s10  ;;  %v2018_v54 = vstv %s4647_s7  ;;  %v2001_v47 = vstv %s4646_s5  ;;  %s4663_s7 = sld [smem:[#allocation7 + $0xb6]] }
 0x21c   : > { %1729 = vrot.lane.b32.xlu0 %v1726_v28, %s5012_s10  ;;  %v1988_v28 = vmul.f32 %v1987_v42, %v5908_v55  ;;  %s4665_s5 = sld [smem:[#allocation7 + $0x70]] }
 0x21d   : > { %v5900_v19 = vpop.permute.xlu1 %1352  ;;  %v5902_v21 = vpop.permute.xlu2 %1457 }
 0x21e   : > { %8462 = vst [vmem:[#allocation74_spill] sm:$0xff] %v5900_v19  ;;  %v5906_v50 = vpop.permute.xlu0 %1337 }
 0x21f   : > { %8463 = vst [vmem:[#allocation75_spill] sm:$0xff] %v5902_v21 }
 0x220   : > { %8464 = vst [vmem:[#allocation76_spill] sm:$0xff] %v5906_v50 }
 0x223   : > { %1966 = vrot.lane.b32.xlu1 %v1961_v51, %s5009_s28  ;;  %1978 = vrot.lane.b32.xlu2 %v1974_v8, %s5009_s28  ;;  %v1975_v51 = vmul.f32 %v1973_v11, %v5904_v33  ;;  %v2019_v8 = vmul.f32 %v2018_v54, %v5908_v55 }
 0x224   : > { %1964 = vrot.lane.b32.xlu0 %v1960_v43, %s5009_s28  ;;  %v2020_v43 = vmul.f32 %v2018_v54, %v5904_v33 }
 0x225   : > { %v5917_v34 = vpop.permute.xlu1 %1375  ;;  %v5919_v22 = vpop.permute.xlu2 %1480  ;;  %v2023_v11 = vrot.slane %v2019_v8, 1 }
 0x226   : > { %8465 = vst [vmem:[#allocation77_spill] sm:$0xff] %v5917_v34  ;;  %v5921_v7 = vpop.permute.xlu0 %1373  ;;  %v2024_v21 = vrot.slane %v2020_v43, 1 }
 0x227   : > { %8466 = vst [vmem:[#allocation78_spill] sm:$0xff] %v5919_v22  ;;  %v2002_v22 = vmul.f32 %v2001_v47, %v5908_v55 }
 0x228   : > { %8467 = vst [vmem:[#allocation79_spill] sm:$0xff] %v5921_v7  ;;  %v2003_v7 = vmul.f32 %v2001_v47, %v5904_v33  ;;  %v2037_v47 = vmul.f32 %v2035_v6, %v5904_v33 }
 0x229   : > { %v2006_v54 = vrot.slane %v2002_v22, 1 }
 0x22a   : > { %v2007_v19 = vrot.slane %v2003_v7, 1 }
 0x22b   : > { %1992 = vrot.lane.b32.xlu1 %v1988_v28, %s5009_s28  ;;  %1994 = vrot.lane.b32.xlu2 %v1989_v49, %s5009_s28  ;;  %v2025_v28 = vsel %vm498_vm5, %v2023_v11, %v2024_v21  ;;  %v2036_v49 = vmul.f32 %v2035_v6, %v5908_v55  ;;  %v2041_v11 = vrot.slane %v2037_v47, 1 }
 0x22c   : > { %1980 = vrot.lane.b32.xlu0 %v1975_v51, %s5009_s28  ;;  %v2008_v51 = vsel %vm498_vm5, %v2006_v54, %v2007_v19 }
 0x22d   : > { %v5933_v34 = vpop.permute.xlu1 %1415  ;;  %v5935_v50 = vpop.permute.xlu2 %1506  ;;  %v2040_v43 = vrot.slane %v2036_v49, 1 }
 0x22e   : > { %8468 = vst [vmem:[#allocation80_spill] sm:$0xff] %v5933_v34  ;;  %v5937_v42 = vpop.permute.xlu0 %1396 }
 0x22f   : > { %8469 = vst [vmem:[#allocation81_spill] sm:$0xff] %v5935_v50  ;;  %v2052_v50 = vstv %s4649_s11  ;;  %v2042_v6 = vsel %vm498_vm5, %v2040_v43, %v2041_v11  ;;  %s4667_s11 = sld [smem:[#allocation7 + $0x2a]] }
 0x230   : > { %8470 = vst [vmem:[#allocation82_spill] sm:$0xff] %v5937_v42  ;;  %v2069_v42 = vstv %s4650_s9  ;;  %v2053_v54 = vmul.f32 %v2052_v50, %v5908_v55  ;;  %s4666_s9 = sld [smem:[#allocation7 + $0xbb]] }
 0x231   : > { %v2070_v34 = vmul.f32 %v2069_v42, %v5908_v55 }
 0x233   : > { %2011 = vrot.lane.b32.xlu1 %v2007_v19, %s5009_s28  ;;  %2026 = vrot.lane.b32.xlu2 %v2025_v28, %s5009_s28  ;;  %v2071_v28 = vmul.f32 %v2069_v42, %v5904_v33  ;;  %v2054_v19 = vmul.f32 %v2052_v50, %v5904_v33  ;;  %v2074_v43 = vrot.slane %v2070_v34, 2 }
 0x234   : > { %2009 = vrot.lane.b32.xlu0 %v2008_v51, %s5009_s28 }
 0x235   : > { %v5946_v8 = vpop.permute.xlu1 %1438  ;;  %v5948_v22 = vpop.permute.xlu2 %1522  ;;  %v2058_v42 = vrot.slane %v2054_v19, 2 }
 0x236   : > { %8471 = vst [vmem:[#allocation83_spill] sm:$0xff] %v5946_v8  ;;  %v5950_v7 = vpop.permute.xlu0 %1436 }
 0x237   : > { %8472 = vst [vmem:[#allocation84_spill] sm:$0xff] %v5948_v22  ;;  %v2057_v22 = vrot.slane %v2053_v54, 2 }
 0x238   : > { %8473 = vst [vmem:[#allocation85_spill] sm:$0xff] %v5950_v7  ;;  %v2075_v7 = vrot.slane %v2071_v28, 2 }
 0x23b   : > { %2043 = vrot.lane.b32.xlu1 %v2042_v6, %s5009_s28  ;;  %2045 = vrot.lane.b32.xlu2 %v2041_v11, %s5009_s28  ;;  %v2086_v6 = vstv %s4651_s12  ;;  %v2076_v11 = vsel %vm538_vm6, %v2074_v43, %v2075_v7  ;;  %s4668_s12 = sld [smem:[#allocation7 + $0x75]] }
 0x23c   : > { %2028 = vrot.lane.b32.xlu0 %v2024_v21, %s5009_s28  ;;  %v2087_v8 = vmul.f32 %v2086_v6, %v5908_v55  ;;  %v2088_v50 = vmul.f32 %v2086_v6, %v5904_v33  ;;  %v2059_v21 = vsel %vm538_vm6, %v2057_v22, %v2058_v42  ;;  %v2124_v6 = vstv %s4653_s24  ;;  %s4670_s24 = sld [smem:[#allocation7 + $0x2f]] }
 0x23d   : > { %v5960_v49 = vpop.permute.xlu1 %1478  ;;  %v5962_v47 = vpop.permute.xlu2 %1554 }
 0x23e   : > { %8474 = vst [vmem:[#allocation86_spill] sm:$0xff] %v5960_v49  ;;  %v5964_v51 = vpop.permute.xlu0 %1459  ;;  %v2091_v54 = vrot.slane %v2087_v8, 2  ;;  %v2092_v43 = vrot.slane %v2088_v50, 2  ;;  %v5979_v49 = vld [vmem:[#allocation2 + $0x28] sm:$0x3] }
 0x23f   : > { %8475 = vst [vmem:[#allocation87_spill] sm:$0xff] %v5962_v47 }
 0x240   : > { %8476 = vst [vmem:[#allocation88_spill] sm:$0xff] %v5964_v51  ;;  %v2103_v51 = vstv %s4652_s22  ;;  %s4669_s22 = sld [smem:[#allocation7 + $0xc0]] }
 0x241   : > { %v2105_v47 = vmul.f32 %v2103_v51, %v5904_v33  ;;  %v2106_v22 = vmul.f32 %v2103_v51, %v5979_v49  ;;  %v2104_v8 = vmul.f32 %v2103_v51, %v5908_v55 }
 0x243   : > { %2062 = vrot.lane.b32.xlu1 %v2058_v42, %s5009_s28  ;;  %2077 = vrot.lane.b32.xlu2 %v2076_v11, %s5009_s28  ;;  %v2093_v11 = vsel %vm538_vm6, %v2091_v54, %v2092_v43  ;;  %v2125_v42 = vmul.f32 %v2124_v6, %v5908_v55  ;;  %v2113_v52 = vrot.slane %v2106_v22, 3  ;;  %v2110_v20 = vrot.slane %v2104_v8, 3 }
 0x244   : > { %2060 = vrot.lane.b32.xlu0 %v2059_v21, %s5009_s28  ;;  %v2126_v21 = vmul.f32 %v2124_v6, %v5904_v33  ;;  %v2127_v22 = vmul.f32 %v2124_v6, %v5979_v49 }
 0x245   : > { %v5973_v34 = vpop.permute.xlu1 %1494  ;;  %v5975_v28 = vpop.permute.xlu2 %1573  ;;  %v2131_v3 = vrot.slane %v2125_v42, 3 }
 0x246   : > { %8477 = vst [vmem:[#allocation89_spill] sm:$0xff] %v5973_v34  ;;  %v5977_v19 = vpop.permute.xlu0 %1492  ;;  %v2145_v34 = vstv %s4654_s4  ;;  %v2132_v56 = vrot.slane %v2126_v21, 3  ;;  %s4671_s4 = sld [smem:[#allocation7 + $0x7a]] }
 0x247   : > { %8478 = vst [vmem:[#allocation90_spill] sm:$0xff] %v5975_v28  ;;  %v2111_v28 = vrot.slane %v2105_v47, 3  ;;  %v2147_v51 = vmul.f32 %v2145_v34, %v5904_v33 }
 0x248   : > { %8479 = vst [vmem:[#allocation91_spill] sm:$0xff] %v5977_v19 }
 0x249   : > { %v2112_v47 = vsel %vm580_vm7, %v2110_v20, %v2111_v28 }
 0x24b   : > { %2094 = vrot.lane.b32.xlu1 %v2093_v11, %s5009_s28  ;;  %2096 = vrot.lane.b32.xlu2 %v2092_v43, %s5009_s28  ;;  %v2146_v43 = vmul.f32 %v2145_v34, %v5908_v55  ;;  %v2133_v11 = vsel %vm580_vm7, %v2131_v3, %v2132_v56 }
 0x24c   : > { %2079 = vrot.lane.b32.xlu0 %v2075_v7, %s5009_s28  ;;  %v2114_v7 = vsel %vm580_vm7, %v2111_v28, %v2113_v52  ;;  %v2153_v52 = vrot.slane %v2147_v51, 3 }
 0x24d   : > { %v5990_v50 = vpop.permute.xlu1 %1520  ;;  %v5992_v19 = vpop.permute.xlu2 %1605  ;;  %v2152_v8 = vrot.slane %v2146_v43, 3 }
 0x24e   : > { %8480 = vst [vmem:[#allocation92_spill] sm:$0xff] %v5990_v50  ;;  %v5994_v54 = vpop.permute.xlu0 %1508  ;;  %v2148_v50 = vmul.f32 %v2145_v34, %v5979_v49  ;;  %v2166_v34 = vstv %s4655_s19  ;;  %s4672_s19 = sld [smem:[#allocation7 + $0xc5]] }
 0x24f   : > { %8481 = vst [vmem:[#allocation93_spill] sm:$0xff] %v5992_v19  ;;  %v2187_v19 = vstv %s4656_s25  ;;  %v2168_v20 = vmul.f32 %v2166_v34, %v5904_v33  ;;  %v2169_v6 = vmul.f32 %v2166_v34, %v5979_v49  ;;  %v2167_v51 = vmul.f32 %v2166_v34, %v5908_v55  ;;  %s4673_s25 = sld [smem:[#allocation7 + $0x1c]] }
 0x250   : > { %8482 = vst [vmem:[#allocation94_spill] sm:$0xff] %v5994_v54  ;;  %v2155_v3 = vrot.slane %v2148_v50, 3  ;;  %v2189_v43 = vmul.f32 %v2187_v19, %v5904_v33 }
 0x252   : > { %v2156_v28 = vsel %vm580_vm7, %v2153_v52, %v2155_v3 }
 0x253   : > { %2117 = vrot.lane.b32.xlu1 %v2114_v7, %s5009_s28  ;;  %2136 = vrot.lane.b32.xlu2 %v2133_v11, %s5009_s28  ;;  %v2134_v7 = vrot.slane %v2127_v22, 3  ;;  %v2154_v11 = vsel %vm580_vm7, %v2152_v8, %v2153_v52  ;;  %v2174_v52 = vrot.slane %v2168_v20, 4 }
 0x254   : > { %2115 = vrot.lane.b32.xlu0 %v2112_v47, %s5009_s28  ;;  %v2188_v47 = vmul.f32 %v2187_v19, %v5908_v55 }
 0x255   : > { %v6006_v42 = vpop.permute.xlu1 %1539  ;;  %v6008_v21 = vpop.permute.xlu2 %1624  ;;  %v2135_v50 = vsel %vm580_vm7, %v2132_v56, %v2134_v7  ;;  %v2210_v7 = vmul.f32 %v2208_v48, %v5904_v33 }
 0x256   : > { %8483 = vst [vmem:[#allocation95_spill] sm:$0xff] %v6006_v42  ;;  %v6010_v54 = vpop.permute.xlu0 %1537  ;;  %v2194_v42 = vrot.slane %v2188_v47, 4 }
 0x257   : > { %8484 = vst [vmem:[#allocation96_spill] sm:$0xff] %v6008_v21  ;;  %v2195_v21 = vrot.slane %v2189_v43, 4 }
 0x258   : > { %8485 = vst [vmem:[#allocation97_spill] sm:$0xff] %v6010_v54  ;;  %v2176_v54 = vrot.slane %v2169_v6, 4  ;;  %v2190_v6 = vmul.f32 %v2187_v19, %v5979_v49 }
 0x259   : > { %v2196_v34 = vsel %vm632_vm8, %v2194_v42, %v2195_v21 }
 0x25a   : > { %v2177_v56 = vsel %vm632_vm8, %v2174_v52, %v2176_v54 }
 0x25b   : > { %2157 = vrot.lane.b32.xlu1 %v2154_v11, %s5009_s28  ;;  %2159 = vrot.lane.b32.xlu2 %v2156_v28, %s5009_s28  ;;  %v2173_v11 = vrot.slane %v2167_v51, 4  ;;  %v2209_v28 = vmul.f32 %v2208_v48, %v5908_v55  ;;  %v2216_v51 = vrot.slane %v2210_v7, 4  ;;  %v2229_v7 = vstv %s4658_s26  ;;  %s4675_s26 = sld [smem:[#allocation7 + $0xb2]] }
 0x25c   : > { %2138 = vrot.lane.b32.xlu0 %v2135_v50, %s5009_s28  ;;  %v2211_v50 = vmul.f32 %v2208_v48, %v5979_v49  ;;  %v2197_v48 = vrot.slane %v2190_v6, 4  ;;  %v2230_v6 = vmul.f32 %v2229_v7, %v5908_v55 }
 0x25d   : > { %v6023_v22 = vpop.permute.xlu1 %1571  ;;  %v6025_v8 = vpop.permute.xlu2 %1664  ;;  %v2175_v20 = vsel %vm632_vm8, %v2173_v11, %v2174_v52  ;;  %v2215_v42 = vrot.slane %v2209_v28, 4 }
 0x25e   : > { %8486 = vst [vmem:[#allocation98_spill] sm:$0xff] %v6023_v22  ;;  %v6027_v3 = vpop.permute.xlu0 %1556  ;;  %v2198_v19 = vsel %vm632_vm8, %v2195_v21, %v2197_v48  ;;  %v2257_v48 = vstv %s4660_s29  ;;  %s4676_s29 = sld [smem:[#allocation7 + $0x21]] }
 0x25f   : > { %8487 = vst [vmem:[#allocation99_spill] sm:$0xff] %v6025_v8 }
 0x260   : > { %8488 = vst [vmem:[#allocation100_spill] sm:$0xff] %v6027_v3  ;;  %v2218_v3 = vrot.slane %v2211_v50, 4  ;;  %v2243_v50 = vstv %s4659_s27  ;;  %s4677_s27 = sld [smem:[#allocation7 + $0x6c]] }
 0x262   : > { %v2219_v52 = vsel %vm632_vm8, %v2216_v51, %v2218_v3  ;;  %v2231_v3 = vmul.f32 %v2229_v7, %v5904_v33  ;;  %v2259_v7 = vmul.f32 %v2257_v48, %v5904_v33 }
 0x263   : > { %2180 = vrot.lane.b32.xlu1 %v2177_v56, %s5009_s28  ;;  %2199 = vrot.lane.b32.xlu2 %v2196_v34, %s5009_s28  ;;  %v2217_v56 = vsel %vm632_vm8, %v2215_v42, %v2216_v51 }
 0x264   : > { %2178 = vrot.lane.b32.xlu0 %v2175_v20, %s5009_s28  ;;  %v2244_v20 = vmul.f32 %v2243_v50, %v5908_v55 }
 0x265   : > { %v6039_v47 = vpop.permute.xlu1 %1590  ;;  %v6041_v43 = vpop.permute.xlu2 %1687 }
 0x266   : > { %8489 = vst [vmem:[#allocation101_spill] sm:$0xff] %v6039_v47  ;;  %v6043_v54 = vpop.permute.xlu0 %1588  ;;  %v2305_v47 = vstv %s4663_s7  ;;  %s4679_s7 = sld [smem:[#allocation7 + $0x26]] }
 0x267   : > { %8490 = vst [vmem:[#allocation102_spill] sm:$0xff] %v6041_v43 }
 0x268   : > { %8491 = vst [vmem:[#allocation103_spill] sm:$0xff] %v6043_v54 }
 0x26b   : > { %2220 = vrot.lane.b32.xlu1 %v2217_v56, %s5009_s28  ;;  %2222 = vrot.lane.b32.xlu2 %v2219_v52, %s5009_s28  ;;  %v2288_v56 = vstv %s4662_s30  ;;  %v2271_v52 = vstv %s4661_s6  ;;  %s4678_s30 = sld [smem:[#allocation7 + $0xb7]] }
 0x26c   : > { %2201 = vrot.lane.b32.xlu0 %v2198_v19, %s5009_s28  ;;  %v2258_v19 = vmul.f32 %v2257_v48, %v5908_v55  ;;  %s4680_s6 = sld [smem:[#allocation7 + $0x71]] }
 0x26d   : > { %v6051_v11 = vpop.permute.xlu1 %1622  ;;  %v6053_v28 = vpop.permute.xlu2 %1727 }
 0x26e   : > { %8492 = vst [vmem:[#allocation104_spill] sm:$0xff] %v6051_v11  ;;  %v6055_v34 = vpop.permute.xlu0 %1607  ;;  %v2272_v11 = vmul.f32 %v2271_v52, %v5908_v55 }
 0x26f   : > { %8493 = vst [vmem:[#allocation105_spill] sm:$0xff] %v6053_v28 }
 0x270   : > { %8494 = vst [vmem:[#allocation106_spill] sm:$0xff] %v6055_v34  ;;  %v2273_v34 = vmul.f32 %v2271_v52, %v5904_v33  ;;  %v2307_v52 = vmul.f32 %v2305_v47, %v5904_v33 }
 0x272   : > { %v2277_v54 = vrot.slane %v2273_v34, 1 }
 0x273   : > { %2236 = vrot.lane.b32.xlu1 %v2231_v3, %s5010_s18  ;;  %2248 = vrot.lane.b32.xlu2 %v2244_v20, %s5010_s18  ;;  %v2245_v3 = vmul.f32 %v2243_v50, %v5904_v33  ;;  %v2289_v20 = vmul.f32 %v2288_v56, %v5908_v55 }
 0x274   : > { %2234 = vrot.lane.b32.xlu0 %v2230_v6, %s5010_s18  ;;  %v2290_v6 = vmul.f32 %v2288_v56, %v5904_v33  ;;  %v2276_v56 = vrot.slane %v2272_v11, 1 }
 0x275   : > { %v6063_v21 = vpop.permute.xlu1 %1645  ;;  %v6065_v42 = vpop.permute.xlu2 %1750  ;;  %v2293_v50 = vrot.slane %v2289_v20, 1 }
 0x276   : > { %8495 = vst [vmem:[#allocation107_spill] sm:$0xff] %v6063_v21  ;;  %v6067_v51 = vpop.permute.xlu0 %1643  ;;  %v2294_v21 = vrot.slane %v2290_v6, 1 }
 0x277   : > { %8496 = vst [vmem:[#allocation108_spill] sm:$0xff] %v6065_v42 }
 0x278   : > { %8497 = vst [vmem:[#allocation109_spill] sm:$0xff] %v6067_v51 }
 0x27b   : > { %2262 = vrot.lane.b32.xlu1 %v2258_v19, %s5010_s18  ;;  %2264 = vrot.lane.b32.xlu2 %v2259_v7, %s5010_s18  ;;  %v2295_v19 = vsel %vm498_vm5, %v2293_v50, %v2294_v21  ;;  %v2306_v7 = vmul.f32 %v2305_v47, %v5908_v55  ;;  %v2311_v50 = vrot.slane %v2307_v52, 1 }
 0x27c   : > { %2250 = vrot.lane.b32.xlu0 %v2245_v3, %s5010_s18  ;;  %v2278_v3 = vsel %vm498_vm5, %v2276_v56, %v2277_v54 }
 0x27d   : > { %v6079_v22 = vpop.permute.xlu1 %1685  ;;  %v6081_v51 = vpop.permute.xlu2 %1978  ;;  %v2310_v6 = vrot.slane %v2306_v7, 1 }
 0x27e   : > { %8498 = vst [vmem:[#allocation110_spill] sm:$0xff] %v6079_v22  ;;  %v6083_v48 = vpop.permute.xlu0 %1666  ;;  %v2322_v22 = vstv %s4664_s8  ;;  %s4682_s8 = sld [smem:[#allocation7 + $0x2b]] }
 0x27f   : > { %8499 = vst [vmem:[#allocation111_spill] sm:$0xff] %v6081_v51  ;;  %v2312_v47 = vsel %vm498_vm5, %v2310_v6, %v2311_v50  ;;  %v2323_v56 = vmul.f32 %v2322_v22, %v5908_v55 }
 0x280   : > { %8500 = vst [vmem:[#allocation112_spill] sm:$0xff] %v6083_v48  ;;  %v2339_v48 = vstv %s4665_s5  ;;  %s4681_s5 = sld [smem:[#allocation7 + $0xbc]] }
 0x281   : > { %v2340_v51 = vmul.f32 %v2339_v48, %v5908_v55 }
 0x283   : > { %2281 = vrot.lane.b32.xlu1 %v2277_v54, %s5010_s18  ;;  %2296 = vrot.lane.b32.xlu2 %v2295_v19, %s5010_s18  ;;  %v2341_v19 = vmul.f32 %v2339_v48, %v5904_v33  ;;  %v2324_v54 = vmul.f32 %v2322_v22, %v5904_v33  ;;  %v2344_v6 = vrot.slane %v2340_v51, 2 }
 0x284   : > { %2279 = vrot.lane.b32.xlu0 %v2278_v3, %s5010_s18 }
 0x285   : > { %v6092_v20 = vpop.permute.xlu1 %1708  ;;  %v6094_v11 = vpop.permute.xlu2 %1994  ;;  %v2328_v48 = vrot.slane %v2324_v54, 2 }
 0x286   : > { %8501 = vst [vmem:[#allocation113_spill] sm:$0xff] %v6092_v20  ;;  %v6096_v34 = vpop.permute.xlu0 %1706 }
 0x287   : > { %8502 = vst [vmem:[#allocation114_spill] sm:$0xff] %v6094_v11  ;;  %v2345_v11 = vrot.slane %v2341_v19, 2 }
 0x288   : > { %8503 = vst [vmem:[#allocation115_spill] sm:$0xff] %v6096_v34  ;;  %v2327_v34 = vrot.slane %v2323_v56, 2 }
 0x28b   : > { %2313 = vrot.lane.b32.xlu1 %v2312_v47, %s5010_s18  ;;  %2315 = vrot.lane.b32.xlu2 %v2311_v50, %s5010_s18  ;;  %v2356_v47 = vstv %s4666_s9  ;;  %v2346_v50 = vsel %vm538_vm6, %v2344_v6, %v2345_v11  ;;  %s4683_s9 = sld [smem:[#allocation7 + $0x76]] }
 0x28c   : > { %2298 = vrot.lane.b32.xlu0 %v2294_v21, %s5010_s18  ;;  %v2357_v20 = vmul.f32 %v2356_v47, %v5908_v55  ;;  %v2358_v22 = vmul.f32 %v2356_v47, %v5904_v33  ;;  %v2329_v21 = vsel %vm538_vm6, %v2327_v34, %v2328_v48 }
 0x28d   : > { %v6106_v7 = vpop.permute.xlu1 %1748  ;;  %v6108_v52 = vpop.permute.xlu2 %2026 }
 0x28e   : > { %8504 = vst [vmem:[#allocation116_spill] sm:$0xff] %v6106_v7  ;;  %v6110_v3 = vpop.permute.xlu0 %1729  ;;  %v2361_v56 = vrot.slane %v2357_v20, 2  ;;  %v2362_v6 = vrot.slane %v2358_v22, 2  ;;  %v2394_v7 = vstv %s4668_s12  ;;  %s4684_s12 = sld [smem:[#allocation7 + $0xc1]] }
 0x28f   : > { %8505 = vst [vmem:[#allocation117_spill] sm:$0xff] %v6108_v52  ;;  %v2395_v34 = vmul.f32 %v2394_v7, %v5908_v55 }
 0x290   : > { %8506 = vst [vmem:[#allocation118_spill] sm:$0xff] %v6110_v3  ;;  %v2373_v3 = vstv %s4667_s11  ;;  %v2363_v52 = vsel %vm538_vm6, %v2361_v56, %v2362_v6  ;;  %s6267_s11 = sld [smem:[#allocation7 + $0x50]] }
 0x291   : > { %v2375_v47 = vmul.f32 %v2373_v3, %v5904_v33  ;;  %v2401_v42 = vrot.slane %v2395_v34, 3 }
 0x293   : > { %2332 = vrot.lane.b32.xlu1 %v2328_v48, %s5010_s18  ;;  %2347 = vrot.lane.b32.xlu2 %v2346_v50, %s5010_s18  ;;  %v2376_v50 = vmul.f32 %v2373_v3, %v5979_v49  ;;  %v2396_v48 = vmul.f32 %v2394_v7, %v5904_v33 }
 0x294   : > { %2330 = vrot.lane.b32.xlu0 %v2329_v21, %s5010_s18  ;;  %v2374_v21 = vmul.f32 %v2373_v3, %v5908_v55 }
 0x295   : > { %v6119_v51 = vpop.permute.xlu1 %1966  ;;  %v6121_v19 = vpop.permute.xlu2 %2045  ;;  %v2402_v43 = vrot.slane %v2396_v48, 3 }
 0x296   : > { %8507 = vst [vmem:[#allocation119_spill] sm:$0xff] %v6119_v51  ;;  %v6123_v54 = vpop.permute.xlu0 %1964  ;;  %v2381_v51 = vrot.slane %v2375_v47, 3  ;;  %v2380_v28 = vrot.slane %v2374_v21, 3 }
 0x297   : > { %8508 = vst [vmem:[#allocation120_spill] sm:$0xff] %v6121_v19  ;;  %v2383_v19 = vrot.slane %v2376_v50, 3  ;;  %v2397_v50 = vmul.f32 %v2394_v7, %v5979_v49 }
 0x298   : > { %8509 = vst [vmem:[#allocation121_spill] sm:$0xff] %v6123_v54  ;;  %v2415_v54 = vstv %s4669_s22  ;;  %v2382_v47 = vsel %vm580_vm7, %v2380_v28, %v2381_v51  ;;  %s6271_s22 = sld [smem:[#allocation7 + $0x55]] }
 0x299   : > { %v2417_v3 = vmul.f32 %v2415_v54, %v5904_v33 }
 0x29b   : > { %2364 = vrot.lane.b32.xlu1 %v2363_v52, %s5010_s18  ;;  %2366 = vrot.lane.b32.xlu2 %v2362_v6, %s5010_s18  ;;  %v2416_v52 = vmul.f32 %v2415_v54, %v5908_v55  ;;  %v2384_v6 = vsel %vm580_vm7, %v2381_v51, %v2383_v19 }
 0x29c   : > { %2349 = vrot.lane.b32.xlu0 %v2345_v11, %s5010_s18  ;;  %v2418_v11 = vmul.f32 %v2415_v54, %v5979_v49  ;;  %v2423_v54 = vrot.slane %v2417_v3, 3 }
 0x29d   : > { %v6134_v20 = vpop.permute.xlu1 %1992  ;;  %v6136_v22 = vpop.permute.xlu2 %2077  ;;  %v2422_v21 = vrot.slane %v2416_v52, 3 }
 0x29e   : > { %8510 = vst [vmem:[#allocation122_spill] sm:$0xff] %v6134_v20  ;;  %v6138_v56 = vpop.permute.xlu0 %1980  ;;  %v2403_v20 = vsel %vm580_vm7, %v2401_v42, %v2402_v43  ;;  %v2404_v42 = vrot.slane %v2397_v50, 3 }
 0x29f   : > { %8511 = vst [vmem:[#allocation123_spill] sm:$0xff] %v6136_v22  ;;  %v2457_v22 = vstv %s4671_s4  ;;  %s6282_s4 = sld [smem:[#allocation7 + $0x5a]] }
 0x2a0   : > { %8512 = vst [vmem:[#allocation124_spill] sm:$0xff] %v6138_v56  ;;  %v2425_v56 = vrot.slane %v2418_v11, 3  ;;  %v2459_v52 = vmul.f32 %v2457_v22, %v5904_v33  ;;  %v2405_v3 = vsel %vm580_vm7, %v2402_v43, %v2404_v42 }
 0x2a2   : > { %v2426_v28 = vsel %vm580_vm7, %v2423_v54, %v2425_v56  ;;  %v2465_v8 = vrot.slane %v2459_v52, 4 }
 0x2a3   : > { %2387 = vrot.lane.b32.xlu1 %v2384_v6, %s5010_s18  ;;  %2406 = vrot.lane.b32.xlu2 %v2403_v20, %s5010_s18  ;;  %v2436_v6 = vstv %s4670_s24  ;;  %v2424_v20 = vsel %vm580_vm7, %v2422_v21, %v2423_v54  ;;  %v2478_v21 = vstv %s4672_s19  ;;  %s6275_s24 = sld [smem:[#allocation7 + $0x4b]] }
 0x2a4   : > { %2385 = vrot.lane.b32.xlu0 %v2382_v47, %s5010_s18  ;;  %v2438_v7 = vmul.f32 %v2436_v6, %v5904_v33  ;;  %v2439_v51 = vmul.f32 %v2436_v6, %v5979_v49  ;;  %v2458_v47 = vmul.f32 %v2457_v22, %v5908_v55  ;;  %v2437_v11 = vmul.f32 %v2436_v6, %v5908_v55  ;;  %s6287_s19 = sld [smem:[#allocation7 + $0x5f]] }
 0x2a5   : > { %v6150_v34 = vpop.permute.xlu1 %2011  ;;  %v6152_v48 = vpop.permute.xlu2 %2096  ;;  %v2480_v6 = vmul.f32 %v2478_v21, %v5904_v33 }
 0x2a6   : > { %8513 = vst [vmem:[#allocation125_spill] sm:$0xff] %v6150_v34  ;;  %v6154_v19 = vpop.permute.xlu0 %2009  ;;  %v2446_v34 = vrot.slane %v2439_v51, 4  ;;  %v2460_v51 = vmul.f32 %v2457_v22, %v5979_v49 }
 0x2a7   : > { %8514 = vst [vmem:[#allocation126_spill] sm:$0xff] %v6152_v48  ;;  %v2464_v48 = vrot.slane %v2458_v47, 4 }
 0x2a8   : > { %8515 = vst [vmem:[#allocation127_spill] sm:$0xff] %v6154_v19  ;;  %v2444_v19 = vrot.slane %v2438_v7, 4 }
 0x2a9   : > { %v2466_v42 = vsel %vm632_vm8, %v2464_v48, %v2465_v8  ;;  %v8572_v17 = vstv %s6275_s24 }
 0x2aa   : > { %v2447_v43 = vsel %vm632_vm8, %v2444_v19, %v2446_v34 }
 0x2ab   : > { %2427 = vrot.lane.b32.xlu1 %v2424_v20, %s5010_s18  ;;  %2429 = vrot.lane.b32.xlu2 %v2426_v28, %s5010_s18  ;;  %v2443_v20 = vrot.slane %v2437_v11, 4  ;;  %v2479_v28 = vmul.f32 %v2478_v21, %v5908_v55  ;;  %v2486_v11 = vrot.slane %v2480_v6, 4  ;;  %v2499_v6 = vstv %s4673_s25  ;;  %s6290_s25 = sld [smem:[#allocation7 + $0x96]] }
 0x2ac   : > { %2408 = vrot.lane.b32.xlu0 %v2405_v3, %s5010_s18  ;;  %v2481_v3 = vmul.f32 %v2478_v21, %v5979_v49  ;;  %v2467_v21 = vrot.slane %v2460_v51, 4  ;;  %v2500_v51 = vmul.f32 %v2499_v6, %v5908_v55 }
 0x2ad   : > { %v6167_v50 = vpop.permute.xlu1 %2043  ;;  %v6169_v56 = vpop.permute.xlu2 %2136  ;;  %v2445_v7 = vsel %vm632_vm8, %v2443_v20, %v2444_v19  ;;  %v2485_v48 = vrot.slane %v2479_v28, 4 }
 0x2ae   : > { %8516 = vst [vmem:[#allocation128_spill] sm:$0xff] %v6167_v50  ;;  %v6171_v54 = vpop.permute.xlu0 %2028  ;;  %v2468_v22 = vsel %vm632_vm8, %v2465_v8, %v2467_v21  ;;  %v2527_v21 = vstv %s4675_s26  ;;  %s6302_s26 = sld [smem:[#allocation7 + $0x7b]] }
 0x2af   : > { %8517 = vst [vmem:[#allocation129_spill] sm:$0xff] %v6169_v56  ;;  %v6330_v56 = vstv %s6282_s4  ;;  %s6490_s4 = sld [smem:[#allocation7 + $0x68]] }
 0x2b0   : > { %8518 = vst [vmem:[#allocation130_spill] sm:$0xff] %v6171_v54  ;;  %v2488_v54 = vrot.slane %v2481_v3, 4  ;;  %v2513_v3 = vstv %s4674_s21  ;;  %s6300_s21 = sld [smem:[#allocation7 + $0x30]] }
 0x2b1   : > { %v8553_v12 = vstv %s6290_s25 }
 0x2b2   : > { %v2489_v19 = vsel %vm632_vm8, %v2486_v11, %v2488_v54  ;;  %v2501_v54 = vmul.f32 %v2499_v6, %v5904_v33  ;;  %v2529_v6 = vmul.f32 %v2527_v21, %v5904_v33 }
 0x2b3   : > { %2450 = vrot.lane.b32.xlu1 %v2447_v43, %s5010_s18  ;;  %2469 = vrot.lane.b32.xlu2 %v2466_v42, %s5010_s18  ;;  %v2487_v43 = vsel %vm632_vm8, %v2485_v48, %v2486_v11 }
 0x2b4   : > { %2448 = vrot.lane.b32.xlu0 %v2445_v7, %s5010_s18  ;;  %v2514_v7 = vmul.f32 %v2513_v3, %v5908_v55  ;;  %v6354_v25 = vstv %s6302_s26  ;;  %s6548_s26 = sld [smem:[#allocation7 + $0x22]] }
 0x2b5   : > { %v6183_v47 = vpop.permute.xlu1 %2062  ;;  %v6185_v52 = vpop.permute.xlu2 %2159 }
 0x2b6   : > { %8519 = vst [vmem:[#allocation131_spill] sm:$0xff] %v6183_v47  ;;  %v6187_v34 = vpop.permute.xlu0 %2060  ;;  %v2575_v47 = vstv %s4678_s30  ;;  %s6322_s30 = sld [smem:[#allocation7 + $0xa5]] }
 0x2b7   : > { %8520 = vst [vmem:[#allocation132_spill] sm:$0xff] %v6185_v52 }
 0x2b8   : > { %8521 = vst [vmem:[#allocation133_spill] sm:$0xff] %v6187_v34 }
 0x2bb   : > { %2490 = vrot.lane.b32.xlu1 %v2487_v43, %s5010_s18  ;;  %2492 = vrot.lane.b32.xlu2 %v2489_v19, %s5010_s18  ;;  %v2558_v43 = vstv %s4677_s27  ;;  %v2541_v19 = vstv %s4676_s29  ;;  %s6304_s27 = sld [smem:[#allocation7 + $0x9b]] }
 0x2bc   : > { %2471 = vrot.lane.b32.xlu0 %v2468_v22, %s5010_s18  ;;  %v2528_v22 = vmul.f32 %v2527_v21, %v5908_v55  ;;  %s6316_s29 = sld [smem:[#allocation7 + $0xa0]] }
 0x2bd   : > { %v6195_v20 = vpop.permute.xlu1 %2094  ;;  %v6197_v28 = vpop.permute.xlu2 %2199 }
 0x2be   : > { %8522 = vst [vmem:[#allocation134_spill] sm:$0xff] %v6195_v20  ;;  %v6199_v42 = vpop.permute.xlu0 %2079  ;;  %v2542_v20 = vmul.f32 %v2541_v19, %v5908_v55 }
 0x2bf   : > { %8523 = vst [vmem:[#allocation135_spill] sm:$0xff] %v6197_v28 }
 0x2c0   : > { %8524 = vst [vmem:[#allocation136_spill] sm:$0xff] %v6199_v42  ;;  %v2543_v42 = vmul.f32 %v2541_v19, %v5904_v33  ;;  %v2577_v19 = vmul.f32 %v2575_v47, %v5904_v33 }
 0x2c1   : > { %v8548_v57 = vstv %s6304_s27  ;;  %v8562_v46 = vstv %s6304_s27  ;;  %s6636_s27 = sld [smem:[#allocation7 + $0x27]] }
 0x2c2   : > { %v2547_v34 = vrot.slane %v2543_v42, 1 }
 0x2c3   : > { %2506 = vrot.lane.b32.xlu1 %v2501_v54, %s5011_s23  ;;  %2518 = vrot.lane.b32.xlu2 %v2514_v7, %s5011_s23  ;;  %v2515_v54 = vmul.f32 %v2513_v3, %v5904_v33  ;;  %v2559_v7 = vmul.f32 %v2558_v43, %v5908_v55 }
 0x2c4   : > { %2504 = vrot.lane.b32.xlu0 %v2500_v51, %s5011_s23  ;;  %v2560_v51 = vmul.f32 %v2558_v43, %v5904_v33  ;;  %v2546_v43 = vrot.slane %v2542_v20, 1 }
 0x2c5   : > { %v6207_v8 = vpop.permute.xlu1 %2117  ;;  %v6209_v48 = vpop.permute.xlu2 %2222  ;;  %v2563_v3 = vrot.slane %v2559_v7, 1 }
 0x2c6   : > { %8525 = vst [vmem:[#allocation137_spill] sm:$0xff] %v6207_v8  ;;  %v6211_v11 = vpop.permute.xlu0 %2115  ;;  %v2564_v8 = vrot.slane %v2560_v51, 1 }
 0x2c7   : > { %8526 = vst [vmem:[#allocation138_spill] sm:$0xff] %v6209_v48 }
 0x2c8   : > { %8527 = vst [vmem:[#allocation139_spill] sm:$0xff] %v6211_v11 }
 0x2cb   : > { %2532 = vrot.lane.b32.xlu1 %v2528_v22, %s5011_s23  ;;  %2534 = vrot.lane.b32.xlu2 %v2529_v6, %s5011_s23  ;;  %v2565_v22 = vsel %vm498_vm5, %v2563_v3, %v2564_v8  ;;  %v2576_v6 = vmul.f32 %v2575_v47, %v5908_v55  ;;  %v2581_v3 = vrot.slane %v2577_v19, 1 }
 0x2cc   : > { %2520 = vrot.lane.b32.xlu0 %v2515_v54, %s5011_s23  ;;  %v2548_v54 = vsel %vm498_vm5, %v2546_v43, %v2547_v34 }
 0x2cd   : > { %v6223_v50 = vpop.permute.xlu1 %2157  ;;  %v6225_v11 = vpop.permute.xlu2 %2248  ;;  %v2580_v51 = vrot.slane %v2576_v6, 1 }
 0x2ce   : > { %8528 = vst [vmem:[#allocation140_spill] sm:$0xff] %v6223_v50  ;;  %v6227_v21 = vpop.permute.xlu0 %2138  ;;  %v2592_v50 = vstv %s4679_s7  ;;  %s6346_s7 = sld [smem:[#allocation7 + $0xc6]] }
 0x2cf   : > { %8529 = vst [vmem:[#allocation141_spill] sm:$0xff] %v6225_v11  ;;  %v2582_v47 = vsel %vm498_vm5, %v2580_v51, %v2581_v3  ;;  %v2593_v43 = vmul.f32 %v2592_v50, %v5908_v55 }
 0x2d0   : > { %8530 = vst [vmem:[#allocation142_spill] sm:$0xff] %v6227_v21  ;;  %v2609_v21 = vstv %s4680_s6  ;;  %s6332_s6 = sld [smem:[#allocation7 + $0xaa]] }
 0x2d1   : > { %v2610_v48 = vmul.f32 %v2609_v21, %v5908_v55 }
 0x2d3   : > { %2551 = vrot.lane.b32.xlu1 %v2547_v34, %s5011_s23  ;;  %2566 = vrot.lane.b32.xlu2 %v2565_v22, %s5011_s23  ;;  %v2611_v22 = vmul.f32 %v2609_v21, %v5904_v33  ;;  %v2594_v34 = vmul.f32 %v2592_v50, %v5904_v33  ;;  %v2614_v51 = vrot.slane %v2610_v48, 2 }
 0x2d4   : > { %2549 = vrot.lane.b32.xlu0 %v2548_v54, %s5011_s23 }
 0x2d5   : > { %v6236_v7 = vpop.permute.xlu1 %2180  ;;  %v6238_v20 = vpop.permute.xlu2 %2264  ;;  %v2598_v21 = vrot.slane %v2594_v34, 2 }
 0x2d6   : > { %8531 = vst [vmem:[#allocation143_spill] sm:$0xff] %v6236_v7  ;;  %v6240_v42 = vpop.permute.xlu0 %2178  ;;  %v2597_v7 = vrot.slane %v2593_v43, 2 }
 0x2d7   : > { %8532 = vst [vmem:[#allocation144_spill] sm:$0xff] %v6238_v20 }
 0x2d8   : > { %8533 = vst [vmem:[#allocation145_spill] sm:$0xff] %v6240_v42  ;;  %v2615_v42 = vrot.slane %v2611_v22, 2 }
 0x2db   : > { %2583 = vrot.lane.b32.xlu1 %v2582_v47, %s5011_s23  ;;  %2585 = vrot.lane.b32.xlu2 %v2581_v3, %s5011_s23  ;;  %v2626_v47 = vstv %s4681_s5  ;;  %v2616_v3 = vsel %vm538_vm6, %v2614_v51, %v2615_v42  ;;  %s6406_s5 = sld [smem:[#allocation7 + $0x5]] }
 0x2dc   : > { %2568 = vrot.lane.b32.xlu0 %v2564_v8, %s5011_s23  ;;  %v2627_v20 = vmul.f32 %v2626_v47, %v5908_v55  ;;  %v2628_v50 = vmul.f32 %v2626_v47, %v5904_v33  ;;  %v2599_v8 = vsel %vm538_vm6, %v2597_v7, %v2598_v21  ;;  %v2664_v47 = vstv %s4683_s9  ;;  %s6430_s9 = sld [smem:[#allocation7 + $0xa]] }
 0x2dd   : > { %v6250_v6 = vpop.permute.xlu1 %2220  ;;  %v6252_v19 = vpop.permute.xlu2 %2296 }
 0x2de   : > { %8534 = vst [vmem:[#allocation146_spill] sm:$0xff] %v6250_v6  ;;  %v6254_v54 = vpop.permute.xlu0 %2201  ;;  %v2631_v43 = vrot.slane %v2627_v20, 2  ;;  %v2632_v51 = vrot.slane %v2628_v50, 2  ;;  %v6280_v6 = vmul.f32 %v2664_v47, %v5904_v33 }
 0x2df   : > { %8535 = vst [vmem:[#allocation147_spill] sm:$0xff] %v6252_v19  ;;  %v2685_v19 = vstv %s4684_s12  ;;  %s6444_s12 = sld [smem:[#allocation7 + $0x14]] }
 0x2e0   : > { %8536 = vst [vmem:[#allocation148_spill] sm:$0xff] %v6254_v54  ;;  %v2643_v54 = vstv %s4682_s8  ;;  %v2688_v11 = vmul.f32 %v2685_v19, %v5979_v49  ;;  %s6420_s8 = sld [smem:[#allocation7 + $0xf]] }
 0x2e1   : > { %v2646_v7 = vmul.f32 %v2643_v54, %v5979_v49  ;;  %v2644_v20 = vmul.f32 %v2643_v54, %v5908_v55 }
 0x2e2   : > { %v2695_v5 = vrot.slane %v2688_v11, 3  ;;  %v6380_v11 = vmul.f32 %v6354_v25, %v5904_v33  ;;  %v533_v58 = vstv %s6430_s9  ;;  %s6718_s9 = sld [smem:[#allocation7 + $0x77]] }
 0x2e3   : > { %2602 = vrot.lane.b32.xlu1 %v2598_v21, %s5011_s23  ;;  %2617 = vrot.lane.b32.xlu2 %v2616_v3, %s5011_s23  ;;  %v2645_v3 = vmul.f32 %v2643_v54, %v5904_v33  ;;  %v2633_v21 = vsel %vm538_vm6, %v2631_v43, %v2632_v51  ;;  %v2650_v54 = vrot.slane %v2644_v20, 3 }
 0x2e4   : > { %2600 = vrot.lane.b32.xlu0 %v2599_v8, %s5011_s23  ;;  %v2665_v8 = vmul.f32 %v2664_v47, %v5908_v55  ;;  %v8369_v37 = vrot.slane %v6380_v11, 4 }
 0x2e5   : > { %v6263_v48 = vpop.permute.xlu1 %2236  ;;  %v6265_v22 = vpop.permute.xlu2 %2315 }
 0x2e6   : > { %8537 = vst [vmem:[#allocation149_spill] sm:$0xff] %v6263_v48  ;;  %v6269_v34 = vpop.permute.xlu0 %2234  ;;  %v2653_v48 = vrot.slane %v2646_v7, 3  ;;  %v547_v7 = vstv %s6271_s22  ;;  %s6483_s22 = sld [smem:[#allocation7 + $0x1d]] }
 0x2e7   : > { %8538 = vst [vmem:[#allocation150_spill] sm:$0xff] %v6265_v22  ;;  %v507_v22 = vstv %s6267_s11  ;;  %s6441_s11 = sld [smem:[#allocation7]] }
 0x2e8   : > { %8539 = vst [vmem:[#allocation151_spill] sm:$0xff] %v6269_v34  ;;  %v2651_v34 = vrot.slane %v2645_v3, 3 }
 0x2eb   : > { %2634 = vrot.lane.b32.xlu1 %v2633_v21, %s5011_s23  ;;  %2636 = vrot.lane.b32.xlu2 %v2632_v51, %s5011_s23  ;;  %v2671_v21 = vrot.slane %v2665_v8, 3  ;;  %v2672_v51 = vrot.slane %v6280_v6, 3  ;;  %v2654_v8 = vsel %vm580_vm7, %v2651_v34, %v2653_v48  ;;  %v2667_v48 = vmul.f32 %v2664_v47, %v5979_v49 }
 0x2ec   : > { %2619 = vrot.lane.b32.xlu0 %v2615_v42, %s5011_s23  ;;  %v6306_v42 = vld [vmem:[#allocation2 + $0x8] sm:$0xff] }
 0x2ed   : > { %v6292_v50 = vpop.permute.xlu1 %2262  ;;  %v6294_v43 = vpop.permute.xlu2 %2347  ;;  %v6309_v3 = vmul.f32 %v6306_v42, %v507_v22  ;;  %v2673_v20 = vsel %vm580_vm7, %v2671_v21, %v2672_v51  ;;  %v6337_v21 = vmul.f32 %v6306_v42, %v547_v7  ;;  %v2674_v27 = vrot.slane %v2667_v48, 3 }
 0x2ee   : > { %8540 = vst [vmem:[#allocation152_spill] sm:$0xff] %v6292_v50  ;;  %v6297_v52 = vpop.permute.xlu0 %2250  ;;  %v2686_v50 = vmul.f32 %v2685_v19, %v5908_v55 }
 0x2ef   : > { %8541 = vst [vmem:[#allocation153_spill] sm:$0xff] %v6294_v43  ;;  %v2687_v43 = vmul.f32 %v2685_v19, %v5904_v33  ;;  %v2706_v19 = vstv %s6300_s21  ;;  %v8552_v36 = vrot.slane %v6337_v21, 2  ;;  %s6544_s21 = sld [smem:[#allocation7 + $0x6d]] }
 0x2f0   : > { %8542 = vst [vmem:[#allocation154_spill] sm:$0xff] %v6297_v52  ;;  %v6312_v52 = vld [vmem:[#allocation2] sm:$0xff]  ;;  %v2708_v29 = vmul.f32 %v2706_v19, %v5904_v33 }
 0x2f1   : > { %v508_v6 = vmul.f32 %v6312_v52, %v507_v22  ;;  %v2652_v22 = vsel %vm580_vm7, %v2650_v54, %v2651_v34  ;;  %v2693_v28 = vrot.slane %v2687_v43, 3  ;;  %v548_v4 = vmul.f32 %v6312_v52, %v547_v7 }
 0x2f2   : > { %v8547_v7 = vrot.slane %v6309_v3, 1 }
 0x2f3   : > { %2657 = vrot.lane.b32.xlu1 %v2654_v8, %s5011_s23  ;;  %2676 = vrot.lane.b32.xlu2 %v2673_v20, %s5011_s23  ;;  %v6340_v8 = vstv %s6287_s19  ;;  %v512_v34 = vrot.slane %v508_v6, 1  ;;  %v6358_v6 = vmul.f32 %v6306_v42, %v6330_v56  ;;  %v2696_v0 = vsel %vm580_vm7, %v2693_v28, %v2695_v5  ;;  %s6535_s19 = sld [smem:[#allocation7 + $0xb3]] }
 0x2f4   : > { %2655 = vrot.lane.b32.xlu0 %v2652_v22, %s5011_s23  ;;  %v2692_v22 = vrot.slane %v2686_v50, 3  ;;  %v2675_v5 = vsel %vm580_vm7, %v2672_v51, %v2674_v27  ;;  %v644_v33 = vmul.f32 %v6312_v52, %v6340_v8  ;;  %v6404_v27 = vstv %s6332_s6  ;;  %s6682_s6 = sld [smem:[#allocation7 + $0x6e]] }
 0x2f5   : > { %v6342_v47 = vpop.permute.xlu1 %2281  ;;  %v6344_v54 = vpop.permute.xlu2 %2366  ;;  %v514_v48 = vsel %vm498_vm5, %v512_v34, %v8547_v7  ;;  %v552_v34 = vrot.slane %v548_v4, 2  ;;  %v592_v7 = vmul.f32 %v6312_v52, %v6330_v56  ;;  %v6394_v4 = vstv %s6322_s30  ;;  %s6679_s30 = sld [smem:[#allocation7 + $0x69]] }
 0x2f6   : > { %8543 = vst [vmem:[#allocation155_spill] sm:$0xff] %v6342_v47  ;;  %v6348_v20 = vpop.permute.xlu0 %2279  ;;  %v6362_v47 = vmul.f32 %v6306_v42, %v6340_v8  ;;  %v2694_v2 = vsel %vm580_vm7, %v2692_v22, %v2693_v28  ;;  %v6387_v28 = vld [vmem:[#allocation2 + $0x18] sm:$0xff] }
 0x2f7   : > { %8544 = vst [vmem:[#allocation156_spill] sm:$0xff] %v6344_v54  ;;  %v8546_v54 = vstv %s6275_s24  ;;  %v554_v35 = vsel %vm538_vm6, %v552_v34, %v8552_v36  ;;  %v598_v15 = vrot.slane %v592_v7, 3  ;;  %v6435_v36 = vmul.f32 %v6306_v42, %v6394_v4  ;;  %v6437_v34 = vld [vmem:[#allocation2 + $0x10] sm:$0x3]  ;;  %s6590_s24 = sld [smem:[#allocation7 + $0xb8]] }
 0x2f8   : > { %8545 = vst [vmem:[#allocation157_spill] sm:$0xff] %v6348_v20  ;;  %v482_v50 = vmul.f32 %v6312_v52, %v8546_v54  ;;  %v2709_v20 = vmul.f32 %v2706_v19, %v5979_v49  ;;  %v2728_v54 = vmul.f32 %v6354_v25, %v5908_v55  ;;  %v2707_v55 = vmul.f32 %v6387_v28, %v2706_v19 }
 0x2f9   : > { %v8556_v62 = vrot.slane %v6362_v47, 4  ;;  %v663_v59 = vmul.f32 %v6437_v34, %v6404_v27 }
 0x2fa   : > { %v517_v22 = vadd.f32 %v514_v48, %v482_v50  ;;  %v2748_v50 = vstv %s6346_s7  ;;  %v2716_v43 = vrot.slane %v2709_v20, 4  ;;  %s6696_s7 = sld [smem:[#allocation7 + $0x73]] }
 0x2fb   : > { %2697 = vrot.lane.b32.xlu1 %v2694_v2, %s5011_s23  ;;  %2699 = vrot.lane.b32.xlu2 %v2696_v0, %s5011_s23  ;;  %v6401_v0 = vmul.f32 %v6306_v42, %v8548_v57  ;;  %v2734_v2 = vrot.slane %v2728_v54, 4  ;;  %v6456_v54 = vmul.f32 %v6306_v42, %v6404_v27 }
 0x2fc   : > { %2678 = vrot.lane.b32.xlu0 %v2675_v5, %s5011_s23  ;;  %v2714_v5 = vrot.slane %v2708_v29, 4  ;;  %v557_v14 = vadd.f32 %v554_v35, %v517_v22  ;;  %v8554_v29 = vstv %s6316_s29  ;;  %v611_v35 = vmul.f32 %v6437_v34, %v6394_v4  ;;  %v6450_v22 = vld [vmem:[#allocation2 + $0x20] sm:$0xff] }
 0x2fd   : > { %v6408_v51 = vpop.permute.xlu1 %2313  ;;  %v6410_v19 = vpop.permute.xlu2 %2406  ;;  %v6428_v20 = vmul.f32 %v6306_v42, %v8554_v29  ;;  %v2751_v29 = vmul.f32 %v2748_v50, %v5979_v49 }
 0x2fe   : > { %8549 = vst [vmem:[#allocation158_spill] sm:$0xff] %v6408_v51  ;;  %v6413_v48 = vpop.permute.xlu0 %2298  ;;  %v2713_v51 = vrot.slane %v2707_v55, 4  ;;  %v2717_v7 = vsel %vm632_vm8, %v2714_v5, %v2716_v43  ;;  %v2736_v55 = vsel %vm632_vm8, %v2734_v2, %v8369_v37  ;;  %v2730_v2 = vmul.f32 %v6354_v25, %v5979_v49 }
 0x2ff   : > { %8550 = vst [vmem:[#allocation159_spill] sm:$0xff] %v6410_v19  ;;  %v650_v19 = vrot.slane %v644_v33, 4  ;;  %v2750_v33 = vmul.f32 %v6450_v22, %v2748_v50  ;;  %v8555_v37 = vrot.slane %v6358_v6, 3  ;;  %v493_v49 = vstv %s6406_s5  ;;  %s6703_s5 = sld [smem:[#allocation7 + $0x64]] }
 0x300   : > { %8551 = vst [vmem:[#allocation160_spill] sm:$0xff] %v6413_v48  ;;  %v489_v48 = vmul.f32 %v6306_v42, %v8553_v12  ;;  %v2749_v12 = vmul.f32 %v6387_v28, %v2748_v50  ;;  %v2715_v43 = vsel %vm632_vm8, %v2713_v51, %v2714_v5  ;;  %v8557_v51 = vrot.slane %v6401_v0, 1 }
 0x301   : > { %v600_v57 = vsel %vm580_vm7, %v598_v15, %v8555_v37  ;;  %v652_v50 = vsel %vm632_vm8, %v650_v19, %v8556_v62  ;;  %v2737_v25 = vrot.slane %v2730_v2, 4  ;;  %v494_v62 = vmul.f32 %v6312_v52, %v493_v49 }
 0x302   : > { %v531_v5 = vadd.f32 %v8557_v51, %v489_v48  ;;  %v2755_v19 = vrot.slane %v2749_v12, 4  ;;  %v618_v48 = vrot.slane %v611_v35, 3  ;;  %v573_v51 = vstv %s6420_s8  ;;  %s6714_s8 = sld [smem:[#allocation7 + $0x2c]] }
 0x303   : > { %2720 = vrot.lane.b32.xlu1 %v2717_v7, %s5011_s23  ;;  %2739 = vrot.lane.b32.xlu2 %v2736_v55, %s5011_s23  ;;  %v605_v7 = vadd.f32 %v600_v57, %v557_v14  ;;  %v2758_v14 = vrot.slane %v2751_v29, 4  ;;  %v521_v35 = vmul.f32 %v6312_v52, %v8562_v46  ;;  %v576_v57 = vmul.f32 %v6437_v34, %v573_v51 }
 0x304   : > { %2718 = vrot.lane.b32.xlu0 %v2715_v43, %s5011_s23  ;;  %v2756_v43 = vrot.slane %v2750_v33, 4  ;;  %v8561_v33 = vrot.slane %v6428_v20, 2  ;;  %v625_v2 = vstv %s6444_s12  ;;  %s6737_s12 = sld [smem:[#allocation7 + $0xb4]] }
 0x305   : > { %v6476_v55 = vpop.permute.xlu1 %2332  ;;  %v6478_v15 = vpop.permute.xlu2 %2429  ;;  %v6492_v12 = vadd.f32 %v652_v50, %v605_v7  ;;  %v535_v50 = vmul.f32 %v6306_v42, %v533_v58  ;;  %v8564_v7 = vrot.slane %v6380_v11, 4 }
 0x306   : > { %8558 = vst [vmem:[#allocation161_spill] sm:$0xff] %v6476_v55  ;;  %v6481_v37 = vpop.permute.xlu0 %2330  ;;  %v670_v55 = vrot.slane %v663_v59, 4  ;;  %v571_v29 = vadd.f32 %v8561_v33, %v531_v5  ;;  %v2757_v59 = vsel %vm632_vm8, %v2755_v19, %v2756_v43  ;;  %v2759_v45 = vsel %vm632_vm8, %v2756_v43, %v2758_v14 }
 0x307   : > { %8559 = vst [vmem:[#allocation162_spill] sm:$0xff] %v6478_v15  ;;  %v495_v15 = vmul.f32 %v6306_v42, %v493_v49  ;;  %v8563_v49 = vrot.slane %v6435_v36, 3  ;;  %v2738_v46 = vsel %vm632_vm8, %v8564_v7, %v2737_v25  ;;  %v8565_v5 = vrot.slane %v6456_v54, 4 }
 0x308   : > { %8560 = vst [vmem:[#allocation163_spill] sm:$0xff] %v6481_v37  ;;  %v475_v37 = vstv %s6441_s11  ;;  %v575_v14 = vmul.f32 %v6306_v42, %v573_v51  ;;  %v525_v25 = vrot.slane %v521_v35, 1  ;;  %s6723_s11 = sld [smem:[#allocation7 + $0x78]] }
 0x309   : > { %v619_v38 = vsel %vm580_vm7, %v8563_v49, %v618_v48  ;;  %v6516_v19 = vsel %vm632_vm8, %v8565_v5, %v670_v55  ;;  %v500_v43 = vrot.slane %v495_v15, 1  ;;  %v499_v48 = vrot.slane %v494_v62, 1 }
 0x30a   : > { %v6520_v33 = vadd.f32 %v619_v38, %v571_v29  ;;  %v477_v11 = vmul.f32 %v6306_v42, %v475_v37  ;;  %v584_v15 = vrot.slane %v576_v57, 3  ;;  %v534_v49 = vmul.f32 %v6312_v52, %v533_v58 }
 0x30b   : > { %2760 = vrot.lane.b32.xlu1 %v2757_v59, %s5011_s23  ;;  %2762 = vrot.lane.b32.xlu2 %v2759_v45, %s5011_s23  ;;  %v6523_v45 = vmul.f32 %v6437_v34, %v625_v2  ;;  %v574_v62 = vmul.f32 %v6312_v52, %v573_v51  ;;  %v2769_v38 = vstv %s6483_s22  ;;  %v540_v29 = vrot.slane %v535_v50, 2  ;;  %s6750_s22 = sld [smem:[#allocation7 + $0xb9]] }
 0x30c   : > { %2741 = vrot.lane.b32.xlu0 %v2738_v46, %s5011_s23  ;;  %v6538_v46 = vmul.f32 %v6306_v42, %v625_v2  ;;  %v476_v35 = vmul.f32 %v6312_v52, %v475_v37  ;;  %v8569_v5 = vstv %s6316_s29  ;;  %v505_v58 = vadd.f32 %v500_v43, %v477_v11  ;;  %s6670_s29 = sld [smem:[#allocation7 + $0xbd]] }
 0x30d   : > { %v6526_v59 = vpop.permute.xlu1 %2364  ;;  %v6528_v55 = vpop.permute.xlu2 %2469  ;;  %v582_v57 = vrot.slane %v575_v14, 3  ;;  %v501_v51 = vsel %vm498_vm5, %v499_v48, %v500_v43  ;;  %v626_v50 = vmul.f32 %v6312_v52, %v625_v2  ;;  %v2771_v37 = vmul.f32 %v6450_v22, %v2769_v38 }
 0x30e   : > { %8566 = vst [vmem:[#allocation164_spill] sm:$0xff] %v6526_v59  ;;  %v6532_v7 = vpop.permute.xlu0 %2349  ;;  %v561_v59 = vmul.f32 %v6312_v52, %v8569_v5  ;;  %v539_v30 = vrot.slane %v534_v49, 2  ;;  %v581_v1 = vrot.slane %v574_v62, 3  ;;  %v8571_v11 = vstv %s6290_s25  ;;  %s6631_s25 = sld [smem:[#allocation7 + $0x72]] }
 0x30f   : > { %8567 = vst [vmem:[#allocation165_spill] sm:$0xff] %v6528_v55  ;;  %v8570_v55 = vrot.slane %v6401_v0, 1  ;;  %v488_v14 = vmul.f32 %v6312_v52, %v8571_v11  ;;  %v2770_v43 = vmul.f32 %v6387_v28, %v2769_v38  ;;  %v504_v48 = vadd.f32 %v501_v51, %v476_v35 }
 0x310   : > { %8568 = vst [vmem:[#allocation166_spill] sm:$0xff] %v6532_v7  ;;  %v2783_v7 = vstv %s6490_s4  ;;  %v565_v32 = vrot.slane %v561_v59, 2  ;;  %v609_v2 = vmul.f32 %v6312_v52, %v6394_v4  ;;  %v483_v0 = vmul.f32 %v6306_v42, %v8572_v17  ;;  %s6761_s4 = sld [smem:[#allocation7 + $0xbe]] }
 0x311   : > { %v527_v31 = vsel %vm498_vm5, %v525_v25, %v8570_v55  ;;  %v2784_v5 = vmul.f32 %v6387_v28, %v2783_v7  ;;  %v636_v25 = vrot.slane %v6523_v45, 4  ;;  %v634_v55 = vrot.slane %v6538_v46, 4 }
 0x312   : > { %v530_v49 = vadd.f32 %v527_v31, %v488_v14  ;;  %v594_v62 = vmul.f32 %v6437_v34, %v6330_v56  ;;  %v545_v4 = vadd.f32 %v540_v29, %v505_v58  ;;  %v585_v59 = vsel %vm580_vm7, %v582_v57, %v584_v15 }
 0x313   : > { %2776 = vrot.lane.b32.xlu1 %v2771_v37, %s5012_s10  ;;  %2788 = vrot.lane.b32.xlu2 %v2784_v5, %s5012_s10  ;;  %v633_v17 = vrot.slane %v626_v50, 4  ;;  %v8573_v42 = vrot.slane %v6309_v3, 1  ;;  %v541_v31 = vsel %vm538_vm6, %v539_v30, %v540_v29  ;;  %v583_v46 = vsel %vm580_vm7, %v581_v1, %v582_v57 }
 0x314   : > { %2774 = vrot.lane.b32.xlu0 %v2770_v43, %s5012_s10  ;;  %v661_v56 = vmul.f32 %v6312_v52, %v6404_v27  ;;  %v2797_v58 = vstv %s6535_s19  ;;  %v544_v15 = vadd.f32 %v541_v31, %v504_v48  ;;  %v8577_v50 = vrot.slane %v6428_v20, 2  ;;  %s6773_s19 = sld [smem:[#allocation7 + $0xc2]] }
 0x315   : > { %v518_v38 = vadd.f32 %v8573_v42, %v483_v0  ;;  %v6575_v35 = vpop.permute.xlu1 %2387  ;;  %v6577_v45 = vpop.permute.xlu2 %2492  ;;  %v615_v37 = vrot.slane %v609_v2, 3  ;;  %v2828_v5 = vstv %s6544_s21  ;;  %v601_v14 = vrot.slane %v594_v62, 3  ;;  %s6792_s21 = sld [smem:[#allocation7 + $0xaf]] }
 0x316   : > { %8574 = vst [vmem:[#allocation167_spill] sm:$0xff] %v6575_v35  ;;  %v6583_v51 = vpop.permute.xlu0 %2385  ;;  %v567_v3 = vsel %vm538_vm6, %v565_v32, %v8577_v50  ;;  %v646_v1 = vmul.f32 %v6437_v34, %v6340_v8  ;;  %v2811_v30 = vstv %s6548_s26  ;;  %v589_v29 = vadd.f32 %v585_v59, %v545_v4  ;;  %s6800_s26 = sld [smem:[#allocation7 + $0xc3]] }
 0x317   : > { %8575 = vst [vmem:[#allocation168_spill] sm:$0xff] %v6577_v45  ;;  %v570_v11 = vadd.f32 %v567_v3, %v530_v49  ;;  %v8578_v52 = vrot.slane %v6337_v21, 2  ;;  %v2798_v57 = vmul.f32 %v6387_v28, %v2797_v58  ;;  %v2799_v20 = vmul.f32 %v6450_v22, %v2797_v58 }
 0x318   : > { %8576 = vst [vmem:[#allocation169_spill] sm:$0xff] %v6583_v51  ;;  %v667_v43 = vrot.slane %v661_v56, 4  ;;  %v2785_v32 = vmul.f32 %v6450_v22, %v2783_v7  ;;  %v2829_v48 = vmul.f32 %v6387_v28, %v2828_v5  ;;  %v6602_v2 = vmul.f32 %v6450_v22, %v2828_v5 }
 0x319   : > { %v558_v27 = vadd.f32 %v8578_v52, %v518_v38  ;;  %v8579_v0 = vrot.slane %v6435_v36, 3  ;;  %v2813_v21 = vmul.f32 %v6450_v22, %v2811_v30  ;;  %v2812_v34 = vmul.f32 %v6387_v28, %v2811_v30 }
 0x31a   : > { %v588_v49 = vadd.f32 %v583_v46, %v544_v15  ;;  %v8580_v7 = vrot.slane %v6358_v6, 3  ;;  %v653_v59 = vrot.slane %v646_v1, 4  ;;  %v675_v36 = vadd.f32 %v6516_v19, %v6520_v33 }
 0x31b   : > { %v617_v8 = vsel %vm580_vm7, %v615_v37, %v8579_v0  ;;  %2802 = vrot.lane.b32.xlu1 %v2798_v57, %s5012_s10  ;;  %2804 = vrot.lane.b32.xlu2 %v2799_v20, %s5012_s10  ;;  %v637_v42 = vsel %vm632_vm8, %v634_v55, %v636_v25  ;;  %v635_v38 = vsel %vm632_vm8, %v633_v17, %v634_v55  ;;  %v8583_v6 = vrot.slane %v6456_v54, 4 }
 0x31c   : > { %v622_v62 = vadd.f32 %v617_v8, %v570_v11  ;;  %v602_v4 = vsel %vm580_vm7, %v8580_v7, %v601_v14  ;;  %2790 = vrot.lane.b32.xlu0 %v2785_v32, %s5012_s10  ;;  %v641_v58 = vadd.f32 %v637_v42, %v589_v29  ;;  %v2833_v3 = vrot.slane %v2829_v48, 1  ;;  %v8595_v42 = vld [vmem:[#allocation18_spill] sm:$0xff] }
 0x31d   : > { %v606_v31 = vadd.f32 %v602_v4, %v558_v27  ;;  %v6619_v56 = vpop.permute.xlu1 %2427  ;;  %v6621_v46 = vpop.permute.xlu2 %2518  ;;  %v669_v15 = vsel %vm632_vm8, %v667_v43, %v8583_v6  ;;  %v2834_v37 = vrot.slane %v6602_v2, 1  ;;  %v717_v19 = vadd.f32 %v5503_v53, %v675_v36  ;;  %v8593_v4 = vld [vmem:[#allocation15_spill] sm:$0xff] }
 0x31e   : > { %8581 = vst [vmem:[#allocation170_spill] sm:$0xff] %v6619_v56  ;;  %v6626_v50 = vpop.permute.xlu0 %2408  ;;  %v2817_v33 = vrot.slane %v2813_v21, 1  ;;  %v2816_v25 = vrot.slane %v2812_v34, 1  ;;  %v2845_v55 = vstv %s6590_s24  ;;  %v640_v17 = vadd.f32 %v635_v38, %v588_v49  ;;  %s6842_s24 = sld [smem:[#allocation7 + $0x1e]] }
 0x31f   : > { %8582 = vst [vmem:[#allocation171_spill] sm:$0xff] %v6621_v46  ;;  %v674_v5 = vadd.f32 %v669_v15, %v622_v62  ;;  %v8585_v11 = vrot.slane %v6362_v47, 4  ;;  %v702_v14 = vadd.f32 %v5494_v41, %v6492_v12  ;;  %v768_v1 = vadd.f32 %v5513_v63, %v717_v19  ;;  %v8592_v62 = vld [vmem:[#allocation14_spill] sm:$0xff] }
 0x320   : > { %8584 = vst [vmem:[#allocation172_spill] sm:$0xff] %v6626_v50  ;;  %v689_v53 = vadd.f32 %v5522_v9, %v641_v58  ;;  %v688_v29 = vadd.f32 %v5526_v13, %v640_v17  ;;  %v2835_v52 = vsel %vm498_vm5, %v2833_v3, %v2834_v37  ;;  %v2846_v27 = vmul.f32 %v6387_v28, %v2845_v55  ;;  %v8597_v58 = vld [vmem:[#allocation20_spill] sm:$0xff] }
 0x321   : > { %v654_v54 = vsel %vm632_vm8, %v8585_v11, %v653_v59  ;;  %v2847_v47 = vmul.f32 %v6450_v22, %v2845_v55  ;;  %v750_v57 = vadd.f32 %v5539_v24, %v702_v14  ;;  %v2818_v41 = vsel %vm498_vm5, %v2816_v25, %v2817_v33  ;;  %v8594_v59 = vld [vmem:[#allocation17_spill] sm:$0xff] }
 0x322   : > { %v658_v30 = vadd.f32 %v654_v54, %v606_v31  ;;  %v716_v63 = vadd.f32 %v5537_v23, %v674_v5  ;;  %v734_v9 = vadd.f32 %v5553_v39, %v689_v53  ;;  %v819_v13 = vadd.f32 %v5524_v10, %v768_v1  ;;  %v8596_v31 = vld [vmem:[#allocation19_spill] sm:$0xff]  ;;  %v8599_v5 = vld [vmem:[#allocation22_spill] sm:$0xff]  ;;  %v8601_v1 = vld [vmem:[#allocation24_spill] sm:$0xff] }
 0x323   : > { %2821 = vrot.lane.b32.xlu1 %v2817_v33, %s5012_s10  ;;  %2836 = vrot.lane.b32.xlu2 %v2835_v52, %s5012_s10  ;;  %v801_v12 = vadd.f32 %v5555_v40, %v750_v57  ;;  %v2850_v2 = vrot.slane %v2846_v27, 1  ;;  %v2851_v0 = vrot.slane %v2847_v47, 1  ;;  %v8589_v40 = vld [vmem:[#allocation13_spill] sm:$0xff]  ;;  %v2879_v34 = vstv %s6631_s25  ;;  %v8600_v54 = vld [vmem:[#allocation23_spill] sm:$0xff]  ;;  %v8603_v52 = vld [vmem:[#allocation26_spill] sm:$0xff]  ;;  %s6852_s25 = sld [smem:[#allocation7 + $0x31]] }
 0x324   : > { %v703_v20 = vadd.f32 %v5541_v26, %v658_v30  ;;  %2819 = vrot.lane.b32.xlu0 %v2818_v41, %s5012_s10  ;;  %v733_v26 = vadd.f32 %v5590_v18, %v688_v29  ;;  %v785_v23 = vadd.f32 %v5570_v60, %v734_v9  ;;  %v767_v39 = vadd.f32 %v5586_v16, %v716_v63  ;;  %v8591_v18 = vld [vmem:[#allocation12_spill] sm:$0xff]  ;;  %v8598_v33 = vld [vmem:[#allocation21_spill] sm:$0xff]  ;;  %v8604_v47 = vld [vmem:[#allocation27_spill] sm:$0xff] }
 0x325   : > { %v6658_v43 = vpop.permute.xlu1 %2450  ;;  %v6660_v32 = vpop.permute.xlu2 %2534  ;;  %v860_v10 = vadd.f32 %v5572_v61, %v801_v12  ;;  %v882_v8 = vadd.f32 %v8589_v40, %v819_v13  ;;  %v2862_v60 = vstv %s6636_s27  ;;  %v2852_v15 = vsel %vm498_vm5, %v2850_v2, %v2851_v0  ;;  %v8602_v30 = vld [vmem:[#allocation25_spill] sm:$0xff]  ;;  %v8607_v63 = vld [vmem:[#allocation28_spill] sm:$0xff]  ;;  %v8611_v40 = vld [vmem:[#allocation31_spill] sm:$0xff]  ;;  %s6867_s27 = sld [smem:[#allocation7 + $0x7c]] }
 0x326   : > { %v751_v24 = vadd.f32 %v5557_v44, %v703_v20  ;;  %8586 = vst [vmem:[#allocation173_spill] sm:$0xff] %v6658_v43  ;;  %v6664_v48 = vpop.permute.xlu0 %2448  ;;  %v8590_v44 = vld [vmem:[#allocation16_spill] sm:$0xff]  ;;  %v818_v7 = vadd.f32 %v8592_v62, %v767_v39  ;;  %v840_v36 = vadd.f32 %v8594_v59, %v785_v23  ;;  %v2880_v3 = vmul.f32 %v6387_v28, %v2879_v34  ;;  %v8608_v13 = vld [vmem:[#allocation29_spill] sm:$0xff]  ;;  %v8610_v23 = vld [vmem:[#allocation30_spill] sm:$0xff] }
 0x327   : > { %8587 = vst [vmem:[#allocation174_spill] sm:$0xff] %v6660_v32  ;;  %v784_v21 = vadd.f32 %v8590_v44, %v733_v26  ;;  %v923_v16 = vadd.f32 %v8593_v4, %v860_v10  ;;  %v945_v38 = vadd.f32 %v8595_v42, %v882_v8  ;;  %v6687_v19 = vmul.f32 %v6450_v22, %v2879_v34  ;;  %v8612_v44 = vld [vmem:[#allocation32_spill] sm:$0xff]  ;;  %v8613_v34 = vld [vmem:[#allocation33_spill] sm:$0xff] }
 0x328   : > { %8588 = vst [vmem:[#allocation175_spill] sm:$0xff] %v6664_v48  ;;  %v802_v49 = vadd.f32 %v8591_v18, %v751_v24  ;;  %v881_v6 = vadd.f32 %v8597_v58, %v818_v7  ;;  %v2864_v55 = vmul.f32 %v6450_v22, %v2862_v60  ;;  %v2863_v17 = vmul.f32 %v6387_v28, %v2862_v60  ;;  %v8615_v7 = vld [vmem:[#allocation35_spill] sm:$0xff]  ;;  %v8616_v4 = vld [vmem:[#allocation36_spill] sm:$0xff] }
 0x329   : > { %v839_v61 = vadd.f32 %v8596_v31, %v784_v21  ;;  %v972_v25 = vadd.f32 %v8598_v33, %v923_v16  ;;  %v903_v14 = vadd.f32 %v8600_v54, %v840_v36  ;;  %v987_v53 = vadd.f32 %v8601_v1, %v945_v38  ;;  %v8619_v33 = vld [vmem:[#allocation39_spill] sm:$0xff] }
 0x32a   : > { %v861_v11 = vadd.f32 %v8599_v5, %v802_v49  ;;  %v944_v27 = vadd.f32 %v8603_v52, %v881_v6  ;;  %v2884_v24 = vrot.slane %v2880_v3, 2  ;;  %v2885_v26 = vrot.slane %v6687_v19, 2  ;;  %v8614_v49 = vld [vmem:[#allocation34_spill] sm:$0xff] }
 0x32b   : > { %2853 = vrot.lane.b32.xlu1 %v2852_v15, %s5012_s10  ;;  %2855 = vrot.lane.b32.xlu2 %v2851_v0, %s5012_s10  ;;  %v902_v29 = vadd.f32 %v8602_v30, %v839_v61  ;;  %v1020_v57 = vadd.f32 %v8604_v47, %v972_v25  ;;  %v959_v12 = vadd.f32 %v8608_v13, %v903_v14  ;;  %v2868_v2 = vrot.slane %v2864_v55, 2  ;;  %v8617_v61 = vld [vmem:[#allocation37_spill] sm:$0xff]  ;;  %v8618_v6 = vld [vmem:[#allocation38_spill] sm:$0xff] }
 0x32c   : > { %2838 = vrot.lane.b32.xlu0 %v2834_v37, %s5012_s10  ;;  %v924_v9 = vadd.f32 %v8607_v63, %v861_v11  ;;  %v1038_v39 = vadd.f32 %v8610_v23, %v987_v53  ;;  %v2867_v0 = vrot.slane %v2863_v17, 2  ;;  %v2896_v10 = vstv %s6670_s29  ;;  %v8620_v11 = vld [vmem:[#allocation40_spill] sm:$0xff]  ;;  %v8621_v14 = vld [vmem:[#allocation41_spill] sm:$0xff]  ;;  %s6876_s29 = sld [smem:[#allocation7 + $0x19]] }
 0x32d   : > { %v6705_v20 = vpop.permute.xlu1 %2490  ;;  %v6707_v41 = vpop.permute.xlu2 %2566  ;;  %v958_v8 = vadd.f32 %v8611_v40, %v902_v29  ;;  %v986_v21 = vadd.f32 %v8612_v44, %v944_v27  ;;  %v1071_v18 = vadd.f32 %v8613_v34, %v1020_v57  ;;  %v1004_v60 = vadd.f32 %v8615_v7, %v959_v12  ;;  %v8625_v27 = vld [vmem:[#allocation42_spill] sm:$0xff]  ;;  %v8627_v12 = vld [vmem:[#allocation43_spill] sm:$0xff] }
 0x32e   : > { %8605 = vst [vmem:[#allocation13_spill] sm:$0xff] %v6705_v20  ;;  %v6711_v37 = vpop.permute.xlu0 %2471  ;;  %v973_v62 = vadd.f32 %v8614_v49, %v924_v9  ;;  %v1089_v16 = vadd.f32 %v8616_v4, %v1038_v39  ;;  %v1792_v59 = vstv %s6679_s30  ;;  %v1831_v36 = vstv %s6682_s6  ;;  %s6890_s30 = sld [smem:[#allocation7 + $0x23]] }
 0x32f   : > { %8606 = vst [vmem:[#allocation16_spill] sm:$0xff] %v6707_v41  ;;  %v2886_v42 = vsel %vm538_vm6, %v2884_v24, %v2885_v26  ;;  %v2897_v38 = vmul.f32 %v6387_v28, %v2896_v10  ;;  %v2898_v31 = vmul.f32 %v6450_v22, %v2896_v10  ;;  %v1003_v58 = vadd.f32 %v8617_v61, %v958_v8  ;;  %v8629_v61 = vld [vmem:[#allocation45_spill] sm:$0xff]  ;;  %s6901_s6 = sld [smem:[#allocation7 + $0x28]] }
 0x330   : > { %8609 = vst [vmem:[#allocation12_spill] sm:$0xff] %v6711_v37  ;;  %v1037_v15 = vadd.f32 %v8618_v6, %v986_v21  ;;  %v2869_v3 = vsel %vm538_vm6, %v2867_v0, %v2868_v2  ;;  %v1130_v25 = vadd.f32 %v8619_v33, %v1071_v18  ;;  %v1793_v55 = vmul.f32 %v6387_v28, %v1792_v59 }
 0x331   : > { %v6745_v17 = vmul.f32 %v6450_v22, %v1792_v59  ;;  %v6748_v5 = vstv %s6696_s7  ;;  %v1021_v54 = vadd.f32 %v8620_v11, %v973_v62  ;;  %v6755_v1 = vadd.f32 %v8621_v14, %v1004_v60  ;;  %v6804_v62 = vld [vmem:[#allocation2 + $0x28] sm:$0x3]  ;;  %s6929_s7 = sld [smem:[#allocation7 + $0x2d]] }
 0x332   : > { %v1832_v53 = vmul.f32 %v6387_v28, %v1831_v36  ;;  %v6759_v30 = vmul.f32 %v6450_v22, %v1831_v36  ;;  %v6768_v47 = vadd.f32 %v8625_v27, %v1089_v16  ;;  %v2901_v63 = vrot.slane %v2897_v38, 2  ;;  %v8628_v38 = vld [vmem:[#allocation44_spill] sm:$0xff] }
 0x333   : > { %2872 = vrot.lane.b32.xlu1 %v2868_v2, %s5012_s10  ;;  %2887 = vrot.lane.b32.xlu2 %v2886_v42, %s5012_s10  ;;  %v2902_v9 = vrot.slane %v2898_v31, 2  ;;  %v2913_v13 = vstv %s6714_s8  ;;  %v6776_v24 = vadd.f32 %v8627_v12, %v1003_v58  ;;  %v1875_v23 = vmul.f32 %v6387_v28, %v6748_v5  ;;  %s6943_s8 = sld [smem:[#allocation7 + $0xc7]] }
 0x334   : > { %2870 = vrot.lane.b32.xlu0 %v2869_v3, %s5012_s10  ;;  %8622 = vst [vmem:[#allocation14_spill] sm:$0xff] %v6759_v30  ;;  %v6782_v39 = vmul.f32 %v6450_v22, %v6748_v5  ;;  %v6785_v2 = vstv %s6718_s9  ;;  %v8374_v0 = vstv %s6703_s5  ;;  %v1797_v10 = vrot.slane %v1793_v55, 1  ;;  %s7041_s9 = sld [smem:[#allocation7 + $0x33]] }
 0x335   : > { %v6763_v29 = vpop.permute.xlu1 %2506  ;;  %v6765_v52 = vpop.permute.xlu2 %2585  ;;  %v8371_v40 = vrot.slane %v6745_v17, 1  ;;  %v6790_v8 = vstv %s6723_s11  ;;  %v6797_v44 = vmul.f32 %v6387_v28, %v8374_v0  ;;  %v1836_v21 = vrot.slane %v1832_v53, 2  ;;  %s7045_s11 = sld [smem:[#allocation7 + $0x7e]] }
 0x336   : > { %8623 = vst [vmem:[#allocation15_spill] sm:$0xff] %v6763_v29  ;;  %v6770_v57 = vpop.permute.xlu0 %2504  ;;  %v8370_v34 = vrot.slane %v6759_v30, 2  ;;  %v2915_v18 = vmul.f32 %v6450_v22, %v2913_v13  ;;  %v2903_v49 = vsel %vm538_vm6, %v2901_v63, %v2902_v9  ;;  %v2916_v7 = vmul.f32 %v6804_v62, %v2913_v13 }
 0x337   : > { %8624 = vst [vmem:[#allocation17_spill] sm:$0xff] %v6765_v52  ;;  %v2935_v60 = vmul.f32 %v6387_v28, %v6785_v2  ;;  %v6811_v4 = vmul.f32 %v6450_v22, %v6785_v2  ;;  %v1881_v16 = vrot.slane %v1875_v23, 3  ;;  %v8373_v59 = vrot.slane %v6782_v39, 3 }
 0x338   : > { %8626 = vst [vmem:[#allocation18_spill] sm:$0xff] %v6770_v57  ;;  %v1926_v36 = vmul.f32 %v6387_v28, %v6790_v8  ;;  %v2914_v42 = vmul.f32 %v6387_v28, %v2913_v13  ;;  %v6820_v31 = vadd.f32 %v8628_v38, %v1037_v15  ;;  %v6823_v58 = vadd.f32 %v8629_v61, %v1130_v25 }
 0x339   : > { %v6828_v6 = vsel %vm498_vm5, %v1797_v10, %v8371_v40  ;;  %v6832_v3 = vmul.f32 %v6450_v22, %v6790_v8  ;;  %v8377_v33 = vstv %s6737_s12  ;;  %v8376_v15 = vstv %s6750_s22 }
 0x33a   : > { %v6840_v55 = vstv %s6761_s4  ;;  %v2921_v14 = vrot.slane %v2915_v18, 3  ;;  %v2923_v27 = vrot.slane %v2916_v7, 3  ;;  %v2941_v63 = vrot.slane %v2935_v60, 3  ;;  %s7146_s4 = sld [smem:[#allocation7 + $0xce]] }
 0x33b   : > { %2904 = vrot.lane.b32.xlu1 %v2903_v49, %s5012_s10  ;;  %2906 = vrot.lane.b32.xlu2 %v2902_v9, %s5012_s10  ;;  %v8378_v19 = vrot.slane %v6811_v4, 3  ;;  %v8633_v9 = vld [vmem:[#allocation46_spill] sm:$0xff]  ;;  %v6860_v12 = vsel %vm538_vm6, %v1836_v21, %v8370_v34  ;;  %v6865_v23 = vsel %vm580_vm7, %v1881_v16, %v8373_v59  ;;  %v2920_v10 = vrot.slane %v2914_v42, 3 }
 0x33c   : > { %2889 = vrot.lane.b32.xlu0 %v2885_v26, %s5012_s10  ;;  %v2955_v26 = vstv %s6773_s19  ;;  %v6855_v13 = vadd.f32 %v8633_v9, %v1021_v54  ;;  %v1932_v18 = vrot.slane %v1926_v36, 4  ;;  %v8372_v49 = vrot.slane %v6832_v3, 4  ;;  %s7152_s19 = sld [smem:[#allocation7 + $0x3d]] }
 0x33d   : > { %v6844_v25 = vpop.permute.xlu1 %2532  ;;  %v6846_v11 = vpop.permute.xlu2 %2617  ;;  %v8375_v7 = vstv %s6792_s21  ;;  %v6874_v54 = vmul.f32 %v6450_v22, %v8377_v33  ;;  %v6881_v21 = vmul.f32 %v6450_v22, %v8376_v15  ;;  %v6885_v60 = vmul.f32 %v6450_v22, %v6840_v55 }
 0x33e   : > { %8630 = vst [vmem:[#allocation19_spill] sm:$0xff] %v6844_v25  ;;  %v6848_v53 = vpop.permute.xlu0 %2520  ;;  %v6888_v16 = vstv %s6800_s26  ;;  %v2956_v36 = vmul.f32 %v6387_v28, %v2955_v26  ;;  %v2924_v42 = vsel %vm580_vm7, %v2921_v14, %v2923_v27  ;;  %v2943_v38 = vsel %vm580_vm7, %v2941_v63, %v8378_v19  ;;  %v8638_v25 = vld [vmem:[#allocation48_spill] sm:$0xff]  ;;  %s7164_s26 = sld [smem:[#allocation7 + $0xd3]] }
 0x33f   : > { %8631 = vst [vmem:[#allocation20_spill] sm:$0xff] %v6846_v11  ;;  %v2957_v61 = vmul.f32 %v6450_v22, %v2955_v26  ;;  %v2958_v9 = vmul.f32 %v6804_v62, %v2955_v26  ;;  %v1894_v34 = vmul.f32 %v6804_v62, %v6840_v55  ;;  %v2922_v27 = vsel %vm580_vm7, %v2920_v10, %v2921_v14 }
 0x340   : > { %8632 = vst [vmem:[#allocation21_spill] sm:$0xff] %v6848_v53  ;;  %v2937_v40 = vmul.f32 %v6804_v62, %v6785_v2  ;;  %v6911_v63 = vsel %vm632_vm8, %v1932_v18, %v8372_v49  ;;  %v6916_v26 = vmul.f32 %v6450_v22, %v8375_v7  ;;  %v1945_v14 = vmul.f32 %v6804_v62, %v6888_v16  ;;  %v8637_v2 = vld [vmem:[#allocation47_spill] sm:$0xff] }
 0x341   : > { %v2962_v7 = vrot.slane %v2956_v36, 3  ;;  %v2965_v15 = vrot.slane %v2958_v9, 3  ;;  %v2976_v33 = vstv %s6852_s25  ;;  %v6940_v10 = vadd.f32 %v8637_v2, %v6755_v1  ;;  %s7213_s25 = sld [smem:[#allocation7 + $0x8d]] }
 0x342   : > { %v1901_v18 = vrot.slane %v1894_v34, 3  ;;  %v2944_v19 = vrot.slane %v2937_v40, 3  ;;  %v2997_v53 = vstv %s6867_s27  ;;  %v6947_v37 = vadd.f32 %v8638_v25, %v6768_v47  ;;  %s7232_s27 = sld [smem:[#allocation7 + $0xd8]] }
 0x343   : > { %2927 = vrot.lane.b32.xlu1 %v2924_v42, %s5012_s10  ;;  %2946 = vrot.lane.b32.xlu2 %v2943_v38, %s5012_s10  ;;  %v6920_v42 = vmul.f32 %v6450_v22, %v6888_v16  ;;  %v1779_v38 = vstv %s6842_s24  ;;  %v1952_v36 = vrot.slane %v1945_v14, 4  ;;  %v1761_v9 = vstv %s6876_s29  ;;  %v8639_v14 = vld [vmem:[#allocation49_spill] sm:$0xff]  ;;  %s7199_s24 = sld [smem:[#allocation7 + $0x42]] }
 0x344   : > { %2925 = vrot.lane.b32.xlu0 %v2922_v27, %s5012_s10  ;;  %v2963_v27 = vrot.slane %v2957_v61, 3  ;;  %v6951_v61 = vmul.f32 %v6450_v22, %v1779_v38  ;;  %v1818_v50 = vstv %s6890_s30  ;;  %v2978_v1 = vmul.f32 %v6450_v22, %v2976_v33  ;;  %s7253_s29 = sld [smem:[#allocation7 + $0x47]] }
 0x345   : > { %v6931_v49 = vpop.permute.xlu1 %2551  ;;  %v6933_v59 = vpop.permute.xlu2 %2636  ;;  %v2979_v40 = vmul.f32 %v6804_v62, %v2976_v33  ;;  %v2998_v47 = vmul.f32 %v6387_v28, %v2997_v53  ;;  %v6961_v25 = vmul.f32 %v6450_v22, %v2997_v53  ;;  %v6965_v20 = vadd.f32 %v8639_v14, %v6776_v24  ;;  %s7269_s30 = sld [smem:[#allocation7 + $0x92]] }
 0x346   : > { %8634 = vst [vmem:[#allocation22_spill] sm:$0xff] %v6931_v49  ;;  %v6935_v0 = vpop.permute.xlu0 %2549  ;;  %v2964_v34 = vsel %vm580_vm7, %v2962_v7, %v2963_v27  ;;  %v2966_v2 = vsel %vm580_vm7, %v2963_v27, %v2965_v15  ;;  %v1857_v56 = vstv %s6901_s6  ;;  %v2977_v15 = vmul.f32 %v6387_v28, %v2976_v33  ;;  %s7275_s6 = sld [smem:[#allocation7 + $0xdd]] }
 0x347   : > { %8635 = vst [vmem:[#allocation23_spill] sm:$0xff] %v6933_v59  ;;  %v8641_v27 = vrot.slane %v6885_v60, 3  ;;  %v8642_v57 = vrot.slane %v6920_v42, 4  ;;  %v2986_v14 = vrot.slane %v2979_v40, 4  ;;  %v7007_v43 = vmul.f32 %v6387_v28, %v1761_v9 }
 0x348   : > { %8636 = vst [vmem:[#allocation24_spill] sm:$0xff] %v6935_v0  ;;  %v8640_v0 = vrot.slane %v6811_v4, 3  ;;  %v1908_v4 = vstv %s6929_s7  ;;  %v3018_v51 = vstv %s6943_s8  ;;  %v1780_v35 = vmul.f32 %v6387_v28, %v1779_v38  ;;  %s7332_s7 = sld [smem:[#allocation7 + $0x82]] }
 0x349   : > { %v6977_v49 = vsel %vm580_vm7, %v8641_v27, %v1901_v18  ;;  %v6982_v24 = vsel %vm632_vm8, %v8642_v57, %v1952_v36  ;;  %v2984_v18 = vrot.slane %v2978_v1, 4  ;;  %v1859_v57 = vmul.f32 %v6450_v22, %v1857_v56  ;;  %s7341_s8 = sld [smem:[#allocation7 + $0x7d]] }
 0x34a   : > { %v2945_v7 = vsel %vm580_vm7, %v8640_v0, %v2944_v19  ;;  %v6990_v0 = vmul.f32 %v6450_v22, %v1818_v50  ;;  %v1860_v36 = vmul.f32 %v6804_v62, %v1857_v56  ;;  %v1910_v1 = vmul.f32 %v6450_v22, %v1908_v4 }
 0x34b   : > { %2967 = vrot.lane.b32.xlu1 %v2964_v34, %s5012_s10  ;;  %2969 = vrot.lane.b32.xlu2 %v2966_v2, %s5012_s10  ;;  %v6985_v34 = vmul.f32 %v6450_v22, %v1761_v9  ;;  %v3004_v2 = vrot.slane %v2998_v47, 4  ;;  %v1911_v40 = vmul.f32 %v6804_v62, %v1908_v4  ;;  %v1858_v29 = vmul.f32 %v6387_v28, %v1857_v56 }
 0x34c   : > { %2948 = vrot.lane.b32.xlu0 %v2945_v7, %s5012_s10  ;;  %v8646_v7 = vld [vmem:[#allocation50_spill] sm:$0xff]  ;;  %v8647_v9 = vrot.slane %v6961_v25, 4  ;;  %v3019_v59 = vmul.f32 %v6387_v28, %v3018_v51  ;;  %v3020_v38 = vmul.f32 %v6450_v22, %v3018_v51  ;;  %v1865_v52 = vrot.slane %v1859_v57, 3 }
 0x34d   : > { %v6993_v33 = vpop.permute.xlu1 %2583  ;;  %v6995_v19 = vpop.permute.xlu2 %2676  ;;  %v7004_v48 = vadd.f32 %v8646_v7, %v6820_v31  ;;  %v1909_v31 = vmul.f32 %v6387_v28, %v1908_v4  ;;  %v2987_v7 = vsel %vm632_vm8, %v2984_v18, %v2986_v14  ;;  %v1867_v47 = vrot.slane %v1860_v36, 3 }
 0x34e   : > { %8643 = vst [vmem:[#allocation25_spill] sm:$0xff] %v6993_v33  ;;  %v6999_v27 = vpop.permute.xlu0 %2568  ;;  %v2983_v33 = vrot.slane %v2977_v15, 4  ;;  %v3006_v15 = vsel %vm632_vm8, %v3004_v2, %v8647_v9  ;;  %v3000_v4 = vmul.f32 %v6804_v62, %v2997_v53  ;;  %v1916_v14 = vrot.slane %v1910_v1, 4 }
 0x34f   : > { %8644 = vst [vmem:[#allocation26_spill] sm:$0xff] %v6995_v19  ;;  %v1918_v2 = vrot.slane %v1911_v40, 4  ;;  %v1784_v9 = vrot.slane %v1780_v35, 1  ;;  %v1864_v19 = vrot.slane %v1858_v29, 3  ;;  %v8648_v45 = vstv %s6737_s12  ;;  %v8654_v40 = vld [vmem:[#allocation52_spill] sm:$0xff]  ;;  %s7091_s12 = sld [smem:[#allocation7 + $0x83]] }
 0x350   : > { %8645 = vst [vmem:[#allocation27_spill] sm:$0xff] %v6999_v27  ;;  %v1819_v27 = vmul.f32 %v6387_v28, %v1818_v50  ;;  %v3021_v50 = vmul.f32 %v6804_v62, %v3018_v51  ;;  %v2985_v56 = vsel %vm632_vm8, %v2983_v33, %v2984_v18  ;;  %v1806_v51 = vmul.f32 %v6387_v28, %v8648_v45  ;;  %v8653_v45 = vld [vmem:[#allocation51_spill] sm:$0xff] }
 0x351   : > { %v8649_v57 = vstv %s6750_s22  ;;  %v1915_v35 = vrot.slane %v1909_v31, 4  ;;  %v3025_v18 = vrot.slane %v3019_v59, 4  ;;  %v3026_v29 = vrot.slane %v3020_v38, 4  ;;  %s7137_s22 = sld [smem:[#allocation7 + $0x38]] }
 0x352   : > { %v1823_v32 = vrot.slane %v1819_v27, 2  ;;  %v1845_v36 = vmul.f32 %v6387_v28, %v8649_v57  ;;  %v3028_v27 = vrot.slane %v3021_v50, 4  ;;  %v1242_v1 = vadd.f32 %v8653_v45, %v6823_v58 }
 0x353   : > { %2990 = vrot.lane.b32.xlu1 %v2987_v7, %s5012_s10  ;;  %3009 = vrot.lane.b32.xlu2 %v3006_v15, %s5012_s10  ;;  %v1892_v7 = vmul.f32 %v6387_v28, %v6840_v55  ;;  %v1131_v55 = vadd.f32 %v8654_v40, %v6855_v13  ;;  %v3007_v57 = vrot.slane %v3000_v4, 4  ;;  %v7054_v31 = vsel %vm580_vm7, %v1865_v52, %v1867_v47 }
 0x354   : > { %2988 = vrot.lane.b32.xlu0 %v2985_v56, %s5012_s10  ;;  %v1943_v56 = vmul.f32 %v6387_v28, %v6888_v16  ;;  %v7057_v59 = vsel %vm632_vm8, %v1916_v14, %v1918_v2  ;;  %v8656_v38 = vrot.slane %v6951_v61, 1  ;;  %v8657_v58 = vrot.slane %v6990_v0, 2 }
 0x355   : > { %v7037_v15 = vpop.permute.xlu1 %2602  ;;  %v7039_v33 = vpop.permute.xlu2 %2699  ;;  %8655 = vst [vmem:[#allocation31_spill] sm:$0xff] %v7057_v59  ;;  %v1810_v13 = vrot.slane %v1806_v51, 1  ;;  %v1849_v40 = vrot.slane %v1845_v36, 2  ;;  %v1898_v16 = vrot.slane %v1892_v7, 3  ;;  %v1877_v47 = vmul.f32 %v6804_v62, %v6748_v5 }
 0x356   : > { %8650 = vst [vmem:[#allocation28_spill] sm:$0xff] %v7037_v15  ;;  %v7043_v53 = vpop.permute.xlu0 %2600  ;;  %v7062_v50 = vsel %vm498_vm5, %v1784_v9, %v8656_v38  ;;  %v7067_v45 = vsel %vm538_vm6, %v1823_v32, %v8657_v58  ;;  %v7072_v4 = vsel %vm580_vm7, %v1864_v19, %v1865_v52  ;;  %v7075_v2 = vsel %vm632_vm8, %v1915_v35, %v1916_v14  ;;  %v8661_v19 = vld [vmem:[#allocation53_spill] sm:$0xff]  ;;  %v8663_v35 = vld [vmem:[#allocation55_spill] sm:$0xff]  ;;  %v7128_v58 = vld [vmem:[#allocation2 + $0x38] sm:$0xff] }
 0x357   : > { %8651 = vst [vmem:[#allocation29_spill] sm:$0xff] %v7039_v33  ;;  %v3027_v9 = vsel %vm632_vm8, %v3025_v18, %v3026_v29  ;;  %v3029_v38 = vsel %vm632_vm8, %v3026_v29, %v3028_v27  ;;  %v1949_v51 = vrot.slane %v1943_v56, 4  ;;  %v1928_v36 = vmul.f32 %v6804_v62, %v6790_v8 }
 0x358   : > { %8652 = vst [vmem:[#allocation30_spill] sm:$0xff] %v7043_v53  ;;  %v8659_v53 = vstv %s6792_s21  ;;  %v8660_v5 = vrot.slane %v6961_v25, 4  ;;  %v1173_v14 = vadd.f32 %v8661_v19, %v6940_v10  ;;  %v1172_v8 = vadd.f32 %v8663_v35, %v6965_v20  ;;  %v8676_v19 = vld [vmem:[#allocation59_spill] sm:$0xff]  ;;  %s7158_s21 = sld [smem:[#allocation7 + $0x88]] }
 0x359   : > { %8658 = vst [vmem:[#allocation32_spill] sm:$0xff] %v7075_v2  ;;  %v7082_v32 = vmul.f32 %v6387_v28, %v8659_v53  ;;  %v8662_v28 = vld [vmem:[#allocation54_spill] sm:$0xff]  ;;  %v8664_v62 = vstv %s6703_s5  ;;  %v8665_v25 = vrot.slane %v6874_v54, 1  ;;  %v8666_v10 = vrot.slane %v6881_v21, 2  ;;  %s7124_s5 = sld [smem:[#allocation7 + $0xc9]] }
 0x35a   : > { %v3008_v52 = vsel %vm632_vm8, %v8660_v5, %v3007_v57  ;;  %v1257_v7 = vadd.f32 %v8662_v28, %v6947_v37  ;;  %v7102_v53 = vmul.f32 %v6450_v22, %v8664_v62  ;;  %v8668_v29 = vrot.slane %v6885_v60, 3  ;;  %v7126_v57 = vld [vmem:[#allocation2 + $0x30] sm:$0xff] }
 0x35b   : > { %3030 = vrot.lane.b32.xlu1 %v3027_v9, %s5012_s10  ;;  %3032 = vrot.lane.b32.xlu2 %v3029_v38, %s5012_s10  ;;  %v7108_v18 = vsel %vm498_vm5, %v1810_v13, %v8665_v25  ;;  %v7113_v37 = vsel %vm538_vm6, %v1849_v40, %v8666_v10  ;;  %v1884_v27 = vrot.slane %v1877_v47, 3  ;;  %v8672_v13 = vld [vmem:[#allocation56_spill] sm:$0xff]  ;;  %v8673_v9 = vld [vmem:[#allocation57_spill] sm:$0xff]  ;;  %v3255_v5 = vstv %s7045_s11  ;;  %v8675_v47 = vld [vmem:[#allocation58_spill] sm:$0xff]  ;;  %s7371_s11 = sld [smem:[#allocation7 + $0x7f]] }
 0x35c   : > { %3011 = vrot.lane.b32.xlu0 %v3008_v52, %s5012_s10  ;;  %8667 = vst [vmem:[#allocation33_spill] sm:$0xff] %v7113_v37  ;;  %v7118_v20 = vsel %vm580_vm7, %v1898_v16, %v8668_v29  ;;  %v1214_v40 = vadd.f32 %v8672_v13, %v7004_v48  ;;  %v1290_v38 = vadd.f32 %v8673_v9, %v1242_v1  ;;  %v3241_v16 = vstv %s7041_s9  ;;  %v8679_v48 = vld [vmem:[#allocation60_spill] sm:$0xff]  ;;  %v8680_v10 = vld [vmem:[#allocation61_spill] sm:$0xff]  ;;  %v8681_v13 = vld [vmem:[#allocation62_spill] sm:$0xff]  ;;  %s7357_s9 = sld [smem:[#allocation7 + $0x34]] }
 0x35d   : > { %8669 = vst [vmem:[#allocation34_spill] sm:$0xff] %v7118_v20  ;;  %v7120_v22 = vpop.permute.xlu1 %2634  ;;  %v7122_v56 = vpop.permute.xlu2 %2739  ;;  %v1194_v52 = vadd.f32 %v8675_v47, %v1131_v55  ;;  %v1229_v28 = vadd.f32 %v8676_v19, %v1173_v14  ;;  %v8677_v35 = vrot.slane %v6920_v42, 4  ;;  %v1935_v25 = vrot.slane %v1928_v36, 4  ;;  %v8683_v55 = vld [vmem:[#allocation64_spill] sm:$0xff]  ;;  %v8684_v42 = vld [vmem:[#allocation65_spill] sm:$0xff] }
 0x35e   : > { %8670 = vst [vmem:[#allocation35_spill] sm:$0xff] %v7120_v22  ;;  %v7133_v60 = vpop.permute.xlu0 %2619  ;;  %v1308_v1 = vadd.f32 %v8679_v48, %v1257_v7  ;;  %v1228_v29 = vadd.f32 %v8680_v10, %v1172_v8  ;;  %v1256_v9 = vadd.f32 %v8681_v13, %v1214_v40  ;;  %v3256_v36 = vmul.f32 %v3255_v5, %v7126_v57  ;;  %v8685_v7 = vld [vmem:[#allocation66_spill] sm:$0xff]  ;;  %v8686_v8 = vld [vmem:[#allocation67_spill] sm:$0xff]  ;;  %v8687_v40 = vld [vmem:[#allocation68_spill] sm:$0xff] }
 0x35f   : > { %8671 = vst [vmem:[#allocation36_spill] sm:$0xff] %v7122_v56  ;;  %v7144_v62 = vsel %vm632_vm8, %v1949_v51, %v8677_v35  ;;  %v1243_v14 = vadd.f32 %v8683_v55, %v1194_v52  ;;  %v1274_v47 = vadd.f32 %v8684_v42, %v1229_v28  ;;  %v3243_v51 = vmul.f32 %v3241_v16, %v7128_v58  ;;  %v8689_v10 = vld [vmem:[#allocation70_spill] sm:$0xff]  ;;  %v8690_v13 = vld [vmem:[#allocation71_spill] sm:$0xff]  ;;  %v8691_v42 = vld [vmem:[#allocation72_spill] sm:$0xff] }
 0x360   : > { %8674 = vst [vmem:[#allocation37_spill] sm:$0xff] %v7133_v60  ;;  %v8682_v60 = vld [vmem:[#allocation63_spill] sm:$0xff]  ;;  %v1359_v19 = vadd.f32 %v8685_v7, %v1308_v1  ;;  %v1273_v35 = vadd.f32 %v8686_v8, %v1228_v29  ;;  %v1307_v48 = vadd.f32 %v8687_v40, %v1256_v9  ;;  %v3300_v1 = vstv %s7091_s12  ;;  %v8692_v7 = vld [vmem:[#allocation73_spill] sm:$0xff]  ;;  %s7380_s12 = sld [smem:[#allocation7 + $0xc8]] }
 0x361   : > { %8678 = vst [vmem:[#allocation38_spill] sm:$0xff] %v7144_v62  ;;  %v1341_v22 = vadd.f32 %v8682_v60, %v1290_v38  ;;  %v3242_v38 = vmul.f32 %v3241_v16, %v7126_v57  ;;  %v8688_v60 = vld [vmem:[#allocation69_spill] sm:$0xff]  ;;  %v1291_v28 = vadd.f32 %v8689_v10, %v1243_v14  ;;  %v1325_v55 = vadd.f32 %v8690_v13, %v1274_v47  ;;  %v8697_v47 = vld [vmem:[#allocation74_spill] sm:$0xff]  ;;  %v8704_v13 = vld [vmem:[#allocation79_spill] sm:$0xff] }
 0x362   : > { %v1422_v29 = vadd.f32 %v8691_v42, %v1359_v19  ;;  %v1324_v9 = vadd.f32 %v8692_v7, %v1273_v35  ;;  %v8693_v16 = vrot.slane %v6782_v39, 3  ;;  %v8699_v19 = vld [vmem:[#allocation76_spill] sm:$0xff]  ;;  %v8700_v35 = vld [vmem:[#allocation77_spill] sm:$0xff]  ;;  %v8718_v56 = vld [vmem:[#allocation99_spill] sm:$0xff] }
 0x363   : > { %v1400_v52 = vadd.f32 %v8688_v60, %v1341_v22  ;;  %3248 = vrot.lane.b32.xlu1 %v3243_v51, %s5009_s28  ;;  %3260 = vrot.lane.b32.xlu2 %v3256_v36, %s5009_s28  ;;  %v8695_v22 = vrot.slane %v6832_v3, 4  ;;  %v1358_v51 = vadd.f32 %v8697_v47, %v1307_v48  ;;  %v8698_v36 = vld [vmem:[#allocation75_spill] sm:$0xff]  ;;  %v1342_v60 = vadd.f32 %v8699_v19, %v1291_v28  ;;  %v8703_v3 = vld [vmem:[#allocation78_spill] sm:$0xff] }
 0x364   : > { %v7177_v8 = vsel %vm580_vm7, %v8693_v16, %v1884_v27  ;;  %3246 = vrot.lane.b32.xlu0 %v3242_v38, %s5009_s28  ;;  %v1380_v39 = vadd.f32 %v8700_v35, %v1325_v55  ;;  %v1379_v42 = vadd.f32 %v8704_v13, %v1324_v9  ;;  %v3269_v48 = vstv %s7124_s5  ;;  %v8707_v55 = vld [vmem:[#allocation81_spill] sm:$0xff]  ;;  %v8709_v9 = vld [vmem:[#allocation83_spill] sm:$0xff]  ;;  %s7383_s5 = sld [smem:[#allocation7 + $0xcd]] }
 0x365   : > { %8694 = vst [vmem:[#allocation39_spill] sm:$0xff] %v7177_v8  ;;  %v7182_v14 = vsel %vm632_vm8, %v8695_v22, %v1935_v25  ;;  %v1463_v40 = vadd.f32 %v8698_v36, %v1400_v52  ;;  %v7189_v27 = vpop.permute.xlu1 %2657  ;;  %v7191_v10 = vpop.permute.xlu2 %2762  ;;  %v1485_v25 = vadd.f32 %v8703_v3, %v1422_v29  ;;  %v3301_v38 = vmul.f32 %v3300_v1, %v7126_v57  ;;  %v8706_v52 = vld [vmem:[#allocation80_spill] sm:$0xff]  ;;  %v8708_v29 = vld [vmem:[#allocation82_spill] sm:$0xff] }
 0x366   : > { %8696 = vst [vmem:[#allocation40_spill] sm:$0xff] %v7182_v14  ;;  %v7195_v7 = vpop.permute.xlu0 %2655  ;;  %v1421_v28 = vadd.f32 %v8706_v52, %v1358_v51  ;;  %v3283_v22 = vstv %s7137_s22  ;;  %v7205_v47 = vmul.f32 %v3300_v1, %v7128_v58  ;;  %v1401_v36 = vadd.f32 %v8708_v29, %v1342_v60  ;;  %s7394_s22 = sld [smem:[#allocation7 + $0xca]] }
 0x367   : > { %8701 = vst [vmem:[#allocation41_spill] sm:$0xff] %v7189_v27  ;;  %v1512_v16 = vadd.f32 %v8707_v55, %v1463_v40  ;;  %v7209_v19 = vadd.f32 %v8709_v9, %v1380_v39  ;;  %v3317_v35 = vstv %s7146_s4  ;;  %v3334_v3 = vstv %s7152_s19  ;;  %v8712_v39 = vld [vmem:[#allocation85_spill] sm:$0xff]  ;;  %s7424_s4 = sld [smem:[#allocation7 + $0x87]] }
 0x368   : > { %8702 = vst [vmem:[#allocation42_spill] sm:$0xff] %v7191_v10  ;;  %v3270_v13 = vmul.f32 %v3269_v48, %v7126_v57  ;;  %v3271_v51 = vmul.f32 %v3269_v48, %v7128_v58  ;;  %v3257_v52 = vmul.f32 %v3255_v5, %v7128_v58  ;;  %v3351_v40 = vstv %s7158_s21  ;;  %v8710_v48 = vld [vmem:[#allocation84_spill] sm:$0xff]  ;;  %s7442_s19 = sld [smem:[#allocation7 + $0x8c]] }
 0x369   : > { %8705 = vst [vmem:[#allocation43_spill] sm:$0xff] %v7195_v7  ;;  %v3285_v55 = vmul.f32 %v3283_v22, %v7128_v58  ;;  %v3305_v1 = vrot.slane %v3301_v38, 1  ;;  %v3284_v7 = vmul.f32 %v3283_v22, %v7126_v57  ;;  %v3368_v60 = vstv %s7164_s26  ;;  %v8711_v22 = vld [vmem:[#allocation87_spill] sm:$0xff]  ;;  %s7468_s21 = sld [smem:[#allocation7 + $0x91]] }
 0x36a   : > { %v3318_v29 = vmul.f32 %v3317_v35, %v7126_v57  ;;  %v7227_v9 = vmul.f32 %v3317_v35, %v7128_v58  ;;  %v7230_v5 = vmul.f32 %v3334_v3, %v7128_v58  ;;  %v1527_v38 = vadd.f32 %v8710_v48, %v1485_v25  ;;  %s7476_s26 = sld [smem:[#allocation7 + $0x39]] }
 0x36b   : > { %3274 = vrot.lane.b32.xlu1 %v3270_v13, %s5009_s28  ;;  %3276 = vrot.lane.b32.xlu2 %v3271_v51, %s5009_s28  ;;  %v1560_v27 = vadd.f32 %v8711_v22, %v1512_v16  ;;  %v3352_v13 = vmul.f32 %v3351_v40, %v7126_v57  ;;  %v7239_v51 = vmul.f32 %v3351_v40, %v7128_v58  ;;  %v3385_v22 = vstv %s7199_s24  ;;  %s7494_s24 = sld [smem:[#allocation7 + $0x84]] }
 0x36c   : > { %3262 = vrot.lane.b32.xlu0 %v3257_v52, %s5009_s28  ;;  %v7242_v35 = vadd.f32 %v8712_v39, %v1379_v42  ;;  %v3335_v33 = vmul.f32 %v3334_v3, %v7126_v57  ;;  %v3369_v25 = vmul.f32 %v3368_v60, %v7126_v57  ;;  %v7251_v16 = vmul.f32 %v3368_v60, %v7128_v58  ;;  %v8715_v52 = vld [vmem:[#allocation93_spill] sm:$0xff]  ;;  %v8721_v60 = vld [vmem:[#allocation88_spill] sm:$0xff] }
 0x36d   : > { %v7244_v15 = vpop.permute.xlu1 %2697  ;;  %v7246_v10 = vpop.permute.xlu2 %2788  ;;  %v1611_v40 = vadd.f32 %v8715_v52, %v1560_v27  ;;  %v3289_v42 = vrot.slane %v3285_v55, 1  ;;  %v3288_v39 = vrot.slane %v3284_v7, 1  ;;  %v8717_v14 = vrot.slane %v7205_v47, 1 }
 0x36e   : > { %8713 = vst [vmem:[#allocation44_spill] sm:$0xff] %v7244_v15  ;;  %v7256_v48 = vpop.permute.xlu0 %2678  ;;  %v7259_v15 = vld [vmem:[#allocation2 + $0x40] sm:$0x3]  ;;  %v3323_v62 = vrot.slane %v7227_v9, 1  ;;  %v3356_v20 = vrot.slane %v3352_v13, 2  ;;  %v3406_v52 = vstv %s7213_s25  ;;  %v3339_v7 = vrot.slane %v3335_v33, 2 }
 0x36f   : > { %8714 = vst [vmem:[#allocation45_spill] sm:$0xff] %v7246_v10  ;;  %v3307_v3 = vsel %vm498_vm5, %v3305_v1, %v8717_v14  ;;  %v3322_v10 = vrot.slane %v3318_v29, 1  ;;  %v1670_v8 = vadd.f32 %v8718_v56, %v1611_v40  ;;  %v3373_v55 = vrot.slane %v3369_v25, 2  ;;  %v8719_v1 = vld [vmem:[#allocation86_spill] sm:$0xff]  ;;  %v8720_v56 = vld [vmem:[#allocation105_spill] sm:$0xff]  ;;  %s7505_s25 = sld [smem:[#allocation7 + $0x32]] }
 0x370   : > { %8716 = vst [vmem:[#allocation46_spill] sm:$0xff] %v7256_v48  ;;  %v7273_v14 = vmul.f32 %v3385_v22, %v7128_v58  ;;  %v7278_v29 = vadd.f32 %v8719_v1, %v1421_v28  ;;  %v3290_v13 = vsel %vm498_vm5, %v3288_v39, %v3289_v42  ;;  %v3388_v40 = vmul.f32 %v3385_v22, %v7259_v15  ;;  %v8722_v1 = vld [vmem:[#allocation90_spill] sm:$0xff] }
 0x371   : > { %v1733_v9 = vadd.f32 %v8720_v56, %v1670_v8  ;;  %v7284_v27 = vadd.f32 %v8721_v60, %v1401_v36  ;;  %v3407_v33 = vmul.f32 %v3406_v52, %v7126_v57  ;;  %v7290_v25 = vmul.f32 %v3406_v52, %v7128_v58 }
 0x372   : > { %v3427_v28 = vstv %s7232_s27  ;;  %v1578_v8 = vadd.f32 %v8722_v1, %v1527_v38  ;;  %v3324_v39 = vsel %vm498_vm5, %v3322_v10, %v3323_v62  ;;  %v8723_v36 = vrot.slane %v7239_v51, 2  ;;  %v8728_v1 = vld [vmem:[#allocation96_spill] sm:$0xff]  ;;  %s7553_s27 = sld [smem:[#allocation7 + $0x37]] }
 0x373   : > { %3293 = vrot.lane.b32.xlu1 %v3289_v42, %s5009_s28  ;;  %3308 = vrot.lane.b32.xlu2 %v3307_v3, %s5009_s28  ;;  %v3386_v42 = vmul.f32 %v3385_v22, %v7126_v57  ;;  %v8726_v48 = vrot.slane %v7230_v5, 2  ;;  %v8727_v38 = vrot.slane %v7251_v16, 2  ;;  %v3413_v2 = vrot.slane %v3407_v33, 3 }
 0x374   : > { %3291 = vrot.lane.b32.xlu0 %v3290_v13, %s5009_s28  ;;  %v7299_v60 = vsel %vm538_vm6, %v3356_v20, %v8723_v36  ;;  %v3393_v20 = vrot.slane %v7273_v14, 3  ;;  %v3448_v13 = vstv %s7253_s29  ;;  %v1629_v22 = vadd.f32 %v8728_v1, %v1578_v8  ;;  %s7585_s29 = sld [smem:[#allocation7 + $0xd2]] }
 0x375   : > { %v7302_v3 = vpop.permute.xlu1 %2720  ;;  %v7304_v56 = vpop.permute.xlu2 %2804  ;;  %v7309_v11 = vsel %vm538_vm6, %v3339_v7, %v8726_v48  ;;  %v7314_v10 = vsel %vm538_vm6, %v3373_v55, %v8727_v38  ;;  %v1770_v36 = vadd.f32 %v6797_v44, %v1733_v9  ;;  %v3428_v48 = vmul.f32 %v3427_v28, %v7126_v57  ;;  %v8730_v7 = vld [vmem:[#allocation89_spill] sm:$0xff]  ;;  %v8731_v38 = vld [vmem:[#allocation102_spill] sm:$0xff] }
 0x376   : > { %8724 = vst [vmem:[#allocation47_spill] sm:$0xff] %v7302_v3  ;;  %v7320_v3 = vpop.permute.xlu0 %2718  ;;  %v7325_v30 = vadd.f32 %v8730_v7, %v7209_v19  ;;  %v3414_v55 = vrot.slane %v7290_v25, 3  ;;  %v3429_v14 = vmul.f32 %v3427_v28, %v7128_v58  ;;  %v1692_v41 = vadd.f32 %v8731_v38, %v1629_v22  ;;  %v8732_v25 = vld [vmem:[#allocation108_spill] sm:$0xff] }
 0x377   : > { %8725 = vst [vmem:[#allocation48_spill] sm:$0xff] %v7304_v56  ;;  %v3395_v56 = vrot.slane %v3388_v40, 3  ;;  %v3392_v8 = vrot.slane %v3386_v42, 3  ;;  %v3430_v44 = vmul.f32 %v3427_v28, %v7259_v15  ;;  %v3469_v9 = vstv %s7269_s30  ;;  %v8733_v28 = vld [vmem:[#allocation91_spill] sm:$0xff]  ;;  %s7606_s30 = sld [smem:[#allocation7 + $0xd7]] }
 0x378   : > { %8729 = vst [vmem:[#allocation49_spill] sm:$0xff] %v7320_v3  ;;  %v3409_v40 = vmul.f32 %v3406_v52, %v7259_v15  ;;  %v3450_v1 = vmul.f32 %v3448_v13, %v7128_v58  ;;  %v3451_v19 = vmul.f32 %v3448_v13, %v7259_v15  ;;  %v3490_v7 = vstv %s7275_s6  ;;  %s7648_s6 = sld [smem:[#allocation7 + $0xdc]] }
 0x379   : > { %v1802_v33 = vadd.f32 %v6828_v6, %v1770_v36  ;;  %v1755_v3 = vadd.f32 %v8732_v25, %v1692_v41  ;;  %v3434_v37 = vrot.slane %v3428_v48, 3  ;;  %v3449_v22 = vmul.f32 %v3448_v13, %v7126_v57 }
 0x37a   : > { %v1498_v42 = vadd.f32 %v8733_v28, %v7242_v35  ;;  %v7348_v52 = vsel %vm580_vm7, %v3393_v20, %v3395_v56  ;;  %v3435_v38 = vrot.slane %v3429_v14, 3  ;;  %v3470_v6 = vmul.f32 %v3469_v9, %v7126_v57 }
 0x37b   : > { %3325 = vrot.lane.b32.xlu1 %v3324_v39, %s5009_s28  ;;  %3327 = vrot.lane.b32.xlu2 %v3323_v62, %s5009_s28  ;;  %v8734_v41 = vrot.slane %v7205_v47, 1  ;;  %v3437_v13 = vrot.slane %v3430_v44, 3  ;;  %v3471_v36 = vmul.f32 %v3469_v9, %v7128_v58  ;;  %v3491_v48 = vmul.f32 %v3490_v7, %v7126_v57 }
 0x37c   : > { %v3492_v35 = vmul.f32 %v3490_v7, %v7128_v58  ;;  %v3416_v56 = vrot.slane %v3409_v40, 3  ;;  %v3456_v14 = vrot.slane %v3450_v1, 4  ;;  %v3458_v25 = vrot.slane %v3451_v19, 4 }
 0x37d   : > { %3310 = vrot.lane.b32.xlu0 %v8734_v41, %s5009_s28  ;;  %v7359_v62 = vpop.permute.xlu1 %2760  ;;  %v7361_v39 = vpop.permute.xlu2 %2836  ;;  %v3493_v47 = vmul.f32 %v3490_v7, %v7259_v15  ;;  %v1841_v44 = vadd.f32 %v6860_v12, %v1802_v33  ;;  %v1777_v28 = vadd.f32 %v6916_v26, %v1755_v3  ;;  %v7369_v59 = vsel %vm580_vm7, %v3413_v2, %v3414_v55 }
 0x37e   : > { %8735 = vst [vmem:[#allocation50_spill] sm:$0xff] %v7359_v62  ;;  %v7366_v41 = vpop.permute.xlu0 %2741  ;;  %v3455_v46 = vrot.slane %v3449_v22, 4  ;;  %v7374_v62 = vsel %vm580_vm7, %v3392_v8, %v3393_v20  ;;  %v7377_v40 = vsel %vm580_vm7, %v3434_v37, %v3435_v38  ;;  %v3476_v1 = vrot.slane %v3470_v6, 4 }
 0x37f   : > { %8736 = vst [vmem:[#allocation51_spill] sm:$0xff] %v7366_v41  ;;  %v3472_v12 = vmul.f32 %v3469_v9, %v7259_v15  ;;  %v3477_v26 = vrot.slane %v3471_v36, 4  ;;  %v3497_v3 = vrot.slane %v3491_v48, 4  ;;  %v3498_v19 = vrot.slane %v3492_v35, 4  ;;  %v8739_v36 = vld [vmem:[#allocation94_spill] sm:$0xff] }
 0x380   : > { %v3074_v2 = vstv %s7332_s7  ;;  %v7386_v7 = vsel %vm580_vm7, %v3435_v38, %v3437_v13  ;;  %v7389_v20 = vsel %vm580_vm7, %v3414_v55, %v3416_v56  ;;  %v7392_v37 = vsel %vm632_vm8, %v3456_v14, %v3458_v25  ;;  %v8738_v13 = vld [vmem:[#allocation92_spill] sm:$0xff]  ;;  %v8765_v41 = vld [vmem:[#allocation114_spill] sm:$0xff]  ;;  %s7727_s7 = sld [smem:[#allocation7 + $0xcf]] }
 0x381   : > { %v3500_v8 = vrot.slane %v3493_v47, 4  ;;  %v1888_v9 = vadd.f32 %v6865_v23, %v1841_v44  ;;  %v8737_v33 = vrot.slane %v6874_v54, 1  ;;  %v7400_v6 = vsel %vm632_vm8, %v3455_v46, %v3456_v14  ;;  %v8741_v46 = vld [vmem:[#allocation95_spill] sm:$0xff] }
 0x382   : > { %v8380_v38 = vstv %s7341_s8  ;;  %v1526_v55 = vadd.f32 %v8738_v13, %v7278_v29  ;;  %v1513_v48 = vadd.f32 %v8739_v36, %v7284_v27  ;;  %v8740_v35 = vrot.slane %v7230_v5, 2 }
 0x383   : > { %v1816_v22 = vadd.f32 %v8737_v33, %v1777_v28  ;;  %3359 = vrot.lane.b32.xlu2 %v7299_v60, %s5009_s28  ;;  %v3479_v23 = vrot.slane %v3472_v12, 4  ;;  %v3075_v54 = vmul.f32 %v3074_v2, %v7126_v57  ;;  %v1544_v56 = vadd.f32 %v8741_v46, %v7325_v30  ;;  %v8742_v60 = vld [vmem:[#allocation97_spill] sm:$0xff]  ;;  %v8746_v33 = vld [vmem:[#allocation103_spill] sm:$0xff] }
 0x384   : > { %3344 = vrot.lane.b32.xlu1 %v8740_v35, %s5009_s28  ;;  %v7418_v29 = vsel %vm632_vm8, %v3476_v1, %v3477_v26  ;;  %v7421_v27 = vsel %vm632_vm8, %v3497_v3, %v3498_v19  ;;  %v3511_v5 = vstv %s7357_s9  ;;  %v1543_v14 = vadd.f32 %v8742_v60, %v1498_v42  ;;  %v8744_v28 = vld [vmem:[#allocation101_spill] sm:$0xff]  ;;  %v8747_v46 = vld [vmem:[#allocation107_spill] sm:$0xff]  ;;  %s7811_s9 = sld [smem:[#allocation7 + $0x89]] }
 0x385   : > { %3342 = vrot.lane.b32.xlu0 %v7309_v11, %s5009_s28  ;;  %v7427_v25 = vpop.permute.xlu1 %2776  ;;  %v7429_v47 = vpop.permute.xlu2 %2855  ;;  %v7432_v30 = vsel %vm632_vm8, %v3498_v19, %v3500_v8  ;;  %v7437_v11 = vmul.f32 %v8380_v38, %v7126_v57  ;;  %v7440_v44 = vmul.f32 %v3074_v2, %v7128_v58  ;;  %v1595_v42 = vadd.f32 %v8744_v28, %v1544_v56  ;;  %v8748_v60 = vld [vmem:[#allocation111_spill] sm:$0xff] }
 0x386   : > { %v1939_v1 = vadd.f32 %v6911_v63, %v1888_v9  ;;  %v8745_v12 = vrot.slane %v6881_v21, 2  ;;  %v7448_v19 = vpop.permute.xlu0 %2774  ;;  %v3525_v8 = vstv %s7371_s11  ;;  %v1594_v13 = vadd.f32 %v8746_v33, %v1543_v14  ;;  %v8749_v9 = vld [vmem:[#allocation109_spill] sm:$0xff]  ;;  %s7840_s11 = sld [smem:[#allocation7 + $0x3c]] }
 0x387   : > { %8743 = vst [vmem:[#allocation52_spill] sm:$0xff] %v7440_v44  ;;  %v7453_v36 = vsel %vm632_vm8, %v3477_v26, %v3479_v23  ;;  %v3079_v2 = vrot.slane %v3075_v54, 1  ;;  %v7456_v35 = vmul.f32 %v3511_v5, %v7128_v58  ;;  %v1650_v56 = vadd.f32 %v8747_v46, %v1595_v42  ;;  %v8750_v54 = vld [vmem:[#allocation113_spill] sm:$0xff] }
 0x388   : > { %v1855_v3 = vadd.f32 %v8745_v12, %v1816_v22  ;;  %v1984_v28 = vadd.f32 %v8748_v60, %v1939_v1  ;;  %v8382_v63 = vstv %s7380_s12  ;;  %v8381_v21 = vstv %s7383_s5  ;;  %v8751_v1 = vld [vmem:[#allocation117_spill] sm:$0xff] }
 0x389   : > { %v1649_v22 = vadd.f32 %v8749_v9, %v1594_v13  ;;  %v8384_v12 = vrot.slane %v7440_v44, 1  ;;  %v7465_v14 = vmul.f32 %v3525_v8, %v7126_v57  ;;  %v3539_v26 = vstv %s7394_s22  ;;  %v8752_v13 = vld [vmem:[#allocation115_spill] sm:$0xff]  ;;  %v8763_v44 = vld [vmem:[#allocation106_spill] sm:$0xff]  ;;  %s7993_s22 = sld [smem:[#allocation7 + $0x43]] }
 0x38a   : > { %v1906_v23 = vadd.f32 %v6977_v49, %v1855_v3  ;;  %v1713_v42 = vadd.f32 %v8750_v54, %v1650_v56  ;;  %v2032_v33 = vadd.f32 %v8751_v1, %v1984_v28  ;;  %v7474_v46 = vmul.f32 %v3511_v5, %v7126_v57  ;;  %v8754_v3 = vld [vmem:[#allocation98_spill] sm:$0xff]  ;;  %v8755_v28 = vld [vmem:[#allocation123_spill] sm:$0xff]  ;;  %v8757_v1 = vld [vmem:[#allocation100_spill] sm:$0xff] }
 0x38b   : > { %v1712_v60 = vadd.f32 %v8752_v13, %v1649_v22  ;;  %v8753_v9 = vrot.slane %v7251_v16, 2  ;;  %v7487_v49 = vmul.f32 %v8382_v63, %v7128_v58  ;;  %v7492_v5 = vmul.f32 %v8381_v21, %v7128_v58 }
 0x38c   : > { %3376 = vrot.lane.b32.xlu1 %v7314_v10, %s5009_s28  ;;  %v1577_v56 = vadd.f32 %v8754_v3, %v1526_v55  ;;  %v2083_v22 = vadd.f32 %v8755_v28, %v2032_v33  ;;  %v8756_v10 = vrot.slane %v7239_v51, 2  ;;  %v7502_v16 = vmul.f32 %v3539_v26, %v7126_v57  ;;  %v8760_v3 = vld [vmem:[#allocation104_spill] sm:$0xff] }
 0x38d   : > { %3378 = vrot.lane.b32.xlu2 %v8753_v9, %s5009_s28  ;;  %v3113_v54 = vstv %s7424_s4  ;;  %v1561_v13 = vadd.f32 %v8757_v1, %v1513_v48  ;;  %v7508_v9 = vpop.permute.xlu1 %2802  ;;  %v7510_v38 = vpop.permute.xlu2 %2887  ;;  %v7515_v55 = vsel %vm498_vm5, %v3079_v2, %v8384_v12  ;;  %v7518_v51 = vmul.f32 %v3539_v26, %v7128_v58  ;;  %v8761_v1 = vld [vmem:[#allocation129_spill] sm:$0xff]  ;;  %s7999_s4 = sld [smem:[#allocation7 + $0x8e]] }
 0x38e   : > { %3361 = vrot.lane.b32.xlu0 %v8756_v10, %s5009_s28  ;;  %8758 = vst [vmem:[#allocation53_spill] sm:$0xff] %v7508_v9  ;;  %v7521_v33 = vstv %s7442_s19  ;;  %v1628_v28 = vadd.f32 %v8760_v3, %v1577_v56  ;;  %v1957_v10 = vadd.f32 %v6982_v24, %v1906_v23  ;;  %v1765_v48 = vadd.f32 %v6985_v34, %v1713_v42  ;;  %v7527_v63 = vpop.permute.xlu0 %2790  ;;  %v8764_v56 = vld [vmem:[#allocation110_spill] sm:$0xff]  ;;  %v8766_v23 = vld [vmem:[#allocation135_spill] sm:$0xff]  ;;  %s8035_s19 = sld [smem:[#allocation7 + $0xd9]] }
 0x38f   : > { %8759 = vst [vmem:[#allocation54_spill] sm:$0xff] %v7521_v33  ;;  %v2142_v21 = vadd.f32 %v8761_v1, %v2083_v22  ;;  %v1612_v9 = vadd.f32 %v8763_v44, %v1561_v13  ;;  %v1764_v2 = vadd.f32 %v7007_v43, %v1712_v60  ;;  %v7532_v26 = vmul.f32 %v3525_v8, %v7128_v58  ;;  %v8768_v44 = vld [vmem:[#allocation112_spill] sm:$0xff] }
 0x390   : > { %8762 = vst [vmem:[#allocation55_spill] sm:$0xff] %v7527_v63  ;;  %v7535_v12 = vmul.f32 %v3113_v54, %v7126_v57  ;;  %v1691_v3 = vadd.f32 %v8764_v56, %v1628_v28  ;;  %v1999_v24 = vadd.f32 %v8765_v41, %v1957_v10  ;;  %v7541_v42 = vmul.f32 %v3113_v54, %v7128_v58  ;;  %v8772_v13 = vld [vmem:[#allocation116_spill] sm:$0xff] }
 0x391   : > { %v2205_v34 = vadd.f32 %v8766_v23, %v2142_v21  ;;  %v1671_v22 = vadd.f32 %v8768_v44, %v1612_v9  ;;  %v3157_v43 = vmul.f32 %v7521_v33, %v7126_v57  ;;  %v7548_v8 = vmul.f32 %v7521_v33, %v7128_v58  ;;  %v8773_v28 = vld [vmem:[#allocation120_spill] sm:$0xff]  ;;  %v8774_v9 = vld [vmem:[#allocation141_spill] sm:$0xff]  ;;  %v8775_v23 = vld [vmem:[#allocation118_spill] sm:$0xff] }
 0x392   : > { %8767 = vst [vmem:[#allocation56_spill] sm:$0xff] %v7541_v42  ;;  %v7551_v60 = vstv %s7468_s21  ;;  %v8771_v41 = vrot.slane %v6951_v61, 1  ;;  %v1754_v54 = vadd.f32 %v8772_v13, %v1691_v3  ;;  %v2050_v10 = vadd.f32 %v8773_v28, %v1999_v24  ;;  %v8776_v61 = vld [vmem:[#allocation126_spill] sm:$0xff]  ;;  %s4745_s21 = sld [smem:[#allocation7 + $0x48]] }
 0x393   : > { %8769 = vst [vmem:[#allocation57_spill] sm:$0xff] %v7548_v8  ;;  %v2254_v1 = vadd.f32 %v8774_v9, %v2205_v34  ;;  %v1789_v56 = vadd.f32 %v7062_v50, %v1764_v2  ;;  %v1734_v44 = vadd.f32 %v8775_v23, %v1671_v22  ;;  %v3553_v33 = vstv %s7476_s26  ;;  %s4746_s26 = sld [smem:[#allocation7 + $0x93]] }
 0x394   : > { %8770 = vst [vmem:[#allocation58_spill] sm:$0xff] %v7551_v60  ;;  %v1790_v21 = vadd.f32 %v8771_v41, %v1765_v48  ;;  %3399 = vrot.lane.b32.xlu1 %v7348_v52, %s5009_s28  ;;  %v3570_v63 = vstv %s7494_s24  ;;  %v2101_v48 = vadd.f32 %v8776_v61, %v2050_v10  ;;  %v8777_v41 = vld [vmem:[#allocation147_spill] sm:$0xff]  ;;  %v3118_v24 = vrot.slane %v7535_v12, 2  ;;  %v8780_v10 = vld [vmem:[#allocation132_spill] sm:$0xff]  ;;  %s4747_s24 = sld [smem:[#allocation7 + $0xde]] }
 0x395   : > { %3418 = vrot.lane.b32.xlu2 %v7369_v59, %s5009_s28  ;;  %v2302_v3 = vadd.f32 %v8777_v41, %v2254_v1  ;;  %v7574_v2 = vpop.permute.xlu1 %2821  ;;  %v7576_v34 = vpop.permute.xlu2 %2906  ;;  %v3163_v22 = vrot.slane %v3157_v43, 3  ;;  %v3208_v59 = vmul.f32 %v7551_v60, %v7126_v57  ;;  %v7583_v13 = vmul.f32 %v7551_v60, %v7128_v58  ;;  %v8781_v1 = vld [vmem:[#allocation153_spill] sm:$0xff] }
 0x396   : > { %3397 = vrot.lane.b32.xlu0 %v7374_v62, %s5009_s28  ;;  %v8779_v62 = vrot.slane %v6990_v0, 2  ;;  %v1776_v28 = vadd.f32 %v7082_v32, %v1754_v54  ;;  %v2164_v9 = vadd.f32 %v8780_v10, %v2101_v48  ;;  %v7592_v43 = vpop.permute.xlu0 %2819  ;;  %v1828_v61 = vadd.f32 %v7067_v45, %v1789_v56  ;;  %v8783_v0 = vld [vmem:[#allocation138_spill] sm:$0xff]  ;;  %v8785_v10 = vld [vmem:[#allocation144_spill] sm:$0xff] }
 0x397   : > { %8778 = vst [vmem:[#allocation59_spill] sm:$0xff] %v7583_v13  ;;  %v2353_v23 = vadd.f32 %v8781_v1, %v2302_v3  ;;  %v1771_v41 = vadd.f32 %v7102_v53, %v1734_v44  ;;  %v3571_v50 = vmul.f32 %v3570_v63, %v7126_v57  ;;  %v7598_v52 = vmul.f32 %v3570_v63, %v7128_v58  ;;  %v8786_v1 = vld [vmem:[#allocation165_spill] sm:$0xff] }
 0x398   : > { %v1829_v12 = vadd.f32 %v8779_v62, %v1790_v21  ;;  %v2227_v21 = vadd.f32 %v8783_v0, %v2164_v9  ;;  %v8784_v62 = vld [vmem:[#allocation159_spill] sm:$0xff]  ;;  %v7604_v48 = vmul.f32 %v3553_v33, %v7128_v58  ;;  %v3214_v3 = vrot.slane %v3208_v59, 4 }
 0x399   : > { %8782 = vst [vmem:[#allocation60_spill] sm:$0xff] %v7598_v52  ;;  %v2412_v32 = vadd.f32 %v8784_v62, %v2353_v23  ;;  %v8386_v45 = vrot.slane %v7583_v13, 4  ;;  %v3554_v53 = vmul.f32 %v3553_v33, %v7126_v57  ;;  %v1815_v44 = vadd.f32 %v7108_v18, %v1776_v28  ;;  %v8788_v18 = vld [vmem:[#allocation150_spill] sm:$0xff] }
 0x39a   : > { %v1872_v63 = vadd.f32 %v7054_v31, %v1829_v12  ;;  %v2269_v9 = vadd.f32 %v8785_v10, %v2227_v21  ;;  %v1871_v0 = vadd.f32 %v7072_v4, %v1828_v61  ;;  %v8787_v62 = vrot.slane %v6745_v17, 1  ;;  %v8789_v12 = vld [vmem:[#allocation171_spill] sm:$0xff]  ;;  %v8793_v10 = vld [vmem:[#allocation33_spill] sm:$0xff] }
 0x39b   : > { %v2475_v23 = vadd.f32 %v8786_v1, %v2412_v32  ;;  %v3575_v33 = vrot.slane %v3571_v50, 1  ;;  %v8387_v31 = vrot.slane %v7598_v52, 1  ;;  %v8790_v17 = vrot.slane %v7541_v42, 2  ;;  %v8792_v32 = vld [vmem:[#allocation31_spill] sm:$0xff]  ;;  %v8794_v1 = vld [vmem:[#allocation156_spill] sm:$0xff] }
 0x39c   : > { %v1803_v54 = vadd.f32 %v8787_v62, %v1771_v41  ;;  %3439 = vrot.lane.b32.xlu1 %v7377_v40, %s5009_s28  ;;  %v2320_v59 = vadd.f32 %v8788_v18, %v2269_v9  ;;  %v8791_v40 = vrot.slane %v7548_v8, 3  ;;  %v7644_v41 = vsel %vm632_vm8, %v3214_v3, %v8386_v45  ;;  %v8795_v62 = vld [vmem:[#allocation16_spill] sm:$0xff]  ;;  %v8825_v42 = vld [vmem:[#allocation139_spill] sm:$0xff] }
 0x39d   : > { %3441 = vrot.lane.b32.xlu2 %v7386_v7, %s5009_s28  ;;  %v2524_v28 = vadd.f32 %v8789_v12, %v2475_v23  ;;  %v7630_v4 = vsel %vm538_vm6, %v3118_v24, %v8790_v17  ;;  %v7637_v7 = vpop.permute.xlu1 %2853  ;;  %v7639_v50 = vpop.permute.xlu2 %2946  ;;  %v3558_v24 = vrot.slane %v3554_v53, 1  ;;  %v1854_v9 = vadd.f32 %v8793_v10, %v1815_v44  ;;  %v8797_v3 = vld [vmem:[#allocation32_spill] sm:$0xff]  ;;  %v8801_v44 = vld [vmem:[#allocation119_spill] sm:$0xff]  ;;  %v8802_v10 = vld [vmem:[#allocation162_spill] sm:$0xff] }
 0x39e   : > { %3420 = vrot.lane.b32.xlu0 %v7389_v20, %s5009_s28  ;;  %v7635_v61 = vsel %vm580_vm7, %v3163_v22, %v8791_v40  ;;  %v8388_v20 = vrot.slane %v7604_v48, 1  ;;  %v1923_v22 = vadd.f32 %v8792_v32, %v1872_v63  ;;  %v2371_v23 = vadd.f32 %v8794_v1, %v2320_v59  ;;  %v7654_v12 = vpop.permute.xlu0 %2838  ;;  %v8798_v40 = vld [vmem:[#allocation14_spill] sm:$0xff]  ;;  %v8803_v1 = vld [vmem:[#allocation20_spill] sm:$0xff] }
 0x39f   : > { %v2572_v18 = vadd.f32 %v8795_v62, %v2524_v28  ;;  %8796 = vst [vmem:[#allocation61_spill] sm:$0xff] %v7654_v12  ;;  %v1922_v17 = vadd.f32 %v8797_v3, %v1871_v0  ;;  %v8799_v45 = vrot.slane %v8798_v40, 2  ;;  %v7662_v21 = vsel %vm498_vm5, %v3575_v33, %v8387_v31  ;;  %v8805_v0 = vld [vmem:[#allocation121_spill] sm:$0xff]  ;;  %v8812_v31 = vld [vmem:[#allocation39_spill] sm:$0xff]  ;;  %v8824_v8 = vld [vmem:[#allocation40_spill] sm:$0xff] }
 0x3a0   : > { %v8800_v63 = vstv %s7505_s25  ;;  %v1971_v59 = vadd.f32 %v8801_v44, %v1923_v22  ;;  %v2434_v28 = vadd.f32 %v8802_v10, %v2371_v23  ;;  %v7673_v56 = vstv %s7606_s30  ;;  %v8808_v23 = vld [vmem:[#allocation34_spill] sm:$0xff]  ;;  %v8810_v10 = vld [vmem:[#allocation168_spill] sm:$0xff]  ;;  %v8831_v12 = vld [vmem:[#allocation145_spill] sm:$0xff]  ;;  %s4752_s30 = sld [smem:[#allocation7 + $0x85]] }
 0x3a1   : > { %v1842_v53 = vadd.f32 %v8799_v45, %v1803_v54  ;;  %v7667_v32 = vmul.f32 %v8800_v63, %v7128_v58  ;;  %v2623_v62 = vadd.f32 %v8803_v1, %v2572_v18  ;;  %8804 = vst [vmem:[#allocation62_spill] sm:$0xff] %v7673_v56  ;;  %v1970_v3 = vadd.f32 %v8805_v0, %v1922_v17  ;;  %v8809_v18 = vld [vmem:[#allocation125_spill] sm:$0xff]  ;;  %v8811_v17 = vld [vmem:[#allocation26_spill] sm:$0xff] }
 0x3a2   : > { %v7679_v54 = vsel %vm498_vm5, %v3558_v24, %v8388_v20  ;;  %v8806_v45 = vstv %s7553_s27  ;;  %v8807_v40 = vstv %s7585_s29  ;;  %v1905_v63 = vadd.f32 %v8808_v23, %v1854_v9  ;;  %v8813_v20 = vld [vmem:[#allocation127_spill] sm:$0xff] }
 0x3a3   : > { %v7684_v33 = vmul.f32 %v8806_v45, %v7128_v58  ;;  %v7689_v22 = vmul.f32 %v8807_v40, %v7128_v58  ;;  %v2016_v44 = vadd.f32 %v8809_v18, %v1971_v59  ;;  %v2497_v1 = vadd.f32 %v8810_v10, %v2434_v28  ;;  %v8814_v28 = vld [vmem:[#allocation131_spill] sm:$0xff]  ;;  %v8815_v45 = vld [vmem:[#allocation174_spill] sm:$0xff] }
 0x3a4   : > { %v2682_v0 = vadd.f32 %v8811_v17, %v2623_v62  ;;  %v1889_v24 = vadd.f32 %v8812_v31, %v1842_v53  ;;  %v2015_v13 = vadd.f32 %v8813_v20, %v1970_v3  ;;  %3462 = vrot.lane.b32.xlu1 %v7392_v37, %s5009_s28  ;;  %v7704_v59 = vmul.f32 %v7673_v56, %v7128_v58  ;;  %v8816_v31 = vld [vmem:[#allocation36_spill] sm:$0xff]  ;;  %v8817_v20 = vld [vmem:[#allocation133_spill] sm:$0xff] }
 0x3a5   : > { %3481 = vrot.lane.b32.xlu2 %v7418_v29, %s5009_s28  ;;  %v2067_v62 = vadd.f32 %v8814_v28, %v2016_v44  ;;  %v2539_v40 = vadd.f32 %v8815_v45, %v2497_v1  ;;  %v3176_v37 = vmul.f32 %v7673_v56, %v7259_v15  ;;  %v7714_v3 = vpop.permute.xlu1 %2872  ;;  %v7716_v23 = vpop.permute.xlu2 %2969  ;;  %v7720_v44 = vstv %s7648_s6  ;;  %v8822_v45 = vld [vmem:[#allocation17_spill] sm:$0xff]  ;;  %s4751_s6 = sld [smem:[#allocation7 + $0x3a]] }
 0x3a6   : > { %v2745_v53 = vadd.f32 %v8816_v31, %v2682_v0  ;;  %3460 = vrot.lane.b32.xlu0 %v7400_v6, %s5009_s28  ;;  %v2066_v29 = vadd.f32 %v8817_v20, %v2015_v13  ;;  %v8818_v10 = vstv %s7505_s25  ;;  %v8820_v6 = vld [vmem:[#allocation38_spill] sm:$0xff]  ;;  %v8821_v0 = vld [vmem:[#allocation137_spill] sm:$0xff]  ;;  %v7733_v9 = vpop.permute.xlu0 %2870  ;;  %v1940_v18 = vadd.f32 %v8824_v8, %v1889_v24  ;;  %s4748_s25 = sld [smem:[#allocation7 + $0x35]] }
 0x3a7   : > { %v7725_v1 = vmul.f32 %v8818_v10, %v7126_v57  ;;  %v1956_v17 = vadd.f32 %v8820_v6, %v1905_v63  ;;  %v2122_v28 = vadd.f32 %v8821_v0, %v2067_v62  ;;  %v2590_v13 = vadd.f32 %v8822_v45, %v2539_v40  ;;  %v8823_v31 = vld [vmem:[#allocation45_spill] sm:$0xff]  ;;  %v8828_v6 = vld [vmem:[#allocation143_spill] sm:$0xff]  ;;  %v8830_v45 = vld [vmem:[#allocation124_spill] sm:$0xff] }
 0x3a8   : > { %v2794_v20 = vadd.f32 %v8823_v31, %v2745_v53  ;;  %v2121_v60 = vadd.f32 %v8825_v42, %v2066_v29  ;;  %v8826_v10 = vstv %s7553_s27  ;;  %v8829_v0 = vld [vmem:[#allocation23_spill] sm:$0xff]  ;;  %v1985_v31 = vadd.f32 %v8830_v45, %v1940_v18  ;;  %v8832_v29 = vld [vmem:[#allocation128_spill] sm:$0xff]  ;;  %v8833_v56 = vld [vmem:[#allocation149_spill] sm:$0xff]  ;;  %s8095_s27 = sld [smem:[#allocation7 + $0x80]] }
 0x3a9   : > { %8819 = vst [vmem:[#allocation63_spill] sm:$0xff] %v7725_v1  ;;  %v7741_v52 = vmul.f32 %v8826_v10, %v7126_v57  ;;  %v8827_v1 = vld [vmem:[#allocation122_spill] sm:$0xff]  ;;  %v2185_v62 = vadd.f32 %v8828_v6, %v2122_v28  ;;  %v2641_v40 = vadd.f32 %v8829_v0, %v2590_v13  ;;  %v3181_v42 = vrot.slane %v7704_v59, 3 }
 0x3aa   : > { %v1998_v63 = vadd.f32 %v8827_v1, %v1956_v17  ;;  %v2842_v53 = vadd.f32 %v7361_v39, %v2794_v20  ;;  %v2184_v8 = vadd.f32 %v8831_v12, %v2121_v60  ;;  %v7752_v24 = vmul.f32 %v7720_v44, %v7128_v58  ;;  %v8834_v17 = vld [vmem:[#allocation29_spill] sm:$0xff]  ;;  %v8835_v6 = vld [vmem:[#allocation130_spill] sm:$0xff]  ;;  %v8836_v20 = vld [vmem:[#allocation151_spill] sm:$0xff] }
 0x3ab   : > { %v2241_v1 = vadd.f32 %v8833_v56, %v2185_v62  ;;  %v2704_v28 = vadd.f32 %v8834_v17, %v2641_v40  ;;  %v2033_v39 = vadd.f32 %v8835_v6, %v1985_v31  ;;  %v3183_v60 = vrot.slane %v3176_v37, 3  ;;  %v8837_v56 = vld [vmem:[#allocation134_spill] sm:$0xff]  ;;  %v8838_v62 = vld [vmem:[#allocation155_spill] sm:$0xff]  ;;  %v8841_v31 = vld [vmem:[#allocation157_spill] sm:$0xff] }
 0x3ac   : > { %v2049_v10 = vadd.f32 %v8832_v29, %v1998_v63  ;;  %v2893_v13 = vadd.f32 %v7510_v38, %v2842_v53  ;;  %v2240_v18 = vadd.f32 %v8836_v20, %v2184_v8  ;;  %3502 = vrot.lane.b32.xlu1 %v7421_v27, %s5009_s28  ;;  %v3227_v12 = vmul.f32 %v7720_v44, %v7259_v15  ;;  %v8839_v38 = vld [vmem:[#allocation42_spill] sm:$0xff]  ;;  %v8840_v27 = vld [vmem:[#allocation136_spill] sm:$0xff]  ;;  %v8843_v6 = vld [vmem:[#allocation161_spill] sm:$0xff] }
 0x3ad   : > { %3504 = vrot.lane.b32.xlu2 %v7432_v30, %s5009_s28  ;;  %v2286_v0 = vadd.f32 %v8838_v62, %v2241_v1  ;;  %v2767_v40 = vadd.f32 %v8839_v38, %v2704_v28  ;;  %v2084_v45 = vadd.f32 %v8840_v27, %v2033_v39  ;;  %v7774_v37 = vpop.permute.xlu1 %2904  ;;  %v3010_v8 = vpop.permute.xlu2 %3009  ;;  %v3066_v29 = vrot.slane %v7741_v52, 1  ;;  %v8842_v17 = vld [vmem:[#allocation140_spill] sm:$0xff]  ;;  %v8846_v39 = vld [vmem:[#allocation163_spill] sm:$0xff] }
 0x3ae   : > { %v2100_v63 = vadd.f32 %v8837_v56, %v2049_v10  ;;  %v2952_v53 = vadd.f32 %v7639_v50, %v2893_v13  ;;  %3483 = vrot.lane.b32.xlu0 %v7453_v36, %s5009_s28  ;;  %v2285_v30 = vadd.f32 %v8841_v31, %v2240_v18  ;;  %v3587_v10 = vstv %s7727_s7  ;;  %v8844_v20 = vld [vmem:[#allocation48_spill] sm:$0xff]  ;;  %v7781_v56 = vpop.permute.xlu0 %2889  ;;  %v8845_v36 = vld [vmem:[#allocation142_spill] sm:$0xff]  ;;  %v8849_v31 = vld [vmem:[#allocation167_spill] sm:$0xff]  ;;  %s7805_s28 = sld [smem:[#allocation7 + $0x3e]] }
 0x3af   : > { %v2337_v28 = vadd.f32 %v8843_v6, %v2286_v0  ;;  %v2809_v50 = vadd.f32 %v8844_v20, %v2767_v40  ;;  %v2143_v62 = vadd.f32 %v8845_v36, %v2084_v45  ;;  %v7788_v18 = vsel %vm580_vm7, %v3181_v42, %v3183_v60  ;;  %v8850_v45 = vld [vmem:[#allocation148_spill] sm:$0xff]  ;;  %s4755_s7 = sld [smem:[#allocation7 + $0x8a]] }
 0x3b0   : > { %v2163_v1 = vadd.f32 %v8842_v17, %v2100_v63  ;;  %v3015_v13 = vadd.f32 %v3010_v8, %v2952_v53  ;;  %v2336_v38 = vadd.f32 %v8846_v39, %v2285_v30  ;;  %v8847_v52 = vstv %s7380_s12  ;;  %v8848_v63 = vld [vmem:[#allocation146_spill] sm:$0xff]  ;;  %v8851_v30 = vld [vmem:[#allocation169_spill] sm:$0xff]  ;;  %v8852_v36 = vld [vmem:[#allocation152_spill] sm:$0xff]  ;;  %s7856_s12 = sld [smem:[#allocation7 + $0x41]] }
 0x3b1   : > { %v7793_v27 = vmul.f32 %v8847_v52, %v7126_v57  ;;  %v2392_v40 = vadd.f32 %v8849_v31, %v2337_v28  ;;  %v2860_v53 = vadd.f32 %v7429_v47, %v2809_v50  ;;  %v2206_v17 = vadd.f32 %v8850_v45, %v2143_v62 }
 0x3b2   : > { %v2226_v0 = vadd.f32 %v8848_v63, %v2163_v1  ;;  %v3052_v8 = vadd.f32 %v7437_v11, %v3015_v13  ;;  %v2391_v6 = vadd.f32 %v8851_v30, %v2336_v38  ;;  %v3588_v20 = vmul.f32 %v3587_v10, %v7126_v57  ;;  %v8853_v1 = vld [vmem:[#allocation173_spill] sm:$0xff]  ;;  %v8854_v11 = vld [vmem:[#allocation154_spill] sm:$0xff]  ;;  %v8855_v13 = vld [vmem:[#allocation175_spill] sm:$0xff] }
 0x3b3   : > { %v7803_v60 = vmul.f32 %v3587_v10, %v7128_v58  ;;  %v2455_v52 = vadd.f32 %v8853_v1, %v2392_v40  ;;  %v2911_v28 = vadd.f32 %v7576_v34, %v2860_v53  ;;  %v2255_v50 = vadd.f32 %v8854_v11, %v2206_v17  ;;  %v8856_v63 = vld [vmem:[#allocation158_spill] sm:$0xff]  ;;  %v8857_v34 = vld [vmem:[#allocation15_spill] sm:$0xff]  ;;  %v8858_v53 = vld [vmem:[#allocation160_spill] sm:$0xff] }
 0x3b4   : > { %v2268_v39 = vadd.f32 %v8852_v36, %v2226_v0  ;;  %v3084_v47 = vadd.f32 %v7515_v55, %v3052_v8  ;;  %v2454_v62 = vadd.f32 %v8855_v13, %v2391_v6  ;;  %3518 = vrot.lane.b32.xlu1 %v7456_v35, %s5010_s18  ;;  %v3232_v10 = vrot.slane %v7752_v24, 4  ;;  %v8859_v8 = vld [vmem:[#allocation18_spill] sm:$0xff]  ;;  %v8864_v11 = vld [vmem:[#allocation24_spill] sm:$0xff] }
 0x3b5   : > { %3530 = vrot.lane.b32.xlu2 %v7465_v14, %s5010_s18  ;;  %v3234_v38 = vrot.slane %v3227_v12, 4  ;;  %v2511_v31 = vadd.f32 %v8857_v34, %v2455_v52  ;;  %v2974_v55 = vadd.f32 %v7716_v23, %v2911_v28  ;;  %v2303_v35 = vadd.f32 %v8858_v53, %v2255_v50  ;;  %v7828_v14 = vpop.permute.xlu1 %2927  ;;  %v3033_v17 = vpop.permute.xlu2 %3032  ;;  %v8861_v23 = vld [vmem:[#allocation164_spill] sm:$0xff]  ;;  %v8863_v28 = vld [vmem:[#allocation166_spill] sm:$0xff] }
 0x3b6   : > { %v2319_v0 = vadd.f32 %v8856_v63, %v2268_v39  ;;  %3516 = vrot.lane.b32.xlu0 %v7474_v46, %s5010_s18  ;;  %v3123_v40 = vadd.f32 %v7630_v4, %v3084_v47  ;;  %v2510_v45 = vadd.f32 %v8859_v8, %v2454_v62  ;;  %v8860_v12 = vrot.slane %v7684_v33, 1  ;;  %v8862_v39 = vld [vmem:[#allocation22_spill] sm:$0xff]  ;;  %v7837_v1 = vpop.permute.xlu0 %2925  ;;  %v8868_v53 = vld [vmem:[#allocation172_spill] sm:$0xff] }
 0x3b7   : > { %v3592_v6 = vrot.slane %v3588_v20, 1  ;;  %v2556_v46 = vadd.f32 %v8862_v39, %v2511_v31  ;;  %v3037_v4 = vadd.f32 %v3033_v17, %v2974_v55  ;;  %v3593_v52 = vrot.slane %v7803_v60, 1  ;;  %v8866_v62 = vld [vmem:[#allocation170_spill] sm:$0xff] }
 0x3b8   : > { %v7833_v30 = vsel %vm498_vm5, %v3066_v29, %v8860_v12  ;;  %v2370_v36 = vadd.f32 %v8861_v23, %v2319_v0  ;;  %v2354_v47 = vadd.f32 %v8863_v28, %v2303_v35  ;;  %v2555_v29 = vadd.f32 %v8864_v11, %v2510_v45  ;;  %v8867_v0 = vld [vmem:[#allocation28_spill] sm:$0xff]  ;;  %v8869_v8 = vld [vmem:[#allocation30_spill] sm:$0xff]  ;;  %v8871_v23 = vld [vmem:[#allocation13_spill] sm:$0xff] }
 0x3b9   : > { %v7847_v20 = vsel %vm632_vm8, %v3232_v10, %v3234_v38  ;;  %v8865_v50 = vstv %s7383_s5  ;;  %v2607_v34 = vadd.f32 %v8867_v0, %v2556_v46  ;;  %v3059_v31 = vadd.f32 %v7487_v49, %v3037_v4  ;;  %v8875_v11 = vld [vmem:[#allocation43_spill] sm:$0xff]  ;;  %s7957_s5 = sld [smem:[#allocation7 + $0xd4]] }
 0x3ba   : > { %v3088_v13 = vmul.f32 %v8865_v50, %v7126_v57  ;;  %v2433_v63 = vadd.f32 %v8866_v62, %v2370_v36  ;;  %v3170_v55 = vadd.f32 %v7635_v61, %v3123_v40  ;;  %v2413_v35 = vadd.f32 %v8868_v53, %v2354_v47  ;;  %v8872_v36 = vld [vmem:[#allocation41_spill] sm:$0xff]  ;;  %v8874_v61 = vld [vmem:[#allocation12_spill] sm:$0xff]  ;;  %v8876_v62 = vld [vmem:[#allocation19_spill] sm:$0xff] }
 0x3bb   : > { %v2606_v45 = vadd.f32 %v8869_v8, %v2555_v29  ;;  %v8870_v38 = vstv %s7341_s8  ;;  %v3604_v12 = vstv %s7805_s28  ;;  %v2662_v28 = vadd.f32 %v8872_v36, %v2607_v34  ;;  %v8877_v0 = vld [vmem:[#allocation47_spill] sm:$0xff]  ;;  %v8880_v8 = vld [vmem:[#allocation49_spill] sm:$0xff]  ;;  %s7904_s8 = sld [smem:[#allocation7 + $0x46]] }
 0x3bc   : > { %v7863_v17 = vmul.f32 %v8870_v38, %v7128_v58  ;;  %v2496_v39 = vadd.f32 %v8871_v23, %v2433_v63  ;;  %v8873_v46 = vrot.slane %v7492_v5, 1  ;;  %v3621_v4 = vstv %s7811_s9  ;;  %3544 = vrot.lane.b32.xlu1 %v7502_v16, %s5010_s18  ;;  %s4754_s28 = sld [smem:[#allocation7 + $0x3f]] }
 0x3bd   : > { %v2476_v40 = vadd.f32 %v8874_v61, %v2413_v35  ;;  %v2661_v50 = vadd.f32 %v8875_v11, %v2606_v45  ;;  %3546 = vrot.lane.b32.xlu2 %v7518_v51, %s5010_s18  ;;  %v7880_v47 = vsel %vm498_vm5, %v3592_v6, %v3593_v52  ;;  %v3092_v29 = vrot.slane %v3088_v13, 1  ;;  %v8879_v51 = vld [vmem:[#allocation21_spill] sm:$0xff]  ;;  %v7891_v6 = vpop.permute.xlu1 %2967  ;;  %v3261_v13 = vpop.permute.xlu2 %3260  ;;  %s4756_s9 = sld [smem:[#allocation7 + $0xd5]] }
 0x3be   : > { %v3098_v49 = vadd.f32 %v8873_v46, %v3059_v31  ;;  %v2538_v63 = vadd.f32 %v8876_v62, %v2496_v39  ;;  %v2725_v34 = vadd.f32 %v8877_v0, %v2662_v28  ;;  %3532 = vrot.lane.b32.xlu0 %v7532_v26, %s5010_s18  ;;  %v3221_v31 = vadd.f32 %v7644_v41, %v3170_v55  ;;  %v8881_v39 = vld [vmem:[#allocation25_spill] sm:$0xff]  ;;  %v7901_v36 = vpop.permute.xlu0 %2948  ;;  %v8882_v46 = vld [vmem:[#allocation27_spill] sm:$0xff] }
 0x3bf   : > { %v8878_v16 = vrot.slane %v7689_v22, 2  ;;  %v2525_v35 = vadd.f32 %v8879_v51, %v2476_v40  ;;  %v2724_v45 = vadd.f32 %v8880_v8, %v2661_v50  ;;  %v7894_v38 = vmul.f32 %v3604_v12, %v7128_v58  ;;  %v8883_v50 = vld [vmem:[#allocation35_spill] sm:$0xff] }
 0x3c0   : > { %v3622_v23 = vmul.f32 %v3621_v4, %v7126_v57  ;;  %v2589_v26 = vadd.f32 %v8881_v39, %v2538_v63  ;;  %v2781_v41 = vadd.f32 %v7427_v25, %v2725_v34  ;;  %v7899_v55 = vadd.f32 %v3261_v13, %v3221_v31  ;;  %v8884_v34 = vld [vmem:[#allocation37_spill] sm:$0xff]  ;;  %v8890_v39 = vld [vmem:[#allocation51_spill] sm:$0xff] }
 0x3c1   : > { %v3137_v53 = vadd.f32 %v8878_v16, %v3098_v49  ;;  %v3100_v28 = vstv %s7840_s11  ;;  %v2573_v49 = vadd.f32 %v8882_v46, %v2525_v35  ;;  %v2780_v61 = vadd.f32 %v7448_v19, %v2724_v45  ;;  %s4757_s11 = sld [smem:[#allocation7 + $0x44]] }
 0x3c2   : > { %v7909_v40 = vmul.f32 %v3621_v4, %v7128_v58  ;;  %v7912_v11 = vmul.f32 %v3604_v12, %v7126_v57  ;;  %v2640_v62 = vadd.f32 %v8883_v50, %v2589_v26  ;;  %v2826_v25 = vadd.f32 %v7574_v2, %v2781_v41  ;;  %v8886_v57 = vld [vmem:[#allocation44_spill] sm:$0xff] }
 0x3c3   : > { %v3188_v63 = vadd.f32 %v7788_v18, %v3137_v53  ;;  %v3139_v0 = vstv %s7856_s12  ;;  %v2624_v31 = vadd.f32 %v8884_v34, %v2573_v49  ;;  %v2825_v16 = vadd.f32 %v7592_v43, %v2780_v61  ;;  %v8887_v18 = vld [vmem:[#allocation46_spill] sm:$0xff]  ;;  %s4758_s12 = sld [smem:[#allocation7 + $0x8f]] }
 0x3c4   : > { %v8885_v51 = vrot.slane %v7492_v5, 1  ;;  %v3102_v4 = vmul.f32 %v3100_v28, %v7128_v58  ;;  %v2703_v12 = vadd.f32 %v8886_v57, %v2640_v62  ;;  %v2877_v35 = vadd.f32 %v7714_v3, %v2826_v25  ;;  %v7937_v5 = vld [vmem:[#allocation2 + $0x38] sm:$0xff]  ;;  %v8891_v62 = vld [vmem:[#allocation53_spill] sm:$0xff] }
 0x3c5   : > { %v3610_v2 = vrot.slane %v7894_v38, 2  ;;  %v3626_v8 = vrot.slane %v3622_v23, 2  ;;  %v2683_v53 = vadd.f32 %v8887_v18, %v2624_v31  ;;  %v2876_v45 = vadd.f32 %v7733_v9, %v2825_v16  ;;  %3578 = vrot.lane.b32.xlu2 %v7662_v21, %s5010_s18  ;;  %v7947_v9 = vld [vmem:[#allocation2 + $0x30] sm:$0xff]  ;;  %v2991_v46 = vpop.permute.xlu1 %2990  ;;  %v3277_v49 = vpop.permute.xlu2 %3276 }
 0x3c6   : > { %v7923_v19 = vsel %vm498_vm5, %v3092_v29, %v8885_v51  ;;  %v8888_v43 = vrot.slane %v7604_v48, 1  ;;  %v3627_v58 = vrot.slane %v7909_v40, 2  ;;  %v7940_v3 = vmul.f32 %v7937_v5, %v3139_v0  ;;  %v8889_v29 = vld [vmem:[#allocation50_spill] sm:$0xff]  ;;  %3561 = vrot.lane.b32.xlu0 %v7679_v54, %s5010_s18  ;;  %v2989_v54 = vpop.permute.xlu0 %2988 }
 0x3c7   : > { %v2766_v13 = vadd.f32 %v8889_v29, %v2703_v12  ;;  %v2932_v23 = vadd.f32 %v7828_v14, %v2877_v35  ;;  %v3239_v48 = vadd.f32 %v7847_v20, %v3188_v63  ;;  %v3101_v21 = vmul.f32 %v7947_v9, %v3100_v28  ;;  %v8892_v63 = vld [vmem:[#allocation55_spill] sm:$0xff]  ;;  %v8893_v35 = vld [vmem:[#allocation61_spill] sm:$0xff] }
 0x3c8   : > { %3563 = vrot.lane.b32.xlu1 %v8888_v43, %s5010_s18  ;;  %v2746_v26 = vadd.f32 %v8890_v39, %v2683_v53  ;;  %v2931_v41 = vadd.f32 %v7837_v1, %v2876_v45  ;;  %v3106_v61 = vrot.slane %v3102_v4, 2  ;;  %v3142_v50 = vmul.f32 %v3139_v0, %v7259_v15  ;;  %v8894_v53 = vld [vmem:[#allocation63_spill] sm:$0xff]  ;;  %v8897_v39 = vld [vmem:[#allocation60_spill] sm:$0xff] }
 0x3c9   : > { %v2808_v14 = vadd.f32 %v8891_v62, %v2766_v13  ;;  %v2995_v25 = vadd.f32 %v2991_v46, %v2932_v23  ;;  %v7954_v34 = vadd.f32 %v3277_v49, %v3239_v48  ;;  %v3190_v20 = vstv %s7904_s8  ;;  %s4759_s8 = sld [smem:[#allocation7 + $0xda]] }
 0x3ca   : > { %v2795_v28 = vadd.f32 %v8892_v63, %v2746_v26  ;;  %v2994_v31 = vadd.f32 %v2989_v54, %v2931_v41  ;;  %v3628_v1 = vsel %vm538_vm6, %v3626_v8, %v3627_v58  ;;  %v3140_v16 = vmul.f32 %v7947_v9, %v3139_v0 }
 0x3cb   : > { %v2859_v51 = vadd.f32 %v7637_v7, %v2808_v14  ;;  %v3047_v4 = vadd.f32 %v7667_v32, %v2995_v25  ;;  %v3147_v57 = vrot.slane %v7940_v3, 3  ;;  %v3105_v12 = vrot.slane %v3101_v21, 2 }
 0x3cc   : > { %v2843_v18 = vadd.f32 %v8893_v35, %v2795_v28  ;;  %v3046_v45 = vadd.f32 %v8894_v53, %v2994_v31  ;;  %v3149_v43 = vrot.slane %v3142_v50, 3  ;;  %v3192_v29 = vmul.f32 %v7937_v5, %v3190_v20 }
 0x3cd   : > { %v2910_v13 = vadd.f32 %v7774_v37, %v2859_v51  ;;  %v8895_v8 = vrot.slane %v7684_v33, 1  ;;  %v3193_v7 = vmul.f32 %v3190_v20, %v7259_v15  ;;  %v3191_v32 = vmul.f32 %v7947_v9, %v3190_v20  ;;  %3597 = vrot.lane.b32.xlu2 %v3593_v52, %s5010_s18  ;;  %v3031_v60 = vpop.permute.xlu1 %3030  ;;  %v3309_v52 = vpop.permute.xlu2 %3308  ;;  %v8899_v20 = vld [vmem:[#allocation62_spill] sm:$0xff] }
 0x3ce   : > { %v2894_v23 = vadd.f32 %v7781_v56, %v2843_v18  ;;  %v3071_v3 = vadd.f32 %v7833_v30, %v3046_v45  ;;  %v3609_v37 = vrot.slane %v7912_v11, 2  ;;  %v8896_v48 = vstv %s7585_s29  ;;  %v3012_v62 = vpop.permute.xlu0 %3011  ;;  %v8900_v51 = vld [vmem:[#allocation54_spill] sm:$0xff]  ;;  %s4750_s29 = sld [smem:[#allocation7 + $0xcb]] }
 0x3cf   : > { %v3072_v0 = vadd.f32 %v8895_v8, %v3047_v4  ;;  %v3127_v33 = vmul.f32 %v7947_v9, %v8896_v48  ;;  %v2973_v21 = vadd.f32 %v7891_v6, %v2910_v13  ;;  %v8898_v26 = vrot.slane %v8897_v39, 1 }
 0x3d0   : > { %3595 = vrot.lane.b32.xlu1 %v7880_v47, %s5010_s18  ;;  %v3107_v30 = vsel %vm538_vm6, %v3105_v12, %v3106_v61  ;;  %v3146_v47 = vrot.slane %v3140_v16, 3  ;;  %v2953_v41 = vadd.f32 %v7901_v36, %v2894_v23  ;;  %v3150_v11 = vsel %vm580_vm7, %v3147_v57, %v3149_v43  ;;  %v8901_v43 = vld [vmem:[#allocation52_spill] sm:$0xff]  ;;  %v8904_v23 = vld [vmem:[#allocation58_spill] sm:$0xff] }
 0x3d1   : > { %3580 = vrot.lane.b32.xlu0 %v8898_v26, %s5010_s18  ;;  %v3111_v56 = vadd.f32 %v3106_v61, %v3072_v0  ;;  %v3198_v46 = vrot.slane %v3192_v29, 4  ;;  %v3110_v49 = vadd.f32 %v3107_v30, %v3071_v3  ;;  %v3036_v6 = vadd.f32 %v3031_v60, %v2973_v21 }
 0x3d2   : > { %v7996_v50 = vadd.f32 %v3309_v52, %v7899_v55  ;;  %v3200_v14 = vrot.slane %v3193_v7, 4  ;;  %v3638_v25 = vstv %s7957_s5  ;;  %v3016_v61 = vadd.f32 %v3012_v62, %v2953_v41  ;;  %s4760_s5 = sld [smem:[#allocation7 + $0x49]] }
 0x3d3   : > { %v3197_v54 = vrot.slane %v3191_v32, 4  ;;  %v3131_v36 = vrot.slane %v3127_v33, 2  ;;  %v3174_v63 = vmul.f32 %v7947_v9, %v8899_v20  ;;  %v3058_v28 = vadd.f32 %v7793_v27, %v3036_v6  ;;  %v8905_v33 = vld [vmem:[#allocation56_spill] sm:$0xff] }
 0x3d4   : > { %v3154_v31 = vadd.f32 %v3150_v11, %v3111_v56  ;;  %v3148_v16 = vsel %vm580_vm7, %v3146_v47, %v3147_v57  ;;  %v3159_v55 = vmul.f32 %v8900_v51, %v7259_v15  ;;  %v3053_v4 = vadd.f32 %v7863_v17, %v3016_v61  ;;  %v8907_v11 = vld [vmem:[#allocation57_spill] sm:$0xff] }
 0x3d5   : > { %v3153_v12 = vadd.f32 %v3148_v16, %v3110_v49  ;;  %v3639_v35 = vmul.f32 %v7947_v9, %v3638_v25  ;;  %v3640_v18 = vmul.f32 %v7937_v5, %v3638_v25  ;;  %v3097_v53 = vadd.f32 %v7923_v19, %v3058_v28  ;;  %3629 = vrot.lane.b32.xlu2 %v3628_v1, %s5010_s18  ;;  %v3328_v3 = vpop.permute.xlu2 %3327 }
 0x3d6   : > { %v3611_v45 = vsel %vm538_vm6, %v3609_v37, %v3610_v2  ;;  %v3201_v27 = vsel %vm632_vm8, %v3198_v46, %v3200_v14  ;;  %v3225_v57 = vmul.f32 %v7947_v9, %v7720_v44  ;;  %v8902_v29 = vrot.slane %v8901_v43, 1  ;;  %v3247_v56 = vpop.permute.xlu0 %3246  ;;  %v8044_v14 = vld [vmem:[#allocation2 + $0x40] sm:$0x3] }
 0x3d7   : > { %v3199_v17 = vsel %vm632_vm8, %v3197_v54, %v3198_v46  ;;  %v8903_v19 = vrot.slane %v7689_v22, 2  ;;  %v3180_v0 = vrot.slane %v3174_v63, 3  ;;  %v3205_v44 = vadd.f32 %v3201_v27, %v3154_v31  ;;  %v8909_v63 = vld [vmem:[#allocation59_spill] sm:$0xff] }
 0x3d8   : > { %v3085_v13 = vadd.f32 %v8902_v29, %v3053_v4  ;;  %3614 = vrot.lane.b32.xlu1 %v3610_v2, %s5010_s18  ;;  %v3166_v32 = vrot.slane %v3159_v55, 3  ;;  %v3210_v38 = vmul.f32 %v8904_v23, %v7259_v15  ;;  %v3249_v2 = vpop.permute.xlu1 %3248  ;;  %v3204_v1 = vadd.f32 %v3199_v17, %v3153_v12 }
 0x3d9   : > { %v3133_v8 = vsel %vm538_vm6, %v3131_v36, %v8903_v19  ;;  %3612 = vrot.lane.b32.xlu0 %v3611_v45, %s5010_s18  ;;  %v3643_v37 = vrot.slane %v3639_v35, 2  ;;  %v3644_v48 = vrot.slane %v3640_v18, 2  ;;  %v8906_v22 = vrot.slane %v8905_v33, 2 }
 0x3da   : > { %v3136_v7 = vadd.f32 %v3133_v8, %v3097_v53  ;;  %v3253_v39 = vadd.f32 %v3249_v2, %v3205_v44  ;;  %v3332_v26 = vadd.f32 %v3328_v3, %v7954_v34  ;;  %v3655_v30 = vstv %s7993_s22  ;;  %s4761_s22 = sld [smem:[#allocation7 + $0x94]] }
 0x3db   : > { %v3124_v21 = vadd.f32 %v8906_v22, %v3085_v13  ;;  %v3676_v47 = vstv %s7999_s4  ;;  %v3252_v41 = vadd.f32 %v3247_v56, %v3204_v1  ;;  %v3182_v15 = vsel %vm580_vm7, %v3180_v0, %v3181_v42  ;;  %s4762_s4 = sld [smem:[#allocation7 + $0xdf]] }
 0x3dc   : > { %v3231_v60 = vrot.slane %v3225_v57, 4  ;;  %v3187_v52 = vadd.f32 %v3182_v15, %v3136_v7  ;;  %v8908_v46 = vrot.slane %v8907_v11, 3  ;;  %v3217_v6 = vrot.slane %v3210_v38, 4 }
 0x3dd   : > { %v3657_v34 = vmul.f32 %v7937_v5, %v3655_v30  ;;  %v3658_v25 = vmul.f32 %v8044_v14, %v3655_v30  ;;  %v3677_v61 = vmul.f32 %v7947_v9, %v3676_v47  ;;  %v3645_v59 = vsel %vm538_vm6, %v3643_v37, %v3644_v48  ;;  %3648 = vrot.lane.b32.xlu2 %v3644_v48, %s5010_s18  ;;  %v3360_v51 = vpop.permute.xlu2 %3359 }
 0x3de   : > { %v3167_v49 = vsel %vm580_vm7, %v8908_v46, %v3166_v32  ;;  %v3678_v42 = vmul.f32 %v7937_v5, %v3676_v47  ;;  %v3233_v54 = vsel %vm632_vm8, %v3231_v60, %v3232_v10  ;;  %v3656_v36 = vmul.f32 %v7947_v9, %v3655_v30  ;;  %v3263_v18 = vpop.permute.xlu0 %3262 }
 0x3df   : > { %v3171_v62 = vadd.f32 %v3167_v49, %v3124_v21  ;;  %v3238_v20 = vadd.f32 %v3233_v54, %v3187_v52  ;;  %v8910_v28 = vrot.slane %v8909_v63, 4  ;;  %v3663_v4 = vrot.slane %v3657_v34, 3 }
 0x3e0   : > { %3646 = vrot.lane.b32.xlu1 %v3645_v59, %s5010_s18  ;;  %v3275_v16 = vpop.permute.xlu1 %3274  ;;  %v3665_v12 = vrot.slane %v3658_v25, 3  ;;  %v3683_v24 = vrot.slane %v3677_v61, 3  ;;  %v3365_v35 = vadd.f32 %v3360_v51, %v7996_v50  ;;  %v3684_v53 = vrot.slane %v3678_v42, 3 }
 0x3e1   : > { %3631 = vrot.lane.b32.xlu0 %v3627_v58, %s5010_s18  ;;  %v3218_v31 = vsel %vm632_vm8, %v8910_v28, %v3217_v6  ;;  %v3280_v10 = vadd.f32 %v3275_v16, %v3238_v20  ;;  %v3697_v45 = vstv %s8035_s19  ;;  %v3662_v58 = vrot.slane %v3656_v36, 3  ;;  %s4763_s19 = sld [smem:[#allocation7 + $0x36]] }
 0x3e2   : > { %v3222_v55 = vadd.f32 %v3218_v31, %v3171_v62  ;;  %v3698_v27 = vmul.f32 %v7947_v9, %v3697_v45  ;;  %v3666_v57 = vsel %vm580_vm7, %v3663_v4, %v3665_v12  ;;  %v3685_v43 = vsel %vm580_vm7, %v3683_v24, %v3684_v53 }
 0x3e3   : > { %v3699_v29 = vmul.f32 %v7937_v5, %v3697_v45  ;;  %v3700_v13 = vmul.f32 %v8044_v14, %v3697_v45  ;;  %v3664_v50 = vsel %vm580_vm7, %v3662_v58, %v3663_v4  ;;  %v3679_v17 = vmul.f32 %v8044_v14, %v3676_v47 }
 0x3e4   : > { %v3267_v40 = vadd.f32 %v3263_v18, %v3222_v55  ;;  %v3704_v0 = vrot.slane %v3698_v27, 3  ;;  %v3718_v44 = vstv %s4745_s21  ;;  %v3739_v37 = vstv %s4746_s26  ;;  %s8182_s21 = sld [smem:[#allocation7 + $0x81]] }
 0x3e5   : > { %3688 = vrot.lane.b32.xlu2 %v3685_v43, %s5010_s18  ;;  %v3705_v38 = vrot.slane %v3699_v29, 3  ;;  %v3707_v2 = vrot.slane %v3700_v13, 3  ;;  %v3686_v1 = vrot.slane %v3679_v17, 3  ;;  %v3720_v48 = vmul.f32 %v7937_v5, %v3718_v44  ;;  %s4765_s26 = sld [smem:[#allocation7 + $0xcc]] }
 0x3e6   : > { %v3292_v23 = vpop.permute.xlu0 %3291  ;;  %v3721_v33 = vmul.f32 %v8044_v14, %v3718_v44  ;;  %v3740_v56 = vmul.f32 %v7947_v9, %v3739_v37  ;;  %v3741_v30 = vmul.f32 %v7937_v5, %v3739_v37  ;;  %v3760_v52 = vstv %s4747_s24  ;;  %s4767_s24 = sld [smem:[#allocation7 + $0x86]] }
 0x3e7   : > { %v3379_v8 = vpop.permute.xlu2 %3378  ;;  %v3297_v3 = vadd.f32 %v3292_v23, %v3252_v41  ;;  %v3706_v22 = vsel %vm580_vm7, %v3704_v0, %v3705_v38  ;;  %v3708_v21 = vsel %vm580_vm7, %v3705_v38, %v3707_v2  ;;  %v3726_v15 = vrot.slane %v3720_v48, 4 }
 0x3e8   : > { %3669 = vrot.lane.b32.xlu1 %v3666_v57, %s5010_s18  ;;  %v3294_v19 = vpop.permute.xlu1 %3293  ;;  %v3383_v32 = vadd.f32 %v3379_v8, %v3332_v26  ;;  %v3719_v26 = vmul.f32 %v7947_v9, %v3718_v44  ;;  %v3728_v60 = vrot.slane %v3721_v33, 4  ;;  %v3746_v6 = vrot.slane %v3740_v56, 4 }
 0x3e9   : > { %3667 = vrot.lane.b32.xlu0 %v3664_v50, %s5010_s18  ;;  %v3298_v7 = vadd.f32 %v3294_v19, %v3253_v39  ;;  %v3687_v39 = vsel %vm580_vm7, %v3684_v53, %v3686_v1  ;;  %v3747_v62 = vrot.slane %v3741_v30, 4  ;;  %v3761_v61 = vmul.f32 %v7947_v9, %v3760_v52 }
 0x3ea   : > { %v3725_v25 = vrot.slane %v3719_v26, 4  ;;  %v3729_v59 = vsel %vm632_vm8, %v3726_v15, %v3728_v60  ;;  %v3762_v54 = vmul.f32 %v7937_v5, %v3760_v52  ;;  %v3763_v36 = vmul.f32 %v8044_v14, %v3760_v52 }
 0x3eb   : > { %v3748_v42 = vsel %vm632_vm8, %v3746_v6, %v3747_v62  ;;  %v3742_v63 = vmul.f32 %v8044_v14, %v3739_v37  ;;  %v3767_v16 = vrot.slane %v3761_v61, 4  ;;  %v3781_v29 = vstv %s4748_s25  ;;  %s4766_s25 = sld [smem:[#allocation7 + $0x3b]] }
 0x3ec   : > { %v3727_v20 = vsel %vm632_vm8, %v3725_v25, %v3726_v15  ;;  %v3768_v12 = vrot.slane %v3762_v54, 4  ;;  %v3770_v24 = vrot.slane %v3763_v36, 4  ;;  %v3795_v13 = vstv %s8095_s27  ;;  %s4770_s27 = sld [smem:[#allocation7 + $0x8b]] }
 0x3ed   : > { %3711 = vrot.lane.b32.xlu2 %v3708_v21, %s5010_s18  ;;  %v3783_v17 = vmul.f32 %v7937_v5, %v3781_v29  ;;  %v3796_v19 = vmul.f32 %v7947_v9, %v3795_v13  ;;  %v3782_v8 = vmul.f32 %v7947_v9, %v3781_v29  ;;  %v3809_v38 = vstv %s4750_s29  ;;  %s4769_s29 = sld [smem:[#allocation7 + $0x40]] }
 0x3ee   : > { %v3769_v18 = vsel %vm632_vm8, %v3767_v16, %v3768_v12  ;;  %v3771_v53 = vsel %vm632_vm8, %v3768_v12, %v3770_v24  ;;  %v3823_v1 = vstv %s4751_s6  ;;  %v3810_v37 = vmul.f32 %v7947_v9, %v3809_v38  ;;  %s4772_s6 = sld [smem:[#allocation7 + $0x45]] }
 0x3ef   : > { %v3419_v41 = vpop.permute.xlu2 %3418  ;;  %v3311_v49 = vpop.permute.xlu0 %3310  ;;  %v3811_v48 = vmul.f32 %v7937_v5, %v3809_v38  ;;  %v3797_v33 = vmul.f32 %v7937_v5, %v3795_v13  ;;  %v3825_v56 = vmul.f32 %v7937_v5, %v3823_v1  ;;  %v3824_v30 = vmul.f32 %v7947_v9, %v3823_v1 }
 0x3f0   : > { %3709 = vrot.lane.b32.xlu1 %v3706_v22, %s5010_s18  ;;  %v3326_v47 = vpop.permute.xlu1 %3325  ;;  %v3424_v46 = vadd.f32 %v3419_v41, %v3365_v35  ;;  %v3315_v34 = vadd.f32 %v3311_v49, %v3267_v40  ;;  %v3749_v35 = vrot.slane %v3742_v63, 4  ;;  %v3891_v16 = vstv %s4755_s7  ;;  %s4774_s7 = sld [smem:[#allocation7 + $0xdb]] }
 0x3f1   : > { %3690 = vrot.lane.b32.xlu0 %v3687_v39, %s5010_s18  ;;  %v3331_v11 = vadd.f32 %v3326_v47, %v3280_v10  ;;  %v3828_v49 = vrot.slane %v3824_v30, 1  ;;  %v3893_v12 = vmul.f32 %v7937_v5, %v3891_v16  ;;  %v3908_v13 = vstv %s4756_s9  ;;  %s4776_s9 = sld [smem:[#allocation7 + $0x95]] }
 0x3f2   : > { %v3750_v45 = vsel %vm632_vm8, %v3747_v62, %v3749_v35 }
 0x3f5   : > { %3751 = vrot.lane.b32.xlu2 %v3748_v42, %s5010_s18 }
 0x3f7   : > { %v3442_v31 = vpop.permute.xlu2 %3441  ;;  %v3343_v4 = vpop.permute.xlu0 %3342 }
 0x3f8   : > { %3732 = vrot.lane.b32.xlu1 %v3729_v59, %s5010_s18  ;;  %v3345_v28 = vpop.permute.xlu1 %3344  ;;  %v3446_v55 = vadd.f32 %v3442_v31, %v3383_v32  ;;  %v3348_v10 = vadd.f32 %v3343_v4, %v3297_v3  ;;  %v3840_v3 = vstv %s4752_s30  ;;  %v3892_v4 = vmul.f32 %v7947_v9, %v3891_v16  ;;  %s4771_s30 = sld [smem:[#allocation7 + $0xd6]] }
 0x3f9   : > { %3730 = vrot.lane.b32.xlu0 %v3727_v20, %s5010_s18  ;;  %v3349_v51 = vadd.f32 %v3345_v28, %v3298_v7  ;;  %v3841_v22 = vmul.f32 %v7947_v9, %v3840_v3  ;;  %v3842_v21 = vmul.f32 %v7937_v5, %v3840_v3  ;;  %v3988_v16 = vstv %s4760_s5  ;;  %s5014_s5 = smov 92  }
 0x3fb   : > { %v3845_v60 = vrot.slane %v3841_v22, 1  ;;  %v3846_v52 = vrot.slane %v3842_v21, 1 }
 0x3fd   : > { %3774 = vrot.lane.b32.xlu2 %v3771_v53, %s5010_s18  ;;  %v3847_v62 = vsel %vm498_vm5, %v3845_v60, %v3846_v52 }
 0x3ff   : > { %v3482_v58 = vpop.permute.xlu2 %3481 }
 0x400   : > { %3772 = vrot.lane.b32.xlu1 %v3769_v18, %s5010_s18  ;;  %v3377_v40 = vpop.permute.xlu1 %3376  ;;  %v3487_v57 = vadd.f32 %v3482_v58, %v3424_v46  ;;  %v3362_v43 = vpop.permute.xlu0 %3361  ;;  %v3829_v46 = vrot.slane %v3825_v56, 1  ;;  %v3896_v58 = vrot.slane %v3892_v4, 2 }
 0x401   : > { %3753 = vrot.lane.b32.xlu0 %v3750_v45, %s5010_s18  ;;  %v3382_v27 = vadd.f32 %v3377_v40, %v3331_v11  ;;  %v3366_v50 = vadd.f32 %v3362_v43, %v3315_v34  ;;  %s4753_s18 = sld [smem:[#allocation7 + $0xd0]] }
 0x402   : > { %v3830_v61 = vsel %vm498_vm5, %v3828_v49, %v3829_v46  ;;  %v3967_v49 = vstv %s4759_s8  ;;  %s5013_s8 = smov 110  }
 0x405   : > { %3800 = vrot.lane.b32.xlu2 %v3796_v19, %s5011_s23  ;;  %v3910_v19 = vmul.f32 %v7937_v5, %v3908_v13 }
 0x407   : > { %v3505_v44 = vpop.permute.xlu2 %3504  ;;  %v3857_v6 = vstv %s4753_s18  ;;  %v3914_v1 = vrot.slane %v3910_v19, 2  ;;  %s4773_s18 = sld [smem:[#allocation7 + $0x90]] }
 0x408   : > { %3788 = vrot.lane.b32.xlu1 %v3783_v17, %s5011_s23  ;;  %v3400_v0 = vpop.permute.xlu1 %3399  ;;  %v3509_v32 = vadd.f32 %v3505_v44, %v3446_v55  ;;  %v3398_v23 = vpop.permute.xlu0 %3397  ;;  %v3858_v34 = vmul.f32 %v7947_v9, %v3857_v6  ;;  %v3859_v25 = vmul.f32 %v7937_v5, %v3857_v6  ;;  %v3909_v17 = vmul.f32 %v7947_v9, %v3908_v13 }
 0x409   : > { %3786 = vrot.lane.b32.xlu0 %v3782_v8, %s5011_s23  ;;  %v3404_v7 = vadd.f32 %v3400_v0, %v3349_v51  ;;  %v3403_v2 = vadd.f32 %v3398_v23, %v3348_v10  ;;  %v3874_v51 = vstv %s4754_s28  ;;  %s4775_s28 = sld [smem:[#allocation7 + $0x4a]] }
 0x40a   : > { %v3862_v63 = vrot.slane %v3858_v34, 1  ;;  %v3863_v28 = vrot.slane %v3859_v25, 1  ;;  %v3876_v24 = vmul.f32 %v7937_v5, %v3874_v51  ;;  %v3875_v10 = vmul.f32 %v7947_v9, %v3874_v51 }
 0x40b   : > { %v3913_v3 = vrot.slane %v3909_v17, 2  ;;  %v3968_v34 = vmul.f32 %v7947_v9, %v3967_v49  ;;  %v3969_v25 = vmul.f32 %v7937_v5, %v3967_v49 }
 0x40c   : > { %v3864_v55 = vsel %vm498_vm5, %v3862_v63, %v3863_v28  ;;  %v3880_v43 = vrot.slane %v3876_v24, 2  ;;  %v3879_v29 = vrot.slane %v3875_v10, 2  ;;  %v4009_v24 = vstv %s4761_s22  ;;  %s4793_s22 = sld [smem:[#allocation8 + $0x2]] }
 0x40d   : > { %3816 = vrot.lane.b32.xlu2 %v3811_v48, %s5011_s23  ;;  %v3915_v21 = vsel %vm538_vm6, %v3913_v3, %v3914_v1 }
 0x40e   : > { %v3881_v8 = vsel %vm538_vm6, %v3879_v29, %v3880_v43 }
 0x40f   : > { %v3531_v26 = vpop.permute.xlu2 %3530 }
 0x410   : > { %3814 = vrot.lane.b32.xlu1 %v3810_v37, %s5011_s23  ;;  %v3440_v39 = vpop.permute.xlu1 %3439  ;;  %v3536_v41 = vadd.f32 %v3531_v26, %v3487_v57  ;;  %v3421_v15 = vpop.permute.xlu0 %3420 }
 0x411   : > { %3802 = vrot.lane.b32.xlu0 %v3797_v33, %s5011_s23  ;;  %v3445_v47 = vadd.f32 %v3440_v39, %v3382_v27  ;;  %v3425_v11 = vadd.f32 %v3421_v15, %v3366_v50  ;;  %v3897_v27 = vrot.slane %v3893_v12, 2 }
 0x413   : > { %v3898_v50 = vsel %vm538_vm6, %v3896_v58, %v3897_v27 }
 0x415   : > { %3848 = vrot.lane.b32.xlu2 %v3847_v62, %s5011_s23 }
 0x417   : > { %v3547_v42 = vpop.permute.xlu2 %3546 }
 0x418   : > { %3833 = vrot.lane.b32.xlu1 %v3829_v46, %s5011_s23  ;;  %v3463_v59 = vpop.permute.xlu1 %3462  ;;  %v3551_v36 = vadd.f32 %v3547_v42, %v3509_v32  ;;  %v3461_v20 = vpop.permute.xlu0 %3460  ;;  %v3946_v32 = vstv %s4758_s12  ;;  %v3970_v42 = vmul.f32 %v8044_v14, %v3967_v49  ;;  %s8281_s12 = sld [smem:[#allocation8 + $0x1]] }
 0x419   : > { %3831 = vrot.lane.b32.xlu0 %v3830_v61, %s5011_s23  ;;  %v3467_v54 = vadd.f32 %v3463_v59, %v3404_v7  ;;  %v3466_v31 = vadd.f32 %v3461_v20, %v3403_v2  ;;  %v3925_v7 = vstv %s4757_s11  ;;  %v3947_v22 = vmul.f32 %v7947_v9, %v3946_v32  ;;  %s4777_s11 = sld [smem:[#allocation7 + $0xe0]] }
 0x41a   : > { %v3927_v48 = vmul.f32 %v7937_v5, %v3925_v7  ;;  %v3928_v33 = vmul.f32 %v8044_v14, %v3925_v7  ;;  %v3948_v56 = vmul.f32 %v7937_v5, %v3946_v32  ;;  %v3926_v30 = vmul.f32 %v7947_v9, %v3925_v7 }
 0x41b   : > { %v3953_v15 = vrot.slane %v3947_v22, 3  ;;  %v3977_v12 = vrot.slane %v3970_v42, 3  ;;  %v4012_v22 = vmul.f32 %v8044_v14, %v4009_v24  ;;  %v4065_v42 = vstv %s8182_s21 }
 0x41c   : > { %v3954_v46 = vrot.slane %v3948_v56, 3  ;;  %v3932_v62 = vrot.slane %v3926_v30, 3 }
 0x41d   : > { %3867 = vrot.lane.b32.xlu2 %v3863_v28, %s5011_s23  ;;  %v3974_v28 = vrot.slane %v3968_v34, 3 }
 0x41e   : > { %v3955_v59 = vsel %vm580_vm7, %v3953_v15, %v3954_v46 }
 0x41f   : > { %v3579_v18 = vpop.permute.xlu2 %3578 }
 0x420   : > { %3865 = vrot.lane.b32.xlu1 %v3864_v55, %s5011_s23  ;;  %v3503_v35 = vpop.permute.xlu1 %3502  ;;  %v3584_v45 = vadd.f32 %v3579_v18, %v3536_v41  ;;  %v3484_v40 = vpop.permute.xlu0 %3483  ;;  %v3935_v41 = vrot.slane %v3928_v33, 3  ;;  %v3990_v18 = vmul.f32 %v7937_v5, %v3988_v16 }
 0x421   : > { %3850 = vrot.lane.b32.xlu0 %v3846_v52, %s5011_s23  ;;  %v3508_v53 = vadd.f32 %v3503_v35, %v3445_v47  ;;  %v3488_v57 = vadd.f32 %v3484_v40, %v3425_v11  ;;  %v3933_v47 = vrot.slane %v3927_v48, 3 }
 0x423   : > { %v3936_v61 = vsel %vm580_vm7, %v3933_v47, %v3935_v41 }
 0x425   : > { %3899 = vrot.lane.b32.xlu2 %v3898_v50, %s5011_s23  ;;  %v3996_v50 = vrot.slane %v3990_v18, 4 }
 0x427   : > { %v3598_v44 = vpop.permute.xlu2 %3597 }
 0x428   : > { %3884 = vrot.lane.b32.xlu1 %v3880_v43, %s5011_s23  ;;  %v3519_v0 = vpop.permute.xlu1 %3518  ;;  %v3602_v38 = vadd.f32 %v3598_v44, %v3551_v36  ;;  %v3517_v2 = vpop.permute.xlu0 %3516  ;;  %v3949_v36 = vmul.f32 %v8044_v14, %v3946_v32  ;;  %v3989_v43 = vmul.f32 %v7947_v9, %v3988_v16  ;;  %v4030_v32 = vstv %s4762_s4  ;;  %s5015_s4 = smov 74  }
 0x429   : > { %3882 = vrot.lane.b32.xlu0 %v3881_v8, %s5011_s23  ;;  %v3523_v23 = vadd.f32 %v3519_v0, %v3467_v54  ;;  %v3522_v37 = vadd.f32 %v3517_v2, %v3466_v31  ;;  %v3934_v54 = vsel %vm580_vm7, %v3932_v62, %v3933_v47  ;;  %v3975_v31 = vrot.slane %v3969_v25, 3 }
 0x42a   : > { %v3956_v35 = vrot.slane %v3949_v36, 3  ;;  %v4031_v2 = vmul.f32 %v7947_v9, %v4030_v32  ;;  %v4033_v48 = vmul.f32 %v8044_v14, %v4030_v32 }
 0x42b   : > { %v3976_v40 = vsel %vm580_vm7, %v3974_v28, %v3975_v31  ;;  %v3978_v58 = vsel %vm580_vm7, %v3975_v31, %v3977_v12 }
 0x42c   : > { %v4037_v30 = vrot.slane %v4031_v2, 4  ;;  %v4040_v15 = vrot.slane %v4033_v48, 4 }
 0x42d   : > { %3918 = vrot.lane.b32.xlu2 %v3914_v1, %s5011_s23 }
 0x42f   : > { %v3630_v26 = vpop.permute.xlu2 %3629 }
 0x430   : > { %3916 = vrot.lane.b32.xlu1 %v3915_v21, %s5011_s23  ;;  %v3545_v39 = vpop.permute.xlu1 %3544  ;;  %v3635_v52 = vadd.f32 %v3630_v26, %v3584_v45  ;;  %v3533_v11 = vpop.permute.xlu0 %3532  ;;  %v4010_v45 = vmul.f32 %v7947_v9, %v4009_v24 }
 0x431   : > { %3901 = vrot.lane.b32.xlu0 %v3897_v27, %s5011_s23  ;;  %v3550_v60 = vadd.f32 %v3545_v39, %v3508_v53  ;;  %v3537_v6 = vadd.f32 %v3533_v11, %v3488_v57  ;;  %v3991_v53 = vmul.f32 %v8044_v14, %v3988_v16  ;;  %v4011_v27 = vmul.f32 %v7937_v5, %v4009_v24 }
 0x432   : > { %v3957_v57 = vsel %vm580_vm7, %v3954_v46, %v3956_v35  ;;  %v4016_v19 = vrot.slane %v4010_v45, 4  ;;  %v4110_v24 = vstv %s4767_s24 }
 0x433   : > { %v3998_v17 = vrot.slane %v3991_v53, 4  ;;  %v4017_v7 = vrot.slane %v4011_v27, 4  ;;  %v4067_v53 = vmul.f32 %v7937_v5, %v4065_v42  ;;  %v4111_v45 = vmul.f32 %v7947_v9, %v4110_v24 }
 0x435   : > { %3958 = vrot.lane.b32.xlu2 %v3955_v59, %s5011_s23  ;;  %v3999_v3 = vsel %vm632_vm8, %v3996_v50, %v3998_v17  ;;  %v4018_v1 = vsel %vm632_vm8, %v4016_v19, %v4017_v7  ;;  %v4051_v59 = vstv %s4763_s19  ;;  %v4115_v17 = vrot.slane %v4111_v45, 1  ;;  %v8234_v45 = vld [vmem:[#allocation2 + $0x30] sm:$0xff]  ;;  %s4534_s19 = sshll.u32 %s4522_s16, 2 }
 0x436   : > { %v4053_v36 = vmul.f32 %v7937_v5, %v4051_v59  ;;  %p219_p5 = scmp.lt.s32.totalorder %s4534_s19, 7 }
 0x437   : > { %v3649_v63 = vpop.permute.xlu2 %3648 }
 0x438   : > { %3939 = vrot.lane.b32.xlu1 %v3936_v61, %s5011_s23  ;;  %v3653_v55 = vadd.f32 %v3649_v63, %v3602_v38  ;;  %v3562_v4 = vpop.permute.xlu0 %3561  ;;  %v3995_v38 = vrot.slane %v3989_v43, 4  ;;  %v4052_v63 = vmul.f32 %v7947_v9, %v4051_v59  ;;  %s8916_s19 = smov (!%p219_p5, %s4534_s19), 7 }
 0x439   : > { %3937 = vrot.lane.b32.xlu0 %v3934_v54, %s5011_s23  ;;  %v3567_v10 = vadd.f32 %v3562_v4, %v3522_v37  ;;  %v4032_v37 = vmul.f32 %v7937_v5, %v4030_v32  ;;  %v4079_v4 = vstv %s4765_s26  ;;  %s4807_s21 = smul.u32 48, %s8916_s19 }
 0x43a   : > { %v3564_v20 = vpop.permute.xlu1 %3563  ;;  %v3997_v33 = vsel %vm632_vm8, %v3995_v38, %v3996_v50  ;;  %v4080_v35 = vmul.f32 %v7947_v9, %v4079_v4  ;;  %v4081_v18 = vmul.f32 %v7937_v5, %v4079_v4 }
 0x43b   : > { %v3568_v51 = vadd.f32 %v3564_v20, %v3523_v23  ;;  %v4038_v41 = vrot.slane %v4032_v37, 4  ;;  %v4066_v20 = vmul.f32 %v7947_v9, %v4065_v42  ;;  %v4178_v42 = vstv %s4771_s30 }
 0x43d   : > { %3981 = vrot.lane.b32.xlu2 %v3978_v58, %s5011_s23  ;;  %v4039_v11 = vsel %vm632_vm8, %v4037_v30, %v4038_v41  ;;  %v4041_v46 = vsel %vm632_vm8, %v4038_v41, %v4040_v15  ;;  %v4161_v30 = vstv %s4770_s27 }
 0x43e   : > { %v4163_v41 = vmul.f32 %v7937_v5, %v4161_v30 }
 0x43f   : > { %v3689_v13 = vpop.permute.xlu2 %3688 }
 0x440   : > { %3979 = vrot.lane.b32.xlu1 %v3976_v40, %s5011_s23  ;;  %v3694_v0 = vadd.f32 %v3689_v13, %v3635_v52  ;;  %v4019_v52 = vrot.slane %v4012_v22, 4  ;;  %v4112_v40 = vmul.f32 %v7937_v5, %v4110_v24 }
 0x441   : > { %3960 = vrot.lane.b32.xlu0 %v3957_v57, %s5011_s23 }
 0x442   : > { %v3596_v29 = vpop.permute.xlu1 %3595  ;;  %v4020_v49 = vsel %vm632_vm8, %v4017_v7, %v4019_v52  ;;  %v4116_v19 = vrot.slane %v4112_v40, 1 }
 0x443   : > { %v3601_v8 = vadd.f32 %v3596_v29, %v3550_v60  ;;  %v3581_v44 = vpop.permute.xlu0 %3580 }
 0x444   : > { %v3585_v23 = vadd.f32 %v3581_v44, %v3537_v6  ;;  %v4117_v32 = vsel %vm498_vm5, %v4115_v17, %v4116_v19 }
 0x445   : > { %4021 = vrot.lane.b32.xlu2 %v4018_v1, %s5011_s23 }
 0x447   : > { %v3712_v56 = vpop.permute.xlu2 %3711 }
 0x448   : > { %4002 = vrot.lane.b32.xlu1 %v3999_v3, %s5011_s23  ;;  %v3716_v26 = vadd.f32 %v3712_v56, %v3653_v55 }
 0x449   : > { %4000 = vrot.lane.b32.xlu0 %v3997_v33, %s5011_s23 }
 0x44a   : > { %v3615_v21 = vpop.permute.xlu1 %3614 }
 0x44b   : > { %v3619_v39 = vadd.f32 %v3615_v21, %v3568_v51  ;;  %v3613_v47 = vpop.permute.xlu0 %3612 }
 0x44c   : > { %v3618_v60 = vadd.f32 %v3613_v47, %v3567_v10  ;;  %v4093_v10 = vstv %s4766_s25  ;;  %v4162_v47 = vmul.f32 %v7947_v9, %v4161_v30  ;;  %s8302_s25 = scalar_lea.vmem %s8368_s3, %s4807_s21 }
 0x44d   : > { %4044 = vrot.lane.b32.xlu2 %v4041_v46, %s5011_s23  ;;  %v4095_v58 = vmul.f32 %v7937_v5, %v4093_v10  ;;  %v4094_v27 = vmul.f32 %v7947_v9, %v4093_v10  ;;  %v4216_v10 = vstv %s4773_s18 }
 0x44e   : > { %v4217_v40 = vmul.f32 %v8234_v45, %v4216_v10 }
 0x44f   : > { %v3752_v62 = vpop.permute.xlu2 %3751  ;;  %v4098_v44 = vrot.slane %v4094_v27, 1 }
 0x450   : > { %4042 = vrot.lane.b32.xlu1 %v4039_v11, %s5011_s23  ;;  %v3757_v25 = vadd.f32 %v3752_v62, %v3694_v0  ;;  %v4099_v0 = vrot.slane %v4095_v58, 1  ;;  %v4166_v62 = vrot.slane %v4162_v47, 2 }
 0x451   : > { %4023 = vrot.lane.b32.xlu0 %v4020_v49, %s5011_s23  ;;  %s4768_s23 = sld [smem:[#allocation7 + $0xd1]] }
 0x452   : > { %v3647_v6 = vpop.permute.xlu1 %3646  ;;  %v4100_v2 = vsel %vm498_vm5, %v4098_v44, %v4099_v0 }
 0x453   : > { %v3652_v34 = vadd.f32 %v3647_v6, %v3601_v8  ;;  %v3632_v61 = vpop.permute.xlu0 %3631 }
 0x454   : > { %v3636_v54 = vadd.f32 %v3632_v61, %v3585_v23 }
 0x455   : > { %4070 = vrot.lane.b32.xlu2 %v4066_v20, %s5012_s10  ;;  %v4180_v20 = vmul.f32 %v7937_v5, %v4178_v42 }
 0x457   : > { %v3775_v31 = vpop.permute.xlu2 %3774  ;;  %v4127_v7 = vstv %s4768_s23  ;;  %v4184_v24 = vrot.slane %v4180_v20, 2  ;;  %v4300_v20 = vstv %s4777_s11 }
 0x458   : > { %4058 = vrot.lane.b32.xlu1 %v4053_v36, %s5012_s10  ;;  %v3779_v51 = vadd.f32 %v3775_v31, %v3716_v26  ;;  %v4128_v23 = vmul.f32 %v7947_v9, %v4127_v7  ;;  %v4129_v38 = vmul.f32 %v7937_v5, %v4127_v7  ;;  %v4179_v36 = vmul.f32 %v7947_v9, %v4178_v42 }
 0x459   : > { %4056 = vrot.lane.b32.xlu0 %v4052_v63, %s5012_s10 }
 0x45a   : > { %v3670_v28 = vpop.permute.xlu1 %3669  ;;  %v4132_v22 = vrot.slane %v4128_v23, 1  ;;  %v4133_v21 = vrot.slane %v4129_v38, 1 }
 0x45b   : > { %v3674_v16 = vadd.f32 %v3670_v28, %v3619_v39  ;;  %v3668_v55 = vpop.permute.xlu0 %3667  ;;  %v4144_v39 = vstv %s4769_s29 }
 0x45c   : > { %v3673_v12 = vadd.f32 %v3668_v55, %v3618_v60  ;;  %v4134_v26 = vsel %vm498_vm5, %v4132_v22, %v4133_v21  ;;  %v4146_v15 = vmul.f32 %v7937_v5, %v4144_v39  ;;  %v4145_v60 = vmul.f32 %v7947_v9, %v4144_v39  ;;  %v8229_v5 = vld [vmem:[#allocation2 + $0x38] sm:$0xff] }
 0x45d   : > { %4086 = vrot.lane.b32.xlu2 %v4081_v18, %s5012_s10  ;;  %v4218_v58 = vmul.f32 %v8229_v5, %v4216_v10 }
 0x45e   : > { %v4150_v61 = vrot.slane %v4146_v15, 2  ;;  %v4149_v59 = vrot.slane %v4145_v60, 2 }
 0x45f   : > { %v3801_v43 = vpop.permute.xlu2 %3800  ;;  %v4224_v44 = vrot.slane %v4218_v58, 3 }
 0x460   : > { %4084 = vrot.lane.b32.xlu1 %v4080_v35, %s5012_s10  ;;  %v3806_v13 = vadd.f32 %v3801_v43, %v3757_v25  ;;  %v4151_v63 = vsel %vm538_vm6, %v4149_v59, %v4150_v61 }
 0x461   : > { %4072 = vrot.lane.b32.xlu0 %v4067_v53, %s5012_s10 }
 0x462   : > { %v3710_v57 = vpop.permute.xlu1 %3709 }
 0x463   : > { %v3715_v29 = vadd.f32 %v3710_v57, %v3652_v34  ;;  %v3691_v50 = vpop.permute.xlu0 %3690  ;;  %v4167_v34 = vrot.slane %v4163_v41, 2 }
 0x464   : > { %v3695_v8 = vadd.f32 %v3691_v50, %v3636_v54  ;;  %v4237_v50 = vstv %s4774_s7 }
 0x465   : > { %4118 = vrot.lane.b32.xlu2 %v4117_v32, %s5012_s10  ;;  %v4168_v54 = vsel %vm538_vm6, %v4166_v62, %v4167_v34  ;;  %v4238_v23 = vmul.f32 %v8234_v45, %v4237_v50 }
 0x467   : > { %v3817_v1 = vpop.permute.xlu2 %3816 }
 0x468   : > { %4103 = vrot.lane.b32.xlu1 %v4099_v0, %s5012_s10  ;;  %v3821_v48 = vadd.f32 %v3817_v1, %v3779_v51  ;;  %v4223_v0 = vrot.slane %v4217_v40, 3  ;;  %v4240_v1 = vmul.f32 %v8044_v14, %v4237_v50 }
 0x469   : > { %4101 = vrot.lane.b32.xlu0 %v4100_v2, %s5012_s10 }
 0x46a   : > { %v3733_v3 = vpop.permute.xlu1 %3732  ;;  %v4225_v2 = vsel %vm580_vm7, %v4223_v0, %v4224_v44  ;;  %v4247_v41 = vrot.slane %v4240_v1, 3 }
 0x46b   : > { %v3737_v37 = vadd.f32 %v3733_v3, %v3674_v16  ;;  %v3731_v33 = vpop.permute.xlu0 %3730  ;;  %v4195_v16 = vstv %s4772_s6  ;;  %v4239_v3 = vmul.f32 %v8229_v5, %v4237_v50 }
 0x46c   : > { %v3736_v56 = vadd.f32 %v3731_v33, %v3673_v12  ;;  %v4183_v12 = vrot.slane %v4179_v36, 2  ;;  %v4197_v35 = vmul.f32 %v8229_v5, %v4195_v16  ;;  %v4198_v18 = vmul.f32 %v8044_v14, %v4195_v16 }
 0x46d   : > { %4137 = vrot.lane.b32.xlu2 %v4133_v21, %s5012_s10  ;;  %v4196_v27 = vmul.f32 %v8234_v45, %v4195_v16  ;;  %v4244_v21 = vrot.slane %v4238_v23, 3  ;;  %v4245_v47 = vrot.slane %v4239_v3, 3 }
 0x46e   : > { %v4185_v53 = vsel %vm538_vm6, %v4183_v12, %v4184_v24  ;;  %v4301_v12 = vmul.f32 %v8234_v45, %v4300_v20 }
 0x46f   : > { %v3849_v11 = vpop.permute.xlu2 %3848  ;;  %v4202_v32 = vrot.slane %v4196_v27, 3 }
 0x470   : > { %4135 = vrot.lane.b32.xlu1 %v4134_v26, %s5012_s10  ;;  %v3854_v49 = vadd.f32 %v3849_v11, %v3806_v13  ;;  %v4205_v13 = vrot.slane %v4198_v18, 3  ;;  %v4307_v58 = vrot.slane %v4301_v12, 4 }
 0x471   : > { %4120 = vrot.lane.b32.xlu0 %v4116_v19, %s5012_s10 }
 0x472   : > { %v3773_v52 = vpop.permute.xlu1 %3772 }
 0x473   : > { %v3778_v46 = vadd.f32 %v3773_v52, %v3715_v29  ;;  %v3754_v6 = vpop.permute.xlu0 %3753  ;;  %v4203_v29 = vrot.slane %v4197_v35, 3  ;;  %v4279_v52 = vstv %s4776_s9  ;;  %v4303_v35 = vmul.f32 %v8044_v14, %v4300_v20 }
 0x474   : > { %v3758_v25 = vadd.f32 %v3754_v6, %v3695_v8  ;;  %v4248_v6 = vsel %vm580_vm7, %v4245_v47, %v4247_v41  ;;  %v4280_v62 = vmul.f32 %v8234_v45, %v4279_v52 }
 0x475   : > { %4169 = vrot.lane.b32.xlu2 %v4168_v54, %s5012_s10  ;;  %v4206_v38 = vsel %vm580_vm7, %v4203_v29, %v4205_v13 }
 0x476   : > { %v4286_v16 = vrot.slane %v4280_v62, 4 }
 0x477   : > { %v3868_v31 = vpop.permute.xlu2 %3867 }
 0x478   : > { %4154 = vrot.lane.b32.xlu1 %v4150_v61, %s5012_s10  ;;  %v3872_v55 = vadd.f32 %v3868_v31, %v3821_v48  ;;  %v4219_v48 = vmul.f32 %v8044_v14, %v4216_v10  ;;  %v4302_v10 = vmul.f32 %v8229_v5, %v4300_v20 }
 0x479   : > { %4152 = vrot.lane.b32.xlu0 %v4151_v63, %s5012_s10 }
 0x47a   : > { %v3789_v28 = vpop.permute.xlu1 %3788  ;;  %v4226_v60 = vrot.slane %v4219_v48, 3 }
 0x47b   : > { %v3793_v51 = vadd.f32 %v3789_v28, %v3737_v37  ;;  %v3787_v4 = vpop.permute.xlu0 %3786  ;;  %v4204_v37 = vsel %vm580_vm7, %v4202_v32, %v4203_v29  ;;  %v4308_v29 = vrot.slane %v4302_v10, 4 }
 0x47c   : > { %v3792_v9 = vadd.f32 %v3787_v4, %v3736_v56  ;;  %v4258_v56 = vstv %s4775_s28 }
 0x47d   : > { %4188 = vrot.lane.b32.xlu2 %v4184_v24, %s5012_s10  ;;  %v4260_v11 = vmul.f32 %v8229_v5, %v4258_v56  ;;  %v4259_v61 = vmul.f32 %v8234_v45, %v4258_v56 }
 0x47f   : > { %v3900_v43 = vpop.permute.xlu2 %3899  ;;  %v4266_v54 = vrot.slane %v4260_v11, 4  ;;  %v4265_v4 = vrot.slane %v4259_v61, 4 }
 0x480   : > { %4186 = vrot.lane.b32.xlu1 %v4185_v53, %s5012_s10  ;;  %v3905_v19 = vadd.f32 %v3900_v43, %v3854_v49  ;;  %v4246_v49 = vsel %vm580_vm7, %v4244_v21, %v4245_v47  ;;  %v4282_v53 = vmul.f32 %v8044_v14, %v4279_v52 }
 0x481   : > { %4171 = vrot.lane.b32.xlu0 %v4167_v34, %s5012_s10  ;;  %v4281_v34 = vmul.f32 %v8229_v5, %v4279_v52  ;;  %v4267_v18 = vsel %vm632_vm8, %v4265_v4, %v4266_v54  ;;  %v4310_v5 = vrot.slane %v4303_v35, 4 }
 0x482   : > { %v3815_v57 = vpop.permute.xlu1 %3814  ;;  %v4289_v50 = vrot.slane %v4282_v53, 4 }
 0x483   : > { %v3820_v17 = vadd.f32 %v3815_v57, %v3778_v46  ;;  %v3803_v8 = vpop.permute.xlu0 %3802  ;;  %v4261_v46 = vmul.f32 %v8044_v14, %v4258_v56 }
 0x484   : > { %v3807_v7 = vadd.f32 %v3803_v8, %v3758_v25  ;;  %v4227_v25 = vsel %vm580_vm7, %v4224_v44, %v4226_v60 }
 0x485   : > { %4228 = vrot.lane.b32.xlu2 %v4225_v2, %s5012_s10  ;;  %v4268_v36 = vrot.slane %v4261_v46, 4 }
 0x487   : > { %v3919_v22 = vpop.permute.xlu2 %3918  ;;  %v4269_v24 = vsel %vm632_vm8, %v4266_v54, %v4268_v36 }
 0x488   : > { %4209 = vrot.lane.b32.xlu1 %v4206_v38, %s5012_s10  ;;  %v3923_v39 = vadd.f32 %v3919_v22, %v3872_v55 }
 0x489   : > { %4207 = vrot.lane.b32.xlu0 %v4204_v37, %s5012_s10 }
 0x48a   : > { %v3834_v33 = vpop.permute.xlu1 %3833 }
 0x48b   : > { %v3838_v30 = vadd.f32 %v3834_v33, %v3793_v51  ;;  %v3832_v26 = vpop.permute.xlu0 %3831  ;;  %v4287_v51 = vrot.slane %v4281_v34, 4 }
 0x48c   : > { %v3837_v15 = vadd.f32 %v3832_v26, %v3792_v9 }
 0x48d   : > { %4251 = vrot.lane.b32.xlu2 %v4248_v6, %s5012_s10  ;;  %v4288_v9 = vsel %vm632_vm8, %v4286_v16, %v4287_v51  ;;  %v4290_v14 = vsel %vm632_vm8, %v4287_v51, %v4289_v50 }
 0x48f   : > { %v3959_v42 = vpop.permute.xlu2 %3958 }
 0x490   : > { %4249 = vrot.lane.b32.xlu1 %v4246_v49, %s5012_s10  ;;  %v3964_v28 = vadd.f32 %v3959_v42, %v3905_v19  ;;  %v4311_v19 = vsel %vm632_vm8, %v4308_v29, %v4310_v5 }
 0x491   : > { %4230 = vrot.lane.b32.xlu0 %v4227_v25, %s5012_s10 }
 0x492   : > { %v3866_v59 = vpop.permute.xlu1 %3865 }
 0x493   : > { %v3871_v63 = vadd.f32 %v3866_v59, %v3820_v17  ;;  %v3851_v31 = vpop.permute.xlu0 %3850  ;;  %v4309_v17 = vsel %vm632_vm8, %v4307_v58, %v4308_v29 }
 0x494   : > { %v3855_v55 = vadd.f32 %v3851_v31, %v3807_v7 }
 0x495   : > { %4291 = vrot.lane.b32.xlu2 %v4288_v9, %s5012_s10 }
 0x497   : > { %v3982_v45 = vpop.permute.xlu2 %3981 }
 0x498   : > { %4272 = vrot.lane.b32.xlu1 %v4269_v24, %s5012_s10  ;;  %v3986_v57 = vadd.f32 %v3982_v45, %v3923_v39 }
 0x499   : > { %4270 = vrot.lane.b32.xlu0 %v4267_v18, %s5012_s10 }
 0x49a   : > { %v3885_v40 = vpop.permute.xlu1 %3884 }
 0x49b   : > { %v3889_v27 = vadd.f32 %v3885_v40, %v3838_v30  ;;  %v3883_v43 = vpop.permute.xlu0 %3882 }
 0x49c   : > { %v3888_v13 = vadd.f32 %v3883_v43, %v3837_v15 }
 0x49d   : > { %4314 = vrot.lane.b32.xlu2 %v4311_v19, %s5012_s10 }
 0x49f   : > { %v4022_v0 = vpop.permute.xlu2 %4021 }
 0x4a0   : > { %4312 = vrot.lane.b32.xlu1 %v4309_v17, %s5012_s10  ;;  %v4027_v7 = vadd.f32 %v4022_v0, %v3964_v28 }
 0x4a1   : > { %4293 = vrot.lane.b32.xlu0 %v4290_v14, %s5012_s10  ;;  %s4320_s10 = sld [smem:[#allocation8]] }
 0x4a2   : > { %v3917_v8 = vpop.permute.xlu1 %3916 }
 0x4a3   : > { %v3922_v44 = vadd.f32 %v3917_v8, %v3871_v63  ;;  %v3902_v32 = vpop.permute.xlu0 %3901 }
 0x4a4   : > { %v3906_v23 = vadd.f32 %v3902_v32, %v3855_v55 }
 0x4a7   : > { %v4045_v2 = vpop.permute.xlu2 %4044 }
 0x4a8   : > { %v8279_v1 = vadd.f32 %v4045_v2, %v3986_v57 }
 0x4aa   : > { %v3940_v38 = vpop.permute.xlu1 %3939 }
 0x4ab   : > { %v3944_v3 = vadd.f32 %v3940_v38, %v3889_v27  ;;  %v3938_v37 = vpop.permute.xlu0 %3937 }
 0x4ac   : > { %v3943_v48 = vadd.f32 %v3938_v37, %v3888_v13  ;;  %v4321_v13 = vstv %s4320_s10  ;;  %v4358_v37 = vstv %s8281_s12 }
 0x4af   : > { %v4071_v41 = vpop.permute.xlu2 %4070 }
 0x4b0   : > { %v4076_v29 = vadd.f32 %v4071_v41, %v4027_v7 }
 0x4b2   : > { %v3980_v33 = vpop.permute.xlu1 %3979 }
 0x4b3   : > { %v3985_v22 = vadd.f32 %v3980_v33, %v3922_v44  ;;  %v3961_v21 = vpop.permute.xlu0 %3960 }
 0x4b4   : > { %v3965_v56 = vadd.f32 %v3961_v21, %v3906_v23 }
 0x4b7   : > { %v4087_v46 = vpop.permute.xlu2 %4086 }
 0x4b8   : > { %v4091_v7 = vadd.f32 %v4087_v46, %v8279_v1  ;;  %v4394_v46 = vstv %s4793_s22 }
 0x4ba   : > { %v4003_v30 = vpop.permute.xlu1 %4002 }
 0x4bb   : > { %v4007_v39 = vadd.f32 %v4003_v30, %v3944_v3  ;;  %v4001_v26 = vpop.permute.xlu0 %4000 }
 0x4bc   : > { %v4006_v47 = vadd.f32 %v4001_v26, %v3943_v48 }
 0x4bf   : > { %v4119_v62 = vpop.permute.xlu2 %4118 }
 0x4c0   : > { %v4124_v14 = vadd.f32 %v4119_v62, %v4076_v29 }
 0x4c2   : > { %v4043_v15 = vpop.permute.xlu1 %4042 }
 0x4c3   : > { %v4048_v60 = vadd.f32 %v4043_v15, %v3985_v22  ;;  %v4024_v52 = vpop.permute.xlu0 %4023 }
 0x4c4   : > { %v4028_v11 = vadd.f32 %v4024_v52, %v3965_v56 }
 0x4c7   : > { %v4138_v54 = vpop.permute.xlu2 %4137 }
 0x4c8   : > { %v4142_v48 = vadd.f32 %v4138_v54, %v4091_v7 }
 0x4ca   : > { %v4059_v49 = vpop.permute.xlu1 %4058 }
 0x4cb   : > { %v4057_v6 = vpop.permute.xlu0 %4056  ;;  %v4063_v35 = vadd.f32 %v4059_v49, %v4007_v39 }
 0x4cc   : > { %v4062_v40 = vadd.f32 %v4057_v6, %v4006_v47 }
 0x4cf   : > { %v4170_v28 = vpop.permute.xlu2 %4169 }
 0x4d0   : > { %v4175_v32 = vadd.f32 %v4170_v28, %v4124_v14 }
 0x4d2   : > { %v4085_v34 = vpop.permute.xlu1 %4084 }
 0x4d3   : > { %v4090_v25 = vadd.f32 %v4085_v34, %v4048_v60  ;;  %v4073_v61 = vpop.permute.xlu0 %4072 }
 0x4d4   : > { %v4077_v59 = vadd.f32 %v4073_v61, %v4028_v11 }
 0x4d7   : > { %v4189_v51 = vpop.permute.xlu2 %4188 }
 0x4d8   : > { %v4193_v21 = vadd.f32 %v4189_v51, %v4142_v48 }
 0x4da   : > { %v4104_v42 = vpop.permute.xlu1 %4103 }
 0x4db   : > { %v4102_v36 = vpop.permute.xlu0 %4101  ;;  %v4108_v45 = vadd.f32 %v4104_v42, %v4063_v35 }
 0x4dc   : > { %v4107_v58 = vadd.f32 %v4102_v36, %v4062_v40 }
 0x4df   : > { %v4229_v12 = vpop.permute.xlu2 %4228 }
 0x4e0   : > { %v4234_v38 = vadd.f32 %v4229_v12, %v4175_v32 }
 0x4e2   : > { %v4136_v20 = vpop.permute.xlu1 %4135 }
 0x4e3   : > { %v4121_v63 = vpop.permute.xlu0 %4120  ;;  %v4141_v3 = vadd.f32 %v4136_v20, %v4090_v25 }
 0x4e4   : > { %v4125_v33 = vadd.f32 %v4121_v63, %v4077_v59 }
 0x4e7   : > { %v4252_v18 = vpop.permute.xlu2 %4251 }
 0x4e8   : > { %v4256_v15 = vadd.f32 %v4252_v18, %v4193_v21 }
 0x4ea   : > { %v4155_v31 = vpop.permute.xlu1 %4154 }
 0x4eb   : > { %v4153_v16 = vpop.permute.xlu0 %4152  ;;  %v4159_v27 = vadd.f32 %v4155_v31, %v4108_v45 }
 0x4ec   : > { %v4158_v57 = vadd.f32 %v4153_v16, %v4107_v58 }
 0x4ef   : > { %v4292_v0 = vpop.permute.xlu2 %4291 }
 0x4f0   : > { %v4297_v2 = vadd.f32 %v4292_v0, %v4234_v38 }
 0x4f2   : > { %v4187_v55 = vpop.permute.xlu1 %4186  ;;  %v4359_v56 = vadd.f32 %v4358_v37, %v4297_v2 }
 0x4f3   : > { %v4172_v4 = vpop.permute.xlu0 %4171  ;;  %v4192_v22 = vadd.f32 %v4187_v55, %v4141_v3 }
 0x4f4   : > { %v4176_v30 = vadd.f32 %v4172_v4, %v4125_v33  ;;  %4785 = vst.msk [vmem:[%s8302_s25 + $0x10] sm:$0xff] %vm4324_vm9, %v4359_v56 }
 0x4f7   : > { %v4315_v26 = vpop.permute.xlu2 %4314 }
 0x4f8   : > { %v4319_v52 = vadd.f32 %v4315_v26, %v4256_v15 }
 0x4fa   : > { %v4210_v24 = vpop.permute.xlu1 %4209  ;;  %v4396_v6 = vadd.f32 %v4394_v46, %v4319_v52 }
 0x4fb   : > { %v4208_v9 = vpop.permute.xlu0 %4207  ;;  %v4214_v43 = vadd.f32 %v4210_v24, %v4159_v27 }
 0x4fc   : > { %v4213_v5 = vadd.f32 %v4208_v9, %v4158_v57  ;;  %4795 = vst.msk [vmem:[%s8302_s25 + $0x28] sm:$0x3f] %vm4326_vm10, %v4396_v6 }
 0x502   : > { %v4250_v10 = vpop.permute.xlu1 %4249 }
 0x503   : > { %v4231_v53 = vpop.permute.xlu0 %4230  ;;  %v4255_v47 = vadd.f32 %v4250_v10, %v4192_v22 }
 0x504   : > { %v4235_v60 = vadd.f32 %v4231_v53, %v4176_v30 }
 0x50a   : > { %v4273_v50 = vpop.permute.xlu1 %4272 }
 0x50b   : > { %v4277_v17 = vadd.f32 %v4273_v50, %v4214_v43  ;;  %v4271_v19 = vpop.permute.xlu0 %4270 }
 0x50c   : > { %v4276_v8 = vadd.f32 %v4271_v19, %v4213_v5 }
 0x50d   : > { %v4323_v44 = vadd.f32 %v4321_v13, %v4277_v17 }
 0x50e   : > { %v4322_v23 = vadd.f32 %v4321_v13, %v4276_v8 }
 0x50f   : > { %4332 = vrot.lane.b32.xlu1 %v4323_v44, %s5013_s8  ;;  %4327 = vst.msk [vmem:[%s8302_s25 + $0x8] sm:$0x3f] %vm4326_vm10, %v4323_v44 }
 0x510   : > { %4339 = vrot.lane.b32.xlu2 %v4322_v23, %s5014_s5  ;;  %4330 = vrot.lane.b32.xlu0 %v4322_v23, %s5013_s8  ;;  %4325 = vst.msk [vmem:[%s8302_s25] sm:$0xff] %vm4324_vm9, %v4322_v23 }
 0x512   : > { %v4313_v39 = vpop.permute.xlu1 %4312 }
 0x513   : > { %v4294_v41 = vpop.permute.xlu0 %4293  ;;  %v4318_v1 = vadd.f32 %v4313_v39, %v4255_v47 }
 0x514   : > { %v4298_v11 = vadd.f32 %v4294_v41, %v4235_v60 }
 0x515   : > { %v4395_v49 = vadd.f32 %v4394_v46, %v4318_v1 }
 0x516   : > { %v4360_v62 = vadd.f32 %v4358_v37, %v4298_v11 }
 0x517   : > { %4348 = vrot.lane.b32.xlu1 %v4322_v23, %s5015_s4  ;;  %4794 = vst.msk [vmem:[%s8302_s25 + $0x20] sm:$0xff] %vm4324_vm9, %v4395_v49 }
 0x518   : > { %4366 = vrot.lane.b32.xlu2 %v4359_v56, %s5013_s8  ;;  %4341 = vrot.lane.b32.xlu0 %v4323_v44, %s5014_s5  ;;  %4786 = vst.msk [vmem:[%s8302_s25 + $0x18] sm:$0x3f] %vm4326_vm10, %v4360_v62 }
 0x51f   : > { %4402 = vrot.lane.b32.xlu1 %v4395_v49, %s5013_s8 }
 0x520   : > { %4404 = vrot.lane.b32.xlu2 %v4396_v6, %s5013_s8  ;;  %4368 = vrot.lane.b32.xlu0 %v4360_v62, %s5013_s8 }
 0x527   : > { %4377 = vrot.lane.b32.xlu1 %v4360_v62, %s5014_s5 }
 0x528   : > { %4411 = vrot.lane.b32.xlu2 %v4395_v49, %s5014_s5  ;;  %4375 = vrot.lane.b32.xlu0 %v4359_v56, %s5014_s5 }
 0x52f   : > { %4350 = vrot.lane.b32.xlu1 %v4323_v44, %s5015_s4 }
 0x530   : > { %4384 = vrot.lane.b32.xlu2 %v4359_v56, %s5015_s4  ;;  %4413 = vrot.lane.b32.xlu0 %v4396_v6, %s5014_s5 }
 0x537   : > { %4420 = vrot.lane.b32.xlu1 %v4395_v49, %s5015_s4 }
 0x538   : > { %4422 = vrot.lane.b32.xlu2 %v4396_v6, %s5015_s4  ;;  %4386 = vrot.lane.b32.xlu0 %v4360_v62, %s5015_s4 }
 0x56a   : > { %v4340_v34 = vpop.permute.xlu2 %4339 }
 0x56b   : > { %4780 = vst.msk [vmem:[%s8302_s25 + $0x60] sm:$0xff] %vm4324_vm9, %v4340_v34 }
 0x572   : > { %v4367_v25 = vpop.permute.xlu2 %4366 }
 0x573   : > { %4787 = vst.msk [vmem:[%s8302_s25 + $0x40] sm:$0xff] %vm4324_vm9, %v4367_v25 }
 0x57a   : > { %v4405_v61 = vpop.permute.xlu2 %4404 }
 0x57b   : > { %4797 = vst.msk [vmem:[%s8302_s25 + $0x58] sm:$0x3f] %vm4326_vm10, %v4405_v61 }
 0x581   : > { %v4333_v59 = vpop.permute.xlu1 %4332 }
 0x582   : > { %4779 = vst.msk [vmem:[%s8302_s25 + $0x38] sm:$0x3f] %vm4326_vm10, %v4333_v59  ;;  %v4331_v42 = vpop.permute.xlu0 %4330  ;;  %v4412_v20 = vpop.permute.xlu2 %4411 }
 0x583   : > { %4778 = vst.msk [vmem:[%s8302_s25 + $0x30] sm:$0xff] %vm4324_vm9, %v4331_v42 }
 0x584   : > { %4798 = vst.msk [vmem:[%s8302_s25 + $0x80] sm:$0xff] %vm4324_vm9, %v4412_v20 }
 0x589   : > { %v4349_v54 = vpop.permute.xlu1 %4348 }
 0x58a   : > { %4782 = vst.msk [vmem:[%s8302_s25 + $0x90] sm:$0xff] %vm4324_vm9, %v4349_v54  ;;  %v4342_v36 = vpop.permute.xlu0 %4341  ;;  %v4385_v31 = vpop.permute.xlu2 %4384 }
 0x58b   : > { %4781 = vst.msk [vmem:[%s8302_s25 + $0x68] sm:$0x3f] %vm4326_vm10, %v4342_v36 }
 0x58c   : > { %4791 = vst.msk [vmem:[%s8302_s25 + $0xa0] sm:$0xff] %vm4324_vm9, %v4385_v31 }
 0x591   : > { %v4403_v63 = vpop.permute.xlu1 %4402 }
 0x592   : > { %4796 = vst.msk [vmem:[%s8302_s25 + $0x50] sm:$0xff] %vm4324_vm9, %v4403_v63  ;;  %v4369_v28 = vpop.permute.xlu0 %4368  ;;  %v4423_v12 = vpop.permute.xlu2 %4422 }
 0x593   : > { %4788 = vst.msk [vmem:[%s8302_s25 + $0x48] sm:$0x3f] %vm4326_vm10, %v4369_v28 }
 0x594   : > { %4801 = vst.msk [vmem:[%s8302_s25 + $0xb8] sm:$0x3f] %vm4326_vm10, %v4423_v12 }
 0x599   : > { %v4378_v16 = vpop.permute.xlu1 %4377 }
 0x59a   : > { %4790 = vst.msk [vmem:[%s8302_s25 + $0x78] sm:$0x3f] %vm4326_vm10, %v4378_v16  ;;  %v4376_v51 = vpop.permute.xlu0 %4375 }
 0x59b   : > { %4789 = vst.msk [vmem:[%s8302_s25 + $0x70] sm:$0xff] %vm4324_vm9, %v4376_v51 }
 0x5a1   : > { %v4351_v55 = vpop.permute.xlu1 %4350 }
 0x5a2   : > { %4783 = vst.msk [vmem:[%s8302_s25 + $0x98] sm:$0x3f] %vm4326_vm10, %v4351_v55  ;;  %v4414_v4 = vpop.permute.xlu0 %4413 }
 0x5a3   : > { %4799 = vst.msk [vmem:[%s8302_s25 + $0x88] sm:$0x3f] %vm4326_vm10, %v4414_v4 }
 0x5a9   : > { %v4421_v24 = vpop.permute.xlu1 %4420 }
 0x5aa   : > { %4800 = vst.msk [vmem:[%s8302_s25 + $0xb0] sm:$0xff] %vm4324_vm9, %v4421_v24  ;;  %v4387_v9 = vpop.permute.xlu0 %4386 }
 0x5ab   : > { %4792 = vst.msk [vmem:[%s8302_s25 + $0xa8] sm:$0x3f] %vm4326_vm10, %v4387_v9 }
 0x5ac PF: > { %p15_p8 = scmp.ge.s32.totalorder %s5056_s17, 4   ;;  %s8911_s12 = smov %s4990_s13 }
 0x5ad   : > { %s8912_s13 = smov %s4994_s14  ;;  %s8913_s14 = smov %s5066_s20 }
 0x5ae   : > { %s8914_s15 = smov %s5056_s17  ;;  %17 = sbr.rel (!%p15_p8) target bundleno = 5 (0x5), region = 98 }
 0x5b3   :  { %4453 = vsyncpa [#allocation4], 1 }
 0x5b4   :  { %4455 = vsyncpa [#allocation4 + $0x1], 1 }
 0x5b5   :  { %4456 = vsyncpa [#allocation5], 1 }
 0x5b6   :  { %4458 = vsyncpa [#allocation5 + $0x1], 1 }
 0x5b7   :  { %4459 = vsyncpa [#allocation6], 1 }
 0x5b8   :  { %4461 = vsyncpa [#allocation6 + $0x1], 1 }

</bundles_post_ra>
